<compile_context>
chip_gen: v5e
topology: v5e:2x2
jax: 0.10.0
libtpu: 0.0.40
codegen_flags: <defaults>
</compile_context>

<pallas_src>
import numpy as np
import jax
import jax.numpy as jnp
from jax.experimental import pallas as pl
from jax.experimental.pallas import tpu as pltpu


OUT_HW = 480       # F.resize(x, (480, 480))
HIDDEN = 512
FEATURES = 2048
CHANNELS = 3


# ----------------------------------------------------------------------------
# Bilinear-resize interpolation matrices (half-pixel centers, no antialias)
# ----------------------------------------------------------------------------
def bilinear_matrix(in_size: int, out_size: int) -> np.ndarray:
    scale = in_size / out_size
    i = np.arange(out_size)
    src = (i + 0.5) * scale - 0.5
    i0 = np.floor(src).astype(np.int64)
    frac = (src - i0).astype(np.float32)
    i0c = np.clip(i0, 0, in_size - 1)
    i1c = np.clip(i0 + 1, 0, in_size - 1)
    m = np.zeros((out_size, in_size), dtype=np.float32)
    np.add.at(m, (i, i0c), 1.0 - frac)
    np.add.at(m, (i, i1c), frac)
    return m


# ----------------------------------------------------------------------------
# Fused kernel: per-channel folded embed -> height resize -> relu -> pool -> head
# Grid: (3,) over RGB channels, sequential ("arbitrary") with a VMEM accumulator.
# ----------------------------------------------------------------------------
def _fused_kernel(x_ref, w1e_ref, rh_ref, b1_ref, w2_hbm, b2_ref, o_ref,
                  t_acc, w2_buf, w2_sem):
    c = pl.program_id(0)
    last = pl.num_programs(0) - 1

    @pl.when(c == 0)
    def _():
        # Kick off the single largest DMA (W2, 2 MB bf16) so it overlaps the
        # 3-step channel embed; it is only consumed by the head matmul.
        pltpu.make_async_copy(w2_hbm, w2_buf, w2_sem).start()
        t_acc[...] = jnp.zeros_like(t_acc)

    # Folded per-channel embed: [H, W] bf16 @ [W, HIDDEN] bf16 -> [H, HIDDEN] f32.
    t_acc[...] = t_acc[...] + jnp.dot(
        x_ref[0].astype(jnp.bfloat16), w1e_ref[0],
        preferred_element_type=jnp.float32)

    @pl.when(c == last)
    def _():
        # Height resize folded into the row embed: [480, H] @ [H, HIDDEN].
        h = jnp.dot(rh_ref[...], t_acc[...],
                    preferred_element_type=jnp.float32)
        h = jnp.maximum(h + b1_ref[...], 0.0)                  # [480, HIDDEN]

        # Mean-pool over the 480 rows on the VPU (no M=1 MXU matmul).
        pooled = jnp.mean(h, axis=0, keepdims=True)            # [1, HIDDEN]

        # Only now wait for W2 (copy has been in flight since step 0).
        pltpu.make_async_copy(w2_hbm, w2_buf, w2_sem).wait()
        o_ref[...] = (jnp.dot(pooled.astype(jnp.bfloat16), w2_buf[...],
                              preferred_element_type=jnp.float32)
                      + b2_ref[...])


def fused_forward_pallas(x_chw, params):
    C, H, W = x_chw.shape
    return pl.pallas_call(
        _fused_kernel,
        out_shape=jax.ShapeDtypeStruct((1, FEATURES), jnp.float32),
        grid=(C,),
        in_specs=[
            pl.BlockSpec((1, H, W), lambda c: (c, 0, 0)),            # x channel
            pl.BlockSpec((1, W, HIDDEN), lambda c: (c, 0, 0)),       # W1_eff chan (bf16)
            pl.BlockSpec((OUT_HW, H), lambda c: (0, 0)),             # Rh
            pl.BlockSpec((1, HIDDEN), lambda c: (0, 0)),             # b1
            pl.BlockSpec(memory_space=pl.ANY),                       # W2 (manual DMA)
            pl.BlockSpec((1, FEATURES), lambda c: (0, 0)),           # b2
        ],
        out_specs=pl.BlockSpec((1, FEATURES), lambda c: (0, 0)),
        scratch_shapes=[
            pltpu.VMEM((H, HIDDEN), jnp.float32),           # channel-sum accumulator
            pltpu.VMEM((HIDDEN, FEATURES), jnp.bfloat16),   # W2 landing buffer
            pltpu.SemaphoreType.DMA,                        # W2 DMA semaphore
        ],
        compiler_params=pltpu.CompilerParams(
            dimension_semantics=("arbitrary",),
            vmem_limit_bytes=32 * 1024 * 1024),
    )(x_chw, params["w1_eff"], params["rh"], params["b1"],
      params["w2"], params["b2"])


# ----------------------------------------------------------------------------
# Parameters + full forward
# ----------------------------------------------------------------------------
def init_params(key, in_h, in_w):
    k1, k2, k3, k4 = jax.random.split(key, 4)
    rh = jnp.asarray(bilinear_matrix(in_h, OUT_HW))            # [480, H] f32
    rwt = jnp.asarray(bilinear_matrix(in_w, OUT_HW).T)         # [W, 480] f32
    w1 = (jax.random.normal(k1, (CHANNELS, OUT_HW, HIDDEN), jnp.float32)
          * (1.0 / np.sqrt(CHANNELS * OUT_HW)))
    # Fold the width-resize matrix into the embed weights (exact: linear).
    w1_eff = jnp.einsum("wk,ckh->cwh", rwt, w1).astype(jnp.bfloat16)  # [3, W, HIDDEN]
    return {
        "rh": rh,
        "w1_eff": w1_eff,
        "b1": jax.random.normal(k2, (1, HIDDEN), jnp.float32) * 0.01,
        "w2": (jax.random.normal(k3, (HIDDEN, FEATURES), jnp.float32)
               * (1.0 / np.sqrt(HIDDEN))).astype(jnp.bfloat16),
        "b2": jax.random.normal(k4, (1, FEATURES), jnp.float32) * 0.01,
    }


def network_forward(x, params):
    # x: [N=1, C=3, H, W]  (NCHW, like the PyTorch module)
    x_chw = x[0].astype(jnp.float32)                   # [3, H, W]
    out = fused_forward_pallas(x_chw, params)          # [1, 2048]
    return out.reshape(1, FEATURES)                    # .view(1, 2048)


def reference_forward(x, params):
    # Pure-JAX reference of the same (folded) math, for a loose tolerance check.
    x_chw = x[0].astype(jnp.float32)
    w1e = params["w1_eff"].astype(jnp.float32)
    t = jnp.einsum("chw,cwk->hk", x_chw, w1e)                          # [H, HIDDEN]
    h = jnp.maximum(params["rh"] @ t + params["b1"], 0.0)              # [480, HIDDEN]
    pooled = jnp.mean(h, axis=0, keepdims=True)                        # [1, HIDDEN]
    return pooled @ params["w2"].astype(jnp.float32) + params["b2"]    # [1, 2048]


if __name__ == "__main__":
    key = jax.random.PRNGKey(0)
    kx, kp = jax.random.split(key)

    N, C, H, W = 1, 3, 64, 64
    x = jax.random.normal(kx, (N, C, H, W), dtype=jnp.float32)

    params = init_params(kp, H, W)

    out = jax.block_until_ready(network_forward(x, params))

    assert out.shape == (1, FEATURES), out.shape
    assert out.dtype == jnp.float32
    assert bool(jnp.all(jnp.isfinite(out)))

    ref = jax.block_until_ready(reference_forward(x, params))
    np.testing.assert_allclose(np.asarray(out), np.asarray(ref),
                               rtol=0.05, atol=0.05)

    print("KERNEL_OK")
</pallas_src>

<mosaic_0001>
module attributes {stable_mosaic.version = 11 : i64} {
  func.func @_fused_kernel(%arg0: i32, %arg1: memref<1x64x64xf32, #tpu.memory_space<vmem>>, %arg2: memref<1x64x512xbf16, #tpu.memory_space<vmem>>, %arg3: memref<480x64xf32, #tpu.memory_space<vmem>>, %arg4: memref<1x512xf32, #tpu.memory_space<vmem>>, %arg5: memref<512x2048xbf16, #tpu.memory_space<any>>, %arg6: memref<1x2048xf32, #tpu.memory_space<vmem>>, %arg7: memref<1x2048xf32, #tpu.memory_space<vmem>>, %arg8: memref<64x512xf32, #tpu.memory_space<vmem>>, %arg9: memref<512x2048xbf16, #tpu.memory_space<vmem>>, %arg10: memref<!tpu.dma_semaphore, #tpu.memory_space<semaphore_mem>>) attributes {dimension_semantics = [#tpu.dimension_semantics<arbitrary>], iteration_bounds = array<i64: 3>, scalar_prefetch = 0 : i64, scratch_operands = 3 : i64, tpu.core_type = #tpu.core_type<tc>, window_params = [{transform_indices = @transform_0, window_bounds = array<i64: 1, 64, 64>}, {transform_indices = @transform_1, window_bounds = array<i64: 1, 64, 512>}, {pipeline_mode = #tpu.pipeline_mode<synchronous>, transform_indices = @transform_2, window_bounds = array<i64: 480, 64>}, {pipeline_mode = #tpu.pipeline_mode<synchronous>, transform_indices = @transform_3, window_bounds = array<i64: 1, 512>}, {}, {pipeline_mode = #tpu.pipeline_mode<synchronous>, transform_indices = @transform_5, window_bounds = array<i64: 1, 2048>}, {pipeline_mode = #tpu.pipeline_mode<synchronous>, transform_indices = @transform_6, window_bounds = array<i64: 1, 2048>}]} {
    %c0_i32 = arith.constant 0 : i32
    %0 = arith.cmpi eq, %arg0, %c0_i32 : i32
    %1 = arith.extui %0 : i1 to i32
    %c0_i32_0 = arith.constant 0 : i32
    %2 = arith.cmpi ne, %1, %c0_i32_0 : i32
    scf.if %2 {
      tpu.enqueue_dma source(%arg5 : memref<512x2048xbf16, #tpu.memory_space<any>>) target(%arg9 : memref<512x2048xbf16, #tpu.memory_space<vmem>>) target_semaphore(%arg10 : memref<!tpu.dma_semaphore, #tpu.memory_space<semaphore_mem>>)
      %cst_11 = arith.constant 0.000000e+00 : f32
      %15 = vector.broadcast %cst_11 : f32 to vector<64x512xf32>
      %c0_12 = arith.constant 0 : index
      %c0_13 = arith.constant 0 : index
      %16 = vector.load %arg8[%c0_12, %c0_13] : memref<64x512xf32, #tpu.memory_space<vmem>>, vector<64x512xf32>
      tpu.vector_store %arg8[%c0_12, %c0_13], %15 {strides = array<i32>} : memref<64x512xf32, #tpu.memory_space<vmem>>, vector<64x512xf32>,
    } else {
    }
    %c0 = arith.constant 0 : index
    %c0_1 = arith.constant 0 : index
    %3 = vector.load %arg8[%c0, %c0_1] : memref<64x512xf32, #tpu.memory_space<vmem>>, vector<64x512xf32>
    %c0_2 = arith.constant 0 : index
    %c0_3 = arith.constant 0 : index
    %c0_4 = arith.constant 0 : index
    %4 = vector.load %arg1[%c0_2, %c0_3, %c0_4] : memref<1x64x64xf32, #tpu.memory_space<vmem>>, vector<1x64x64xf32>
    %5 = vector.shape_cast %4 : vector<1x64x64xf32> to vector<64x64xf32>
    %6 = arith.truncf %5 : vector<64x64xf32> to vector<64x64xbf16>
    %c0_5 = arith.constant 0 : index
    %c0_6 = arith.constant 0 : index
    %c0_7 = arith.constant 0 : index
    %7 = vector.load %arg2[%c0_5, %c0_6, %c0_7] : memref<1x64x512xbf16, #tpu.memory_space<vmem>>, vector<1x64x512xbf16>
    %8 = vector.shape_cast %7 : vector<1x64x512xbf16> to vector<64x512xbf16>
    %cst = arith.constant dense<0.000000e+00> : vector<64x512xf32>
    %9 = tpu.matmul %6, %8, %cst {dimension_numbers = #tpu.dot_dimension_numbers<[1], [0], [0], [1], [0, 0, 1, 1], [], []>} : vector<64x64xbf16>, vector<64x512xbf16>, vector<64x512xf32> -> vector<64x512xf32>
    %10 = arith.addf %3, %9 : vector<64x512xf32>
    %c0_8 = arith.constant 0 : index
    %c0_9 = arith.constant 0 : index
    %11 = vector.load %arg8[%c0_8, %c0_9] : memref<64x512xf32, #tpu.memory_space<vmem>>, vector<64x512xf32>
    tpu.vector_store %arg8[%c0_8, %c0_9], %10 {strides = array<i32>} : memref<64x512xf32, #tpu.memory_space<vmem>>, vector<64x512xf32>,
    %c2_i32 = arith.constant 2 : i32
    %12 = arith.cmpi eq, %arg0, %c2_i32 : i32
    %13 = arith.extui %12 : i1 to i32
    %c0_i32_10 = arith.constant 0 : i32
    %14 = arith.cmpi ne, %13, %c0_i32_10 : i32
    scf.if %14 {
      %c0_11 = arith.constant 0 : index
      %c0_12 = arith.constant 0 : index
      %15 = vector.load %arg3[%c0_11, %c0_12] : memref<480x64xf32, #tpu.memory_space<vmem>>, vector<480x64xf32>
      %c0_13 = arith.constant 0 : index
      %c0_14 = arith.constant 0 : index
      %16 = vector.load %arg8[%c0_13, %c0_14] : memref<64x512xf32, #tpu.memory_space<vmem>>, vector<64x512xf32>
      %cst_15 = arith.constant dense<0.000000e+00> : vector<480x512xf32>
      %17 = tpu.matmul %15, %16, %cst_15 {dimension_numbers = #tpu.dot_dimension_numbers<[1], [0], [0], [1], [0, 0, 1, 1], [], []>} : vector<480x64xf32>, vector<64x512xf32>, vector<480x512xf32> -> vector<480x512xf32>
      %c0_16 = arith.constant 0 : index
      %c0_17 = arith.constant 0 : index
      %18 = vector.load %arg4[%c0_16, %c0_17] : memref<1x512xf32, #tpu.memory_space<vmem>>, vector<1x512xf32>
      %19 = vector.broadcast %18 : vector<1x512xf32> to vector<480x512xf32>
      %20 = arith.addf %17, %19 : vector<480x512xf32>
      %cst_18 = arith.constant 0.000000e+00 : f32
      %21 = vector.broadcast %cst_18 : f32 to vector<480x512xf32>
      %22 = arith.maximumf %20, %21 : vector<480x512xf32>
      %cst_19 = arith.constant dense<0.000000e+00> : vector<512xf32>
      %23 = vector.multi_reduction <add>, %22, %cst_19 [0] : vector<480x512xf32> to vector<512xf32>
      %24 = vector.shape_cast %23 : vector<512xf32> to vector<1x512xf32>
      %cst_20 = arith.constant 4.800000e+02 : f32
      %25 = vector.broadcast %cst_20 : f32 to vector<1x512xf32>
      %26 = arith.divf %24, %25 : vector<1x512xf32>
      tpu.wait_dma2 semaphore(%arg10 : memref<!tpu.dma_semaphore, #tpu.memory_space<semaphore_mem>>) src(%arg5 : memref<512x2048xbf16, #tpu.memory_space<any>>) dst(%arg9 : memref<512x2048xbf16, #tpu.memory_space<vmem>>)
      %27 = arith.truncf %26 : vector<1x512xf32> to vector<1x512xbf16>
      %c0_21 = arith.constant 0 : index
      %c0_22 = arith.constant 0 : index
      %28 = vector.load %arg9[%c0_21, %c0_22] : memref<512x2048xbf16, #tpu.memory_space<vmem>>, vector<512x2048xbf16>
      %cst_23 = arith.constant dense<0.000000e+00> : vector<1x2048xf32>
      %29 = tpu.matmul %27, %28, %cst_23 {dimension_numbers = #tpu.dot_dimension_numbers<[1], [0], [0], [1], [0, 0, 1, 1], [], []>} : vector<1x512xbf16>, vector<512x2048xbf16>, vector<1x2048xf32> -> vector<1x2048xf32>
      %c0_24 = arith.constant 0 : index
      %c0_25 = arith.constant 0 : index
      %30 = vector.load %arg6[%c0_24, %c0_25] : memref<1x2048xf32, #tpu.memory_space<vmem>>, vector<1x2048xf32>
      %31 = arith.addf %29, %30 : vector<1x2048xf32>
      %c0_26 = arith.constant 0 : index
      %c0_27 = arith.constant 0 : index
      %32 = vector.load %arg7[%c0_26, %c0_27] : memref<1x2048xf32, #tpu.memory_space<vmem>>, vector<1x2048xf32>
      tpu.vector_store %arg7[%c0_26, %c0_27], %31 {strides = array<i32>} : memref<1x2048xf32, #tpu.memory_space<vmem>>, vector<1x2048xf32>,
    } else {
    }
    return
  }
  func.func @transform_0(%arg0: i32) -> (i32, i32, i32) {
    %c0_i32 = arith.constant 0 : i32
    %c0_i32_0 = arith.constant 0 : i32
    %c0_i32_1 = arith.constant 0 : i32
    return %arg0, %c0_i32, %c0_i32_0 : i32, i32, i32
  }
  func.func @transform_1(%arg0: i32) -> (i32, i32, i32) {
    %c0_i32 = arith.constant 0 : i32
    %c0_i32_0 = arith.constant 0 : i32
    %c0_i32_1 = arith.constant 0 : i32
    return %arg0, %c0_i32, %c0_i32_0 : i32, i32, i32
  }
  func.func @transform_2(%arg0: i32) -> (i32, i32) {
    %c0_i32 = arith.constant 0 : i32
    %c0_i32_0 = arith.constant 0 : i32
    %c0_i32_1 = arith.constant 0 : i32
    return %c0_i32, %c0_i32_0 : i32, i32
  }
  func.func @transform_3(%arg0: i32) -> (i32, i32) {
    %c0_i32 = arith.constant 0 : i32
    %c0_i32_0 = arith.constant 0 : i32
    %c0_i32_1 = arith.constant 0 : i32
    return %c0_i32, %c0_i32_0 : i32, i32
  }
  func.func @transform_5(%arg0: i32) -> (i32, i32) {
    %c0_i32 = arith.constant 0 : i32
    %c0_i32_0 = arith.constant 0 : i32
    %c0_i32_1 = arith.constant 0 : i32
    return %c0_i32, %c0_i32_0 : i32, i32
  }
  func.func @transform_6(%arg0: i32) -> (i32, i32) {
    %c0_i32 = arith.constant 0 : i32
    %c0_i32_0 = arith.constant 0 : i32
    %c0_i32_1 = arith.constant 0 : i32
    return %c0_i32, %c0_i32_0 : i32, i32
  }
}

</mosaic_0001>

<bundles_post_ra>
// kernel: tpu_custom_call.1
= control target key start
LH: loop header
LB: loop body
LE: loop exit
PB: predicated region body
PF: predicated region fallthrough
CT: control target
= control target key end

     0   :  { %s10952_s0 = inlined_call_operand.hbm [shape: f32[3,64,64], index: 0, kind: input, shape index: {}]   ;;  %s10953_s1 = inlined_call_operand.hbm [shape: bf16[3,64,512], index: 1, kind: input, shape index: {}]   ;;  %s10954_s2 = inlined_call_operand.vmem [shape: f32[480,64], index: 2, kind: input, shape index: {}]   ;;  %s10955_s3 = inlined_call_operand.hbm [shape: f32[1,512], index: 3, kind: input, shape index: {}]   ;;  %s10956_s4 = inlined_call_operand.hbm [shape: bf16[512,2048], index: 4, kind: input, shape index: {}]   ;;  %s10957_s5 = inlined_call_operand.hbm [shape: f32[1,2048], index: 5, kind: input, shape index: {}]   ;;  %s10958_s6 = inlined_call_operand.hbm [shape: f32[1,2048], index: 6, kind: output, shape index: {}]  }
   0x1   :  { %10959 = sst [smem:[#allocation36_spill]] %s10952_s0 }
   0x2   :  { %10960 = sst [smem:[#allocation37_spill]] %s10955_s3 }
   0x3   :  { %10961 = sst [smem:[#allocation38_spill]] %s10957_s5 }
   0x4   :  { %11 = vsyncpa [#allocation6], 0 }
   0x5   :  { %13 = vsyncpa [#allocation6 + $0x1], 0 }
   0x6   :  { %14 = vsyncpa [#allocation9], 0 }
   0x7   :  { %16 = vsyncpa [#allocation9 + $0x1], 0 }
   0x8   :  { %17 = vsyncpa [#allocation12], 0 }
   0x9   :  { %18 = vsyncpa [#allocation7], 0  ;;  %s9657_s21 = smov 0   ;;  %s9659_s22 = smov 0  }
   0xa   :  { %s9661_s23 = smov 0   ;;  %s9663_s24 = smov 0  }
   0xb LB: > { %s9676_s25 = sadd.s32 4294967295, %s9610_s24   ;;  %s9679_s26 = sadd.s32 1, %s9610_s24   ;;  %s9610_s24 = sphi %s9663_s24, %s10996_s24   ;;  %s9606_s23 = sphi %s9661_s23, %s10995_s23   ;;  %s9602_s22 = sphi %s9659_s22, %s10994_s22   ;;  %s9598_s21 = sphi %s9657_s21, %s10993_s21  }
   0xc   : > { %s28_s27 = ssub.s32 %s9610_s24, %s9679_s26  ;;  %s31_s28 = sadd.s32 1, %s9606_s23 }
   0xd   : > { %p29_p0 = scmp.eq.s32.totalorder %s28_s27, 0  ;;  %p38_p1 = scmp.ne.s32.totalorder %s9606_s23, %s9602_s22 }
   0xe   : > { %p39_p2 = scmp.eq.s32.totalorder %s9610_s24, 0  ;;  %p44_p3 = scmp.ne.s32.totalorder %s9602_s22, %s9598_s21 }
   0xf   : > { %s9689_s29 = scalar_select %p29_p0, %s9606_s23, %s31_s28  }
  0x10   : > { %p9691_p4 = por %p39_p2, %p38_p1  ;;  %p45_p5 = scmp.eq.s32.totalorder %s9676_s25, 0 }
  0x11   : > { %p6384_p6 = scmp.ge.s32.totalorder %s9610_s24, 1  ;;  %p165_p7 = scmp.lt.s32.totalorder %s9610_s24, 4 }
  0x12   : > { %p9700_p8 = por %p45_p5, %p44_p3  ;;  %p6385_p9 = scmp.ne.s32.totalorder %s9676_s25, 0 }
  0x13   : > { %p9705_p10 = pnand %p6384_p6, %p165_p7  ;;  %s10965_s3 = sld [smem:[#allocation37_spill]] }
  0x14   : > { %s9612_s12 = smov [#allocation10]   ;;  %p9336_p13 = scmp.lt.s32.totalorder %s9610_s24, 3 }
  0x15   : > { %p9320_p11 = pneg %p9705_p10  ;;  %s182_s13 = sshll.u32 %s9612_s12, 4  ;;  %s183_s13 = int_to_ptr.vmem [resolvable:$true] %s182_s13 }
  0x16   : > { %s10966_s5 = sld [smem:[#allocation38_spill]]  ;;  %p9722_p0 = pnand %p9336_p13, %p9691_p4 }
  0x17   : > { %p9321_p12 = pnand %p9320_p11, %p45_p5  ;;  %s9613_s18 = smov [#allocation11]  }
  0x18   : > { %s194_s19 = sshll.u32 %s9613_s18, 4  ;;  %s9727_s20 = sand.u32 1, %s9606_s23   ;;  %s195_s19 = int_to_ptr.vmem [resolvable:$true] %s194_s19 }
  0x19   : > { %s180_s11 = sshll.u32 %s10965_s3, 4  ;;  %s6388_s21 = sshll.u32 %s9727_s20, 6  ;;  %s181_s11 = int_to_ptr.hbm [resolvable:$true] %s180_s11 }
  0x1a   : > { %9323 = dma.hbm_to_vmem [thread:$0]  (!%p9321_p12), %s181_s11, 64, %s183_s13, [#allocation9]  }
  0x1b   : > { %s8774_s27 = sshll.u32 %s9610_s24, 6  ;;  %s10968_s0 = sld [smem:[#allocation36_spill]] }
  0x1c   : > { %s192_s16 = sshll.u32 %s10966_s5, 4  ;;  %s209_s12 = scalar_lea.vmem [#allocation5], %s6388_s21  ;;  %s193_s16 = int_to_ptr.hbm [resolvable:$true] %s192_s16 }
  0x1d   : > { %9326 = dma.hbm_to_vmem [thread:$0]  (!%p9321_p12), %s193_s16, 256, %s195_s19, [#allocation12]  }
  0x1e   : > { %s217_s11 = sshll.u32 %s209_s12, 4  ;;  %s206_s13 = scalar_lea.sflag [#allocation6], %s9727_s20  ;;  %s218_s11 = int_to_ptr.vmem [resolvable:$true] %s217_s11 }
  0x1f   : > { %p9450_p2 = pneg %p9722_p0 }
  0x21   : > { %s214_s9 = scalar_lea.hbm %s10968_s0, %s8774_s27  ;;  %s9453_s19 = scalar_lea.hbm %s10968_s0, 192 }
  0x22   : > { %s215_s10 = sshll.u32 %s214_s9, 4  ;;  %s216_s10 = int_to_ptr.hbm [resolvable:$true] %s215_s10 }
  0x23   : > { %s9446_s14 = sshra.s32 %s216_s10, 4  ;;  %s9447_s14 = int_to_ptr.hbm [resolvable:$true] %s9446_s14 }
  0x24   : > { %s9448_s15 = scalar_lea.hbm %s9447_s14, 64  ;;  %p9454_p6 = scmp.lt.s32.totalorder %s9447_s14, %s10968_s0 }
  0x25   : > { %p9449_p1 = scmp.ne.s32.totalorder %s9447_s14, %s9448_s15  ;;  %p9455_p7 = scmp.lt.s32.totalorder %s9453_s19, %s9448_s15 }
  0x27   : > { %p9451_p3 = pnand %p9450_p2, %p9449_p1  ;;  %p9456_p11 = por %p9455_p7, %p9454_p6 }
  0x29   : > { %p9452_p4 = pneg %p9451_p3 }
  0x2b   : > { %p9457_p12 = pnand %p9456_p11, %p9452_p4 }
  0x2d   : > { %9460 = shalt.err (!%p9457_p12)
}
  0x2e   : > { %s9614_s28 = smov 128   ;;  %s9615_s30 = smov 8  }
  0x2f   : > { %9330 = dma.hbm_to_vmem [thread:$0]  (!%p9722_p0), %s216_s10, 1024, %s218_s11, %s206_s13, %s9614_s28, %s9614_s28, %s9615_s30  }
  0x30   : > { %s227_s9 = sand.u32 1, %s9610_s24   ;;  %s6391_s12 = sshll.u32 %s9727_s20, 7 }
  0x31   : > { %s8775_s16 = sshll.u32 %s9610_s24, 7  ;;  %s231_s18 = scalar_lea.vmem [#allocation8], %s6391_s12 }
  0x32   : > { %s239_s3 = sshll.u32 %s231_s18, 4  ;;  %s236_s15 = scalar_lea.hbm %s10953_s1, %s8775_s16  ;;  %s240_s3 = int_to_ptr.vmem [resolvable:$true] %s239_s3 }
  0x33   : > { %s237_s19 = sshll.u32 %s236_s15, 4  ;;  %s228_s21 = scalar_lea.sflag [#allocation9], %s227_s9  ;;  %s238_s19 = int_to_ptr.hbm [resolvable:$true] %s237_s19 }
  0x34   : > { %s9476_s0 = sshra.s32 %s238_s19, 4  ;;  %s9483_s10 = scalar_lea.hbm %s10953_s1, 384  ;;  %s9477_s0 = int_to_ptr.hbm [resolvable:$true] %s9476_s0 }
  0x35   : > { %s9478_s5 = scalar_lea.hbm %s9477_s0, 128  ;;  %p9484_p4 = scmp.lt.s32.totalorder %s9477_s0, %s10953_s1 }
  0x36   : > { %p9479_p13 = scmp.ne.s32.totalorder %s9477_s0, %s9478_s5  ;;  %p9485_p6 = scmp.lt.s32.totalorder %s9483_s10, %s9478_s5 }
  0x38   : > { %p9481_p1 = pnand %p9479_p13, %p9450_p2  ;;  %p9486_p7 = por %p9485_p6, %p9484_p4 }
  0x3a   : > { %p9482_p3 = pneg %p9481_p1 }
  0x3c   : > { %p9487_p11 = pnand %p9486_p7, %p9482_p3 }
  0x3e   : > { %9490 = shalt.err (!%p9487_p11)
}
  0x3f   : > { %s9616_s28 = smov 256   ;;  %s9617_s30 = smov 16  }
  0x40   : > { %9333 = dma.hbm_to_vmem [thread:$0]  (!%p9722_p0), %s238_s19, 2048, %s240_s3, %s228_s21, %s9616_s28, %s9616_s28, %s9617_s30  }
  0x41   : > { %251 = sbr.rel (%p9705_p10) target bundleno = 1685 (0x695), region = 40  ;;  %s253_s9 = sand.u32 (!%p9705_p10), 1, %s9602_s22  }
  0x42   : > { %s6395_s12 = sshll.u32 (!%p9705_p10), %s253_s9, 6  ;;  %s254_s16 = scalar_lea.sflag (!%p9705_p10), [#allocation6], %s253_s9 }
  0x43   : > { %s9768_s18 = scalar_lea.vmem (!%p9705_p10), [#allocation5], %s6395_s12 }
  0x46   : > { %9575 = dma.done.wait (%p9700_p8), %s254_s16, 1024  }
  0x47   : > { %9577 = vsyncadd (%p9700_p8), %s254_s16, 4294966272  ;;  %s263_s0 = sand.u32 1, %s9676_s25   ;;  %s6396_s5 = sshll.u32 %s253_s9, 7 }
  0x48   : > { %s264_s3 = scalar_lea.sflag [#allocation9], %s263_s0  ;;  %s9775_s17 = scalar_lea.vmem [#allocation8], %s6396_s5 }
  0x49   : > { %9579 = dma.done.wait (%p9700_p8), %s264_s3, 2048  }
  0x4a   : > { %9581 = vsyncadd (%p9700_p8), %s264_s3, 4294965248 }
  0x4b   : > { %9583 = dma.done.wait (%p45_p5), [#allocation9], 64  }
  0x4c   : > { %9585 = vsyncadd (%p45_p5), [#allocation9], 4294967232 }
  0x4d   : > { %9587 = dma.done.wait (%p45_p5), [#allocation12], 256  }
  0x4e   : > { %9589 = vsyncadd (%p45_p5), [#allocation12], 4294967040  ;;  %309 = sbr.rel (%p6385_p9) target bundleno = 116 (0x74), region = 60  ;;  %s317_s7 = sshll.u32 (!%p6385_p9), %s10956_s4, 4  ;;  %s318_s7 = int_to_ptr.hbm [resolvable:$true] %s317_s7 }
  0x4f   : > { %s9618_s14 = smov (!%p6385_p9), [#allocation3]  }
  0x50   : > { %s319_s15 = sshll.u32 (!%p6385_p9), %s9618_s14, 4  ;;  %s320_s15 = int_to_ptr.vmem [resolvable:$true] %s319_s15 }
  0x51   : > { %322 = dma.hbm_to_vmem [thread:$0]  (!%p6385_p9), %s318_s7, 65536, %s320_s15, [#allocation4] }
  0x53   : > { %v9619_v0 = vmov 0.0  }
  0x54   : > { %323 = vst [vmem:[#allocation2 + $0xb0] sm:$0xff] %v9619_v0 }
  0x55   : > { %324 = vst [vmem:[#allocation2] sm:$0xff] %v9619_v0 }
  0x56   : > { %325 = vst [vmem:[#allocation2 + $0xd8] sm:$0xff] %v9619_v0 }
  0x57   : > { %326 = vst [vmem:[#allocation2 + $0x18] sm:$0xff] %v9619_v0 }
  0x58   : > { %327 = vst [vmem:[#allocation2 + $0x50] sm:$0xff] %v9619_v0 }
  0x59   : > { %328 = vst [vmem:[#allocation2 + $0x68] sm:$0xff] %v9619_v0 }
  0x5a   : > { %329 = vst [vmem:[#allocation2 + $0x30] sm:$0xff] %v9619_v0 }
  0x5b   : > { %330 = vst [vmem:[#allocation2 + $0x48] sm:$0xff] %v9619_v0 }
  0x5c   : > { %331 = vst [vmem:[#allocation2 + $0x80] sm:$0xff] %v9619_v0 }
  0x5d   : > { %332 = vst [vmem:[#allocation2 + $0x88] sm:$0xff] %v9619_v0 }
  0x5e   : > { %333 = vst [vmem:[#allocation2 + $0xe8] sm:$0xff] %v9619_v0 }
  0x5f   : > { %334 = vst [vmem:[#allocation2 + $0xb8] sm:$0xff] %v9619_v0 }
  0x60   : > { %335 = vst [vmem:[#allocation2 + $0x60] sm:$0xff] %v9619_v0 }
  0x61   : > { %336 = vst [vmem:[#allocation2 + $0xf0] sm:$0xff] %v9619_v0 }
  0x62   : > { %337 = vst [vmem:[#allocation2 + $0x8] sm:$0xff] %v9619_v0 }
  0x63   : > { %338 = vst [vmem:[#allocation2 + $0x78] sm:$0xff] %v9619_v0 }
  0x64   : > { %339 = vst [vmem:[#allocation2 + $0x38] sm:$0xff] %v9619_v0 }
  0x65   : > { %340 = vst [vmem:[#allocation2 + $0x58] sm:$0xff] %v9619_v0 }
  0x66   : > { %341 = vst [vmem:[#allocation2 + $0x40] sm:$0xff] %v9619_v0 }
  0x67   : > { %342 = vst [vmem:[#allocation2 + $0xc8] sm:$0xff] %v9619_v0 }
  0x68   : > { %343 = vst [vmem:[#allocation2 + $0xe0] sm:$0xff] %v9619_v0 }
  0x69   : > { %344 = vst [vmem:[#allocation2 + $0x90] sm:$0xff] %v9619_v0 }
  0x6a   : > { %345 = vst [vmem:[#allocation2 + $0x70] sm:$0xff] %v9619_v0 }
  0x6b   : > { %346 = vst [vmem:[#allocation2 + $0xc0] sm:$0xff] %v9619_v0 }
  0x6c   : > { %347 = vst [vmem:[#allocation2 + $0xa8] sm:$0xff] %v9619_v0 }
  0x6d   : > { %348 = vst [vmem:[#allocation2 + $0xd0] sm:$0xff] %v9619_v0 }
  0x6e   : > { %349 = vst [vmem:[#allocation2 + $0x10] sm:$0xff] %v9619_v0 }
  0x6f   : > { %350 = vst [vmem:[#allocation2 + $0x28] sm:$0xff] %v9619_v0 }
  0x70   : > { %351 = vst [vmem:[#allocation2 + $0xa0] sm:$0xff] %v9619_v0 }
  0x71   : > { %352 = vst [vmem:[#allocation2 + $0xf8] sm:$0xff] %v9619_v0 }
  0x72   : > { %353 = vst [vmem:[#allocation2 + $0x20] sm:$0xff] %v9619_v0 }
  0x73   : > { %354 = vst [vmem:[#allocation2 + $0x98] sm:$0xff] %v9619_v0 }
  0x74 PF: > { %v6450_v1 = vld [vmem:[%s9775_s17 + $0x60] sm:$0xf]  ;;  %v8790_v2 = vld [vmem:[%s9775_s17 + $0x6c] sm:$0xf0]  ;;  %v8788_v3 = vld [vmem:[%s9775_s17 + $0x64] sm:$0xf] }
  0x75   : > { %v6451_v4 = vor.u32 %v8790_v2, %v6450_v1  ;;  %v6452_v5 = vld [vmem:[%s9775_s17 + $0x70] sm:$0xf0]  ;;  %v6458_v6 = vld [vmem:[%s9775_s17 + $0x68] sm:$0xf]  ;;  %v8791_v7 = vld [vmem:[%s9775_s17 + $0x74] sm:$0xf0] }
  0x76   : > { %v6455_v8 = vor.u32 %v8788_v3, %v6452_v5  ;;  %v6459_v9 = vor.u32 %v8791_v7, %v6458_v6  ;;  %v8789_v10 = vld [vmem:[%s9775_s17 + $0x6c] sm:$0xf]  ;;  %v6460_v11 = vld [vmem:[%s9775_s17 + $0x78] sm:$0xf0]  ;;  %v6434_v12 = vld [vmem:[%s9775_s17 + $0x40] sm:$0xf] }
  0x77   : > { %512 = vmatpush.bf16.msra.mxu0 %v6451_v4  ;;  %v6463_v13 = vor.u32 %v8789_v10, %v6460_v11  ;;  %v8786_v14 = vld [vmem:[%s9775_s17 + $0x4c] sm:$0xf0]  ;;  %v8784_v15 = vld [vmem:[%s9775_s17 + $0x44] sm:$0xf]  ;;  %v6436_v16 = vld [vmem:[%s9775_s17 + $0x50] sm:$0xf0] }
  0x78   : > { %541 = vmatpush.bf16.msra.mxu1 %v6455_v8  ;;  %570 = vmatpush.bf16.msra.mxu2 %v6459_v9  ;;  %v6435_v17 = vor.u32 %v8786_v14, %v6434_v12  ;;  %v6439_v18 = vor.u32 %v8784_v15, %v6436_v16  ;;  %v6442_v19 = vld [vmem:[%s9775_s17 + $0x48] sm:$0xf]  ;;  %v8787_v20 = vld [vmem:[%s9775_s17 + $0x54] sm:$0xf0]  ;;  %v8785_v21 = vld [vmem:[%s9775_s17 + $0x4c] sm:$0xf] }
  0x79   : > { %599 = vmatpush.bf16.msra.mxu3 %v6463_v13  ;;  %v6443_v22 = vor.u32 %v8787_v20, %v6442_v19  ;;  %v6444_v23 = vld [vmem:[%s9775_s17 + $0x58] sm:$0xf0]  ;;  %v6418_v24 = vld [vmem:[%s9775_s17 + $0x20] sm:$0xf]  ;;  %v8782_v25 = vld [vmem:[%s9775_s17 + $0x2c] sm:$0xf0] }
  0x7a   : > { %v6447_v26 = vor.u32 %v8785_v21, %v6444_v23  ;;  %v8780_v27 = vld [vmem:[%s9775_s17 + $0x24] sm:$0xf]  ;;  %v6420_v28 = vld [vmem:[%s9775_s17 + $0x30] sm:$0xf0]  ;;  %v6426_v29 = vld [vmem:[%s9775_s17 + $0x28] sm:$0xf]  ;;  %v6419_v30 = vor.u32 %v8782_v25, %v6418_v24 }
  0x7b   : > { %513 = vmatpush.bf16.msra.mxu0 %v6435_v17  ;;  %v8783_v31 = vld [vmem:[%s9775_s17 + $0x34] sm:$0xf0]  ;;  %v8781_v32 = vld [vmem:[%s9775_s17 + $0x2c] sm:$0xf]  ;;  %v6428_v33 = vld [vmem:[%s9775_s17 + $0x38] sm:$0xf0]  ;;  %v6423_v34 = vor.u32 %v8780_v27, %v6420_v28 }
  0x7c   : > { %542 = vmatpush.bf16.msra.mxu1 %v6439_v18  ;;  %571 = vmatpush.bf16.msra.mxu2 %v6443_v22  ;;  %v6427_v35 = vor.u32 %v8783_v31, %v6426_v29  ;;  %v6402_v36 = vld [vmem:[%s9775_s17] sm:$0xf]  ;;  %v8778_v37 = vld [vmem:[%s9775_s17 + $0xc] sm:$0xf0]  ;;  %v8776_v38 = vld [vmem:[%s9775_s17 + $0x4] sm:$0xf]  ;;  %v6431_v39 = vor.u32 %v8781_v32, %v6428_v33 }
  0x7d   : > { %600 = vmatpush.bf16.msra.mxu3 %v6447_v26  ;;  %v6404_v40 = vld [vmem:[%s9775_s17 + $0x10] sm:$0xf0]  ;;  %v6410_v41 = vld [vmem:[%s9775_s17 + $0x8] sm:$0xf]  ;;  %v8779_v42 = vld [vmem:[%s9775_s17 + $0x14] sm:$0xf0]  ;;  %v6403_v45 = vor.u32 %v8778_v37, %v6402_v36 }
  0x7e   : > { %v8777_v43 = vld [vmem:[%s9775_s17 + $0xc] sm:$0xf]  ;;  %v6412_v44 = vld [vmem:[%s9775_s17 + $0x18] sm:$0xf0]  ;;  %v387_v46 = vld [vmem:[%s9768_s18] sm:$0xff]  ;;  %v6407_v48 = vor.u32 %v8776_v38, %v6404_v40  ;;  %v6411_v49 = vor.u32 %v8779_v42, %v6410_v41  ;;  %vm495_vm0 = vcmask 523264  }
  0x7f   : > { %514 = vmatpush.bf16.msra.mxu0 %v6419_v30  ;;  %v388_v47 = vld [vmem:[%s9768_s18 + $0x8] sm:$0xff]  ;;  %v6415_v50 = vor.u32 %v8777_v43, %v6412_v44  ;;  %v389_v52 = vld [vmem:[%s9768_s18 + $0x10] sm:$0xff]  ;;  %v390_v53 = vld [vmem:[%s9768_s18 + $0x18] sm:$0xff]  ;;  %p6480_p5 = scmp.ne.s32.totalorder %s9676_s25, 2 }
  0x80   : > { %543 = vmatpush.bf16.msra.mxu1 %v6423_v34  ;;  %572 = vmatpush.bf16.msra.mxu2 %v6427_v35  ;;  %v395_v51 = vpack.c.bf16 %v388_v47, %v387_v46  ;;  %v396_v54 = vpack.c.bf16 %v390_v53, %v389_v52  ;;  %v391_v55 = vld [vmem:[%s9768_s18 + $0x20] sm:$0xff]  ;;  %v392_v56 = vld [vmem:[%s9768_s18 + $0x28] sm:$0xff]  ;;  %v393_v58 = vld [vmem:[%s9768_s18 + $0x30] sm:$0xff] }
  0x81   : > { %601 = vmatpush.bf16.msra.mxu3 %v6431_v39  ;;  %v397_v57 = vpack.c.bf16 %v392_v56, %v391_v55  ;;  %v394_v59 = vld [vmem:[%s9768_s18 + $0x38] sm:$0xff]  ;;  %v355_v61 = vld [vmem:[#allocation2 + $0xb0] sm:$0xff]  ;;  %v356_v62 = vld [vmem:[#allocation2] sm:$0xff] }
  0x82   : > { %v398_v60 = vpack.c.bf16 %v394_v59, %v393_v58  ;;  %v357_v3 = vld [vmem:[#allocation2 + $0xd8] sm:$0xff]  ;;  %v359_v5 = vld [vmem:[#allocation2 + $0x50] sm:$0xff]  ;;  %v360_v7 = vld [vmem:[#allocation2 + $0x68] sm:$0xff] }
  0x83   : > { %515 = vmatpush.bf16.msra.mxu0 %v6403_v45  ;;  %v358_v4 = vld [vmem:[#allocation2 + $0x18] sm:$0xff]  ;;  %v361_v15 = vld [vmem:[#allocation2 + $0x30] sm:$0xff]  ;;  %v362_v16 = vld [vmem:[#allocation2 + $0x48] sm:$0xff] }
  0x84   : > { %544 = vmatpush.bf16.msra.mxu1 %v6407_v48  ;;  %573 = vmatpush.bf16.msra.mxu2 %v6411_v49  ;;  %v363_v17 = vld [vmem:[#allocation2 + $0x80] sm:$0xff]  ;;  %v364_v19 = vld [vmem:[#allocation2 + $0x88] sm:$0xff]  ;;  %v366_v28 = vld [vmem:[#allocation2 + $0xb8] sm:$0xff] }
  0x85   : > { %602 = vmatpush.bf16.msra.mxu3 %v6415_v50  ;;  %v365_v27 = vld [vmem:[#allocation2 + $0xe8] sm:$0xff]  ;;  %v367_v29 = vld [vmem:[#allocation2 + $0x60] sm:$0xff]  ;;  %v368_v31 = vld [vmem:[#allocation2 + $0xf0] sm:$0xff] }
  0x86   : > { %6464 = vmatmul.msk.bf16.vlgmr.msra.gmra.mxu0 %vm495_vm0, %v395_v51  ;;  %v369_v39 = vld [vmem:[#allocation2 + $0x8] sm:$0xff]  ;;  %v370_v40 = vld [vmem:[#allocation2 + $0x78] sm:$0xff]  ;;  %v375_v53 = vld [vmem:[#allocation2 + $0xe0] sm:$0xff] }
  0x87   : > { %6468 = vmatmul.msk.bf16.vlgmr.msra.gmra.mxu1 %vm495_vm0, %v395_v51  ;;  %6472 = vmatmul.msk.bf16.vlgmr.msra.gmra.mxu2 %vm495_vm0, %v395_v51  ;;  %v371_v41 = vld [vmem:[#allocation2 + $0x38] sm:$0xff]  ;;  %v374_v52 = vld [vmem:[#allocation2 + $0xc8] sm:$0xff]  ;;  %v376_v55 = vld [vmem:[#allocation2 + $0x90] sm:$0xff] }
  0x88   : > { %6476 = vmatmul.msk.bf16.vlgmr.msra.gmra.mxu3 %vm495_vm0, %v395_v51  ;;  %v372_v43 = vld [vmem:[#allocation2 + $0x58] sm:$0xff]  ;;  %v373_v51 = vld [vmem:[#allocation2 + $0x40] sm:$0xff] }
  0x96   : > { %6465 = vmatmul.msk.bf16.gmra.mxu0 %vm495_vm0, %v396_v54 }
  0x97   : > { %6469 = vmatmul.msk.bf16.gmra.mxu1 %vm495_vm0, %v396_v54  ;;  %6473 = vmatmul.msk.bf16.gmra.mxu2 %vm495_vm0, %v396_v54 }
  0x98   : > { %6477 = vmatmul.msk.bf16.gmra.mxu3 %vm495_vm0, %v396_v54 }
  0xa6   : > { %6466 = vmatmul.msk.bf16.gmra.mxu0 %vm495_vm0, %v397_v57 }
  0xa7   : > { %6470 = vmatmul.msk.bf16.gmra.mxu1 %vm495_vm0, %v397_v57  ;;  %6474 = vmatmul.msk.bf16.gmra.mxu2 %vm495_vm0, %v397_v57 }
  0xa8   : > { %6478 = vmatmul.msk.bf16.gmra.mxu3 %vm495_vm0, %v397_v57 }
  0xb6   : > { %6467 = vmatmul.msk.bf16.gmra.mxu0 %vm495_vm0, %v398_v60 }
  0xb7   : > { %6471 = vmatmul.msk.bf16.gmra.mxu1 %vm495_vm0, %v398_v60  ;;  %6475 = vmatmul.msk.bf16.gmra.mxu2 %vm495_vm0, %v398_v60 }
  0xb8   : > { %6479 = vmatmul.msk.bf16.gmra.mxu3 %vm495_vm0, %v398_v60 }
 0x103   : > { %v517_v63 = vpop.f32.mrf.mxu0 }
 0x104   : > { %v624_v0 = vadd.f32 %v517_v63, %v355_v61  ;;  %v546_v1 = vpop.f32.mrf.mxu1  ;;  %v377_v63 = vld [vmem:[#allocation2 + $0x70] sm:$0xff] }
 0x105   : > { %v625_v2 = vadd.f32 %v546_v1, %v356_v62  ;;  %v379_v1 = vld [vmem:[#allocation2 + $0xa8] sm:$0xff] }
 0x106   : > { %656 = vst [vmem:[#allocation2 + $0xb0] sm:$0xff] %v624_v0  ;;  %v378_v0 = vld [vmem:[#allocation2 + $0xc0] sm:$0xff] }
 0x107   : > { %657 = vst [vmem:[#allocation2] sm:$0xff] %v625_v2 }
 0x10a   : > { %v575_v6 = vpop.f32.mrf.mxu2 }
 0x10b   : > { %v626_v8 = vadd.f32 %v575_v6, %v357_v3  ;;  %v604_v9 = vpop.f32.mrf.mxu3  ;;  %v519_v10 = vpop.f32.mrf.mxu0  ;;  %v380_v3 = vld [vmem:[#allocation2 + $0xd0] sm:$0xff] }
 0x10c   : > { %v627_v11 = vadd.f32 %v604_v9, %v358_v4  ;;  %v628_v12 = vadd.f32 %v519_v10, %v359_v5  ;;  %v548_v13 = vpop.f32.mrf.mxu1 }
 0x10d   : > { %658 = vst [vmem:[#allocation2 + $0xd8] sm:$0xff] %v626_v8  ;;  %v629_v14 = vadd.f32 %v548_v13, %v360_v7  ;;  %v383_v13 = vld [vmem:[#allocation2 + $0xa0] sm:$0xff] }
 0x10e   : > { %659 = vst [vmem:[#allocation2 + $0x18] sm:$0xff] %v627_v11  ;;  %v381_v11 = vld [vmem:[#allocation2 + $0x10] sm:$0xff] }
 0x10f   : > { %660 = vst [vmem:[#allocation2 + $0x50] sm:$0xff] %v628_v12  ;;  %v382_v12 = vld [vmem:[#allocation2 + $0x28] sm:$0xff] }
 0x110   : > { %661 = vst [vmem:[#allocation2 + $0x68] sm:$0xff] %v629_v14 }
 0x112   : > { %v577_v18 = vpop.f32.mrf.mxu2 }
 0x113   : > { %v630_v20 = vadd.f32 %v577_v18, %v361_v15  ;;  %v606_v21 = vpop.f32.mrf.mxu3  ;;  %v522_v22 = vpop.f32.mrf.mxu0  ;;  %v384_v15 = vld [vmem:[#allocation2 + $0xf8] sm:$0xff] }
 0x114   : > { %v631_v23 = vadd.f32 %v606_v21, %v362_v16  ;;  %v632_v24 = vadd.f32 %v522_v22, %v363_v17  ;;  %v551_v25 = vpop.f32.mrf.mxu1 }
 0x115   : > { %662 = vst [vmem:[#allocation2 + $0x30] sm:$0xff] %v630_v20  ;;  %v633_v26 = vadd.f32 %v551_v25, %v364_v19 }
 0x116   : > { %663 = vst [vmem:[#allocation2 + $0x48] sm:$0xff] %v631_v23  ;;  %v385_v23 = vld [vmem:[#allocation2 + $0x20] sm:$0xff] }
 0x117   : > { %664 = vst [vmem:[#allocation2 + $0x80] sm:$0xff] %v632_v24  ;;  %v386_v24 = vld [vmem:[#allocation2 + $0x98] sm:$0xff] }
 0x118   : > { %665 = vst [vmem:[#allocation2 + $0x88] sm:$0xff] %v633_v26 }
 0x11a   : > { %v580_v30 = vpop.f32.mrf.mxu2 }
 0x11b   : > { %v634_v32 = vadd.f32 %v580_v30, %v365_v27  ;;  %v609_v33 = vpop.f32.mrf.mxu3  ;;  %v524_v34 = vpop.f32.mrf.mxu0 }
 0x11c   : > { %v635_v35 = vadd.f32 %v609_v33, %v366_v28  ;;  %v636_v36 = vadd.f32 %v524_v34, %v367_v29  ;;  %v553_v37 = vpop.f32.mrf.mxu1 }
 0x11d   : > { %666 = vst [vmem:[#allocation2 + $0xe8] sm:$0xff] %v634_v32  ;;  %v637_v38 = vadd.f32 %v553_v37, %v368_v31 }
 0x11e   : > { %667 = vst [vmem:[#allocation2 + $0xb8] sm:$0xff] %v635_v35 }
 0x11f   : > { %668 = vst [vmem:[#allocation2 + $0x60] sm:$0xff] %v636_v36 }
 0x120   : > { %669 = vst [vmem:[#allocation2 + $0xf0] sm:$0xff] %v637_v38 }
 0x122   : > { %v582_v42 = vpop.f32.mrf.mxu2 }
 0x123   : > { %v638_v44 = vadd.f32 %v582_v42, %v369_v39  ;;  %v611_v45 = vpop.f32.mrf.mxu3  ;;  %v527_v46 = vpop.f32.mrf.mxu0 }
 0x124   : > { %v639_v47 = vadd.f32 %v611_v45, %v370_v40  ;;  %v640_v48 = vadd.f32 %v527_v46, %v371_v41  ;;  %v556_v49 = vpop.f32.mrf.mxu1 }
 0x125   : > { %670 = vst [vmem:[#allocation2 + $0x8] sm:$0xff] %v638_v44  ;;  %v641_v50 = vadd.f32 %v556_v49, %v372_v43 }
 0x126   : > { %671 = vst [vmem:[#allocation2 + $0x78] sm:$0xff] %v639_v47 }
 0x127   : > { %672 = vst [vmem:[#allocation2 + $0x38] sm:$0xff] %v640_v48 }
 0x128   : > { %673 = vst [vmem:[#allocation2 + $0x58] sm:$0xff] %v641_v50 }
 0x12a   : > { %v585_v54 = vpop.f32.mrf.mxu2 }
 0x12b   : > { %v642_v56 = vadd.f32 %v585_v54, %v373_v51  ;;  %v614_v57 = vpop.f32.mrf.mxu3  ;;  %v529_v58 = vpop.f32.mrf.mxu0 }
 0x12c   : > { %v643_v59 = vadd.f32 %v614_v57, %v374_v52  ;;  %v644_v60 = vadd.f32 %v529_v58, %v375_v53  ;;  %v558_v61 = vpop.f32.mrf.mxu1 }
 0x12d   : > { %674 = vst [vmem:[#allocation2 + $0x40] sm:$0xff] %v642_v56  ;;  %v645_v62 = vadd.f32 %v558_v61, %v376_v55 }
 0x12e   : > { %675 = vst [vmem:[#allocation2 + $0xc8] sm:$0xff] %v643_v59 }
 0x12f   : > { %676 = vst [vmem:[#allocation2 + $0xe0] sm:$0xff] %v644_v60 }
 0x130   : > { %677 = vst [vmem:[#allocation2 + $0x90] sm:$0xff] %v645_v62 }
 0x132   : > { %v587_v2 = vpop.f32.mrf.mxu2 }
 0x133   : > { %v646_v4 = vadd.f32 %v587_v2, %v377_v63  ;;  %v616_v5 = vpop.f32.mrf.mxu3  ;;  %v532_v6 = vpop.f32.mrf.mxu0 }
 0x134   : > { %v647_v7 = vadd.f32 %v616_v5, %v378_v0  ;;  %v648_v8 = vadd.f32 %v532_v6, %v379_v1  ;;  %v561_v9 = vpop.f32.mrf.mxu1 }
 0x135   : > { %678 = vst [vmem:[#allocation2 + $0x70] sm:$0xff] %v646_v4  ;;  %v649_v10 = vadd.f32 %v561_v9, %v380_v3 }
 0x136   : > { %679 = vst [vmem:[#allocation2 + $0xc0] sm:$0xff] %v647_v7 }
 0x137   : > { %680 = vst [vmem:[#allocation2 + $0xa8] sm:$0xff] %v648_v8 }
 0x138   : > { %681 = vst [vmem:[#allocation2 + $0xd0] sm:$0xff] %v649_v10 }
 0x13a   : > { %v590_v14 = vpop.f32.mrf.mxu2 }
 0x13b   : > { %v650_v16 = vadd.f32 %v590_v14, %v381_v11  ;;  %v619_v17 = vpop.f32.mrf.mxu3  ;;  %v534_v18 = vpop.f32.mrf.mxu0 }
 0x13c   : > { %v651_v19 = vadd.f32 %v619_v17, %v382_v12  ;;  %v652_v20 = vadd.f32 %v534_v18, %v383_v13  ;;  %v563_v21 = vpop.f32.mrf.mxu1 }
 0x13d   : > { %682 = vst [vmem:[#allocation2 + $0x10] sm:$0xff] %v650_v16  ;;  %v653_v22 = vadd.f32 %v563_v21, %v384_v15 }
 0x13e   : > { %683 = vst [vmem:[#allocation2 + $0x28] sm:$0xff] %v651_v19 }
 0x13f   : > { %684 = vst [vmem:[#allocation2 + $0xa0] sm:$0xff] %v652_v20 }
 0x140   : > { %685 = vst [vmem:[#allocation2 + $0xf8] sm:$0xff] %v653_v22 }
 0x142   : > { %v592_v25 = vpop.f32.mrf.mxu2  ;;  %691 = sbr.rel (%p6480_p5) target bundleno = 1680 (0x690), region = 68 }
 0x143   : > { %v654_v26 = vadd.f32 %v592_v25, %v385_v23  ;;  %v621_v27 = vpop.f32.mrf.mxu3 }
 0x144   : > { %v655_v28 = vadd.f32 %v621_v27, %v386_v24 }
 0x145   : > { %686 = vst [vmem:[#allocation2 + $0x20] sm:$0xff] %v654_v26 }
 0x146   : > { %687 = vst [vmem:[#allocation2 + $0x98] sm:$0xff] %v655_v28 }
 0x147   : > { %v780_v29 = vld [vmem:[#allocation2 + $0xa0] sm:$0xff]  ;;  %v781_v30 = vld [vmem:[#allocation2 + $0xf8] sm:$0xff]  ;;  %v776_v33 = vld [vmem:[#allocation2 + $0xa8] sm:$0xff] }
 0x148   : > { %982 = vmatpush.msra.mxu0 %v780_v29  ;;  %1179 = vmatpush.msra.mxu1 %v781_v30  ;;  %v777_v34 = vld [vmem:[#allocation2 + $0xd0] sm:$0xff]  ;;  %v779_v36 = vld [vmem:[#allocation2 + $0x28] sm:$0xff]  ;;  %v772_v37 = vld [vmem:[#allocation2 + $0xe0] sm:$0xff] }
 0x149   : > { %v778_v35 = vld [vmem:[#allocation2 + $0x10] sm:$0xff]  ;;  %v775_v40 = vld [vmem:[#allocation2 + $0xc0] sm:$0xff]  ;;  %v768_v41 = vld [vmem:[#allocation2 + $0x38] sm:$0xff] }
 0x14a   : > { %983 = vmatpush.msra.mxu0 %v776_v33  ;;  %1180 = vmatpush.msra.mxu1 %v777_v34  ;;  %v773_v38 = vld [vmem:[#allocation2 + $0x90] sm:$0xff]  ;;  %v769_v42 = vld [vmem:[#allocation2 + $0x58] sm:$0xff]  ;;  %v770_v43 = vld [vmem:[#allocation2 + $0x40] sm:$0xff] }
 0x14b   : > { %v774_v39 = vld [vmem:[#allocation2 + $0x70] sm:$0xff]  ;;  %v771_v44 = vld [vmem:[#allocation2 + $0xc8] sm:$0xff]  ;;  %v764_v45 = vld [vmem:[#allocation2 + $0x60] sm:$0xff] }
 0x14c   : > { %v782_v31 = vld [vmem:[#allocation2 + $0x20] sm:$0xff]  ;;  %984 = vmatpush.msra.mxu0 %v772_v37  ;;  %1181 = vmatpush.msra.mxu1 %v773_v38  ;;  %v765_v46 = vld [vmem:[#allocation2 + $0xf0] sm:$0xff]  ;;  %v766_v47 = vld [vmem:[#allocation2 + $0x8] sm:$0xff] }
 0x14d   : > { %v783_v32 = vld [vmem:[#allocation2 + $0x98] sm:$0xff]  ;;  %1376 = vmatpush.msra.mxu2 %v782_v31  ;;  %v760_v49 = vld [vmem:[#allocation2 + $0x80] sm:$0xff]  ;;  %v761_v50 = vld [vmem:[#allocation2 + $0x88] sm:$0xff] }
 0x14e   : > { %1573 = vmatpush.msra.mxu3 %v783_v32  ;;  %985 = vmatpush.msra.mxu0 %v768_v41  ;;  %v767_v48 = vld [vmem:[#allocation2 + $0x78] sm:$0xff]  ;;  %v762_v51 = vld [vmem:[#allocation2 + $0xe8] sm:$0xff]  ;;  %v756_v53 = vld [vmem:[#allocation2 + $0x50] sm:$0xff] }
 0x14f   : > { %1377 = vmatpush.msra.mxu2 %v778_v35  ;;  %1182 = vmatpush.msra.mxu1 %v769_v42  ;;  %v763_v52 = vld [vmem:[#allocation2 + $0xb8] sm:$0xff]  ;;  %v757_v54 = vld [vmem:[#allocation2 + $0x68] sm:$0xff]  ;;  %v758_v55 = vld [vmem:[#allocation2 + $0x30] sm:$0xff] }
 0x150   : > { %1574 = vmatpush.msra.mxu3 %v779_v36  ;;  %986 = vmatpush.msra.mxu0 %v764_v45  ;;  %v759_v56 = vld [vmem:[#allocation2 + $0x48] sm:$0xff]  ;;  %v752_v57 = vld [vmem:[#allocation2 + $0xb0] sm:$0xff]  ;;  %v753_v58 = vld [vmem:[#allocation2] sm:$0xff] }
 0x151   : > { %1378 = vmatpush.msra.mxu2 %v774_v39  ;;  %1183 = vmatpush.msra.mxu1 %v765_v46  ;;  %v754_v59 = vld [vmem:[#allocation2 + $0xd8] sm:$0xff]  ;;  %v692_v61 = vld [vmem:[%s10954_s2] sm:$0xff]  ;;  %v693_v62 = vld [vmem:[%s10954_s2 + $0x8] sm:$0xff] }
 0x152   : > { %1575 = vmatpush.msra.mxu3 %v775_v40  ;;  %987 = vmatpush.msra.mxu0 %v760_v49  ;;  %v755_v60 = vld [vmem:[#allocation2 + $0x18] sm:$0xff]  ;;  %v694_v63 = vld [vmem:[%s10954_s2 + $0x10] sm:$0xff]  ;;  %v696_v1 = vld [vmem:[%s10954_s2 + $0x20] sm:$0xff] }
 0x153   : > { %1379 = vmatpush.msra.mxu2 %v770_v43  ;;  %1184 = vmatpush.msra.mxu1 %v761_v50  ;;  %v695_v0 = vld [vmem:[%s10954_s2 + $0x18] sm:$0xff]  ;;  %v697_v2 = vld [vmem:[%s10954_s2 + $0x28] sm:$0xff]  ;;  %v698_v3 = vld [vmem:[%s10954_s2 + $0x30] sm:$0xff] }
 0x154   : > { %1576 = vmatpush.msra.mxu3 %v771_v44  ;;  %988 = vmatpush.msra.mxu0 %v756_v53  ;;  %v699_v4 = vld [vmem:[%s10954_s2 + $0x38] sm:$0xff]  ;;  %v700_v5 = vld [vmem:[%s10954_s2 + $0x40] sm:$0xff]  ;;  %v701_v6 = vld [vmem:[%s10954_s2 + $0x48] sm:$0xff] }
 0x155   : > { %1380 = vmatpush.msra.mxu2 %v766_v47  ;;  %1185 = vmatpush.msra.mxu1 %v757_v54  ;;  %v702_v7 = vld [vmem:[%s10954_s2 + $0x50] sm:$0xff]  ;;  %v703_v8 = vld [vmem:[%s10954_s2 + $0x58] sm:$0xff]  ;;  %v704_v9 = vld [vmem:[%s10954_s2 + $0x60] sm:$0xff] }
 0x156   : > { %1577 = vmatpush.msra.mxu3 %v767_v48  ;;  %989 = vmatpush.msra.mxu0 %v752_v57  ;;  %v705_v10 = vld [vmem:[%s10954_s2 + $0x68] sm:$0xff]  ;;  %v706_v11 = vld [vmem:[%s10954_s2 + $0x70] sm:$0xff]  ;;  %v707_v12 = vld [vmem:[%s10954_s2 + $0x78] sm:$0xff] }
 0x157   : > { %1381 = vmatpush.msra.mxu2 %v762_v51  ;;  %1186 = vmatpush.msra.mxu1 %v753_v58  ;;  %v708_v15 = vld [vmem:[%s10954_s2 + $0x80] sm:$0xff]  ;;  %v709_v21 = vld [vmem:[%s10954_s2 + $0x88] sm:$0xff]  ;;  %v710_v32 = vld [vmem:[%s10954_s2 + $0x90] sm:$0xff] }
 0x158   : > { %1578 = vmatpush.msra.mxu3 %v763_v52  ;;  %6481 = vmatmul.msk.f32.vlgmr.msra.gmra.mxu0 %vm495_vm0, %v692_v61  ;;  %v9974_v16 = vld [vmem:[#allocation10] sm:$0xf]  ;;  %v711_v45 = vld [vmem:[%s10954_s2 + $0x98] sm:$0xff] }
 0x159   : > { %1382 = vmatpush.msra.mxu2 %v758_v55  ;;  %6541 = vmatmul.msk.f32.vlgmr.msra.gmra.mxu1 %vm495_vm0, %v692_v61  ;;  %v9984_v22 = vperm.slane %v9974_v16, 2  ;;  %v9987_v23 = vperm.slane %v9974_v16, 3 }
 0x15a   : > { %1579 = vmatpush.msra.mxu3 %v759_v56  ;;  %v712_v56 = vld [vmem:[%s10954_s2 + $0xa0] sm:$0xff] }
 0x15b   : > { %1383 = vmatpush.msra.mxu2 %v754_v59 }
 0x15c   : > { %1580 = vmatpush.msra.mxu3 %v755_v60  ;;  %6601 = vmatmul.msk.f32.vlgmr.msra.gmra.mxu2 %vm495_vm0, %v692_v61 }
 0x15d   : > { %6661 = vmatmul.msk.f32.vlgmr.msra.gmra.mxu3 %vm495_vm0, %v692_v61 }
 0x160   : > { %6482 = vmatmul.msk.f32.gmra.mxu0 %vm495_vm0, %v693_v62 }
 0x161   : > { %6542 = vmatmul.msk.f32.gmra.mxu1 %vm495_vm0, %v693_v62 }
 0x164   : > { %6602 = vmatmul.msk.f32.gmra.mxu2 %vm495_vm0, %v693_v62 }
 0x165   : > { %6662 = vmatmul.msk.f32.gmra.mxu3 %vm495_vm0, %v693_v62 }
 0x168   : > { %6483 = vmatmul.msk.f32.gmra.mxu0 %vm495_vm0, %v694_v63 }
 0x169   : > { %6543 = vmatmul.msk.f32.gmra.mxu1 %vm495_vm0, %v694_v63 }
 0x16c   : > { %6603 = vmatmul.msk.f32.gmra.mxu2 %vm495_vm0, %v694_v63 }
 0x16d   : > { %6663 = vmatmul.msk.f32.gmra.mxu3 %vm495_vm0, %v694_v63 }
 0x170   : > { %6484 = vmatmul.msk.f32.gmra.mxu0 %vm495_vm0, %v695_v0 }
 0x171   : > { %6544 = vmatmul.msk.f32.gmra.mxu1 %vm495_vm0, %v695_v0 }
 0x174   : > { %6604 = vmatmul.msk.f32.gmra.mxu2 %vm495_vm0, %v695_v0 }
 0x175   : > { %6664 = vmatmul.msk.f32.gmra.mxu3 %vm495_vm0, %v695_v0 }
 0x178   : > { %6485 = vmatmul.msk.f32.gmra.mxu0 %vm495_vm0, %v696_v1 }
 0x179   : > { %6545 = vmatmul.msk.f32.gmra.mxu1 %vm495_vm0, %v696_v1 }
 0x17c   : > { %6605 = vmatmul.msk.f32.gmra.mxu2 %vm495_vm0, %v696_v1 }
 0x17d   : > { %6665 = vmatmul.msk.f32.gmra.mxu3 %vm495_vm0, %v696_v1 }
 0x180   : > { %6486 = vmatmul.msk.f32.gmra.mxu0 %vm495_vm0, %v697_v2 }
 0x181   : > { %6546 = vmatmul.msk.f32.gmra.mxu1 %vm495_vm0, %v697_v2 }
 0x184   : > { %6606 = vmatmul.msk.f32.gmra.mxu2 %vm495_vm0, %v697_v2 }
 0x185   : > { %6666 = vmatmul.msk.f32.gmra.mxu3 %vm495_vm0, %v697_v2 }
 0x188   : > { %6487 = vmatmul.msk.f32.gmra.mxu0 %vm495_vm0, %v698_v3 }
 0x189   : > { %6547 = vmatmul.msk.f32.gmra.mxu1 %vm495_vm0, %v698_v3 }
 0x18c   : > { %6607 = vmatmul.msk.f32.gmra.mxu2 %vm495_vm0, %v698_v3 }
 0x18d   : > { %6667 = vmatmul.msk.f32.gmra.mxu3 %vm495_vm0, %v698_v3  ;;  %v713_v3 = vld [vmem:[%s10954_s2 + $0xa8] sm:$0xff] }
 0x190   : > { %6488 = vmatmul.msk.f32.gmra.mxu0 %vm495_vm0, %v699_v4 }
 0x191   : > { %6548 = vmatmul.msk.f32.gmra.mxu1 %vm495_vm0, %v699_v4 }
 0x194   : > { %6608 = vmatmul.msk.f32.gmra.mxu2 %vm495_vm0, %v699_v4 }
 0x195   : > { %6668 = vmatmul.msk.f32.gmra.mxu3 %vm495_vm0, %v699_v4 }
 0x198   : > { %6489 = vmatmul.msk.f32.gmra.mxu0 %vm495_vm0, %v700_v5 }
 0x199   : > { %6549 = vmatmul.msk.f32.gmra.mxu1 %vm495_vm0, %v700_v5 }
 0x19c   : > { %6609 = vmatmul.msk.f32.gmra.mxu2 %vm495_vm0, %v700_v5 }
 0x19d   : > { %6669 = vmatmul.msk.f32.gmra.mxu3 %vm495_vm0, %v700_v5 }
 0x1a0   : > { %6490 = vmatmul.msk.f32.gmra.mxu0 %vm495_vm0, %v701_v6 }
 0x1a1   : > { %6550 = vmatmul.msk.f32.gmra.mxu1 %vm495_vm0, %v701_v6 }
 0x1a4   : > { %6610 = vmatmul.msk.f32.gmra.mxu2 %vm495_vm0, %v701_v6 }
 0x1a5   : > { %6670 = vmatmul.msk.f32.gmra.mxu3 %vm495_vm0, %v701_v6 }
 0x1a8   : > { %6491 = vmatmul.msk.f32.gmra.mxu0 %vm495_vm0, %v702_v7 }
 0x1a9   : > { %6551 = vmatmul.msk.f32.gmra.mxu1 %vm495_vm0, %v702_v7 }
 0x1ac   : > { %6611 = vmatmul.msk.f32.gmra.mxu2 %vm495_vm0, %v702_v7 }
 0x1ad   : > { %6671 = vmatmul.msk.f32.gmra.mxu3 %vm495_vm0, %v702_v7 }
 0x1b0   : > { %6492 = vmatmul.msk.f32.gmra.mxu0 %vm495_vm0, %v703_v8 }
 0x1b1   : > { %6552 = vmatmul.msk.f32.gmra.mxu1 %vm495_vm0, %v703_v8 }
 0x1b4   : > { %6612 = vmatmul.msk.f32.gmra.mxu2 %vm495_vm0, %v703_v8 }
 0x1b5   : > { %6672 = vmatmul.msk.f32.gmra.mxu3 %vm495_vm0, %v703_v8 }
 0x1b8   : > { %6493 = vmatmul.msk.f32.gmra.mxu0 %vm495_vm0, %v704_v9 }
 0x1b9   : > { %6553 = vmatmul.msk.f32.gmra.mxu1 %vm495_vm0, %v704_v9 }
 0x1bc   : > { %6613 = vmatmul.msk.f32.gmra.mxu2 %vm495_vm0, %v704_v9 }
 0x1bd   : > { %6673 = vmatmul.msk.f32.gmra.mxu3 %vm495_vm0, %v704_v9 }
 0x1c0   : > { %6494 = vmatmul.msk.f32.gmra.mxu0 %vm495_vm0, %v705_v10 }
 0x1c1   : > { %6554 = vmatmul.msk.f32.gmra.mxu1 %vm495_vm0, %v705_v10 }
 0x1c4   : > { %6614 = vmatmul.msk.f32.gmra.mxu2 %vm495_vm0, %v705_v10 }
 0x1c5   : > { %6674 = vmatmul.msk.f32.gmra.mxu3 %vm495_vm0, %v705_v10 }
 0x1c8   : > { %6495 = vmatmul.msk.f32.gmra.mxu0 %vm495_vm0, %v706_v11 }
 0x1c9   : > { %6555 = vmatmul.msk.f32.gmra.mxu1 %vm495_vm0, %v706_v11 }
 0x1cc   : > { %6615 = vmatmul.msk.f32.gmra.mxu2 %vm495_vm0, %v706_v11 }
 0x1cd   : > { %6675 = vmatmul.msk.f32.gmra.mxu3 %vm495_vm0, %v706_v11 }
 0x1d0   : > { %6496 = vmatmul.msk.f32.gmra.mxu0 %vm495_vm0, %v707_v12 }
 0x1d1   : > { %6556 = vmatmul.msk.f32.gmra.mxu1 %vm495_vm0, %v707_v12 }
 0x1d4   : > { %6616 = vmatmul.msk.f32.gmra.mxu2 %vm495_vm0, %v707_v12 }
 0x1d5   : > { %6676 = vmatmul.msk.f32.gmra.mxu3 %vm495_vm0, %v707_v12  ;;  %v9963_v13 = vpop.f32.mrf.mxu0 }
 0x1d6   : > { %v9965_v14 = vpop.f32.mrf.mxu1 }
 0x1d8   : > { %6497 = vmatmul.msk.f32.gmra.mxu0 %vm495_vm0, %v708_v15 }
 0x1d9   : > { %6557 = vmatmul.msk.f32.gmra.mxu1 %vm495_vm0, %v708_v15 }
 0x1dc   : > { %6617 = vmatmul.msk.f32.gmra.mxu2 %vm495_vm0, %v708_v15 }
 0x1dd   : > { %6677 = vmatmul.msk.f32.gmra.mxu3 %vm495_vm0, %v708_v15  ;;  %v9976_v19 = vpop.f32.mrf.mxu0 }
 0x1de   : > { %v9978_v20 = vpop.f32.mrf.mxu1 }
 0x1df   : > { %v1385_v17 = vpop.f32.mrf.mxu2 }
 0x1e0   : > { %v1582_v18 = vpop.f32.mrf.mxu3  ;;  %6498 = vmatmul.msk.f32.gmra.mxu0 %vm495_vm0, %v709_v21  ;;  %v1386_v24 = vadd.f32 %v1385_v17, %v9984_v22  ;;  %v714_v17 = vld [vmem:[%s10954_s2 + $0xb0] sm:$0xff] }
 0x1e1   : > { %6558 = vmatmul.msk.f32.gmra.mxu1 %vm495_vm0, %v709_v21  ;;  %v1583_v25 = vadd.f32 %v1582_v18, %v9987_v23 }
 0x1e2   : > { %v1764_v33 = vmax.f32 %v1386_v24, 0.0 }
 0x1e3   : > { %v1765_v34 = vmax.f32 %v1583_v25, 0.0 }
 0x1e4   : > { %6618 = vmatmul.msk.f32.gmra.mxu2 %vm495_vm0, %v709_v21 }
 0x1e5   : > { %6678 = vmatmul.msk.f32.gmra.mxu3 %vm495_vm0, %v709_v21  ;;  %v9997_v30 = vpop.f32.mrf.mxu0 }
 0x1e6   : > { %v9999_v31 = vpop.f32.mrf.mxu1 }
 0x1e7   : > { %v1388_v26 = vpop.f32.mrf.mxu2 }
 0x1e8   : > { %v1585_v27 = vpop.f32.mrf.mxu3  ;;  %v1389_v28 = vadd.f32 %v1388_v26, %v9984_v22  ;;  %6499 = vmatmul.msk.f32.gmra.mxu0 %vm495_vm0, %v710_v32 }
 0x1e9   : > { %v1586_v29 = vadd.f32 %v1585_v27, %v9987_v23  ;;  %6559 = vmatmul.msk.f32.gmra.mxu1 %vm495_vm0, %v710_v32 }
 0x1ea   : > { %v1768_v35 = vmax.f32 %v1389_v28, 0.0 }
 0x1eb   : > { %v1769_v36 = vmax.f32 %v1586_v29, 0.0 }
 0x1ec   : > { %v2132_v37 = vadd.f32 %v1768_v35, %v1764_v33  ;;  %6619 = vmatmul.msk.f32.gmra.mxu2 %vm495_vm0, %v710_v32 }
 0x1ed   : > { %v2197_v38 = vadd.f32 %v1769_v36, %v1765_v34  ;;  %6679 = vmatmul.msk.f32.gmra.mxu3 %vm495_vm0, %v710_v32  ;;  %v10010_v43 = vpop.f32.mrf.mxu0  ;;  %v715_v34 = vld [vmem:[%s10954_s2 + $0xb8] sm:$0xff] }
 0x1ee   : > { %v10012_v44 = vpop.f32.mrf.mxu1 }
 0x1ef   : > { %v1391_v39 = vpop.f32.mrf.mxu2 }
 0x1f0   : > { %v1588_v40 = vpop.f32.mrf.mxu3  ;;  %v1392_v41 = vadd.f32 %v1391_v39, %v9984_v22  ;;  %6500 = vmatmul.msk.f32.gmra.mxu0 %vm495_vm0, %v711_v45 }
 0x1f1   : > { %v1589_v42 = vadd.f32 %v1588_v40, %v9987_v23  ;;  %6560 = vmatmul.msk.f32.gmra.mxu1 %vm495_vm0, %v711_v45 }
 0x1f2   : > { %v1772_v46 = vmax.f32 %v1392_v41, 0.0 }
 0x1f3   : > { %v1773_v47 = vmax.f32 %v1589_v42, 0.0 }
 0x1f4   : > { %v2133_v48 = vadd.f32 %v2132_v37, %v1772_v46  ;;  %6620 = vmatmul.msk.f32.gmra.mxu2 %vm495_vm0, %v711_v45 }
 0x1f5   : > { %v2198_v49 = vadd.f32 %v2197_v38, %v1773_v47  ;;  %6680 = vmatmul.msk.f32.gmra.mxu3 %vm495_vm0, %v711_v45  ;;  %v10023_v54 = vpop.f32.mrf.mxu0  ;;  %v716_v47 = vld [vmem:[%s10954_s2 + $0xc0] sm:$0xff] }
 0x1f6   : > { %v10025_v55 = vpop.f32.mrf.mxu1 }
 0x1f7   : > { %v1394_v50 = vpop.f32.mrf.mxu2 }
 0x1f8   : > { %v1591_v51 = vpop.f32.mrf.mxu3  ;;  %v1395_v52 = vadd.f32 %v1394_v50, %v9984_v22  ;;  %6501 = vmatmul.msk.f32.gmra.mxu0 %vm495_vm0, %v712_v56 }
 0x1f9   : > { %v1592_v53 = vadd.f32 %v1591_v51, %v9987_v23  ;;  %6561 = vmatmul.msk.f32.gmra.mxu1 %vm495_vm0, %v712_v56 }
 0x1fa   : > { %v1776_v57 = vmax.f32 %v1395_v52, 0.0 }
 0x1fb   : > { %v1777_v58 = vmax.f32 %v1592_v53, 0.0 }
 0x1fc   : > { %v2134_v59 = vadd.f32 %v2133_v48, %v1776_v57  ;;  %6621 = vmatmul.msk.f32.gmra.mxu2 %vm495_vm0, %v712_v56 }
 0x1fd   : > { %v2199_v60 = vadd.f32 %v2198_v49, %v1777_v58  ;;  %6681 = vmatmul.msk.f32.gmra.mxu3 %vm495_vm0, %v712_v56  ;;  %v10036_v1 = vpop.f32.mrf.mxu0 }
 0x1fe   : > { %v10038_v2 = vpop.f32.mrf.mxu1 }
 0x1ff   : > { %v1397_v61 = vpop.f32.mrf.mxu2 }
 0x200   : > { %v1594_v62 = vpop.f32.mrf.mxu3  ;;  %v1398_v63 = vadd.f32 %v1397_v61, %v9984_v22  ;;  %6502 = vmatmul.msk.f32.gmra.mxu0 %vm495_vm0, %v713_v3 }
 0x201   : > { %v1595_v0 = vadd.f32 %v1594_v62, %v9987_v23  ;;  %6562 = vmatmul.msk.f32.gmra.mxu1 %vm495_vm0, %v713_v3 }
 0x202   : > { %v1780_v4 = vmax.f32 %v1398_v63, 0.0 }
 0x203   : > { %v1781_v5 = vmax.f32 %v1595_v0, 0.0 }
 0x204   : > { %v2135_v6 = vadd.f32 %v2134_v59, %v1780_v4  ;;  %6622 = vmatmul.msk.f32.gmra.mxu2 %vm495_vm0, %v713_v3 }
 0x205   : > { %v2200_v7 = vadd.f32 %v2199_v60, %v1781_v5  ;;  %6682 = vmatmul.msk.f32.gmra.mxu3 %vm495_vm0, %v713_v3  ;;  %v10049_v12 = vpop.f32.mrf.mxu0  ;;  %v717_v60 = vld [vmem:[%s10954_s2 + $0xc8] sm:$0xff] }
 0x206   : > { %v10051_v15 = vpop.f32.mrf.mxu1 }
 0x207   : > { %v1400_v8 = vpop.f32.mrf.mxu2 }
 0x208   : > { %v1597_v9 = vpop.f32.mrf.mxu3  ;;  %v1401_v10 = vadd.f32 %v1400_v8, %v9984_v22  ;;  %6503 = vmatmul.msk.f32.gmra.mxu0 %vm495_vm0, %v714_v17 }
 0x209   : > { %v1598_v11 = vadd.f32 %v1597_v9, %v9987_v23  ;;  %6563 = vmatmul.msk.f32.gmra.mxu1 %vm495_vm0, %v714_v17  ;;  %v718_v9 = vld [vmem:[%s10954_s2 + $0xd0] sm:$0xff] }
 0x20a   : > { %v1784_v18 = vmax.f32 %v1401_v10, 0.0 }
 0x20b   : > { %v1785_v21 = vmax.f32 %v1598_v11, 0.0 }
 0x20c   : > { %v2136_v24 = vadd.f32 %v2135_v6, %v1784_v18  ;;  %6623 = vmatmul.msk.f32.gmra.mxu2 %vm495_vm0, %v714_v17 }
 0x20d   : > { %v2201_v25 = vadd.f32 %v2200_v7, %v1785_v21  ;;  %6683 = vmatmul.msk.f32.gmra.mxu3 %vm495_vm0, %v714_v17  ;;  %v10062_v32 = vpop.f32.mrf.mxu0 }
 0x20e   : > { %v10064_v33 = vpop.f32.mrf.mxu1 }
 0x20f   : > { %v1403_v26 = vpop.f32.mrf.mxu2 }
 0x210   : > { %v1600_v27 = vpop.f32.mrf.mxu3  ;;  %v1404_v28 = vadd.f32 %v1403_v26, %v9984_v22  ;;  %6504 = vmatmul.msk.f32.gmra.mxu0 %vm495_vm0, %v715_v34 }
 0x211   : > { %v1601_v29 = vadd.f32 %v1600_v27, %v9987_v23  ;;  %6564 = vmatmul.msk.f32.gmra.mxu1 %vm495_vm0, %v715_v34 }
 0x212   : > { %v1788_v35 = vmax.f32 %v1404_v28, 0.0 }
 0x213   : > { %v1789_v36 = vmax.f32 %v1601_v29, 0.0  ;;  %v719_v29 = vld [vmem:[%s10954_s2 + $0xd8] sm:$0xff] }
 0x214   : > { %v2137_v37 = vadd.f32 %v2136_v24, %v1788_v35  ;;  %6624 = vmatmul.msk.f32.gmra.mxu2 %vm495_vm0, %v715_v34 }
 0x215   : > { %v2202_v38 = vadd.f32 %v2201_v25, %v1789_v36  ;;  %6684 = vmatmul.msk.f32.gmra.mxu3 %vm495_vm0, %v715_v34  ;;  %v10075_v45 = vpop.f32.mrf.mxu0 }
 0x216   : > { %v10077_v46 = vpop.f32.mrf.mxu1 }
 0x217   : > { %v1406_v39 = vpop.f32.mrf.mxu2 }
 0x218   : > { %v1603_v40 = vpop.f32.mrf.mxu3  ;;  %v1407_v41 = vadd.f32 %v1406_v39, %v9984_v22  ;;  %6505 = vmatmul.msk.f32.gmra.mxu0 %vm495_vm0, %v716_v47 }
 0x219   : > { %v1604_v42 = vadd.f32 %v1603_v40, %v9987_v23  ;;  %6565 = vmatmul.msk.f32.gmra.mxu1 %vm495_vm0, %v716_v47 }
 0x21a   : > { %v1792_v48 = vmax.f32 %v1407_v41, 0.0 }
 0x21b   : > { %v1793_v49 = vmax.f32 %v1604_v42, 0.0 }
 0x21c   : > { %v2138_v50 = vadd.f32 %v2137_v37, %v1792_v48  ;;  %6625 = vmatmul.msk.f32.gmra.mxu2 %vm495_vm0, %v716_v47  ;;  %v720_v48 = vld [vmem:[%s10954_s2 + $0xe0] sm:$0xff] }
 0x21d   : > { %v2203_v51 = vadd.f32 %v2202_v38, %v1793_v49  ;;  %6685 = vmatmul.msk.f32.gmra.mxu3 %vm495_vm0, %v716_v47  ;;  %v10088_v58 = vpop.f32.mrf.mxu0 }
 0x21e   : > { %v10090_v59 = vpop.f32.mrf.mxu1 }
 0x21f   : > { %v1409_v52 = vpop.f32.mrf.mxu2 }
 0x220   : > { %v1606_v53 = vpop.f32.mrf.mxu3  ;;  %v1410_v56 = vadd.f32 %v1409_v52, %v9984_v22  ;;  %6506 = vmatmul.msk.f32.gmra.mxu0 %vm495_vm0, %v717_v60 }
 0x221   : > { %v1607_v57 = vadd.f32 %v1606_v53, %v9987_v23  ;;  %6566 = vmatmul.msk.f32.gmra.mxu1 %vm495_vm0, %v717_v60 }
 0x222   : > { %v1796_v61 = vmax.f32 %v1410_v56, 0.0 }
 0x223   : > { %v1797_v62 = vmax.f32 %v1607_v57, 0.0 }
 0x224   : > { %v2139_v63 = vadd.f32 %v2138_v50, %v1796_v61  ;;  %6626 = vmatmul.msk.f32.gmra.mxu2 %vm495_vm0, %v717_v60 }
 0x225   : > { %v2204_v0 = vadd.f32 %v2203_v51, %v1797_v62  ;;  %6686 = vmatmul.msk.f32.gmra.mxu3 %vm495_vm0, %v717_v60  ;;  %v10101_v7 = vpop.f32.mrf.mxu0 }
 0x226   : > { %v10103_v8 = vpop.f32.mrf.mxu1 }
 0x227   : > { %v1412_v3 = vpop.f32.mrf.mxu2 }
 0x228   : > { %v1609_v4 = vpop.f32.mrf.mxu3  ;;  %v1413_v5 = vadd.f32 %v1412_v3, %v9984_v22  ;;  %6507 = vmatmul.msk.f32.gmra.mxu0 %vm495_vm0, %v718_v9 }
 0x229   : > { %v1610_v6 = vadd.f32 %v1609_v4, %v9987_v23  ;;  %6567 = vmatmul.msk.f32.gmra.mxu1 %vm495_vm0, %v718_v9 }
 0x22a   : > { %v1800_v10 = vmax.f32 %v1413_v5, 0.0 }
 0x22b   : > { %v1801_v11 = vmax.f32 %v1610_v6, 0.0 }
 0x22c   : > { %v2140_v17 = vadd.f32 %v2139_v63, %v1800_v10  ;;  %6627 = vmatmul.msk.f32.gmra.mxu2 %vm495_vm0, %v718_v9  ;;  %v721_v63 = vld [vmem:[%s10954_s2 + $0xe8] sm:$0xff] }
 0x22d   : > { %v2205_v18 = vadd.f32 %v2204_v0, %v1801_v11  ;;  %6687 = vmatmul.msk.f32.gmra.mxu3 %vm495_vm0, %v718_v9  ;;  %v10114_v27 = vpop.f32.mrf.mxu0 }
 0x22e   : > { %v10116_v28 = vpop.f32.mrf.mxu1 }
 0x22f   : > { %v1415_v21 = vpop.f32.mrf.mxu2 }
 0x230   : > { %v1612_v24 = vpop.f32.mrf.mxu3  ;;  %v1416_v25 = vadd.f32 %v1415_v21, %v9984_v22  ;;  %6508 = vmatmul.msk.f32.gmra.mxu0 %vm495_vm0, %v719_v29  ;;  %v722_v21 = vld [vmem:[%s10954_s2 + $0xf0] sm:$0xff] }
 0x231   : > { %v1613_v26 = vadd.f32 %v1612_v24, %v9987_v23  ;;  %6568 = vmatmul.msk.f32.gmra.mxu1 %vm495_vm0, %v719_v29 }
 0x232   : > { %v1804_v34 = vmax.f32 %v1416_v25, 0.0 }
 0x233   : > { %v1805_v35 = vmax.f32 %v1613_v26, 0.0 }
 0x234   : > { %v2141_v36 = vadd.f32 %v2140_v17, %v1804_v34  ;;  %6628 = vmatmul.msk.f32.gmra.mxu2 %vm495_vm0, %v719_v29 }
 0x235   : > { %v2206_v37 = vadd.f32 %v2205_v18, %v1805_v35  ;;  %6688 = vmatmul.msk.f32.gmra.mxu3 %vm495_vm0, %v719_v29  ;;  %v10127_v42 = vpop.f32.mrf.mxu0 }
 0x236   : > { %v10129_v47 = vpop.f32.mrf.mxu1 }
 0x237   : > { %v1418_v38 = vpop.f32.mrf.mxu2 }
 0x238   : > { %v1615_v39 = vpop.f32.mrf.mxu3  ;;  %v1419_v40 = vadd.f32 %v1418_v38, %v9984_v22  ;;  %6509 = vmatmul.msk.f32.gmra.mxu0 %vm495_vm0, %v720_v48 }
 0x239   : > { %v1616_v41 = vadd.f32 %v1615_v39, %v9987_v23  ;;  %6569 = vmatmul.msk.f32.gmra.mxu1 %vm495_vm0, %v720_v48 }
 0x23a   : > { %v1808_v49 = vmax.f32 %v1419_v40, 0.0  ;;  %v723_v40 = vld [vmem:[%s10954_s2 + $0xf8] sm:$0xff] }
 0x23b   : > { %v1809_v50 = vmax.f32 %v1616_v41, 0.0 }
 0x23c   : > { %v2142_v51 = vadd.f32 %v2141_v36, %v1808_v49  ;;  %6629 = vmatmul.msk.f32.gmra.mxu2 %vm495_vm0, %v720_v48 }
 0x23d   : > { %v2207_v52 = vadd.f32 %v2206_v37, %v1809_v50  ;;  %6689 = vmatmul.msk.f32.gmra.mxu3 %vm495_vm0, %v720_v48  ;;  %v10140_v61 = vpop.f32.mrf.mxu0 }
 0x23e   : > { %v10142_v62 = vpop.f32.mrf.mxu1 }
 0x23f   : > { %v1421_v53 = vpop.f32.mrf.mxu2 }
 0x240   : > { %v1618_v56 = vpop.f32.mrf.mxu3  ;;  %v1422_v57 = vadd.f32 %v1421_v53, %v9984_v22  ;;  %6510 = vmatmul.msk.f32.gmra.mxu0 %vm495_vm0, %v721_v63 }
 0x241   : > { %v1619_v60 = vadd.f32 %v1618_v56, %v9987_v23  ;;  %6570 = vmatmul.msk.f32.gmra.mxu1 %vm495_vm0, %v721_v63 }
 0x242   : > { %v1812_v0 = vmax.f32 %v1422_v57, 0.0 }
 0x243   : > { %v1813_v3 = vmax.f32 %v1619_v60, 0.0 }
 0x244   : > { %v2143_v4 = vadd.f32 %v2142_v51, %v1812_v0  ;;  %6630 = vmatmul.msk.f32.gmra.mxu2 %vm495_vm0, %v721_v63 }
 0x245   : > { %v2208_v5 = vadd.f32 %v2207_v52, %v1813_v3  ;;  %6690 = vmatmul.msk.f32.gmra.mxu3 %vm495_vm0, %v721_v63  ;;  %v10153_v17 = vpop.f32.mrf.mxu0  ;;  %v724_v63 = vld [vmem:[%s10954_s2 + $0x100] sm:$0xff] }
 0x246   : > { %v10155_v18 = vpop.f32.mrf.mxu1 }
 0x247   : > { %v1424_v6 = vpop.f32.mrf.mxu2 }
 0x248   : > { %v1621_v9 = vpop.f32.mrf.mxu3  ;;  %v1425_v10 = vadd.f32 %v1424_v6, %v9984_v22  ;;  %6511 = vmatmul.msk.f32.gmra.mxu0 %vm495_vm0, %v722_v21 }
 0x249   : > { %v1622_v11 = vadd.f32 %v1621_v9, %v9987_v23  ;;  %6571 = vmatmul.msk.f32.gmra.mxu1 %vm495_vm0, %v722_v21 }
 0x24a   : > { %v1816_v24 = vmax.f32 %v1425_v10, 0.0 }
 0x24b   : > { %v1817_v25 = vmax.f32 %v1622_v11, 0.0 }
 0x24c   : > { %v2144_v26 = vadd.f32 %v2143_v4, %v1816_v24  ;;  %6631 = vmatmul.msk.f32.gmra.mxu2 %vm495_vm0, %v722_v21 }
 0x24d   : > { %v2209_v29 = vadd.f32 %v2208_v5, %v1817_v25  ;;  %6691 = vmatmul.msk.f32.gmra.mxu3 %vm495_vm0, %v722_v21  ;;  %v10166_v38 = vpop.f32.mrf.mxu0  ;;  %v725_v25 = vld [vmem:[%s10954_s2 + $0x108] sm:$0xff] }
 0x24e   : > { %v10168_v39 = vpop.f32.mrf.mxu1 }
 0x24f   : > { %v1427_v34 = vpop.f32.mrf.mxu2 }
 0x250   : > { %v1624_v35 = vpop.f32.mrf.mxu3  ;;  %v1428_v36 = vadd.f32 %v1427_v34, %v9984_v22  ;;  %6512 = vmatmul.msk.f32.gmra.mxu0 %vm495_vm0, %v723_v40 }
 0x251   : > { %v1625_v37 = vadd.f32 %v1624_v35, %v9987_v23  ;;  %6572 = vmatmul.msk.f32.gmra.mxu1 %vm495_vm0, %v723_v40 }
 0x252   : > { %v1820_v41 = vmax.f32 %v1428_v36, 0.0 }
 0x253   : > { %v1821_v48 = vmax.f32 %v1625_v37, 0.0 }
 0x254   : > { %v2145_v49 = vadd.f32 %v2144_v26, %v1820_v41  ;;  %6632 = vmatmul.msk.f32.gmra.mxu2 %vm495_vm0, %v723_v40 }
 0x255   : > { %v2210_v50 = vadd.f32 %v2209_v29, %v1821_v48  ;;  %6692 = vmatmul.msk.f32.gmra.mxu3 %vm495_vm0, %v723_v40  ;;  %v10179_v57 = vpop.f32.mrf.mxu0 }
 0x256   : > { %v10181_v60 = vpop.f32.mrf.mxu1 }
 0x257   : > { %v1430_v51 = vpop.f32.mrf.mxu2 }
 0x258   : > { %v1627_v52 = vpop.f32.mrf.mxu3  ;;  %v1431_v53 = vadd.f32 %v1430_v51, %v9984_v22  ;;  %6513 = vmatmul.msk.f32.gmra.mxu0 %vm495_vm0, %v724_v63 }
 0x259   : > { %v1628_v56 = vadd.f32 %v1627_v52, %v9987_v23  ;;  %6573 = vmatmul.msk.f32.gmra.mxu1 %vm495_vm0, %v724_v63 }
 0x25a   : > { %v1824_v0 = vmax.f32 %v1431_v53, 0.0 }
 0x25b   : > { %v1825_v3 = vmax.f32 %v1628_v56, 0.0 }
 0x25c   : > { %v2146_v4 = vadd.f32 %v2145_v49, %v1824_v0  ;;  %6633 = vmatmul.msk.f32.gmra.mxu2 %vm495_vm0, %v724_v63 }
 0x25d   : > { %v2211_v5 = vadd.f32 %v2210_v50, %v1825_v3  ;;  %6693 = vmatmul.msk.f32.gmra.mxu3 %vm495_vm0, %v724_v63  ;;  %v10192_v21 = vpop.f32.mrf.mxu0  ;;  %v726_v50 = vld [vmem:[%s10954_s2 + $0x110] sm:$0xff] }
 0x25e   : > { %v10194_v24 = vpop.f32.mrf.mxu1 }
 0x25f   : > { %v1433_v6 = vpop.f32.mrf.mxu2 }
 0x260   : > { %v1630_v9 = vpop.f32.mrf.mxu3  ;;  %v1434_v10 = vadd.f32 %v1433_v6, %v9984_v22  ;;  %6514 = vmatmul.msk.f32.gmra.mxu0 %vm495_vm0, %v725_v25 }
 0x261   : > { %v1631_v11 = vadd.f32 %v1630_v9, %v9987_v23  ;;  %6574 = vmatmul.msk.f32.gmra.mxu1 %vm495_vm0, %v725_v25  ;;  %v727_v9 = vld [vmem:[%s10954_s2 + $0x118] sm:$0xff] }
 0x262   : > { %v1828_v26 = vmax.f32 %v1434_v10, 0.0 }
 0x263   : > { %v1829_v29 = vmax.f32 %v1631_v11, 0.0 }
 0x264   : > { %v2147_v34 = vadd.f32 %v2146_v4, %v1828_v26  ;;  %6634 = vmatmul.msk.f32.gmra.mxu2 %vm495_vm0, %v725_v25 }
 0x265   : > { %v2212_v35 = vadd.f32 %v2211_v5, %v1829_v29  ;;  %6694 = vmatmul.msk.f32.gmra.mxu3 %vm495_vm0, %v725_v25  ;;  %v10205_v48 = vpop.f32.mrf.mxu0 }
 0x266   : > { %v10207_v49 = vpop.f32.mrf.mxu1 }
 0x267   : > { %v1436_v36 = vpop.f32.mrf.mxu2 }
 0x268   : > { %v1633_v37 = vpop.f32.mrf.mxu3  ;;  %v1437_v40 = vadd.f32 %v1436_v36, %v9984_v22  ;;  %6515 = vmatmul.msk.f32.gmra.mxu0 %vm495_vm0, %v726_v50 }
 0x269   : > { %v1634_v41 = vadd.f32 %v1633_v37, %v9987_v23  ;;  %6575 = vmatmul.msk.f32.gmra.mxu1 %vm495_vm0, %v726_v50 }
 0x26a   : > { %v1832_v51 = vmax.f32 %v1437_v40, 0.0 }
 0x26b   : > { %v1833_v52 = vmax.f32 %v1634_v41, 0.0  ;;  %v728_v41 = vld [vmem:[%s10954_s2 + $0x120] sm:$0xff] }
 0x26c   : > { %v2148_v53 = vadd.f32 %v2147_v34, %v1832_v51  ;;  %6635 = vmatmul.msk.f32.gmra.mxu2 %vm495_vm0, %v726_v50 }
 0x26d   : > { %v2213_v56 = vadd.f32 %v2212_v35, %v1833_v52  ;;  %6695 = vmatmul.msk.f32.gmra.mxu3 %vm495_vm0, %v726_v50  ;;  %v10218_v5 = vpop.f32.mrf.mxu0 }
 0x26e   : > { %v10220_v6 = vpop.f32.mrf.mxu1 }
 0x26f   : > { %v1439_v63 = vpop.f32.mrf.mxu2 }
 0x270   : > { %v1636_v0 = vpop.f32.mrf.mxu3  ;;  %v1440_v3 = vadd.f32 %v1439_v63, %v9984_v22  ;;  %6516 = vmatmul.msk.f32.gmra.mxu0 %vm495_vm0, %v727_v9 }
 0x271   : > { %v1637_v4 = vadd.f32 %v1636_v0, %v9987_v23  ;;  %6576 = vmatmul.msk.f32.gmra.mxu1 %vm495_vm0, %v727_v9 }
 0x272   : > { %v1836_v10 = vmax.f32 %v1440_v3, 0.0 }
 0x273   : > { %v1837_v11 = vmax.f32 %v1637_v4, 0.0 }
 0x274   : > { %v2149_v25 = vadd.f32 %v2148_v53, %v1836_v10  ;;  %6636 = vmatmul.msk.f32.gmra.mxu2 %vm495_vm0, %v727_v9  ;;  %v729_v10 = vld [vmem:[%s10954_s2 + $0x128] sm:$0xff] }
 0x275   : > { %v2214_v26 = vadd.f32 %v2213_v56, %v1837_v11  ;;  %6696 = vmatmul.msk.f32.gmra.mxu3 %vm495_vm0, %v727_v9  ;;  %v10231_v37 = vpop.f32.mrf.mxu0 }
 0x276   : > { %v10233_v40 = vpop.f32.mrf.mxu1 }
 0x277   : > { %v1442_v29 = vpop.f32.mrf.mxu2 }
 0x278   : > { %v1639_v34 = vpop.f32.mrf.mxu3  ;;  %v1443_v35 = vadd.f32 %v1442_v29, %v9984_v22  ;;  %6517 = vmatmul.msk.f32.gmra.mxu0 %vm495_vm0, %v728_v41 }
 0x279   : > { %v1640_v36 = vadd.f32 %v1639_v34, %v9987_v23  ;;  %6577 = vmatmul.msk.f32.gmra.mxu1 %vm495_vm0, %v728_v41 }
 0x27a   : > { %v1840_v50 = vmax.f32 %v1443_v35, 0.0 }
 0x27b   : > { %v1841_v51 = vmax.f32 %v1640_v36, 0.0 }
 0x27c   : > { %v2150_v52 = vadd.f32 %v2149_v25, %v1840_v50  ;;  %6637 = vmatmul.msk.f32.gmra.mxu2 %vm495_vm0, %v728_v41 }
 0x27d   : > { %v2215_v53 = vadd.f32 %v2214_v26, %v1841_v51  ;;  %6697 = vmatmul.msk.f32.gmra.mxu3 %vm495_vm0, %v728_v41  ;;  %v10244_v4 = vpop.f32.mrf.mxu0 }
 0x27e   : > { %v10246_v9 = vpop.f32.mrf.mxu1 }
 0x27f   : > { %v1445_v56 = vpop.f32.mrf.mxu2 }
 0x280   : > { %v1642_v63 = vpop.f32.mrf.mxu3  ;;  %v1446_v0 = vadd.f32 %v1445_v56, %v9984_v22  ;;  %6518 = vmatmul.msk.f32.gmra.mxu0 %vm495_vm0, %v729_v10  ;;  %v730_v56 = vld [vmem:[%s10954_s2 + $0x130] sm:$0xff] }
 0x281   : > { %v1643_v3 = vadd.f32 %v1642_v63, %v9987_v23  ;;  %6578 = vmatmul.msk.f32.gmra.mxu1 %vm495_vm0, %v729_v10 }
 0x282   : > { %v1844_v11 = vmax.f32 %v1446_v0, 0.0 }
 0x283   : > { %v1845_v25 = vmax.f32 %v1643_v3, 0.0 }
 0x284   : > { %v2151_v26 = vadd.f32 %v2150_v52, %v1844_v11  ;;  %6638 = vmatmul.msk.f32.gmra.mxu2 %vm495_vm0, %v729_v10 }
 0x285   : > { %v2216_v29 = vadd.f32 %v2215_v53, %v1845_v25  ;;  %6698 = vmatmul.msk.f32.gmra.mxu3 %vm495_vm0, %v729_v10  ;;  %v10257_v50 = vpop.f32.mrf.mxu0 }
 0x286   : > { %10969 = vst [vmem:[#allocation24_spill] sm:$0xff] %v10257_v50  ;;  %v10259_v51 = vpop.f32.mrf.mxu1 }
 0x287   : > { %v1448_v34 = vpop.f32.mrf.mxu2  ;;  %10970 = vst [vmem:[#allocation25_spill] sm:$0xff] %v10259_v51 }
 0x288   : > { %v1645_v35 = vpop.f32.mrf.mxu3  ;;  %v1449_v36 = vadd.f32 %v1448_v34, %v9984_v22  ;;  %6519 = vmatmul.msk.f32.gmra.mxu0 %vm495_vm0, %v730_v56 }
 0x289   : > { %v1646_v41 = vadd.f32 %v1645_v35, %v9987_v23  ;;  %6579 = vmatmul.msk.f32.gmra.mxu1 %vm495_vm0, %v730_v56 }
 0x28a   : > { %v1848_v52 = vmax.f32 %v1449_v36, 0.0  ;;  %v731_v36 = vld [vmem:[%s10954_s2 + $0x138] sm:$0xff] }
 0x28b   : > { %v1849_v53 = vmax.f32 %v1646_v41, 0.0 }
 0x28c   : > { %v2152_v63 = vadd.f32 %v2151_v26, %v1848_v52  ;;  %6639 = vmatmul.msk.f32.gmra.mxu2 %vm495_vm0, %v730_v56 }
 0x28d   : > { %v2217_v0 = vadd.f32 %v2216_v29, %v1849_v53  ;;  %6699 = vmatmul.msk.f32.gmra.mxu3 %vm495_vm0, %v730_v56  ;;  %v10270_v34 = vpop.f32.mrf.mxu0 }
 0x28e   : > { %10971 = vst [vmem:[#allocation26_spill] sm:$0xff] %v10270_v34  ;;  %v10272_v35 = vpop.f32.mrf.mxu1 }
 0x28f   : > { %v1451_v3 = vpop.f32.mrf.mxu2  ;;  %10972 = vst [vmem:[#allocation27_spill] sm:$0xff] %v10272_v35 }
 0x290   : > { %v1648_v10 = vpop.f32.mrf.mxu3  ;;  %v1452_v11 = vadd.f32 %v1451_v3, %v9984_v22  ;;  %6520 = vmatmul.msk.f32.gmra.mxu0 %vm495_vm0, %v731_v36 }
 0x291   : > { %v1649_v25 = vadd.f32 %v1648_v10, %v9987_v23  ;;  %6580 = vmatmul.msk.f32.gmra.mxu1 %vm495_vm0, %v731_v36 }
 0x292   : > { %v1852_v26 = vmax.f32 %v1452_v11, 0.0 }
 0x293   : > { %v1853_v29 = vmax.f32 %v1649_v25, 0.0  ;;  %v732_v25 = vld [vmem:[%s10954_s2 + $0x140] sm:$0xff] }
 0x294   : > { %v2153_v41 = vadd.f32 %v2152_v63, %v1852_v26  ;;  %6640 = vmatmul.msk.f32.gmra.mxu2 %vm495_vm0, %v731_v36 }
 0x295   : > { %v2218_v56 = vadd.f32 %v2217_v0, %v1853_v29  ;;  %6700 = vmatmul.msk.f32.gmra.mxu3 %vm495_vm0, %v731_v36  ;;  %v10283_v35 = vpop.f32.mrf.mxu0 }
 0x296   : > { %10973 = vst [vmem:[#allocation28_spill] sm:$0xff] %v10283_v35  ;;  %v10285_v11 = vpop.f32.mrf.mxu1 }
 0x297   : > { %v1454_v52 = vpop.f32.mrf.mxu2  ;;  %10974 = vst [vmem:[#allocation29_spill] sm:$0xff] %v10285_v11 }
 0x298   : > { %v1651_v53 = vpop.f32.mrf.mxu3  ;;  %v1455_v3 = vadd.f32 %v1454_v52, %v9984_v22  ;;  %6521 = vmatmul.msk.f32.gmra.mxu0 %vm495_vm0, %v732_v25 }
 0x299   : > { %v1652_v10 = vadd.f32 %v1651_v53, %v9987_v23  ;;  %6581 = vmatmul.msk.f32.gmra.mxu1 %vm495_vm0, %v732_v25 }
 0x29a   : > { %v1856_v63 = vmax.f32 %v1455_v3, 0.0 }
 0x29b   : > { %v1857_v0 = vmax.f32 %v1652_v10, 0.0  ;;  %v733_v10 = vld [vmem:[%s10954_s2 + $0x148] sm:$0xff] }
 0x29c   : > { %v2154_v36 = vadd.f32 %v2153_v41, %v1856_v63  ;;  %6641 = vmatmul.msk.f32.gmra.mxu2 %vm495_vm0, %v732_v25 }
 0x29d   : > { %v2219_v26 = vadd.f32 %v2218_v56, %v1857_v0  ;;  %6701 = vmatmul.msk.f32.gmra.mxu3 %vm495_vm0, %v732_v25  ;;  %v10296_v35 = vpop.f32.mrf.mxu0 }
 0x29e   : > { %10975 = vst [vmem:[#allocation30_spill] sm:$0xff] %v10296_v35  ;;  %v10298_v3 = vpop.f32.mrf.mxu1 }
 0x29f   : > { %v1457_v29 = vpop.f32.mrf.mxu2  ;;  %10976 = vst [vmem:[#allocation31_spill] sm:$0xff] %v10298_v3 }
 0x2a0   : > { %v1654_v52 = vpop.f32.mrf.mxu3  ;;  %v1458_v53 = vadd.f32 %v1457_v29, %v9984_v22  ;;  %6522 = vmatmul.msk.f32.gmra.mxu0 %vm495_vm0, %v733_v10 }
 0x2a1   : > { %v1655_v11 = vadd.f32 %v1654_v52, %v9987_v23  ;;  %6582 = vmatmul.msk.f32.gmra.mxu1 %vm495_vm0, %v733_v10 }
 0x2a2   : > { %v1860_v41 = vmax.f32 %v1458_v53, 0.0 }
 0x2a3   : > { %v1861_v56 = vmax.f32 %v1655_v11, 0.0  ;;  %v734_v11 = vld [vmem:[%s10954_s2 + $0x150] sm:$0xff] }
 0x2a4   : > { %v2155_v25 = vadd.f32 %v2154_v36, %v1860_v41  ;;  %6642 = vmatmul.msk.f32.gmra.mxu2 %vm495_vm0, %v733_v10  ;;  %v10317_v36 = vperm.slane %v9974_v16, 0 }
 0x2a5   : > { %v2220_v63 = vadd.f32 %v2219_v26, %v1861_v56  ;;  %6702 = vmatmul.msk.f32.gmra.mxu3 %vm495_vm0, %v733_v10  ;;  %v10309_v35 = vpop.f32.mrf.mxu0  ;;  %v10320_v10 = vperm.slane %v9974_v16, 1 }
 0x2a6   : > { %10977 = vst [vmem:[#allocation32_spill] sm:$0xff] %v10309_v35  ;;  %v10311_v53 = vpop.f32.mrf.mxu1  ;;  %v995_v56 = vadd.f32 %v9976_v19, %v10317_v36 }
 0x2a7   : > { %v1460_v0 = vpop.f32.mrf.mxu2  ;;  %10978 = vst [vmem:[#allocation33_spill] sm:$0xff] %v10311_v53  ;;  %v1192_v16 = vadd.f32 %v9978_v20, %v10320_v10  ;;  %v1189_v19 = vadd.f32 %v9965_v14, %v10320_v10  ;;  %v735_v14 = vld [vmem:[%s10954_s2 + $0x158] sm:$0xff] }
 0x2a8   : > { %v1657_v29 = vpop.f32.mrf.mxu3  ;;  %v1461_v52 = vadd.f32 %v1460_v0, %v9984_v22  ;;  %6523 = vmatmul.msk.f32.gmra.mxu0 %vm495_vm0, %v734_v11  ;;  %v1766_v53 = vmax.f32 %v995_v56, 0.0 }
 0x2a9   : > { %v1658_v3 = vadd.f32 %v1657_v29, %v9987_v23  ;;  %6583 = vmatmul.msk.f32.gmra.mxu1 %vm495_vm0, %v734_v11  ;;  %v1767_v56 = vmax.f32 %v1192_v16, 0.0 }
 0x2aa   : > { %v1864_v26 = vmax.f32 %v1461_v52, 0.0  ;;  %v992_v52 = vadd.f32 %v9963_v13, %v10317_v36 }
 0x2ab   : > { %v1865_v41 = vmax.f32 %v1658_v3, 0.0  ;;  %v998_v3 = vadd.f32 %v9997_v30, %v10317_v36 }
 0x2ac   : > { %v2156_v0 = vadd.f32 %v2155_v25, %v1864_v26  ;;  %6643 = vmatmul.msk.f32.gmra.mxu2 %vm495_vm0, %v734_v11  ;;  %v1195_v25 = vadd.f32 %v9999_v31, %v10320_v10  ;;  %v1762_v30 = vmax.f32 %v992_v52, 0.0  ;;  %v1198_v31 = vadd.f32 %v10012_v44, %v10320_v10 }
 0x2ad   : > { %v2221_v29 = vadd.f32 %v2220_v63, %v1865_v41  ;;  %6703 = vmatmul.msk.f32.gmra.mxu3 %vm495_vm0, %v734_v11  ;;  %v1001_v11 = vadd.f32 %v10010_v43, %v10317_v36  ;;  %v10342_v20 = vpop.f32.mrf.mxu0  ;;  %v1770_v34 = vmax.f32 %v998_v3, 0.0  ;;  %v1004_v43 = vadd.f32 %v10023_v54, %v10317_v36 }
 0x2ae   : > { %10979 = vst [vmem:[#allocation34_spill] sm:$0xff] %v10342_v20  ;;  %v10344_v35 = vpop.f32.mrf.mxu1  ;;  %v2002_v50 = vadd.f32 %v1766_v53, %v1762_v30  ;;  %v1771_v20 = vmax.f32 %v1195_v25, 0.0  ;;  %v1007_v44 = vadd.f32 %v10036_v1, %v10317_v36  ;;  %v1775_v53 = vmax.f32 %v1198_v31, 0.0 }
 0x2af   : > { %v1463_v63 = vpop.f32.mrf.mxu2  ;;  %10980 = vst [vmem:[#allocation35_spill] sm:$0xff] %v10344_v35  ;;  %v1201_v35 = vadd.f32 %v10025_v55, %v10320_v10  ;;  %v1774_v52 = vmax.f32 %v1001_v11, 0.0  ;;  %v1778_v25 = vmax.f32 %v1004_v43, 0.0  ;;  %v1207_v1 = vadd.f32 %v10051_v15, %v10320_v10 }
 0x2b0   : > { %v1660_v26 = vpop.f32.mrf.mxu3  ;;  %v1464_v13 = vadd.f32 %v1463_v63, %v9984_v22  ;;  %6524 = vmatmul.msk.f32.gmra.mxu0 %vm495_vm0, %v735_v14  ;;  %v2003_v55 = vadd.f32 %v2002_v50, %v1770_v34  ;;  %v1782_v30 = vmax.f32 %v1007_v44, 0.0  ;;  %v1013_v15 = vadd.f32 %v10062_v32, %v10317_v36 }
 0x2b1   : > { %v1661_v41 = vadd.f32 %v1660_v26, %v9987_v23  ;;  %v1763_v26 = vmax.f32 %v1189_v19, 0.0  ;;  %6584 = vmatmul.msk.f32.gmra.mxu1 %vm495_vm0, %v735_v14  ;;  %v1204_v19 = vadd.f32 %v10038_v2, %v10320_v10  ;;  %v1787_v44 = vmax.f32 %v1207_v1, 0.0 }
 0x2b2   : > { %v1868_v63 = vmax.f32 %v1464_v13, 0.0  ;;  %v1010_v13 = vadd.f32 %v10049_v12, %v10317_v36  ;;  %v736_v12 = vld [vmem:[%s10954_s2 + $0x160] sm:$0xff] }
 0x2b3   : > { %v1869_v51 = vmax.f32 %v1661_v41, 0.0  ;;  %v2067_v54 = vadd.f32 %v1767_v56, %v1763_v26  ;;  %v1779_v41 = vmax.f32 %v1201_v35, 0.0  ;;  %v1783_v34 = vmax.f32 %v1204_v19, 0.0 }
 0x2b4   : > { %v2157_v16 = vadd.f32 %v2156_v0, %v1868_v63  ;;  %6644 = vmatmul.msk.f32.gmra.mxu2 %vm495_vm0, %v735_v14  ;;  %v1210_v35 = vadd.f32 %v10064_v33, %v10320_v10  ;;  %v1786_v43 = vmax.f32 %v1010_v13, 0.0 }
 0x2b5   : > { %v2222_v3 = vadd.f32 %v2221_v29, %v1869_v51  ;;  %6704 = vmatmul.msk.f32.gmra.mxu3 %vm495_vm0, %v735_v14  ;;  %v2068_v11 = vadd.f32 %v2067_v54, %v1771_v20  ;;  %v2004_v29 = vadd.f32 %v2003_v55, %v1774_v52  ;;  %v10369_v31 = vpop.f32.mrf.mxu0  ;;  %v1016_v54 = vadd.f32 %v10075_v45, %v10317_v36 }
 0x2b6   : > { %v10371_v2 = vpop.f32.mrf.mxu1  ;;  %v1213_v55 = vadd.f32 %v10077_v46, %v10320_v10  ;;  %v1791_v13 = vmax.f32 %v1210_v35, 0.0  ;;  %v1019_v45 = vadd.f32 %v10088_v58, %v10317_v36  ;;  %v1216_v46 = vadd.f32 %v10090_v59, %v10320_v10  ;;  %v737_v59 = vld [vmem:[%s10954_s2 + $0x168] sm:$0xff] }
 0x2b7   : > { %v1466_v51 = vpop.f32.mrf.mxu2  ;;  %v2069_v50 = vadd.f32 %v2068_v11, %v1775_v53  ;;  %v2005_v20 = vadd.f32 %v2004_v29, %v1778_v25  ;;  %v1790_v25 = vmax.f32 %v1013_v15, 0.0  ;;  %v1794_v1 = vmax.f32 %v1016_v54, 0.0 }
 0x2b8   : > { %v1663_v0 = vpop.f32.mrf.mxu3  ;;  %v1467_v14 = vadd.f32 %v1466_v51, %v9984_v22  ;;  %6525 = vmatmul.msk.f32.gmra.mxu0 %vm495_vm0, %v736_v12  ;;  %v1795_v51 = vmax.f32 %v1213_v55, 0.0  ;;  %v1219_v29 = vadd.f32 %v10103_v8, %v10320_v10  ;;  %v1799_v15 = vmax.f32 %v1216_v46, 0.0 }
 0x2b9   : > { %v1664_v56 = vadd.f32 %v1663_v0, %v9987_v23  ;;  %v2070_v52 = vadd.f32 %v2069_v50, %v1779_v41  ;;  %6585 = vmatmul.msk.f32.gmra.mxu1 %vm495_vm0, %v736_v12  ;;  %v2006_v32 = vadd.f32 %v2005_v20, %v1782_v30  ;;  %v1222_v8 = vadd.f32 %v10116_v28, %v10320_v10 }
 0x2ba   : > { %v1872_v63 = vmax.f32 %v1467_v14, 0.0 }
 0x2bb   : > { %v1873_v26 = vmax.f32 %v1664_v56, 0.0  ;;  %v2071_v33 = vadd.f32 %v2070_v52, %v1783_v34  ;;  %v2007_v11 = vadd.f32 %v2006_v32, %v1786_v43  ;;  %v1025_v34 = vadd.f32 %v10114_v27, %v10317_v36 }
 0x2bc   : > { %v2158_v53 = vadd.f32 %v2157_v16, %v1872_v63  ;;  %6645 = vmatmul.msk.f32.gmra.mxu2 %vm495_vm0, %v736_v12  ;;  %v1022_v16 = vadd.f32 %v10101_v7, %v10317_v36  ;;  %v1798_v7 = vmax.f32 %v1019_v45, 0.0  ;;  %v1028_v52 = vadd.f32 %v10127_v42, %v10317_v36 }
 0x2bd   : > { %v2223_v19 = vadd.f32 %v2222_v3, %v1873_v26  ;;  %6705 = vmatmul.msk.f32.gmra.mxu3 %vm495_vm0, %v736_v12  ;;  %v2072_v41 = vadd.f32 %v2071_v33, %v1787_v44  ;;  %v10398_v58 = vpop.f32.mrf.mxu0  ;;  %v2008_v12 = vadd.f32 %v2007_v11, %v1790_v25  ;;  %v1803_v44 = vmax.f32 %v1219_v29, 0.0 }
 0x2be   : > { %v10400_v56 = vpop.f32.mrf.mxu1  ;;  %v1802_v26 = vmax.f32 %v1022_v16, 0.0  ;;  %v1225_v27 = vadd.f32 %v10129_v47, %v10320_v10  ;;  %v1806_v32 = vmax.f32 %v1025_v34, 0.0  ;;  %v1031_v33 = vadd.f32 %v10140_v61, %v10317_v36 }
 0x2bf   : > { %v1469_v3 = vpop.f32.mrf.mxu2  ;;  %v2073_v50 = vadd.f32 %v2072_v41, %v1791_v13  ;;  %v2009_v43 = vadd.f32 %v2008_v12, %v1794_v1  ;;  %v1807_v25 = vmax.f32 %v1222_v8, 0.0  ;;  %v1228_v13 = vadd.f32 %v10142_v62, %v10320_v10  ;;  %v738_v62 = vld [vmem:[%s10954_s2 + $0x170] sm:$0xff] }
 0x2c0   : > { %v1666_v0 = vpop.f32.mrf.mxu3  ;;  %v1470_v30 = vadd.f32 %v1469_v3, %v9984_v22  ;;  %6526 = vmatmul.msk.f32.gmra.mxu0 %vm495_vm0, %v737_v59  ;;  %v1810_v11 = vmax.f32 %v1028_v52, 0.0  ;;  %v1034_v47 = vadd.f32 %v10153_v17, %v10317_v36  ;;  %v1811_v41 = vmax.f32 %v1225_v27, 0.0 }
 0x2c1   : > { %v1667_v14 = vadd.f32 %v1666_v0, %v9987_v23  ;;  %v2074_v63 = vadd.f32 %v2073_v50, %v1795_v51  ;;  %6586 = vmatmul.msk.f32.gmra.mxu1 %vm495_vm0, %v737_v59  ;;  %v2010_v28 = vadd.f32 %v2009_v43, %v1798_v7  ;;  %v1814_v0 = vmax.f32 %v1031_v33, 0.0 }
 0x2c2   : > { %v1876_v35 = vmax.f32 %v1470_v30, 0.0  ;;  %v1231_v17 = vadd.f32 %v10155_v18, %v10320_v10  ;;  %v1037_v29 = vadd.f32 %v10166_v38, %v10317_v36  ;;  %v1818_v7 = vmax.f32 %v1034_v47, 0.0 }
 0x2c3   : > { %v1877_v20 = vmax.f32 %v1667_v14, 0.0  ;;  %v2075_v42 = vadd.f32 %v2074_v63, %v1799_v15  ;;  %v2011_v45 = vadd.f32 %v2010_v28, %v1802_v26  ;;  %v1815_v14 = vmax.f32 %v1228_v13, 0.0 }
 0x2c4   : > { %v2159_v54 = vadd.f32 %v2158_v53, %v1876_v35  ;;  %6646 = vmatmul.msk.f32.gmra.mxu2 %vm495_vm0, %v737_v59  ;;  %v1234_v34 = vadd.f32 %v10168_v39, %v10320_v10  ;;  %v1040_v15 = vadd.f32 %v10179_v57, %v10317_v36  ;;  %v1822_v43 = vmax.f32 %v1037_v29, 0.0 }
 0x2c5   : > { %v2224_v55 = vadd.f32 %v2223_v19, %v1877_v20  ;;  %6706 = vmatmul.msk.f32.gmra.mxu3 %vm495_vm0, %v737_v59  ;;  %v2076_v46 = vadd.f32 %v2075_v42, %v1803_v44  ;;  %v10425_v16 = vpop.f32.mrf.mxu0  ;;  %v2012_v3 = vadd.f32 %v2011_v45, %v1806_v32  ;;  %v1819_v20 = vmax.f32 %v1231_v17, 0.0 }
 0x2c6   : > { %v10427_v61 = vpop.f32.mrf.mxu1  ;;  %v1237_v39 = vadd.f32 %v10181_v60, %v10320_v10  ;;  %v1043_v57 = vadd.f32 %v10192_v21, %v10317_v36  ;;  %v1823_v52 = vmax.f32 %v1234_v34, 0.0  ;;  %v1826_v44 = vmax.f32 %v1040_v15, 0.0  ;;  %v739_v21 = vld [vmem:[%s10954_s2 + $0x178] sm:$0xff] }
 0x2c7   : > { %v1472_v53 = vpop.f32.mrf.mxu2  ;;  %v2077_v30 = vadd.f32 %v2076_v46, %v1807_v25  ;;  %v2013_v50 = vadd.f32 %v2012_v3, %v1810_v11  ;;  %v1240_v27 = vadd.f32 %v10194_v24, %v10320_v10  ;;  %v1046_v28 = vadd.f32 %v10205_v48, %v10317_v36 }
 0x2c8   : > { %v1669_v19 = vpop.f32.mrf.mxu3  ;;  %v1473_v1 = vadd.f32 %v1472_v53, %v9984_v22  ;;  %6527 = vmatmul.msk.f32.gmra.mxu0 %vm495_vm0, %v738_v62  ;;  %v1827_v24 = vmax.f32 %v1237_v39, 0.0  ;;  %v1243_v45 = vadd.f32 %v10207_v49, %v10320_v10  ;;  %v1830_v11 = vmax.f32 %v1043_v57, 0.0 }
 0x2c9   : > { %v1670_v51 = vadd.f32 %v1669_v19, %v9987_v23  ;;  %6587 = vmatmul.msk.f32.gmra.mxu1 %vm495_vm0, %v738_v62  ;;  %v2078_v18 = vadd.f32 %v2077_v30, %v1811_v41  ;;  %v2014_v38 = vadd.f32 %v2013_v50, %v1814_v0  ;;  %v1049_v48 = vadd.f32 %v10218_v5, %v10317_v36 }
 0x2ca   : > { %v1880_v59 = vmax.f32 %v1473_v1, 0.0  ;;  %v1831_v41 = vmax.f32 %v1240_v27, 0.0  ;;  %v1246_v1 = vadd.f32 %v10220_v6, %v10320_v10  ;;  %v1052_v49 = vadd.f32 %v10231_v37, %v10317_v36 }
 0x2cb   : > { %v1881_v12 = vmax.f32 %v1670_v51, 0.0  ;;  %v2079_v63 = vadd.f32 %v2078_v18, %v1815_v14  ;;  %v2015_v26 = vadd.f32 %v2014_v38, %v1818_v7  ;;  %v1834_v51 = vmax.f32 %v1046_v28, 0.0  ;;  %v10981_v38 = vld [vmem:[#allocation24_spill] sm:$0xff] }
 0x2cc   : > { %v2160_v8 = vadd.f32 %v2159_v54, %v1880_v59  ;;  %6647 = vmatmul.msk.f32.gmra.mxu2 %vm495_vm0, %v738_v62  ;;  %v1835_v0 = vmax.f32 %v1243_v45, 0.0  ;;  %v1838_v29 = vmax.f32 %v1049_v48, 0.0  ;;  %v1249_v6 = vadd.f32 %v10233_v40, %v10320_v10  ;;  %v740_v40 = vld [vmem:[%s10954_s2 + $0x180] sm:$0xff] }
 0x2cd   : > { %v2225_v35 = vadd.f32 %v2224_v55, %v1881_v12  ;;  %6707 = vmatmul.msk.f32.gmra.mxu3 %vm495_vm0, %v738_v62  ;;  %v10454_v60 = vpop.f32.mrf.mxu0  ;;  %v2080_v25 = vadd.f32 %v2079_v63, %v1819_v20  ;;  %v2016_v13 = vadd.f32 %v2015_v26, %v1822_v43  ;;  %v1839_v14 = vmax.f32 %v1246_v1, 0.0 }
 0x2ce   : > { %v10456_v42 = vpop.f32.mrf.mxu1  ;;  %v1055_v59 = vadd.f32 %v10244_v4, %v10317_v36  ;;  %v1842_v7 = vmax.f32 %v1052_v49, 0.0  ;;  %v1252_v4 = vadd.f32 %v10246_v9, %v10320_v10  ;;  %v1058_v20 = vadd.f32 %v10981_v38, %v10317_v36  ;;  %v10990_v38 = vld [vmem:[#allocation33_spill] sm:$0xff] }
 0x2cf   : > { %v1475_v54 = vpop.f32.mrf.mxu2  ;;  %v2081_v19 = vadd.f32 %v2080_v25, %v1823_v52  ;;  %v2017_v46 = vadd.f32 %v2016_v13, %v1826_v44  ;;  %v1843_v39 = vmax.f32 %v1249_v6, 0.0  ;;  %v10982_v44 = vld [vmem:[#allocation25_spill] sm:$0xff]  ;;  %v10984_v25 = vld [vmem:[#allocation27_spill] sm:$0xff] }
 0x2d0   : > { %v1672_v55 = vpop.f32.mrf.mxu3  ;;  %v1476_v32 = vadd.f32 %v1475_v54, %v9984_v22  ;;  %6528 = vmatmul.msk.f32.gmra.mxu0 %vm495_vm0, %v739_v21  ;;  %v1846_v52 = vmax.f32 %v1055_v59, 0.0  ;;  %v1255_v27 = vadd.f32 %v10982_v44, %v10320_v10  ;;  %v10983_v54 = vld [vmem:[#allocation26_spill] sm:$0xff]  ;;  %v1258_v13 = vadd.f32 %v10984_v25, %v10320_v10  ;;  %v10988_v59 = vld [vmem:[#allocation31_spill] sm:$0xff] }
 0x2d1   : > { %v1673_v33 = vadd.f32 %v1672_v55, %v9987_v23  ;;  %6588 = vmatmul.msk.f32.gmra.mxu1 %vm495_vm0, %v739_v21  ;;  %v2082_v5 = vadd.f32 %v2081_v19, %v1827_v24  ;;  %v2018_v17 = vadd.f32 %v2017_v46, %v1830_v11  ;;  %v1061_v55 = vadd.f32 %v10983_v54, %v10317_v36  ;;  %v10985_v24 = vld [vmem:[#allocation28_spill] sm:$0xff]  ;;  %v10986_v19 = vld [vmem:[#allocation29_spill] sm:$0xff] }
 0x2d2   : > { %v1884_v47 = vmax.f32 %v1476_v32, 0.0  ;;  %v1064_v45 = vadd.f32 %v10985_v24, %v10317_v36  ;;  %v1261_v46 = vadd.f32 %v10986_v19, %v10320_v10 }
 0x2d3   : > { %v1885_v53 = vmax.f32 %v1673_v33, 0.0  ;;  %v2083_v30 = vadd.f32 %v2082_v5, %v1831_v41  ;;  %v2019_v50 = vadd.f32 %v2018_v17, %v1834_v51  ;;  %v1847_v33 = vmax.f32 %v1252_v4, 0.0  ;;  %v10987_v51 = vld [vmem:[#allocation30_spill] sm:$0xff]  ;;  %v741_v17 = vld [vmem:[%s10954_s2 + $0x188] sm:$0xff] }
 0x2d4   : > { %v2161_v62 = vadd.f32 %v2160_v8, %v1884_v47  ;;  %6648 = vmatmul.msk.f32.gmra.mxu2 %vm495_vm0, %v739_v21  ;;  %v1851_v47 = vmax.f32 %v1255_v27, 0.0  ;;  %v1067_v49 = vadd.f32 %v10987_v51, %v10317_v36  ;;  %v10991_v27 = vld [vmem:[#allocation34_spill] sm:$0xff] }
 0x2d5   : > { %v2226_v3 = vadd.f32 %v2225_v35, %v1885_v53  ;;  %6708 = vmatmul.msk.f32.gmra.mxu3 %vm495_vm0, %v739_v21  ;;  %v10479_v18 = vpop.f32.mrf.mxu0  ;;  %v2084_v35 = vadd.f32 %v2083_v30, %v1835_v0  ;;  %v2020_v43 = vadd.f32 %v2019_v50, %v1838_v29  ;;  %v1850_v21 = vmax.f32 %v1058_v20, 0.0 }
 0x2d6   : > { %v10481_v8 = vpop.f32.mrf.mxu1  ;;  %v1854_v53 = vmax.f32 %v1061_v55, 0.0  ;;  %v1855_v30 = vmax.f32 %v1258_v13, 0.0  ;;  %v1862_v4 = vmax.f32 %v1067_v49, 0.0  ;;  %v1267_v20 = vadd.f32 %v10990_v38, %v10320_v10  ;;  %v10992_v55 = vld [vmem:[#allocation35_spill] sm:$0xff] }
 0x2d7   : > { %v1478_v12 = vpop.f32.mrf.mxu2  ;;  %v2085_v26 = vadd.f32 %v2084_v35, %v1839_v14  ;;  %v2021_v9 = vadd.f32 %v2020_v43, %v1842_v7  ;;  %v1858_v14 = vmax.f32 %v1064_v45, 0.0  ;;  %v1859_v35 = vmax.f32 %v1261_v46, 0.0 }
 0x2d8   : > { %v1675_v37 = vpop.f32.mrf.mxu3  ;;  %v1479_v34 = vadd.f32 %v1478_v12, %v9984_v22  ;;  %6529 = vmatmul.msk.f32.gmra.mxu0 %vm495_vm0, %v740_v40  ;;  %v1264_v12 = vadd.f32 %v10988_v59, %v10320_v10  ;;  %v1073_v54 = vadd.f32 %v10991_v27, %v10317_v36  ;;  %v1079_v49 = vadd.f32 %v10398_v58, %v10317_v36 }
 0x2d9   : > { %v1676_v15 = vadd.f32 %v1675_v37, %v9987_v23  ;;  %6589 = vmatmul.msk.f32.gmra.mxu1 %vm495_vm0, %v740_v40  ;;  %v2086_v11 = vadd.f32 %v2085_v26, %v1843_v39  ;;  %v2022_v48 = vadd.f32 %v2021_v9, %v1846_v52  ;;  %v10989_v37 = vld [vmem:[#allocation32_spill] sm:$0xff]  ;;  %v1270_v9 = vadd.f32 %v10992_v55, %v10320_v10 }
 0x2da   : > { %v1888_v63 = vmax.f32 %v1479_v34, 0.0  ;;  %v1070_v50 = vadd.f32 %v10989_v37, %v10317_v36  ;;  %v1863_v26 = vmax.f32 %v1264_v12, 0.0  ;;  %v1279_v58 = vadd.f32 %v10427_v61, %v10320_v10  ;;  %v743_v61 = vld [vmem:[%s10954_s2 + $0x198] sm:$0xff] }
 0x2db   : > { %v1889_v57 = vmax.f32 %v1676_v15, 0.0  ;;  %v2087_v29 = vadd.f32 %v2086_v11, %v1847_v33  ;;  %v2023_v6 = vadd.f32 %v2022_v48, %v1850_v21  ;;  %v742_v11 = vld [vmem:[%s10954_s2 + $0x190] sm:$0xff]  ;;  %v1076_v48 = vadd.f32 %v10369_v31, %v10317_v36 }
 0x2dc   : > { %v2162_v28 = vadd.f32 %v2161_v62, %v1888_v63  ;;  %6649 = vmatmul.msk.f32.gmra.mxu2 %vm495_vm0, %v740_v40  ;;  %v1866_v52 = vmax.f32 %v1070_v50, 0.0  ;;  %v1871_v51 = vmax.f32 %v1270_v9, 0.0  ;;  %v1085_v50 = vadd.f32 %v10454_v60, %v10317_v36 }
 0x2dd   : > { %v2227_v32 = vadd.f32 %v2226_v3, %v1889_v57  ;;  %6709 = vmatmul.msk.f32.gmra.mxu3 %vm495_vm0, %v740_v40  ;;  %v10508_v5 = vpop.f32.mrf.mxu0  ;;  %v2088_v15 = vadd.f32 %v2087_v29, %v1851_v47  ;;  %v2024_v40 = vadd.f32 %v2023_v6, %v1854_v53  ;;  %v1273_v47 = vadd.f32 %v10371_v2, %v10320_v10 }
 0x2de   : > { %v10510_v0 = vpop.f32.mrf.mxu1  ;;  %v1874_v2 = vmax.f32 %v1076_v48, 0.0  ;;  %v1082_v6 = vadd.f32 %v10425_v16, %v10317_v36  ;;  %v1088_v60 = vadd.f32 %v10479_v18, %v10317_v36  ;;  %v1091_v18 = vadd.f32 %v10508_v5, %v10317_v36 }
 0x2df   : > { %v1481_v41 = vpop.f32.mrf.mxu2  ;;  %v2089_v63 = vadd.f32 %v2088_v15, %v1855_v30  ;;  %v2025_v57 = vadd.f32 %v2024_v40, %v1858_v14  ;;  %v1875_v29 = vmax.f32 %v1273_v47, 0.0  ;;  %v1878_v14 = vmax.f32 %v1079_v49, 0.0 }
 0x2e0   : > { %v1678_v1 = vpop.f32.mrf.mxu3  ;;  %v1482_v62 = vadd.f32 %v1481_v41, %v9984_v22  ;;  %6530 = vmatmul.msk.f32.gmra.mxu0 %vm495_vm0, %v741_v17  ;;  %v1882_v38 = vmax.f32 %v1082_v6, 0.0  ;;  %v1890_v9 = vmax.f32 %v1088_v60, 0.0 }
 0x2e1   : > { %v1679_v3 = vadd.f32 %v1678_v1, %v9987_v23  ;;  %6590 = vmatmul.msk.f32.gmra.mxu1 %vm495_vm0, %v741_v17  ;;  %v2090_v44 = vadd.f32 %v2089_v63, %v1859_v35  ;;  %v2026_v25 = vadd.f32 %v2025_v57, %v1862_v4  ;;  %v1870_v1 = vmax.f32 %v1073_v54, 0.0 }
 0x2e2   : > { %v1892_v7 = vmax.f32 %v1482_v62, 0.0  ;;  %v1276_v62 = vadd.f32 %v10400_v56, %v10320_v10 }
 0x2e3   : > { %v1893_v34 = vmax.f32 %v1679_v3, 0.0  ;;  %v2091_v53 = vadd.f32 %v2090_v44, %v1863_v26  ;;  %v2027_v19 = vadd.f32 %v2026_v25, %v1866_v52  ;;  %v1886_v26 = vmax.f32 %v1085_v50, 0.0 }
 0x2e4   : > { %v2163_v43 = vadd.f32 %v2162_v28, %v1892_v7  ;;  %6650 = vmatmul.msk.f32.gmra.mxu2 %vm495_vm0, %v741_v17  ;;  %v1867_v28 = vmax.f32 %v1267_v20, 0.0  ;;  %v1879_v59 = vmax.f32 %v1276_v62, 0.0  ;;  %v1282_v7 = vadd.f32 %v10456_v42, %v10320_v10 }
 0x2e5   : > { %v2228_v39 = vadd.f32 %v2227_v32, %v1893_v34  ;;  %6710 = vmatmul.msk.f32.gmra.mxu3 %vm495_vm0, %v741_v17  ;;  %v1093_v24 = vpop.f32.mrf.mxu0  ;;  %v2028_v56 = vadd.f32 %v2027_v19, %v1870_v1  ;;  %v1883_v20 = vmax.f32 %v1279_v58, 0.0  ;;  %v1285_v42 = vadd.f32 %v10481_v8, %v10320_v10 }
 0x2e6   : > { %v1290_v45 = vpop.f32.mrf.mxu1  ;;  %v2092_v31 = vadd.f32 %v2091_v53, %v1867_v28  ;;  %v1887_v52 = vmax.f32 %v1282_v7, 0.0  ;;  %v1288_v8 = vadd.f32 %v10510_v0, %v10320_v10  ;;  %v744_v0 = vld [vmem:[%s10954_s2 + $0x1a0] sm:$0xff]  ;;  %v1894_v19 = vmax.f32 %v1091_v18, 0.0 }
 0x2e7   : > { %v1484_v33 = vpop.f32.mrf.mxu2  ;;  %v2029_v35 = vadd.f32 %v2028_v56, %v1874_v2  ;;  %v1291_v25 = vadd.f32 %v1290_v45, %v10320_v10 }
 0x2e8   : > { %v1681_v21 = vpop.f32.mrf.mxu3  ;;  %v1485_v32 = vadd.f32 %v1484_v33, %v9984_v22  ;;  %6531 = vmatmul.msk.f32.gmra.mxu0 %vm495_vm0, %v742_v11  ;;  %v2093_v30 = vadd.f32 %v2092_v31, %v1871_v51  ;;  %v1891_v33 = vmax.f32 %v1285_v42, 0.0 }
 0x2e9   : > { %v1682_v13 = vadd.f32 %v1681_v21, %v9987_v23  ;;  %6591 = vmatmul.msk.f32.gmra.mxu1 %vm495_vm0, %v742_v11  ;;  %v2030_v63 = vadd.f32 %v2029_v35, %v1878_v14  ;;  %v1094_v21 = vadd.f32 %v1093_v24, %v10317_v36  ;;  %v1899_v31 = vmax.f32 %v1291_v25, 0.0 }
 0x2ea   : > { %v1896_v46 = vmax.f32 %v1485_v32, 0.0  ;;  %v2094_v4 = vadd.f32 %v2093_v30, %v1875_v29 }
 0x2eb   : > { %v1897_v41 = vmax.f32 %v1682_v13, 0.0  ;;  %v2031_v54 = vadd.f32 %v2030_v63, %v1882_v38  ;;  %v1898_v62 = vmax.f32 %v1094_v21, 0.0  ;;  %v746_v21 = vld [vmem:[%s10954_s2 + $0x1b0] sm:$0xff] }
 0x2ec   : > { %v2164_v3 = vadd.f32 %v2163_v43, %v1896_v46  ;;  %6651 = vmatmul.msk.f32.gmra.mxu2 %vm495_vm0, %v742_v11  ;;  %v2095_v57 = vadd.f32 %v2094_v4, %v1879_v59  ;;  %v1895_v46 = vmax.f32 %v1288_v8, 0.0 }
 0x2ed   : > { %v2229_v17 = vadd.f32 %v2228_v39, %v1897_v41  ;;  %6711 = vmatmul.msk.f32.gmra.mxu3 %vm495_vm0, %v742_v11  ;;  %v1096_v16 = vpop.f32.mrf.mxu0  ;;  %v2032_v13 = vadd.f32 %v2031_v54, %v1886_v26 }
 0x2ee   : > { %v1293_v40 = vpop.f32.mrf.mxu1  ;;  %v2096_v55 = vadd.f32 %v2095_v57, %v1883_v20  ;;  %v1097_v24 = vadd.f32 %v1096_v16, %v10317_v36 }
 0x2ef   : > { %v1487_v12 = vpop.f32.mrf.mxu2  ;;  %v1294_v45 = vadd.f32 %v1293_v40, %v10320_v10  ;;  %v2033_v41 = vadd.f32 %v2032_v13, %v1890_v9 }
 0x2f0   : > { %v1684_v37 = vpop.f32.mrf.mxu3  ;;  %v1488_v34 = vadd.f32 %v1487_v12, %v9984_v22  ;;  %6532 = vmatmul.msk.f32.gmra.mxu0 %vm495_vm0, %v743_v61  ;;  %v2097_v11 = vadd.f32 %v2096_v55, %v1887_v52  ;;  %v1902_v56 = vmax.f32 %v1097_v24, 0.0 }
 0x2f1   : > { %v1685_v15 = vadd.f32 %v1684_v37, %v9987_v23  ;;  %6592 = vmatmul.msk.f32.gmra.mxu1 %vm495_vm0, %v743_v61  ;;  %v2034_v6 = vadd.f32 %v2033_v41, %v1894_v19  ;;  %v1903_v30 = vmax.f32 %v1294_v45, 0.0 }
 0x2f2   : > { %v1900_v43 = vmax.f32 %v1488_v34, 0.0  ;;  %v2098_v1 = vadd.f32 %v2097_v11, %v1891_v33 }
 0x2f3   : > { %v1901_v39 = vmax.f32 %v1685_v15, 0.0  ;;  %v2035_v14 = vadd.f32 %v2034_v6, %v1898_v62 }
 0x2f4   : > { %v2165_v44 = vadd.f32 %v2164_v3, %v1900_v43  ;;  %6652 = vmatmul.msk.f32.gmra.mxu2 %vm495_vm0, %v743_v61  ;;  %v2099_v58 = vadd.f32 %v2098_v1, %v1895_v46 }
 0x2f5   : > { %v2230_v27 = vadd.f32 %v2229_v17, %v1901_v39  ;;  %6712 = vmatmul.msk.f32.gmra.mxu3 %vm495_vm0, %v743_v61  ;;  %v1099_v5 = vpop.f32.mrf.mxu0  ;;  %v745_v61 = vld [vmem:[%s10954_s2 + $0x1a8] sm:$0xff]  ;;  %v2036_v35 = vadd.f32 %v2035_v14, %v1902_v56 }
 0x2f6   : > { %v1296_v53 = vpop.f32.mrf.mxu1  ;;  %v1100_v3 = vadd.f32 %v1099_v5, %v10317_v36  ;;  %v2100_v59 = vadd.f32 %v2099_v58, %v1899_v31 }
 0x2f7   : > { %v1490_v28 = vpop.f32.mrf.mxu2  ;;  %v1297_v17 = vadd.f32 %v1296_v53, %v10320_v10 }
 0x2f8   : > { %v1687_v32 = vpop.f32.mrf.mxu3  ;;  %v1491_v48 = vadd.f32 %v1490_v28, %v9984_v22  ;;  %6533 = vmatmul.msk.f32.gmra.mxu0 %vm495_vm0, %v744_v0  ;;  %v1906_v12 = vmax.f32 %v1100_v3, 0.0  ;;  %v2101_v4 = vadd.f32 %v2100_v59, %v1903_v30 }
 0x2f9   : > { %v1688_v47 = vadd.f32 %v1687_v32, %v9987_v23  ;;  %6593 = vmatmul.msk.f32.gmra.mxu1 %vm495_vm0, %v744_v0  ;;  %v1907_v37 = vmax.f32 %v1297_v17, 0.0 }
 0x2fa   : > { %v1904_v51 = vmax.f32 %v1491_v48, 0.0  ;;  %v2037_v43 = vadd.f32 %v2036_v35, %v1906_v12 }
 0x2fb   : > { %v1905_v49 = vmax.f32 %v1688_v47, 0.0  ;;  %v2102_v39 = vadd.f32 %v2101_v4, %v1907_v37 }
 0x2fc   : > { %v2166_v2 = vadd.f32 %v2165_v44, %v1904_v51  ;;  %6653 = vmatmul.msk.f32.gmra.mxu2 %vm495_vm0, %v744_v0  ;;  %v747_v51 = vld [vmem:[%s10954_s2 + $0x1b8] sm:$0xff] }
 0x2fd   : > { %v2231_v29 = vadd.f32 %v2230_v27, %v1905_v49  ;;  %6713 = vmatmul.msk.f32.gmra.mxu3 %vm495_vm0, %v744_v0  ;;  %v1102_v16 = vpop.f32.mrf.mxu0 }
 0x2fe   : > { %v1299_v40 = vpop.f32.mrf.mxu1  ;;  %v1103_v38 = vadd.f32 %v1102_v16, %v10317_v36 }
 0x2ff   : > { %v1493_v50 = vpop.f32.mrf.mxu2  ;;  %v1300_v20 = vadd.f32 %v1299_v40, %v10320_v10 }
 0x300   : > { %v1690_v7 = vpop.f32.mrf.mxu3  ;;  %v1494_v34 = vadd.f32 %v1493_v50, %v9984_v22  ;;  %v1910_v63 = vmax.f32 %v1103_v38, 0.0  ;;  %6534 = vmatmul.msk.f32.gmra.mxu0 %vm495_vm0, %v745_v61 }
 0x301   : > { %v1691_v15 = vadd.f32 %v1690_v7, %v9987_v23  ;;  %v1911_v57 = vmax.f32 %v1300_v20, 0.0  ;;  %6594 = vmatmul.msk.f32.gmra.mxu1 %vm495_vm0, %v745_v61  ;;  %v748_v7 = vld [vmem:[%s10954_s2 + $0x1c0] sm:$0xff] }
 0x302   : > { %v1908_v60 = vmax.f32 %v1494_v34, 0.0  ;;  %v2038_v44 = vadd.f32 %v2037_v43, %v1910_v63 }
 0x303   : > { %v1909_v42 = vmax.f32 %v1691_v15, 0.0  ;;  %v2103_v27 = vadd.f32 %v2102_v39, %v1911_v57 }
 0x304   : > { %v2167_v26 = vadd.f32 %v2166_v2, %v1908_v60  ;;  %6654 = vmatmul.msk.f32.gmra.mxu2 %vm495_vm0, %v745_v61 }
 0x305   : > { %v2232_v52 = vadd.f32 %v2231_v29, %v1909_v42  ;;  %6714 = vmatmul.msk.f32.gmra.mxu3 %vm495_vm0, %v745_v61  ;;  %v1105_v9 = vpop.f32.mrf.mxu0 }
 0x306   : > { %v1302_v33 = vpop.f32.mrf.mxu1  ;;  %v1106_v25 = vadd.f32 %v1105_v9, %v10317_v36 }
 0x307   : > { %v1496_v18 = vpop.f32.mrf.mxu2  ;;  %v1303_v28 = vadd.f32 %v1302_v33, %v10320_v10 }
 0x308   : > { %v1693_v8 = vpop.f32.mrf.mxu3  ;;  %v1497_v54 = vadd.f32 %v1496_v18, %v9984_v22  ;;  %v1914_v11 = vmax.f32 %v1106_v25, 0.0  ;;  %6535 = vmatmul.msk.f32.gmra.mxu0 %vm495_vm0, %v746_v21 }
 0x309   : > { %v1694_v55 = vadd.f32 %v1693_v8, %v9987_v23  ;;  %v1915_v48 = vmax.f32 %v1303_v28, 0.0  ;;  %6595 = vmatmul.msk.f32.gmra.mxu1 %vm495_vm0, %v746_v21 }
 0x30a   : > { %v1912_v32 = vmax.f32 %v1497_v54, 0.0  ;;  %v2039_v53 = vadd.f32 %v2038_v44, %v1914_v11 }
 0x30b   : > { %v1913_v13 = vmax.f32 %v1694_v55, 0.0  ;;  %v2104_v0 = vadd.f32 %v2103_v27, %v1915_v48 }
 0x30c   : > { %v2168_v47 = vadd.f32 %v2167_v26, %v1912_v32  ;;  %6655 = vmatmul.msk.f32.gmra.mxu2 %vm495_vm0, %v746_v21 }
 0x30d   : > { %v2233_v5 = vadd.f32 %v2232_v52, %v1913_v13  ;;  %6715 = vmatmul.msk.f32.gmra.mxu3 %vm495_vm0, %v746_v21  ;;  %v1108_v41 = vpop.f32.mrf.mxu0  ;;  %v749_v52 = vld [vmem:[%s10954_s2 + $0x1c8] sm:$0xff] }
 0x30e   : > { %v1305_v1 = vpop.f32.mrf.mxu1  ;;  %v1109_v49 = vadd.f32 %v1108_v41, %v10317_v36 }
 0x30f   : > { %v1499_v19 = vpop.f32.mrf.mxu2  ;;  %v1306_v62 = vadd.f32 %v1305_v1, %v10320_v10 }
 0x310   : > { %v1696_v46 = vpop.f32.mrf.mxu3  ;;  %v1500_v24 = vadd.f32 %v1499_v19, %v9984_v22  ;;  %v1918_v17 = vmax.f32 %v1109_v49, 0.0  ;;  %6536 = vmatmul.msk.f32.gmra.mxu0 %vm495_vm0, %v747_v51 }
 0x311   : > { %v1697_v45 = vadd.f32 %v1696_v46, %v9987_v23  ;;  %v1919_v2 = vmax.f32 %v1306_v62, 0.0  ;;  %6596 = vmatmul.msk.f32.gmra.mxu1 %vm495_vm0, %v747_v51 }
 0x312   : > { %v1916_v31 = vmax.f32 %v1500_v24, 0.0  ;;  %v2040_v58 = vadd.f32 %v2039_v53, %v1918_v17 }
 0x313   : > { %v1917_v3 = vmax.f32 %v1697_v45, 0.0  ;;  %v2105_v56 = vadd.f32 %v2104_v0, %v1919_v2 }
 0x314   : > { %v2169_v29 = vadd.f32 %v2168_v47, %v1916_v31  ;;  %6656 = vmatmul.msk.f32.gmra.mxu2 %vm495_vm0, %v747_v51 }
 0x315   : > { %v2234_v6 = vadd.f32 %v2233_v5, %v1917_v3  ;;  %6716 = vmatmul.msk.f32.gmra.mxu3 %vm495_vm0, %v747_v51  ;;  %v1111_v37 = vpop.f32.mrf.mxu0  ;;  %v750_v5 = vld [vmem:[%s10954_s2 + $0x1d0] sm:$0xff] }
 0x316   : > { %v1308_v50 = vpop.f32.mrf.mxu1  ;;  %v1112_v34 = vadd.f32 %v1111_v37, %v10317_v36 }
 0x317   : > { %v1502_v30 = vpop.f32.mrf.mxu2  ;;  %v1309_v15 = vadd.f32 %v1308_v50, %v10320_v10 }
 0x318   : > { %v1699_v14 = vpop.f32.mrf.mxu3  ;;  %v1503_v59 = vadd.f32 %v1502_v30, %v9984_v22  ;;  %v1922_v61 = vmax.f32 %v1112_v34, 0.0  ;;  %6537 = vmatmul.msk.f32.gmra.mxu0 %vm495_vm0, %v748_v7 }
 0x319   : > { %v1700_v12 = vadd.f32 %v1699_v14, %v9987_v23  ;;  %v1923_v35 = vmax.f32 %v1309_v15, 0.0  ;;  %6597 = vmatmul.msk.f32.gmra.mxu1 %vm495_vm0, %v748_v7 }
 0x31a   : > { %v1920_v16 = vmax.f32 %v1503_v59, 0.0  ;;  %v2041_v20 = vadd.f32 %v2040_v58, %v1922_v61 }
 0x31b   : > { %v1921_v40 = vmax.f32 %v1700_v12, 0.0  ;;  %v2106_v60 = vadd.f32 %v2105_v56, %v1923_v35 }
 0x31c   : > { %v2170_v4 = vadd.f32 %v2169_v29, %v1920_v16  ;;  %6657 = vmatmul.msk.f32.gmra.mxu2 %vm495_vm0, %v748_v7 }
 0x31d   : > { %v2235_v38 = vadd.f32 %v2234_v6, %v1921_v40  ;;  %6717 = vmatmul.msk.f32.gmra.mxu3 %vm495_vm0, %v748_v7  ;;  %v1114_v57 = vpop.f32.mrf.mxu0  ;;  %v751_v6 = vld [vmem:[%s10954_s2 + $0x1d8] sm:$0xff] }
 0x31e   : > { %v1311_v26 = vpop.f32.mrf.mxu1  ;;  %v1115_v44 = vadd.f32 %v1114_v57, %v10317_v36 }
 0x31f   : > { %v1505_v42 = vpop.f32.mrf.mxu2  ;;  %v1312_v27 = vadd.f32 %v1311_v26, %v10320_v10 }
 0x320   : > { %v1702_v43 = vpop.f32.mrf.mxu3  ;;  %v1506_v39 = vadd.f32 %v1505_v42, %v9984_v22  ;;  %v1926_v54 = vmax.f32 %v1115_v44, 0.0  ;;  %6538 = vmatmul.msk.f32.gmra.mxu0 %vm495_vm0, %v749_v52 }
 0x321   : > { %v1703_v63 = vadd.f32 %v1702_v43, %v9987_v23  ;;  %v1927_v55 = vmax.f32 %v1312_v27, 0.0  ;;  %6598 = vmatmul.msk.f32.gmra.mxu1 %vm495_vm0, %v749_v52 }
 0x322   : > { %v1924_v18 = vmax.f32 %v1506_v39, 0.0  ;;  %v2042_v21 = vadd.f32 %v2041_v20, %v1926_v54 }
 0x323   : > { %v1925_v8 = vmax.f32 %v1703_v63, 0.0  ;;  %v2107_v25 = vadd.f32 %v2106_v60, %v1927_v55 }
 0x324   : > { %v2171_v9 = vadd.f32 %v2170_v4, %v1924_v18  ;;  %6658 = vmatmul.msk.f32.gmra.mxu2 %vm495_vm0, %v749_v52 }
 0x325   : > { %v2236_v33 = vadd.f32 %v2235_v38, %v1925_v8  ;;  %6718 = vmatmul.msk.f32.gmra.mxu3 %vm495_vm0, %v749_v52  ;;  %v1117_v48 = vpop.f32.mrf.mxu0 }
 0x326   : > { %v1314_v47 = vpop.f32.mrf.mxu1  ;;  %v1118_v53 = vadd.f32 %v1117_v48, %v10317_v36 }
 0x327   : > { %v1508_v28 = vpop.f32.mrf.mxu2  ;;  %v1315_v0 = vadd.f32 %v1314_v47, %v10320_v10 }
 0x328   : > { %v1705_v32 = vpop.f32.mrf.mxu3  ;;  %v1509_v13 = vadd.f32 %v1508_v28, %v9984_v22  ;;  %v1930_v24 = vmax.f32 %v1118_v53, 0.0  ;;  %6539 = vmatmul.msk.f32.gmra.mxu0 %vm495_vm0, %v750_v5 }
 0x329   : > { %v1706_v11 = vadd.f32 %v1705_v32, %v9987_v23  ;;  %v1931_v45 = vmax.f32 %v1315_v0, 0.0  ;;  %6599 = vmatmul.msk.f32.gmra.mxu1 %vm495_vm0, %v750_v5 }
 0x32a   : > { %v1928_v19 = vmax.f32 %v1509_v13, 0.0  ;;  %v2043_v51 = vadd.f32 %v2042_v21, %v1930_v24 }
 0x32b   : > { %v1929_v46 = vmax.f32 %v1706_v11, 0.0  ;;  %v2108_v49 = vadd.f32 %v2107_v25, %v1931_v45 }
 0x32c   : > { %v2172_v41 = vadd.f32 %v2171_v9, %v1928_v19  ;;  %6659 = vmatmul.msk.f32.gmra.mxu2 %vm495_vm0, %v750_v5 }
 0x32d   : > { %v2237_v1 = vadd.f32 %v2236_v33, %v1929_v46  ;;  %6719 = vmatmul.msk.f32.gmra.mxu3 %vm495_vm0, %v750_v5  ;;  %v1120_v2 = vpop.f32.mrf.mxu0 }
 0x32e   : > { %v1317_v29 = vpop.f32.mrf.mxu1  ;;  %v1121_v58 = vadd.f32 %v1120_v2, %v10317_v36 }
 0x32f   : > { %v1511_v62 = vpop.f32.mrf.mxu2  ;;  %v1318_v56 = vadd.f32 %v1317_v29, %v10320_v10 }
 0x330   : > { %v1708_v31 = vpop.f32.mrf.mxu3  ;;  %v1512_v3 = vadd.f32 %v1511_v62, %v9984_v22  ;;  %v1934_v59 = vmax.f32 %v1121_v58, 0.0  ;;  %6540 = vmatmul.msk.f32.gmra.mxu0 %vm495_vm0, %v751_v6 }
 0x331   : > { %v1709_v17 = vadd.f32 %v1708_v31, %v9987_v23  ;;  %v1935_v12 = vmax.f32 %v1318_v56, 0.0  ;;  %6600 = vmatmul.msk.f32.gmra.mxu1 %vm495_vm0, %v751_v6 }
 0x332   : > { %v1932_v30 = vmax.f32 %v1512_v3, 0.0  ;;  %v2044_v7 = vadd.f32 %v2043_v51, %v1934_v59 }
 0x333   : > { %v1933_v14 = vmax.f32 %v1709_v17, 0.0  ;;  %v2109_v34 = vadd.f32 %v2108_v49, %v1935_v12 }
 0x334   : > { %v2173_v37 = vadd.f32 %v2172_v41, %v1932_v30  ;;  %6660 = vmatmul.msk.f32.gmra.mxu2 %vm495_vm0, %v751_v6 }
 0x335   : > { %v2238_v50 = vadd.f32 %v2237_v1, %v1933_v14  ;;  %6720 = vmatmul.msk.f32.gmra.mxu3 %vm495_vm0, %v751_v6  ;;  %v1123_v35 = vpop.f32.mrf.mxu0 }
 0x336   : > { %v1320_v4 = vpop.f32.mrf.mxu1  ;;  %v1124_v38 = vadd.f32 %v1123_v35, %v10317_v36 }
 0x337   : > { %v1514_v15 = vpop.f32.mrf.mxu2  ;;  %v1321_v20 = vadd.f32 %v1320_v4, %v10320_v10 }
 0x338   : > { %v1711_v16 = vpop.f32.mrf.mxu3  ;;  %v1515_v40 = vadd.f32 %v1514_v15, %v9984_v22  ;;  %v1938_v43 = vmax.f32 %v1124_v38, 0.0 }
 0x339   : > { %v1712_v61 = vadd.f32 %v1711_v16, %v9987_v23  ;;  %v1939_v39 = vmax.f32 %v1321_v20, 0.0 }
 0x33a   : > { %v1936_v60 = vmax.f32 %v1515_v40, 0.0  ;;  %v2045_v26 = vadd.f32 %v2044_v7, %v1938_v43 }
 0x33b   : > { %v1937_v42 = vmax.f32 %v1712_v61, 0.0  ;;  %v2110_v52 = vadd.f32 %v2109_v34, %v1939_v39 }
 0x33c   : > { %v2174_v63 = vadd.f32 %v2173_v37, %v1936_v60 }
 0x33d   : > { %v2239_v57 = vadd.f32 %v2238_v50, %v1937_v42  ;;  %v1126_v54 = vpop.f32.mrf.mxu0 }
 0x33e   : > { %v1323_v55 = vpop.f32.mrf.mxu1  ;;  %v1127_v9 = vadd.f32 %v1126_v54, %v10317_v36 }
 0x33f   : > { %v1517_v44 = vpop.f32.mrf.mxu2  ;;  %v1324_v33 = vadd.f32 %v1323_v55, %v10320_v10 }
 0x340   : > { %v1714_v27 = vpop.f32.mrf.mxu3  ;;  %v1518_v18 = vadd.f32 %v1517_v44, %v9984_v22  ;;  %v1942_v28 = vmax.f32 %v1127_v9, 0.0 }
 0x341   : > { %v1715_v8 = vadd.f32 %v1714_v27, %v9987_v23  ;;  %v1943_v32 = vmax.f32 %v1324_v33, 0.0 }
 0x342   : > { %v1940_v21 = vmax.f32 %v1518_v18, 0.0  ;;  %v2046_v48 = vadd.f32 %v2045_v26, %v1942_v28 }
 0x343   : > { %v1941_v25 = vmax.f32 %v1715_v8, 0.0  ;;  %v2111_v47 = vadd.f32 %v2110_v52, %v1943_v32 }
 0x344   : > { %v2175_v13 = vadd.f32 %v2174_v63, %v1940_v21 }
 0x345   : > { %v2240_v11 = vadd.f32 %v2239_v57, %v1941_v25  ;;  %v1129_v46 = vpop.f32.mrf.mxu0 }
 0x346   : > { %v1326_v24 = vpop.f32.mrf.mxu1  ;;  %v1130_v45 = vadd.f32 %v1129_v46, %v10317_v36 }
 0x347   : > { %v1520_v5 = vpop.f32.mrf.mxu2  ;;  %v1327_v41 = vadd.f32 %v1326_v24, %v10320_v10 }
 0x348   : > { %v1717_v53 = vpop.f32.mrf.mxu3  ;;  %v1521_v0 = vadd.f32 %v1520_v5, %v9984_v22  ;;  %v1946_v49 = vmax.f32 %v1130_v45, 0.0 }
 0x349   : > { %v1718_v19 = vadd.f32 %v1717_v53, %v9987_v23  ;;  %v1947_v62 = vmax.f32 %v1327_v41, 0.0 }
 0x34a   : > { %v1944_v1 = vmax.f32 %v1521_v0, 0.0  ;;  %v2047_v17 = vadd.f32 %v2046_v48, %v1946_v49 }
 0x34b   : > { %v1945_v51 = vmax.f32 %v1718_v19, 0.0  ;;  %v2112_v2 = vadd.f32 %v2111_v47, %v1947_v62 }
 0x34c   : > { %v2176_v31 = vadd.f32 %v2175_v13, %v1944_v1 }
 0x34d   : > { %v2241_v3 = vadd.f32 %v2240_v11, %v1945_v51  ;;  %v1132_v30 = vpop.f32.mrf.mxu0 }
 0x34e   : > { %v1329_v14 = vpop.f32.mrf.mxu1  ;;  %v1133_v59 = vadd.f32 %v1132_v30, %v10317_v36 }
 0x34f   : > { %v1523_v29 = vpop.f32.mrf.mxu2  ;;  %v1330_v12 = vadd.f32 %v1329_v14, %v10320_v10 }
 0x350   : > { %v1720_v6 = vpop.f32.mrf.mxu3  ;;  %v1524_v58 = vadd.f32 %v1523_v29, %v9984_v22  ;;  %v1950_v7 = vmax.f32 %v1133_v59, 0.0 }
 0x351   : > { %v1721_v56 = vadd.f32 %v1720_v6, %v9987_v23  ;;  %v1951_v34 = vmax.f32 %v1330_v12, 0.0 }
 0x352   : > { %v1948_v37 = vmax.f32 %v1524_v58, 0.0  ;;  %v2048_v40 = vadd.f32 %v2047_v17, %v1950_v7 }
 0x353   : > { %v1949_v50 = vmax.f32 %v1721_v56, 0.0  ;;  %v2113_v61 = vadd.f32 %v2112_v2, %v1951_v34 }
 0x354   : > { %v2177_v15 = vadd.f32 %v2176_v31, %v1948_v37 }
 0x355   : > { %v2242_v16 = vadd.f32 %v2241_v3, %v1949_v50  ;;  %v1135_v60 = vpop.f32.mrf.mxu0 }
 0x356   : > { %v1332_v42 = vpop.f32.mrf.mxu1  ;;  %v1136_v43 = vadd.f32 %v1135_v60, %v10317_v36 }
 0x357   : > { %v1526_v35 = vpop.f32.mrf.mxu2  ;;  %v1333_v39 = vadd.f32 %v1332_v42, %v10320_v10 }
 0x358   : > { %v1723_v4 = vpop.f32.mrf.mxu3  ;;  %v1527_v38 = vadd.f32 %v1526_v35, %v9984_v22  ;;  %v1954_v26 = vmax.f32 %v1136_v43, 0.0 }
 0x359   : > { %v1724_v20 = vadd.f32 %v1723_v4, %v9987_v23  ;;  %v1955_v52 = vmax.f32 %v1333_v39, 0.0 }
 0x35a   : > { %v1952_v63 = vmax.f32 %v1527_v38, 0.0  ;;  %v2049_v18 = vadd.f32 %v2048_v40, %v1954_v26 }
 0x35b   : > { %v1953_v57 = vmax.f32 %v1724_v20, 0.0  ;;  %v2114_v8 = vadd.f32 %v2113_v61, %v1955_v52 }
 0x35c   : > { %v2178_v44 = vadd.f32 %v2177_v15, %v1952_v63 }
 0x35d   : > { %v2243_v27 = vadd.f32 %v2242_v16, %v1953_v57  ;;  %v1138_v21 = vpop.f32.mrf.mxu0 }
 0x35e   : > { %v1335_v25 = vpop.f32.mrf.mxu1  ;;  %v1139_v59 = vadd.f32 %v1138_v21, %v10317_v36 }
 0x35f   : > { %v1529_v54 = vpop.f32.mrf.mxu2  ;;  %v1336_v12 = vadd.f32 %v1335_v25, %v10320_v10 }
 0x360   : > { %v1726_v55 = vpop.f32.mrf.mxu3  ;;  %v1530_v9 = vadd.f32 %v1529_v54, %v9984_v22  ;;  %v1958_v15 = vmax.f32 %v1139_v59, 0.0 }
 0x361   : > { %v1727_v33 = vadd.f32 %v1726_v55, %v9987_v23  ;;  %v1959_v35 = vmax.f32 %v1336_v12, 0.0 }
 0x362   : > { %v1956_v28 = vmax.f32 %v1530_v9, 0.0  ;;  %v2050_v52 = vadd.f32 %v2049_v18, %v1958_v15 }
 0x363   : > { %v1957_v32 = vmax.f32 %v1727_v33, 0.0  ;;  %v2115_v54 = vadd.f32 %v2114_v8, %v1959_v35 }
 0x364   : > { %v2179_v13 = vadd.f32 %v2178_v44, %v1956_v28 }
 0x365   : > { %v2244_v11 = vadd.f32 %v2243_v27, %v1957_v32  ;;  %v1141_v5 = vpop.f32.mrf.mxu0 }
 0x366   : > { %v1338_v53 = vpop.f32.mrf.mxu1  ;;  %v1142_v7 = vadd.f32 %v1141_v5, %v10317_v36 }
 0x367   : > { %v1532_v48 = vpop.f32.mrf.mxu2  ;;  %v1339_v34 = vadd.f32 %v1338_v53, %v10320_v10 }
 0x368   : > { %v1729_v47 = vpop.f32.mrf.mxu3  ;;  %v1533_v37 = vadd.f32 %v1532_v48, %v9984_v22  ;;  %v1962_v63 = vmax.f32 %v1142_v7, 0.0 }
 0x369   : > { %v1730_v50 = vadd.f32 %v1729_v47, %v9987_v23  ;;  %v1963_v57 = vmax.f32 %v1339_v34, 0.0 }
 0x36a   : > { %v1960_v4 = vmax.f32 %v1533_v37, 0.0  ;;  %v2051_v48 = vadd.f32 %v2050_v52, %v1962_v63 }
 0x36b   : > { %v1961_v38 = vmax.f32 %v1730_v50, 0.0  ;;  %v2116_v47 = vadd.f32 %v2115_v54, %v1963_v57 }
 0x36c   : > { %v2180_v55 = vadd.f32 %v2179_v13, %v1960_v4 }
 0x36d   : > { %v1144_v46 = vpop.f32.mrf.mxu0  ;;  %v2245_v9 = vadd.f32 %v2244_v11, %v1961_v38 }
 0x36e   : > { %v1341_v24 = vpop.f32.mrf.mxu1  ;;  %v1145_v43 = vadd.f32 %v1144_v46, %v10317_v36 }
 0x36f   : > { %v1535_v0 = vpop.f32.mrf.mxu2  ;;  %v1342_v39 = vadd.f32 %v1341_v24, %v10320_v10 }
 0x370   : > { %v1732_v19 = vpop.f32.mrf.mxu3  ;;  %v1536_v16 = vadd.f32 %v1535_v0, %v9984_v22  ;;  %v1966_v21 = vmax.f32 %v1145_v43, 0.0 }
 0x371   : > { %v1733_v20 = vadd.f32 %v1732_v19, %v9987_v23  ;;  %v1967_v25 = vmax.f32 %v1342_v39, 0.0 }
 0x372   : > { %v1964_v44 = vmax.f32 %v1536_v16, 0.0  ;;  %v9620_v16 = vmov 480.0  }
 0x373   : > { %v1965_v33 = vmax.f32 %v1733_v20, 0.0  ;;  %v2117_v59 = vadd.f32 %v2116_v47, %v1967_v25  ;;  %9383 = vrcp.f32 %v9620_v16 }
 0x374   : > { %v2181_v0 = vadd.f32 %v2180_v55, %v1964_v44 }
 0x375   : > { %v1147_v1 = vpop.f32.mrf.mxu0  ;;  %v2246_v46 = vadd.f32 %v2245_v9, %v1965_v33 }
 0x376   : > { %v1344_v51 = vpop.f32.mrf.mxu1  ;;  %v1148_v28 = vadd.f32 %v1147_v1, %v10317_v36 }
 0x377   : > { %v1538_v45 = vpop.f32.mrf.mxu2  ;;  %v1345_v32 = vadd.f32 %v1344_v51, %v10320_v10  ;;  %v2052_v51 = vadd.f32 %v2051_v48, %v1966_v21 }
 0x378   : > { %v1735_v41 = vpop.f32.mrf.mxu3  ;;  %v1539_v26 = vadd.f32 %v1538_v45, %v9984_v22 }
 0x379   : > { %v1736_v27 = vadd.f32 %v1735_v41, %v9987_v23  ;;  %v1971_v12 = vmax.f32 %v1345_v32, 0.0  ;;  %v10736_v21 = vpop.eup %9383 }
 0x37a   : > { %v1968_v5 = vmax.f32 %v1539_v26, 0.0  ;;  %vm2267_vm1 = vweird.f32 %v10736_v21 }
 0x37b   : > { %v1969_v18 = vmax.f32 %v1736_v27, 0.0  ;;  %v2118_v20 = vadd.f32 %v2117_v59, %v1971_v12 }
 0x37c   : > { %v2182_v37 = vadd.f32 %v2181_v0, %v1968_v5 }
 0x37d   : > { %v1150_v31 = vpop.f32.mrf.mxu0  ;;  %v2247_v7 = vadd.f32 %v2246_v46, %v1969_v18 }
 0x37e   : > { %v1347_v3 = vpop.f32.mrf.mxu1  ;;  %v1151_v8 = vadd.f32 %v1150_v31, %v10317_v36 }
 0x37f   : > { %v1541_v49 = vpop.f32.mrf.mxu2  ;;  %v1348_v24 = vadd.f32 %v1347_v3, %v10320_v10 }
 0x380   : > { %v1738_v62 = vpop.f32.mrf.mxu3  ;;  %v1542_v53 = vadd.f32 %v1541_v49, %v9984_v22  ;;  %v1970_v49 = vmax.f32 %v1148_v28, 0.0  ;;  %v1974_v15 = vmax.f32 %v1151_v8, 0.0 }
 0x381   : > { %v1739_v19 = vadd.f32 %v1738_v62, %v9987_v23  ;;  %v1975_v3 = vmax.f32 %v1348_v24, 0.0  ;;  %v2263_v24 = vmul.f32 480.0, %v10736_v21 }
 0x382   : > { %v1972_v50 = vmax.f32 %v1542_v53, 0.0  ;;  %v2053_v38 = vadd.f32 %v2052_v51, %v1970_v49 }
 0x383   : > { %v1973_v34 = vmax.f32 %v1739_v19, 0.0  ;;  %v2119_v54 = vadd.f32 %v2118_v20, %v1975_v3 }
 0x384   : > { %v2183_v43 = vadd.f32 %v2182_v37, %v1972_v50  ;;  %v2054_v52 = vadd.f32 %v2053_v38, %v1974_v15 }
 0x385   : > { %v1153_v29 = vpop.f32.mrf.mxu0  ;;  %v2248_v26 = vadd.f32 %v2247_v7, %v1973_v34 }
 0x386   : > { %v1350_v6 = vpop.f32.mrf.mxu1  ;;  %v1154_v62 = vadd.f32 %v1153_v29, %v10317_v36 }
 0x387   : > { %v1544_v17 = vpop.f32.mrf.mxu2  ;;  %v1351_v31 = vadd.f32 %v1350_v6, %v10320_v10 }
 0x388   : > { %v10685_v2 = vpop.f32.mrf.mxu3  ;;  %v1545_v45 = vadd.f32 %v1544_v17, %v9984_v22  ;;  %v1978_v39 = vmax.f32 %v1154_v62, 0.0 }
 0x389   : > { %v1742_v17 = vadd.f32 %v10685_v2, %v9987_v23  ;;  %v1979_v63 = vmax.f32 %v1351_v31, 0.0 }
 0x38a   : > { %v1976_v35 = vmax.f32 %v1545_v45, 0.0  ;;  %v2055_v48 = vadd.f32 %v2054_v52, %v1978_v39 }
 0x38c   : > { %v2184_v55 = vadd.f32 %v2183_v43, %v1976_v35  ;;  %v2264_v35 = vsub.f32 1.0, %v2263_v24 }
 0x38d   : > { %v10691_v30 = vpop.f32.mrf.mxu0 }
 0x38e   : > { %v10693_v14 = vpop.f32.mrf.mxu1  ;;  %v1157_v29 = vadd.f32 %v10691_v30, %v10317_v36  ;;  %v1977_v30 = vmax.f32 %v1742_v17, 0.0 }
 0x38f   : > { %v10687_v58 = vpop.f32.mrf.mxu2  ;;  %v1354_v6 = vadd.f32 %v10693_v14, %v10320_v10 }
 0x390   : > { %v10689_v56 = vpop.f32.mrf.mxu3  ;;  %v1548_v4 = vadd.f32 %v10687_v58, %v9984_v22  ;;  %v1982_v25 = vmax.f32 %v1157_v29, 0.0  ;;  %v2249_v19 = vadd.f32 %v2248_v26, %v1977_v30 }
 0x391   : > { %v1745_v57 = vadd.f32 %v10689_v56, %v9987_v23  ;;  %v1983_v28 = vmax.f32 %v1354_v6, 0.0 }
 0x392   : > { %v1980_v9 = vmax.f32 %v1548_v4, 0.0  ;;  %v2056_v45 = vadd.f32 %v2055_v48, %v1982_v25 }
 0x393   : > { %v1981_v47 = vmax.f32 %v1745_v57, 0.0 }
 0x394   : > { %v2185_v8 = vadd.f32 %v2184_v55, %v1980_v9 }
 0x395   : > { %v1159_v60 = vpop.f32.mrf.mxu0  ;;  %v2250_v59 = vadd.f32 %v2249_v19, %v1981_v47 }
 0x396   : > { %v1356_v42 = vpop.f32.mrf.mxu1  ;;  %v1160_v2 = vadd.f32 %v1159_v60, %v10317_v36  ;;  %v2120_v60 = vadd.f32 %v2119_v54, %v1979_v63 }
 0x397   : > { %v10702_v40 = vpop.f32.mrf.mxu2  ;;  %v1357_v58 = vadd.f32 %v1356_v42, %v10320_v10 }
 0x398   : > { %v10704_v61 = vpop.f32.mrf.mxu3  ;;  %v1551_v42 = vadd.f32 %v10702_v40, %v9984_v22  ;;  %v1986_v5 = vmax.f32 %v1160_v2, 0.0 }
 0x399   : > { %v1987_v53 = vmax.f32 %v1357_v58, 0.0  ;;  %v1748_v46 = vadd.f32 %v10704_v61, %v9987_v23 }
 0x39a   : > { %v1984_v49 = vmax.f32 %v1551_v42, 0.0  ;;  %v2057_v37 = vadd.f32 %v2056_v45, %v1986_v5 }
 0x39b   : > { %v1985_v34 = vmax.f32 %v1748_v46, 0.0 }
 0x39c   : > { %v2186_v52 = vadd.f32 %v2185_v8, %v1984_v49 }
 0x39d   : > { %v1162_v41 = vpop.f32.mrf.mxu0  ;;  %v2251_v2 = vadd.f32 %v2250_v59, %v1985_v34 }
 0x39e   : > { %v1359_v1 = vpop.f32.mrf.mxu1  ;;  %v1163_v56 = vadd.f32 %v1162_v41, %v10317_v36  ;;  %v2121_v41 = vadd.f32 %v2120_v60, %v1983_v28 }
 0x39f   : > { %v10716_v13 = vpop.f32.mrf.mxu2  ;;  %v1360_v32 = vadd.f32 %v1359_v1, %v10320_v10 }
 0x3a0   : > { %v10718_v11 = vpop.f32.mrf.mxu3  ;;  %v1990_v1 = vmax.f32 %v1163_v56, 0.0  ;;  %v1554_v40 = vadd.f32 %v10716_v13, %v9984_v22  ;;  %v2122_v50 = vadd.f32 %v2121_v41, %v1987_v53 }
 0x3a1   : > { %v1991_v51 = vmax.f32 %v1360_v32, 0.0  ;;  %v1751_v12 = vadd.f32 %v10718_v11, %v9987_v23 }
 0x3a2   : > { %v2058_v4 = vadd.f32 %v2057_v37, %v1990_v1  ;;  %v1988_v20 = vmax.f32 %v1554_v40, 0.0 }
 0x3a3   : > { %v2123_v38 = vadd.f32 %v2122_v50, %v1991_v51  ;;  %v1989_v29 = vmax.f32 %v1751_v12, 0.0 }
 0x3a4   : > { %v2187_v55 = vadd.f32 %v2186_v52, %v1988_v20 }
 0x3a5   : > { %v1165_v33 = vpop.f32.mrf.mxu0 }
 0x3a6   : > { %v1362_v14 = vpop.f32.mrf.mxu1  ;;  %v1166_v0 = vadd.f32 %v1165_v33, %v10317_v36  ;;  %v2265_v33 = vmul.f32 %v10736_v21, %v2264_v35 }
 0x3a7   : > { %v1556_v44 = vpop.f32.mrf.mxu2  ;;  %v1363_v18 = vadd.f32 %v1362_v14, %v10320_v10 }
 0x3a8   : > { %v1753_v27 = vpop.f32.mrf.mxu3  ;;  %v1994_v62 = vmax.f32 %v1166_v0, 0.0  ;;  %v1557_v15 = vadd.f32 %v1556_v44, %v9984_v22  ;;  %v2266_v46 = vadd.f32 %v10736_v21, %v2265_v33 }
 0x3a9   : > { %v1995_v31 = vmax.f32 %v1363_v18, 0.0  ;;  %v1754_v16 = vadd.f32 %v1753_v27, %v9987_v23 }
 0x3aa   : > { %v2059_v39 = vadd.f32 %v2058_v4, %v1994_v62  ;;  %v1992_v58 = vmax.f32 %v1557_v15, 0.0  ;;  %v2268_v49 = vsel %vm2267_vm1, %v10736_v21, %v2266_v46 }
 0x3ab   : > { %v2124_v63 = vadd.f32 %v2123_v38, %v1995_v31  ;;  %v1993_v44 = vmax.f32 %v1754_v16, 0.0 }
 0x3ac   : > { %v2188_v56 = vadd.f32 %v2187_v55, %v1992_v58 }
 0x3ad   : > { %v1168_v3 = vpop.f32.mrf.mxu0 }
 0x3ae   : > { %v1365_v17 = vpop.f32.mrf.mxu1  ;;  %v1169_v13 = vadd.f32 %v1168_v3, %v10317_v36  ;;  %v2252_v36 = vadd.f32 %v2251_v2, %v1989_v29 }
 0x3af   : > { %v1559_v7 = vpop.f32.mrf.mxu2  ;;  %v1366_v11 = vadd.f32 %v1365_v17, %v10320_v10 }
 0x3b0   : > { %v1756_v61 = vpop.f32.mrf.mxu3  ;;  %v1560_v6 = vadd.f32 %v1559_v7, %v9984_v22  ;;  %v1998_v57 = vmax.f32 %v1169_v13, 0.0  ;;  %v2253_v32 = vadd.f32 %v2252_v36, %v1993_v44 }
 0x3b1   : > { %v1757_v43 = vadd.f32 %v1756_v61, %v9987_v23  ;;  %v1999_v26 = vmax.f32 %v1366_v11, 0.0 }
 0x3b2   : > { %v2060_v27 = vadd.f32 %v2059_v39, %v1998_v57  ;;  %v1996_v30 = vmax.f32 %v1560_v6, 0.0 }
 0x3b3   : > { %v2125_v54 = vadd.f32 %v2124_v63, %v1999_v26  ;;  %v1997_v10 = vmax.f32 %v1757_v43, 0.0 }
 0x3b4   : > { %v2061_v9 = vrot.slane %v2060_v27, 4  ;;  %v2189_v5 = vadd.f32 %v2188_v56, %v1996_v30 }
 0x3b5   : > { %v2126_v14 = vrot.slane %v2125_v54, 4  ;;  %v2254_v53 = vadd.f32 %v2253_v32, %v1997_v10 }
 0x3b6   : > { %v2062_v47 = vadd.f32 %v2061_v9, %v2060_v27 }
 0x3b7   : > { %v1562_v25 = vpop.f32.mrf.mxu2  ;;  %v2127_v42 = vadd.f32 %v2126_v14, %v2125_v54 }
 0x3b8   : > { %v1759_v28 = vpop.f32.mrf.mxu3  ;;  %v1563_v48 = vadd.f32 %v1562_v25, %v9984_v22  ;;  %v2063_v19 = vrot.slane %v2062_v47, 2 }
 0x3b9   : > { %v1760_v60 = vadd.f32 %v1759_v28, %v9987_v23  ;;  %v2128_v8 = vrot.slane %v2127_v42, 2 }
 0x3ba   : > { %v2000_v0 = vmax.f32 %v1563_v48, 0.0  ;;  %v2064_v41 = vadd.f32 %v2063_v19, %v2062_v47 }
 0x3bb   : > { %v2001_v18 = vmax.f32 %v1760_v60, 0.0  ;;  %v2129_v1 = vadd.f32 %v2128_v8, %v2127_v42 }
 0x3bc   : > { %v2190_v24 = vadd.f32 %v2189_v5, %v2000_v0  ;;  %v2065_v59 = vrot.slane %v2064_v41, 1 }
 0x3bd   : > { %v2255_v45 = vadd.f32 %v2254_v53, %v2001_v18  ;;  %v2130_v23 = vrot.slane %v2129_v1, 1 }
 0x3be   : > { %v2191_v51 = vrot.slane %v2190_v24, 4  ;;  %v2066_v37 = vadd.f32 %v2065_v59, %v2064_v41 }
 0x3bf   : > { %v2256_v22 = vrot.slane %v2255_v45, 4  ;;  %v2131_v50 = vadd.f32 %v2130_v23, %v2129_v1 }
 0x3c0   : > { %v2192_v40 = vadd.f32 %v2191_v51, %v2190_v24  ;;  %v10763_v7 = vmul.f32 %v2268_v49, %v2066_v37 }
 0x3c1   : > { %v2257_v12 = vadd.f32 %v2256_v22, %v2255_v45  ;;  %v10765_v61 = vmul.f32 %v2268_v49, %v2131_v50 }
 0x3c2   : > { %v2193_v62 = vrot.slane %v2192_v40, 2 }
 0x3c3   : > { %v2258_v31 = vrot.slane %v2257_v12, 2 }
 0x3c4   : > { %v2194_v34 = vadd.f32 %v2193_v62, %v2192_v40 }
 0x3c5   : > { %v2259_v15 = vadd.f32 %v2258_v31, %v2257_v12 }
 0x3c6   : > { %v2195_v16 = vrot.slane %v2194_v34, 1 }
 0x3c7   : > { %v2260_v3 = vrot.slane %v2259_v15, 1 }
 0x3c8   : > { %v2196_v35 = vadd.f32 %v2195_v16, %v2194_v34 }
 0x3c9   : > { %v2261_v17 = vadd.f32 %v2260_v3, %v2259_v15 }
 0x3ca   : > { %v10767_v4 = vmul.f32 %v2268_v49, %v2196_v35 }
 0x3cb   : > { %v10769_v38 = vmul.f32 %v2268_v49, %v2261_v17 }
 0x3cc   : > { %9590 = dma.done.wait [#allocation4], 65536 }
 0x3cd   : > { %9591 = vsyncadd [#allocation4], 4294901760  ;;  %v7171_v21 = vld [vmem:[#allocation3 + $0x380] sm:$0xf]  ;;  %vm6251_vm2 = vcmask 1040384   ;;  %vm6253_vm3 = vcmask 1042434  }
 0x3ce   : > { %v8912_v13 = vld [vmem:[#allocation3 + $0x3bc] sm:$0xf0]  ;;  %vm6255_vm4 = vcmask 1041408   ;;  %vm6257_vm5 = vcmask 1044484   ;;  %vm6259_vm6 = vcmask 1046534   ;;  %vm6261_vm7 = vcmask 1045508  }
 0x3cf   : > { %v7683_v11 = vld [vmem:[#allocation3 + $0x780] sm:$0xf]  ;;  %v7172_v20 = vor.u32 %v8912_v13, %v7171_v21  ;;  %vm6263_vm8 = vcmask 1043456  }
 0x3d0   : > { %v9040_v29 = vld [vmem:[#allocation3 + $0x7bc] sm:$0xf0] }
 0x3d1   : > { %v8195_v6 = vld [vmem:[#allocation3 + $0xb80] sm:$0xf]  ;;  %v7684_v39 = vor.u32 %v9040_v29, %v7683_v11  ;;  %5389 = vmatpush.bf16.msrb.mxu0 %v7172_v20 }
 0x3d2   : > { %v9168_v43 = vld [vmem:[#allocation3 + $0xbbc] sm:$0xf0] }
 0x3d3   : > { %v8196_v63 = vor.u32 %v9168_v43, %v8195_v6  ;;  %v8707_v57 = vld [vmem:[#allocation3 + $0xf80] sm:$0xf]  ;;  %5402 = vmatpush.bf16.msrb.mxu1 %v7684_v39 }
 0x3d4   : > { %v9296_v26 = vld [vmem:[#allocation3 + $0xfbc] sm:$0xf0] }
 0x3d5   : > { %v7107_v52 = vld [vmem:[#allocation3 + $0x300] sm:$0xf]  ;;  %v8708_v2 = vor.u32 %v9296_v26, %v8707_v57  ;;  %5415 = vmatpush.bf16.msrb.mxu2 %v8196_v63 }
 0x3d6   : > { %v8896_v58 = vld [vmem:[#allocation3 + $0x33c] sm:$0xf0] }
 0x3d7   : > { %v7619_v44 = vld [vmem:[#allocation3 + $0x700] sm:$0xf]  ;;  %v7108_v54 = vor.u32 %v8896_v58, %v7107_v52  ;;  %5428 = vmatpush.bf16.msrb.mxu3 %v8708_v2 }
 0x3d8   : > { %v9024_v27 = vld [vmem:[#allocation3 + $0x73c] sm:$0xf0] }
 0x3d9   : > { %v7620_v55 = vor.u32 %v9024_v27, %v7619_v44  ;;  %v8131_v36 = vld [vmem:[#allocation3 + $0xb00] sm:$0xf]  ;;  %5390 = vmatpush.bf16.msrb.mxu0 %v7108_v54 }
 0x3da   : > { %v9152_v30 = vld [vmem:[#allocation3 + $0xb3c] sm:$0xf0] }
 0x3db   : > { %v8643_v10 = vld [vmem:[#allocation3 + $0xf00] sm:$0xf]  ;;  %v8132_v9 = vor.u32 %v9152_v30, %v8131_v36  ;;  %5403 = vmatpush.bf16.msrb.mxu1 %v7620_v55 }
 0x3dc   : > { %v9280_v33 = vld [vmem:[#allocation3 + $0xf3c] sm:$0xf0] }
 0x3dd   : > { %v7043_v14 = vld [vmem:[#allocation3 + $0x280] sm:$0xf]  ;;  %v8644_v28 = vor.u32 %v9280_v33, %v8643_v10  ;;  %5416 = vmatpush.bf16.msrb.mxu2 %v8132_v9 }
 0x3de   : > { %v8880_v25 = vld [vmem:[#allocation3 + $0x2bc] sm:$0xf0] }
 0x3df   : > { %v7555_v56 = vld [vmem:[#allocation3 + $0x680] sm:$0xf]  ;;  %v7044_v60 = vor.u32 %v8880_v25, %v7043_v14  ;;  %5429 = vmatpush.bf16.msrb.mxu3 %v8644_v28 }
 0x3e0   : > { %v9008_v32 = vld [vmem:[#allocation3 + $0x6bc] sm:$0xf0] }
 0x3e1   : > { %v8067_v48 = vld [vmem:[#allocation3 + $0xa80] sm:$0xf]  ;;  %v7556_v53 = vor.u32 %v9008_v32, %v7555_v56  ;;  %5391 = vmatpush.bf16.msrb.mxu0 %v7044_v60 }
 0x3e2   : > { %v9136_v47 = vld [vmem:[#allocation3 + $0xabc] sm:$0xf0] }
 0x3e3   : > { %v8579_v42 = vld [vmem:[#allocation3 + $0xe80] sm:$0xf]  ;;  %v8068_v0 = vor.u32 %v9136_v47, %v8067_v48  ;;  %5404 = vmatpush.bf16.msrb.mxu1 %v7556_v53  ;;  %v7173_v53 = vld [vmem:[#allocation3 + $0x3c0] sm:$0xf0] }
 0x3e4   : > { %v9264_v5 = vld [vmem:[#allocation3 + $0xebc] sm:$0xf0] }
 0x3e5   : > { %v6979_v18 = vld [vmem:[#allocation3 + $0x200] sm:$0xf]  ;;  %v8580_v46 = vor.u32 %v9264_v5, %v8579_v42  ;;  %5417 = vmatpush.bf16.msrb.mxu2 %v8068_v0  ;;  %v8904_v5 = vld [vmem:[#allocation3 + $0x384] sm:$0xf] }
 0x3e6   : > { %v8864_v19 = vld [vmem:[#allocation3 + $0x23c] sm:$0xf0]  ;;  %v9032_v0 = vld [vmem:[#allocation3 + $0x784] sm:$0xf] }
 0x3e7   : > { %v7491_v8 = vld [vmem:[#allocation3 + $0x600] sm:$0xf]  ;;  %v6980_v22 = vor.u32 %v8864_v19, %v6979_v18  ;;  %5430 = vmatpush.bf16.msrb.mxu3 %v8580_v46  ;;  %v7685_v19 = vld [vmem:[#allocation3 + $0x7c0] sm:$0xf0] }
 0x3e8   : > { %v8992_v24 = vld [vmem:[#allocation3 + $0x63c] sm:$0xf0]  ;;  %v8197_v46 = vld [vmem:[#allocation3 + $0xbc0] sm:$0xf0] }
 0x3e9   : > { %v8003_v45 = vld [vmem:[#allocation3 + $0xa00] sm:$0xf]  ;;  %v7492_v59 = vor.u32 %v8992_v24, %v7491_v8  ;;  %5392 = vmatpush.bf16.msrb.mxu0 %v6980_v22  ;;  %v9160_v8 = vld [vmem:[#allocation3 + $0xb84] sm:$0xf]  ;;  %v7176_v22 = vor.u32 %v8904_v5, %v7173_v53 }
 0x3ea   : > { %v9120_v41 = vld [vmem:[#allocation3 + $0xa3c] sm:$0xf0] }
 0x3eb   : > { %v8515_v1 = vld [vmem:[#allocation3 + $0xe00] sm:$0xf]  ;;  %v8004_v23 = vor.u32 %v9120_v41, %v8003_v45  ;;  %5405 = vmatpush.bf16.msrb.mxu1 %v7492_v59  ;;  %v9288_v41 = vld [vmem:[#allocation3 + $0xf84] sm:$0xf]  ;;  %v7688_v59 = vor.u32 %v9032_v0, %v7685_v19 }
 0x3ec   : > { %v9248_v51 = vld [vmem:[#allocation3 + $0xe3c] sm:$0xf0]  ;;  %v6853_v19 = vld [vmem:[#allocation3 + $0x140] sm:$0xf0] }
 0x3ed   : > { %v6915_v49 = vld [vmem:[#allocation3 + $0x180] sm:$0xf]  ;;  %v8516_v37 = vor.u32 %v9248_v51, %v8515_v1  ;;  %5418 = vmatpush.bf16.msrb.mxu2 %v8004_v23  ;;  %v8709_v1 = vld [vmem:[#allocation3 + $0xfc0] sm:$0xf0]  ;;  %v8200_v23 = vor.u32 %v9160_v8, %v8197_v46 }
 0x3ee   : > { %v8848_v40 = vld [vmem:[#allocation3 + $0x1bc] sm:$0xf0]  ;;  %v8952_v8 = vld [vmem:[#allocation3 + $0x504] sm:$0xf] }
 0x3ef   : > { %v7427_v12 = vld [vmem:[#allocation3 + $0x580] sm:$0xf]  ;;  %v6916_v16 = vor.u32 %v8848_v40, %v6915_v49  ;;  %5431 = vmatpush.bf16.msrb.mxu3 %v8516_v37  ;;  %v8888_v49 = vld [vmem:[#allocation3 + $0x304] sm:$0xf]  ;;  %v8712_v37 = vor.u32 %v9288_v41, %v8709_v1 }
 0x3f0   : > { %v8976_v50 = vld [vmem:[#allocation3 + $0x5bc] sm:$0xf0]  ;;  %v7109_v40 = vld [vmem:[#allocation3 + $0x340] sm:$0xf0] }
 0x3f1   : > { %v7939_v62 = vld [vmem:[#allocation3 + $0x980] sm:$0xf]  ;;  %v7428_v3 = vor.u32 %v8976_v50, %v7427_v12  ;;  %5393 = vmatpush.bf16.msrb.mxu0 %v6916_v16  ;;  %v9016_v12 = vld [vmem:[#allocation3 + $0x704] sm:$0xf] }
 0x3f2   : > { %v9104_v31 = vld [vmem:[#allocation3 + $0x9bc] sm:$0xf0]  ;;  %v7621_v50 = vld [vmem:[#allocation3 + $0x740] sm:$0xf0] }
 0x3f3   : > { %v8451_v34 = vld [vmem:[#allocation3 + $0xd80] sm:$0xf]  ;;  %v7940_v35 = vor.u32 %v9104_v31, %v7939_v62  ;;  %5406 = vmatpush.bf16.msrb.mxu1 %v7428_v3  ;;  %v9144_v62 = vld [vmem:[#allocation3 + $0xb04] sm:$0xf]  ;;  %v10777_v3 = vpack.c.bf16 %v10763_v7, %v10763_v7 }
 0x3f4   : > { %v9232_v15 = vld [vmem:[#allocation3 + $0xdbc] sm:$0xf0]  ;;  %v8133_v31 = vld [vmem:[#allocation3 + $0xb40] sm:$0xf0] }
 0x3f5   : > { %v6851_v17 = vld [vmem:[#allocation3 + $0x100] sm:$0xf]  ;;  %v8452_v11 = vor.u32 %v9232_v15, %v8451_v34  ;;  %5419 = vmatpush.bf16.msrb.mxu2 %v7940_v35  ;;  %v10773_v34 = vpack.c.bf16 %v10767_v4, %v10767_v4  ;;  %v9272_v15 = vld [vmem:[#allocation3 + $0xf04] sm:$0xf]  ;;  %v10781_v35 = vpack.c.bf16 %v10769_v38, %v10769_v38  ;;  %v7624_v4 = vor.u32 %v9016_v12, %v7621_v50 }
 0x3f6   : > { %v8832_v21 = vld [vmem:[#allocation3 + $0x13c] sm:$0xf0]  ;;  %v8645_v16 = vld [vmem:[#allocation3 + $0xf40] sm:$0xf0] }
 0x3f7   : > { %v7363_v13 = vld [vmem:[#allocation3 + $0x500] sm:$0xf]  ;;  %v6852_v63 = vor.u32 %v8832_v21, %v6851_v17  ;;  %5432 = vmatpush.bf16.msrb.mxu3 %v8452_v11  ;;  %v7112_v17 = vor.u32 %v8888_v49, %v7109_v40  ;;  %v10785_v21 = vpack.c.bf16 %v10765_v61, %v10765_v61  ;;  %v8872_v11 = vld [vmem:[#allocation3 + $0x284] sm:$0xf]  ;;  %v8648_v7 = vor.u32 %v9272_v15, %v8645_v16 }
 0x3f8   : > { %v8960_v20 = vld [vmem:[#allocation3 + $0x53c] sm:$0xf0]  ;;  %v8069_v38 = vld [vmem:[#allocation3 + $0xac0] sm:$0xf0] }
 0x3f9   : > { %v7875_v29 = vld [vmem:[#allocation3 + $0x900] sm:$0xf]  ;;  %v7364_v57 = vor.u32 %v8960_v20, %v7363_v13  ;;  %5394 = vmatpush.bf16.msrb.mxu0 %v6852_v63  ;;  %v8136_v13 = vor.u32 %v9144_v62, %v8133_v31  ;;  %v7045_v20 = vld [vmem:[#allocation3 + $0x2c0] sm:$0xf0] }
 0x3fa   : > { %v9088_v6 = vld [vmem:[#allocation3 + $0x93c] sm:$0xf0]  ;;  %v8581_v63 = vld [vmem:[#allocation3 + $0xec0] sm:$0xf0]  ;;  %v7048_v61 = vor.u32 %v8872_v11, %v7045_v20 }
 0x3fb   : > { %v8387_v43 = vld [vmem:[#allocation3 + $0xd00] sm:$0xf]  ;;  %v7876_v26 = vor.u32 %v9088_v6, %v7875_v29  ;;  %5407 = vmatpush.bf16.msrb.mxu1 %v7364_v57  ;;  %v9000_v29 = vld [vmem:[#allocation3 + $0x684] sm:$0xf] }
 0x3fc   : > { %v9216_v39 = vld [vmem:[#allocation3 + $0xd3c] sm:$0xf0]  ;;  %v7557_v6 = vld [vmem:[#allocation3 + $0x6c0] sm:$0xf0] }
 0x3fd   : > { %v6787_v52 = vld [vmem:[#allocation3 + $0x80] sm:$0xf]  ;;  %v8388_v44 = vor.u32 %v9216_v39, %v8387_v43  ;;  %5420 = vmatpush.bf16.msrb.mxu2 %v7876_v26  ;;  %v9128_v43 = vld [vmem:[#allocation3 + $0xa84] sm:$0xf]  ;;  %v7560_v57 = vor.u32 %v9000_v29, %v7557_v6 }
 0x3fe   : > { %v8816_v2 = vld [vmem:[#allocation3 + $0xbc] sm:$0xf0]  ;;  %v9256_v39 = vld [vmem:[#allocation3 + $0xe84] sm:$0xf]  ;;  %v8072_v26 = vor.u32 %v9128_v43, %v8069_v38 }
 0x3ff   : > { %v7299_v58 = vld [vmem:[#allocation3 + $0x480] sm:$0xf]  ;;  %v6788_v10 = vor.u32 %v8816_v2, %v6787_v52  ;;  %5433 = vmatpush.bf16.msrb.mxu3 %v8388_v44  ;;  %v8856_v52 = vld [vmem:[#allocation3 + $0x204] sm:$0xf]  ;;  %v8584_v44 = vor.u32 %v9256_v39, %v8581_v63 }
 0x400   : > { %v8944_v27 = vld [vmem:[#allocation3 + $0x4bc] sm:$0xf0]  ;;  %v6981_v2 = vld [vmem:[#allocation3 + $0x240] sm:$0xf0] }
 0x401   : > { %v7811_v54 = vld [vmem:[#allocation3 + $0x880] sm:$0xf]  ;;  %v7300_v14 = vor.u32 %v8944_v27, %v7299_v58  ;;  %5395 = vmatpush.bf16.msrb.mxu0 %v6788_v10  ;;  %v8984_v58 = vld [vmem:[#allocation3 + $0x604] sm:$0xf]  ;;  %v6984_v10 = vor.u32 %v8856_v52, %v6981_v2  ;;  %v9041_v2 = vld [vmem:[#allocation3 + $0x7c4] sm:$0xf0] }
 0x402   : > { %v9072_v55 = vld [vmem:[#allocation3 + $0x8bc] sm:$0xf0]  ;;  %v7493_v27 = vld [vmem:[#allocation3 + $0x640] sm:$0xf0] }
 0x403   : > { %v8323_v36 = vld [vmem:[#allocation3 + $0xc80] sm:$0xf]  ;;  %v7812_v25 = vor.u32 %v9072_v55, %v7811_v54  ;;  %5408 = vmatpush.bf16.msrb.mxu1 %v7300_v14  ;;  %v9112_v54 = vld [vmem:[#allocation3 + $0xa04] sm:$0xf] }
 0x404   : > { %v9200_v30 = vld [vmem:[#allocation3 + $0xcbc] sm:$0xf0]  ;;  %v8005_v55 = vld [vmem:[#allocation3 + $0xa40] sm:$0xf0] }
 0x405   : > { %v6723_v9 = vld [vmem:[#allocation3] sm:$0xf]  ;;  %v8324_v48 = vor.u32 %v9200_v30, %v8323_v36  ;;  %5421 = vmatpush.bf16.msrb.mxu2 %v7812_v25  ;;  %v9240_v36 = vld [vmem:[#allocation3 + $0xe04] sm:$0xf] }
 0x406   : > { %v8800_v33 = vld [vmem:[#allocation3 + $0x3c] sm:$0xf0]  ;;  %v8517_v30 = vld [vmem:[#allocation3 + $0xe40] sm:$0xf0] }
 0x407   : > { %v7235_v28 = vld [vmem:[#allocation3 + $0x400] sm:$0xf]  ;;  %v6724_v18 = vor.u32 %v8800_v33, %v6723_v9  ;;  %5434 = vmatpush.bf16.msrb.mxu3 %v8324_v48  ;;  %v7496_v9 = vor.u32 %v8984_v58, %v7493_v27  ;;  %v8008_v33 = vor.u32 %v9112_v54, %v8005_v55  ;;  %v8840_v14 = vld [vmem:[#allocation3 + $0x184] sm:$0xf]  ;;  %v8203_v58 = vld [vmem:[#allocation3 + $0xb88] sm:$0xf] }
 0x408   : > { %v8928_v56 = vld [vmem:[#allocation3 + $0x43c] sm:$0xf0]  ;;  %v6917_v25 = vld [vmem:[#allocation3 + $0x1c0] sm:$0xf0]  ;;  %v8715_v55 = vld [vmem:[#allocation3 + $0xf88] sm:$0xf] }
 0x409   : > { %v7747_v32 = vld [vmem:[#allocation3 + $0x800] sm:$0xf]  ;;  %v7236_v24 = vor.u32 %v8928_v56, %v7235_v28  ;;  %5396 = vmatpush.bf16.msrb.mxu0 %v6724_v18  ;;  %v8968_v28 = vld [vmem:[#allocation3 + $0x584] sm:$0xf]  ;;  %v8520_v56 = vor.u32 %v9240_v36, %v8517_v30  ;;  %v6920_v5 = vor.u32 %v8840_v14, %v6917_v25  ;;  %v9297_v36 = vld [vmem:[#allocation3 + $0xfc4] sm:$0xf0] }
 0x40a   : > { %v9056_v60 = vld [vmem:[#allocation3 + $0x83c] sm:$0xf0]  ;;  %v9096_v48 = vld [vmem:[#allocation3 + $0x984] sm:$0xf]  ;;  %v7115_v14 = vld [vmem:[#allocation3 + $0x308] sm:$0xf] }
 0x40b   : > { %v8259_v47 = vld [vmem:[#allocation3 + $0xc00] sm:$0xf]  ;;  %v7748_v45 = vor.u32 %v9056_v60, %v7747_v32  ;;  %5409 = vmatpush.bf16.msrb.mxu1 %v7236_v24  ;;  %v7429_v32 = vld [vmem:[#allocation3 + $0x5c0] sm:$0xf0]  ;;  %v8897_v25 = vld [vmem:[#allocation3 + $0x344] sm:$0xf0] }
 0x40c   : > { %v9184_v42 = vld [vmem:[#allocation3 + $0xc3c] sm:$0xf0]  ;;  %5397 = vmatmul.bf16.vlgmr.msrb.gmra.mxu0 %v10777_v3  ;;  %v7941_v60 = vld [vmem:[#allocation3 + $0x9c0] sm:$0xf0]  ;;  %v7432_v53 = vor.u32 %v8968_v28, %v7429_v32  ;;  %v7627_v28 = vld [vmem:[#allocation3 + $0x708] sm:$0xf] }
 0x40d   : > { %v8260_v51 = vor.u32 %v9184_v42, %v8259_v47  ;;  %5422 = vmatpush.bf16.msrb.mxu2 %v7748_v45  ;;  %5441 = vmatpush.bf16.msra.mxu0 %v7176_v22  ;;  %v9224_v47 = vld [vmem:[#allocation3 + $0xd84] sm:$0xf]  ;;  %v7944_v0 = vor.u32 %v9096_v48, %v7941_v60  ;;  %v9025_v32 = vld [vmem:[#allocation3 + $0x744] sm:$0xf0] }
 0x40e   : > { %5410 = vmatmul.bf16.vlgmr.msrb.gmra.mxu1 %v10785_v21  ;;  %v8453_v42 = vld [vmem:[#allocation3 + $0xdc0] sm:$0xf0]  ;;  %v8139_v48 = vld [vmem:[#allocation3 + $0xb08] sm:$0xf] }
 0x40f   : > { %5435 = vmatpush.bf16.msrb.mxu3 %v8260_v51  ;;  %5454 = vmatpush.bf16.msra.mxu1 %v7688_v59  ;;  %v8824_v18 = vld [vmem:[#allocation3 + $0x104] sm:$0xf]  ;;  %v8456_v46 = vor.u32 %v9224_v47, %v8453_v42  ;;  %v9153_v60 = vld [vmem:[#allocation3 + $0xb44] sm:$0xf0] }
 0x410   : > { %5423 = vmatmul.bf16.vlgmr.msrb.gmra.mxu2 %v10773_v34  ;;  %v7365_v24 = vld [vmem:[#allocation3 + $0x540] sm:$0xf0]  ;;  %v6856_v22 = vor.u32 %v8824_v18, %v6853_v19  ;;  %v8651_v47 = vld [vmem:[#allocation3 + $0xf08] sm:$0xf] }
 0x411   : > { %5467 = vmatpush.bf16.msra.mxu2 %v8200_v23  ;;  %5442 = vmatpush.bf16.msra.mxu0 %v7112_v17  ;;  %v9080_v45 = vld [vmem:[#allocation3 + $0x904] sm:$0xf]  ;;  %v7368_v59 = vor.u32 %v8952_v8, %v7365_v24  ;;  %v9281_v42 = vld [vmem:[#allocation3 + $0xf44] sm:$0xf0] }
 0x412   : > { %5436 = vmatmul.bf16.vlgmr.msrb.gmra.mxu3 %v10781_v35  ;;  %v7877_v41 = vld [vmem:[#allocation3 + $0x940] sm:$0xf0]  ;;  %v7051_v18 = vld [vmem:[#allocation3 + $0x288] sm:$0xf] }
 0x413   : > { %5480 = vmatpush.bf16.msra.mxu3 %v8712_v37  ;;  %5455 = vmatpush.bf16.msra.mxu1 %v7624_v4  ;;  %v9208_v1 = vld [vmem:[#allocation3 + $0xd04] sm:$0xf]  ;;  %v7880_v23 = vor.u32 %v9080_v45, %v7877_v41  ;;  %v8881_v19 = vld [vmem:[#allocation3 + $0x2c4] sm:$0xf0] }
 0x414   : > { %v8389_v51 = vld [vmem:[#allocation3 + $0xd40] sm:$0xf0]  ;;  %v7563_v8 = vld [vmem:[#allocation3 + $0x688] sm:$0xf] }
 0x415   : > { %5468 = vmatpush.bf16.msra.mxu2 %v8136_v13  ;;  %5443 = vmatpush.bf16.msra.mxu0 %v7048_v61  ;;  %v8808_v49 = vld [vmem:[#allocation3 + $0x84] sm:$0xf]  ;;  %v8392_v37 = vor.u32 %v9208_v1, %v8389_v51  ;;  %v7179_v61 = vld [vmem:[#allocation3 + $0x388] sm:$0xf] }
 0x416   : > { %v6789_v40 = vld [vmem:[#allocation3 + $0xc0] sm:$0xf0]  ;;  %v9009_v24 = vld [vmem:[#allocation3 + $0x6c4] sm:$0xf0] }
 0x417   : > { %5481 = vmatpush.bf16.msra.mxu3 %v8648_v7  ;;  %5456 = vmatpush.bf16.msra.mxu1 %v7560_v57  ;;  %v8936_v12 = vld [vmem:[#allocation3 + $0x484] sm:$0xf]  ;;  %v6792_v17 = vor.u32 %v8808_v49, %v6789_v40  ;;  %v8913_v57 = vld [vmem:[#allocation3 + $0x3c4] sm:$0xf0] }
 0x418   : > { %v7301_v50 = vld [vmem:[#allocation3 + $0x4c0] sm:$0xf0]  ;;  %v8075_v45 = vld [vmem:[#allocation3 + $0xa88] sm:$0xf] }
 0x419   : > { %5469 = vmatpush.bf16.msra.mxu2 %v8072_v26  ;;  %5444 = vmatpush.bf16.msra.mxu0 %v6984_v10  ;;  %v9064_v62 = vld [vmem:[#allocation3 + $0x884] sm:$0xf]  ;;  %v7304_v11 = vor.u32 %v8936_v12, %v7301_v50  ;;  %v7691_v26 = vld [vmem:[#allocation3 + $0x788] sm:$0xf]  ;;  %v7180_v10 = vor.u32 %v8913_v57, %v7179_v61 }
 0x41a   : > { %v7813_v31 = vld [vmem:[#allocation3 + $0x8c0] sm:$0xf0]  ;;  %v9137_v41 = vld [vmem:[#allocation3 + $0xac4] sm:$0xf0] }
 0x41b   : > { %5482 = vmatpush.bf16.msra.mxu3 %v8584_v44  ;;  %5457 = vmatpush.bf16.msra.mxu1 %v7496_v9  ;;  %v9192_v15 = vld [vmem:[#allocation3 + $0xc84] sm:$0xf]  ;;  %v7816_v20 = vor.u32 %v9064_v62, %v7813_v31  ;;  %v9169_v44 = vld [vmem:[#allocation3 + $0xbc4] sm:$0xf0]  ;;  %v7692_v9 = vor.u32 %v9041_v2, %v7691_v26 }
 0x41c   : > { %v8325_v16 = vld [vmem:[#allocation3 + $0xcc0] sm:$0xf0]  ;;  %v8587_v1 = vld [vmem:[#allocation3 + $0xe88] sm:$0xf] }
 0x41d   : > { %5470 = vmatpush.bf16.msra.mxu2 %v8008_v33  ;;  %5445 = vmatpush.bf16.msra.mxu0 %v6920_v5  ;;  %v8792_v4 = vld [vmem:[#allocation3 + $0x4] sm:$0xf]  ;;  %v8328_v43 = vor.u32 %v9192_v15, %v8325_v16  ;;  %v8204_v33 = vor.u32 %v9169_v44, %v8203_v58  ;;  %v7116_v5 = vor.u32 %v8897_v25, %v7115_v14  ;;  %v9265_v51 = vld [vmem:[#allocation3 + $0xec4] sm:$0xf0] }
 0x41e   : > { %v6725_v13 = vld [vmem:[#allocation3 + $0x40] sm:$0xf0]  ;;  %v6987_v49 = vld [vmem:[#allocation3 + $0x208] sm:$0xf] }
 0x41f   : > { %5483 = vmatpush.bf16.msra.mxu3 %v8520_v56  ;;  %5458 = vmatpush.bf16.msra.mxu1 %v7432_v53  ;;  %v8920_v29 = vld [vmem:[#allocation3 + $0x404] sm:$0xf]  ;;  %v6728_v52 = vor.u32 %v8792_v4, %v6725_v13  ;;  %v8716_v56 = vor.u32 %v9297_v36, %v8715_v55  ;;  %v7628_v53 = vor.u32 %v9025_v32, %v7627_v28  ;;  %v8865_v40 = vld [vmem:[#allocation3 + $0x244] sm:$0xf0] }
 0x420   : > { %v7237_v7 = vld [vmem:[#allocation3 + $0x440] sm:$0xf0]  ;;  %v7499_v12 = vld [vmem:[#allocation3 + $0x608] sm:$0xf] }
 0x421   : > { %5471 = vmatpush.bf16.msra.mxu2 %v7944_v0  ;;  %5446 = vmatpush.bf16.msra.mxu0 %v6856_v22  ;;  %v9048_v6 = vld [vmem:[#allocation3 + $0x804] sm:$0xf]  ;;  %v7240_v27 = vor.u32 %v8920_v29, %v7237_v7  ;;  %v8140_v0 = vor.u32 %v9153_v60, %v8139_v48  ;;  %v7052_v22 = vor.u32 %v8881_v19, %v7051_v18  ;;  %v8993_v50 = vld [vmem:[#allocation3 + $0x644] sm:$0xf0] }
 0x422   : > { %v7749_v38 = vld [vmem:[#allocation3 + $0x840] sm:$0xf0]  ;;  %v8011_v62 = vld [vmem:[#allocation3 + $0xa08] sm:$0xf]  ;;  %v7500_v4 = vor.u32 %v8993_v50, %v7499_v12  ;;  %v9161_v12 = vld [vmem:[#allocation3 + $0xb8c] sm:$0xf] }
 0x423   : > { %5484 = vmatpush.bf16.msra.mxu3 %v8456_v46  ;;  %5459 = vmatpush.bf16.msra.mxu1 %v7368_v59  ;;  %v9176_v39 = vld [vmem:[#allocation3 + $0xc04] sm:$0xf]  ;;  %v7752_v54 = vor.u32 %v9048_v6, %v7749_v38  ;;  %v8652_v46 = vor.u32 %v9281_v42, %v8651_v47  ;;  %v7564_v59 = vor.u32 %v9009_v24, %v7563_v8  ;;  %v9121_v31 = vld [vmem:[#allocation3 + $0xa44] sm:$0xf0] }
 0x424   : > { %v8261_v63 = vld [vmem:[#allocation3 + $0xc40] sm:$0xf0]  ;;  %v8523_v15 = vld [vmem:[#allocation3 + $0xe08] sm:$0xf]  ;;  %v8012_v13 = vor.u32 %v9121_v31, %v8011_v62  ;;  %v9289_v31 = vld [vmem:[#allocation3 + $0xf8c] sm:$0xf] }
 0x425   : > { %5472 = vmatpush.bf16.msra.mxu2 %v7880_v23  ;;  %5447 = vmatpush.bf16.msra.mxu0 %v6792_v17  ;;  %v8264_v30 = vor.u32 %v9176_v39, %v8261_v63  ;;  %v8076_v23 = vor.u32 %v9137_v41, %v8075_v45  ;;  %v9249_v16 = vld [vmem:[#allocation3 + $0xe44] sm:$0xf0]  ;;  %v6988_v17 = vor.u32 %v8865_v40, %v6987_v49  ;;  %v7693_v40 = vld [vmem:[#allocation3 + $0x7c8] sm:$0xf0] }
 0x426   : > { %v7435_v29 = vld [vmem:[#allocation3 + $0x588] sm:$0xf]  ;;  %v8524_v7 = vor.u32 %v9249_v16, %v8523_v15  ;;  %v8717_v15 = vld [vmem:[#allocation3 + $0xfc8] sm:$0xf0] }
 0x427   : > { %5485 = vmatpush.bf16.msra.mxu3 %v8392_v37  ;;  %5460 = vmatpush.bf16.msra.mxu1 %v7304_v11  ;;  %v8588_v37 = vor.u32 %v9265_v51, %v8587_v1  ;;  %v6923_v11 = vld [vmem:[#allocation3 + $0x188] sm:$0xf] }
 0x428   : > { %v8977_v6 = vld [vmem:[#allocation3 + $0x5c4] sm:$0xf0] }
 0x429   : > { %5473 = vmatpush.bf16.msra.mxu2 %v7816_v20  ;;  %5448 = vmatpush.bf16.msra.mxu0 %v6728_v52  ;;  %v8849_v20 = vld [vmem:[#allocation3 + $0x1c4] sm:$0xf0]  ;;  %v7436_v57 = vor.u32 %v8977_v6, %v7435_v29  ;;  %v9017_v29 = vld [vmem:[#allocation3 + $0x70c] sm:$0xf] }
 0x42a   : > { %v9105_v38 = vld [vmem:[#allocation3 + $0x9c4] sm:$0xf0]  ;;  %v6924_v61 = vor.u32 %v8849_v20, %v6923_v11  ;;  %v8889_v11 = vld [vmem:[#allocation3 + $0x30c] sm:$0xf] }
 0x42b   : > { %5486 = vmatpush.bf16.msra.mxu3 %v8328_v43  ;;  %5461 = vmatpush.bf16.msra.mxu1 %v7240_v27  ;;  %v7947_v43 = vld [vmem:[#allocation3 + $0x988] sm:$0xf]  ;;  %v7117_v20 = vld [vmem:[#allocation3 + $0x348] sm:$0xf0] }
 0x42c   : > { %5449 = vmatmul.bf16.vlgmr.msra.gmra.mxu0 %v10777_v3  ;;  %v8459_v39 = vld [vmem:[#allocation3 + $0xd88] sm:$0xf]  ;;  %v7948_v26 = vor.u32 %v9105_v38, %v7947_v43  ;;  %v7629_v6 = vld [vmem:[#allocation3 + $0x748] sm:$0xf0] }
 0x42d   : > { %5474 = vmatpush.bf16.msra.mxu2 %v7752_v54  ;;  %5493 = vmatpush.bf16.msrb.mxu0 %v7180_v10  ;;  %v9233_v63 = vld [vmem:[#allocation3 + $0xdc4] sm:$0xf0]  ;;  %v9145_v43 = vld [vmem:[#allocation3 + $0xb0c] sm:$0xf] }
 0x42e   : > { %5462 = vmatmul.bf16.vlgmr.msra.gmra.mxu1 %v10785_v21  ;;  %v6859_v52 = vld [vmem:[#allocation3 + $0x108] sm:$0xf]  ;;  %v8460_v44 = vor.u32 %v9233_v63, %v8459_v39  ;;  %v8141_v38 = vld [vmem:[#allocation3 + $0xb48] sm:$0xf0] }
 0x42f   : > { %5487 = vmatpush.bf16.msra.mxu3 %v8264_v30  ;;  %5506 = vmatpush.bf16.msrb.mxu1 %v7692_v9  ;;  %v8833_v2 = vld [vmem:[#allocation3 + $0x144] sm:$0xf0]  ;;  %v9273_v39 = vld [vmem:[#allocation3 + $0xf0c] sm:$0xf] }
 0x430   : > { %5475 = vmatmul.bf16.vlgmr.msra.gmra.mxu2 %v10773_v34  ;;  %v7371_v58 = vld [vmem:[#allocation3 + $0x508] sm:$0xf]  ;;  %v6860_v10 = vor.u32 %v8833_v2, %v6859_v52  ;;  %v8653_v63 = vld [vmem:[#allocation3 + $0xf48] sm:$0xf0] }
 0x431   : > { %5519 = vmatpush.bf16.msrb.mxu2 %v8204_v33  ;;  %5494 = vmatpush.bf16.msrb.mxu0 %v7116_v5  ;;  %v8961_v27 = vld [vmem:[#allocation3 + $0x544] sm:$0xf0]  ;;  %v8873_v52 = vld [vmem:[#allocation3 + $0x28c] sm:$0xf] }
 0x432   : > { %5488 = vmatmul.bf16.vlgmr.msra.gmra.mxu3 %v10781_v35  ;;  %v7883_v54 = vld [vmem:[#allocation3 + $0x908] sm:$0xf]  ;;  %v7372_v9 = vor.u32 %v8961_v27, %v7371_v58  ;;  %v7053_v2 = vld [vmem:[#allocation3 + $0x2c8] sm:$0xf0] }
 0x433   : > { %5532 = vmatpush.bf16.msrb.mxu3 %v8716_v56  ;;  %5507 = vmatpush.bf16.msrb.mxu1 %v7628_v53  ;;  %v9089_v55 = vld [vmem:[#allocation3 + $0x944] sm:$0xf0]  ;;  %v9001_v58 = vld [vmem:[#allocation3 + $0x68c] sm:$0xf] }
 0x434   : > { %v8395_v36 = vld [vmem:[#allocation3 + $0xd08] sm:$0xf]  ;;  %v7884_v33 = vor.u32 %v9089_v55, %v7883_v54  ;;  %v7565_v27 = vld [vmem:[#allocation3 + $0x6c8] sm:$0xf0] }
 0x435   : > { %5520 = vmatpush.bf16.msrb.mxu2 %v8140_v0  ;;  %5495 = vmatpush.bf16.msrb.mxu0 %v7052_v22  ;;  %v9217_v30 = vld [vmem:[#allocation3 + $0xd44] sm:$0xf0]  ;;  %v8905_v22 = vld [vmem:[#allocation3 + $0x38c] sm:$0xf] }
 0x436   : > { %v6795_v14 = vld [vmem:[#allocation3 + $0x88] sm:$0xf]  ;;  %v8396_v56 = vor.u32 %v9217_v30, %v8395_v36  ;;  %v9129_v54 = vld [vmem:[#allocation3 + $0xa8c] sm:$0xf] }
 0x437   : > { %5533 = vmatpush.bf16.msrb.mxu3 %v8652_v46  ;;  %5508 = vmatpush.bf16.msrb.mxu1 %v7564_v59  ;;  %v8817_v25 = vld [vmem:[#allocation3 + $0xc4] sm:$0xf0]  ;;  %v7181_v59 = vld [vmem:[#allocation3 + $0x3c8] sm:$0xf0] }
 0x438   : > { %v7307_v28 = vld [vmem:[#allocation3 + $0x488] sm:$0xf]  ;;  %v6796_v5 = vor.u32 %v8817_v25, %v6795_v14  ;;  %v8077_v55 = vld [vmem:[#allocation3 + $0xac8] sm:$0xf0] }
 0x439   : > { %5521 = vmatpush.bf16.msrb.mxu2 %v8076_v23  ;;  %5496 = vmatpush.bf16.msrb.mxu0 %v6988_v17  ;;  %v8945_v32 = vld [vmem:[#allocation3 + $0x4c4] sm:$0xf0]  ;;  %v9033_v23 = vld [vmem:[#allocation3 + $0x78c] sm:$0xf]  ;;  %v7184_v17 = vor.u32 %v8905_v22, %v7181_v59 }
 0x43a   : > { %v7819_v48 = vld [vmem:[#allocation3 + $0x888] sm:$0xf]  ;;  %v7308_v18 = vor.u32 %v8945_v32, %v7307_v28  ;;  %v9257_v36 = vld [vmem:[#allocation3 + $0xe8c] sm:$0xf] }
 0x43b   : > { %5534 = vmatpush.bf16.msrb.mxu3 %v8588_v37  ;;  %5509 = vmatpush.bf16.msrb.mxu1 %v7500_v4  ;;  %v9073_v60 = vld [vmem:[#allocation3 + $0x8c4] sm:$0xf0]  ;;  %v8205_v37 = vld [vmem:[#allocation3 + $0xbc8] sm:$0xf0]  ;;  %v7696_v4 = vor.u32 %v9033_v23, %v7693_v40 }
 0x43c   : > { %v8331_v47 = vld [vmem:[#allocation3 + $0xc88] sm:$0xf]  ;;  %v7820_v19 = vor.u32 %v9073_v60, %v7819_v48  ;;  %v8589_v30 = vld [vmem:[#allocation3 + $0xec8] sm:$0xf0] }
 0x43d   : > { %5522 = vmatpush.bf16.msrb.mxu2 %v8012_v13  ;;  %5497 = vmatpush.bf16.msrb.mxu0 %v6924_v61  ;;  %v9201_v42 = vld [vmem:[#allocation3 + $0xcc4] sm:$0xf0]  ;;  %v8208_v13 = vor.u32 %v9161_v12, %v8205_v37  ;;  %v7120_v61 = vor.u32 %v8889_v11, %v7117_v20  ;;  %v8857_v14 = vld [vmem:[#allocation3 + $0x20c] sm:$0xf] }
 0x43e   : > { %v6731_v53 = vld [vmem:[#allocation3 + $0x8] sm:$0xf]  ;;  %v8332_v45 = vor.u32 %v9201_v42, %v8331_v47  ;;  %v6989_v25 = vld [vmem:[#allocation3 + $0x248] sm:$0xf0] }
 0x43f   : > { %5535 = vmatpush.bf16.msrb.mxu3 %v8524_v7  ;;  %5510 = vmatpush.bf16.msrb.mxu1 %v7436_v57  ;;  %v8801_v0 = vld [vmem:[#allocation3 + $0x44] sm:$0xf0]  ;;  %v8720_v7 = vor.u32 %v9289_v31, %v8717_v15  ;;  %v7632_v57 = vor.u32 %v9017_v29, %v7629_v6  ;;  %v8985_v28 = vld [vmem:[#allocation3 + $0x60c] sm:$0xf] }
 0x440   : > { %v7243_v8 = vld [vmem:[#allocation3 + $0x408] sm:$0xf]  ;;  %v6732_v49 = vor.u32 %v8801_v0, %v6731_v53  ;;  %v7501_v32 = vld [vmem:[#allocation3 + $0x648] sm:$0xf0] }
 0x441   : > { %5523 = vmatpush.bf16.msrb.mxu2 %v7948_v26  ;;  %5498 = vmatpush.bf16.msrb.mxu0 %v6860_v10  ;;  %v8929_v46 = vld [vmem:[#allocation3 + $0x444] sm:$0xf0]  ;;  %v8144_v26 = vor.u32 %v9145_v43, %v8141_v38  ;;  %v7056_v10 = vor.u32 %v8873_v52, %v7053_v2  ;;  %v9113_v48 = vld [vmem:[#allocation3 + $0xa0c] sm:$0xf]  ;;  %v7504_v53 = vor.u32 %v8985_v28, %v7501_v32  ;;  %v8211_v28 = vld [vmem:[#allocation3 + $0xb90] sm:$0xf] }
 0x442   : > { %v7755_v24 = vld [vmem:[#allocation3 + $0x808] sm:$0xf]  ;;  %v7244_v50 = vor.u32 %v8929_v46, %v7243_v8  ;;  %v8013_v60 = vld [vmem:[#allocation3 + $0xa48] sm:$0xf0] }
 0x443   : > { %5536 = vmatpush.bf16.msrb.mxu3 %v8460_v44  ;;  %5511 = vmatpush.bf16.msrb.mxu1 %v7372_v9  ;;  %v9057_v41 = vld [vmem:[#allocation3 + $0x844] sm:$0xf0]  ;;  %v8656_v44 = vor.u32 %v9273_v39, %v8653_v63  ;;  %v7568_v9 = vor.u32 %v9001_v58, %v7565_v27  ;;  %v9241_v47 = vld [vmem:[#allocation3 + $0xe0c] sm:$0xf]  ;;  %v8016_v0 = vor.u32 %v9113_v48, %v8013_v60  ;;  %v8723_v60 = vld [vmem:[#allocation3 + $0xf90] sm:$0xf] }
 0x444   : > { %v8267_v1 = vld [vmem:[#allocation3 + $0xc08] sm:$0xf]  ;;  %v7756_v62 = vor.u32 %v9057_v41, %v7755_v24  ;;  %v8525_v42 = vld [vmem:[#allocation3 + $0xe48] sm:$0xf0] }
 0x445   : > { %5524 = vmatpush.bf16.msrb.mxu2 %v7884_v33  ;;  %v9185_v51 = vld [vmem:[#allocation3 + $0xc44] sm:$0xf0]  ;;  %5499 = vmatpush.bf16.msrb.mxu0 %v6796_v5  ;;  %v8080_v33 = vor.u32 %v9129_v54, %v8077_v55  ;;  %v6992_v5 = vor.u32 %v8857_v14, %v6989_v25  ;;  %v8969_v8 = vld [vmem:[#allocation3 + $0x58c] sm:$0xf]  ;;  %v8528_v46 = vor.u32 %v9241_v47, %v8525_v42  ;;  %v9042_v25 = vld [vmem:[#allocation3 + $0x7cc] sm:$0xf0] }
 0x446   : > { %v8268_v16 = vor.u32 %v9185_v51, %v8267_v1  ;;  %v7437_v24 = vld [vmem:[#allocation3 + $0x5c8] sm:$0xf0]  ;;  %v9298_v47 = vld [vmem:[#allocation3 + $0xfcc] sm:$0xf0] }
 0x447   : > { %5537 = vmatpush.bf16.msrb.mxu3 %v8396_v56  ;;  %5512 = vmatpush.bf16.msrb.mxu1 %v7308_v18  ;;  %v8592_v56 = vor.u32 %v9257_v36, %v8589_v30  ;;  %v8841_v18 = vld [vmem:[#allocation3 + $0x18c] sm:$0xf]  ;;  %v7440_v59 = vor.u32 %v8969_v8, %v7437_v24  ;;  %v7635_v8 = vld [vmem:[#allocation3 + $0x710] sm:$0xf] }
 0x448   : > { %v7949_v41 = vld [vmem:[#allocation3 + $0x9c8] sm:$0xf0]  ;;  %v9026_v24 = vld [vmem:[#allocation3 + $0x74c] sm:$0xf0] }
 0x449   : > { %5525 = vmatpush.bf16.msrb.mxu2 %v7820_v19  ;;  %5500 = vmatpush.bf16.msrb.mxu0 %v6732_v49  ;;  %v6925_v19 = vld [vmem:[#allocation3 + $0x1c8] sm:$0xf0] }
 0x44a   : > { %v9225_v1 = vld [vmem:[#allocation3 + $0xd8c] sm:$0xf]  ;;  %v6928_v22 = vor.u32 %v8841_v18, %v6925_v19  ;;  %v7123_v18 = vld [vmem:[#allocation3 + $0x310] sm:$0xf] }
 0x44b   : > { %5538 = vmatpush.bf16.msrb.mxu3 %v8332_v45  ;;  %5513 = vmatpush.bf16.msrb.mxu1 %v7244_v50  ;;  %v9097_v45 = vld [vmem:[#allocation3 + $0x98c] sm:$0xf]  ;;  %v8898_v19 = vld [vmem:[#allocation3 + $0x34c] sm:$0xf0] }
 0x44c   : > { %5501 = vmatmul.bf16.vlgmr.msrb.gmra.mxu0 %v10777_v3  ;;  %v8461_v51 = vld [vmem:[#allocation3 + $0xdc8] sm:$0xf0]  ;;  %v7952_v23 = vor.u32 %v9097_v45, %v7949_v41  ;;  %v8147_v45 = vld [vmem:[#allocation3 + $0xb10] sm:$0xf] }
 0x44d   : > { %5526 = vmatpush.bf16.msrb.mxu2 %v7756_v62  ;;  %5545 = vmatpush.bf16.msra.mxu0 %v7184_v17  ;;  %v8825_v49 = vld [vmem:[#allocation3 + $0x10c] sm:$0xf]  ;;  %v8464_v37 = vor.u32 %v9225_v1, %v8461_v51  ;;  %v9154_v41 = vld [vmem:[#allocation3 + $0xb4c] sm:$0xf0] }
 0x44e   : > { %5514 = vmatmul.bf16.vlgmr.msrb.gmra.mxu1 %v10785_v21  ;;  %v6861_v40 = vld [vmem:[#allocation3 + $0x148] sm:$0xf0]  ;;  %v8659_v1 = vld [vmem:[#allocation3 + $0xf10] sm:$0xf] }
 0x44f   : > { %5539 = vmatpush.bf16.msrb.mxu3 %v8268_v16  ;;  %5558 = vmatpush.bf16.msra.mxu1 %v7696_v4  ;;  %v8953_v12 = vld [vmem:[#allocation3 + $0x50c] sm:$0xf]  ;;  %v6864_v17 = vor.u32 %v8825_v49, %v6861_v40  ;;  %v9282_v51 = vld [vmem:[#allocation3 + $0xf4c] sm:$0xf0] }
 0x450   : > { %5527 = vmatmul.bf16.vlgmr.msrb.gmra.mxu2 %v10773_v34  ;;  %v7373_v50 = vld [vmem:[#allocation3 + $0x548] sm:$0xf0]  ;;  %v7059_v49 = vld [vmem:[#allocation3 + $0x290] sm:$0xf] }
 0x451   : > { %5571 = vmatpush.bf16.msra.mxu2 %v8208_v13  ;;  %5546 = vmatpush.bf16.msra.mxu0 %v7120_v61  ;;  %v9081_v62 = vld [vmem:[#allocation3 + $0x90c] sm:$0xf]  ;;  %v7376_v4 = vor.u32 %v8953_v12, %v7373_v50  ;;  %v8882_v40 = vld [vmem:[#allocation3 + $0x2cc] sm:$0xf0] }
 0x452   : > { %5540 = vmatmul.bf16.vlgmr.msrb.gmra.mxu3 %v10781_v35  ;;  %v7885_v31 = vld [vmem:[#allocation3 + $0x948] sm:$0xf0]  ;;  %v7571_v12 = vld [vmem:[#allocation3 + $0x690] sm:$0xf] }
 0x453   : > { %5584 = vmatpush.bf16.msra.mxu3 %v8720_v7  ;;  %5559 = vmatpush.bf16.msra.mxu1 %v7632_v57  ;;  %v9209_v15 = vld [vmem:[#allocation3 + $0xd0c] sm:$0xf]  ;;  %v7888_v13 = vor.u32 %v9081_v62, %v7885_v31  ;;  %v9010_v50 = vld [vmem:[#allocation3 + $0x6cc] sm:$0xf0] }
 0x454   : > { %v8397_v16 = vld [vmem:[#allocation3 + $0xd48] sm:$0xf0]  ;;  %v8083_v62 = vld [vmem:[#allocation3 + $0xa90] sm:$0xf] }
 0x455   : > { %5572 = vmatpush.bf16.msra.mxu2 %v8144_v26  ;;  %5547 = vmatpush.bf16.msra.mxu0 %v7056_v10  ;;  %v8809_v11 = vld [vmem:[#allocation3 + $0x8c] sm:$0xf]  ;;  %v8400_v7 = vor.u32 %v9209_v15, %v8397_v16  ;;  %v7187_v10 = vld [vmem:[#allocation3 + $0x390] sm:$0xf] }
 0x456   : > { %v6797_v20 = vld [vmem:[#allocation3 + $0xc8] sm:$0xf0]  ;;  %v9138_v31 = vld [vmem:[#allocation3 + $0xacc] sm:$0xf0] }
 0x457   : > { %5585 = vmatpush.bf16.msra.mxu3 %v8656_v44  ;;  %5560 = vmatpush.bf16.msra.mxu1 %v7568_v9  ;;  %v8937_v29 = vld [vmem:[#allocation3 + $0x48c] sm:$0xf]  ;;  %v6800_v61 = vor.u32 %v8809_v11, %v6797_v20  ;;  %v8914_v9 = vld [vmem:[#allocation3 + $0x3cc] sm:$0xf0] }
 0x458   : > { %v7309_v6 = vld [vmem:[#allocation3 + $0x4c8] sm:$0xf0]  ;;  %v8595_v15 = vld [vmem:[#allocation3 + $0xe90] sm:$0xf] }
 0x459   : > { %5573 = vmatpush.bf16.msra.mxu2 %v8080_v33  ;;  %5548 = vmatpush.bf16.msra.mxu0 %v6992_v5  ;;  %v9065_v43 = vld [vmem:[#allocation3 + $0x88c] sm:$0xf]  ;;  %v7312_v52 = vor.u32 %v8937_v29, %v7309_v6  ;;  %v7699_v33 = vld [vmem:[#allocation3 + $0x790] sm:$0xf]  ;;  %v7188_v5 = vor.u32 %v8914_v9, %v7187_v10 }
 0x45a   : > { %v7821_v38 = vld [vmem:[#allocation3 + $0x8c8] sm:$0xf0]  ;;  %v9266_v16 = vld [vmem:[#allocation3 + $0xecc] sm:$0xf0] }
 0x45b   : > { %5586 = vmatpush.bf16.msra.mxu3 %v8592_v56  ;;  %5561 = vmatpush.bf16.msra.mxu1 %v7504_v53  ;;  %v9193_v39 = vld [vmem:[#allocation3 + $0xc8c] sm:$0xf]  ;;  %v7824_v2 = vor.u32 %v9065_v43, %v7821_v38  ;;  %v9170_v56 = vld [vmem:[#allocation3 + $0xbcc] sm:$0xf0]  ;;  %v7700_v53 = vor.u32 %v9042_v25, %v7699_v33 }
 0x45c   : > { %v8333_v63 = vld [vmem:[#allocation3 + $0xcc8] sm:$0xf0]  ;;  %v6995_v11 = vld [vmem:[#allocation3 + $0x210] sm:$0xf] }
 0x45d   : > { %5574 = vmatpush.bf16.msra.mxu2 %v8016_v0  ;;  %5549 = vmatpush.bf16.msra.mxu0 %v6928_v22  ;;  %v8793_v57 = vld [vmem:[#allocation3 + $0xc] sm:$0xf]  ;;  %v8336_v54 = vor.u32 %v9193_v39, %v8333_v63  ;;  %v8212_v0 = vor.u32 %v9170_v56, %v8211_v28  ;;  %v7124_v22 = vor.u32 %v8898_v19, %v7123_v18  ;;  %v8866_v20 = vld [vmem:[#allocation3 + $0x24c] sm:$0xf0] }
 0x45e   : > { %v6733_v26 = vld [vmem:[#allocation3 + $0x48] sm:$0xf0]  ;;  %v7507_v29 = vld [vmem:[#allocation3 + $0x610] sm:$0xf] }
 0x45f   : > { %5587 = vmatpush.bf16.msra.mxu3 %v8528_v46  ;;  %5562 = vmatpush.bf16.msra.mxu1 %v7440_v59  ;;  %v8921_v58 = vld [vmem:[#allocation3 + $0x40c] sm:$0xf]  ;;  %v6736_v14 = vor.u32 %v8793_v57, %v6733_v26  ;;  %v8724_v46 = vor.u32 %v9298_v47, %v8723_v60  ;;  %v7636_v59 = vor.u32 %v9026_v24, %v7635_v8  ;;  %v8994_v6 = vld [vmem:[#allocation3 + $0x64c] sm:$0xf0] }
 0x460   : > { %v7245_v44 = vld [vmem:[#allocation3 + $0x448] sm:$0xf0]  ;;  %v8019_v43 = vld [vmem:[#allocation3 + $0xa10] sm:$0xf]  ;;  %v7508_v57 = vor.u32 %v8994_v6, %v7507_v29  ;;  %v9162_v29 = vld [vmem:[#allocation3 + $0xb94] sm:$0xf] }
 0x461   : > { %5575 = vmatpush.bf16.msra.mxu2 %v7952_v23  ;;  %5550 = vmatpush.bf16.msra.mxu0 %v6864_v17  ;;  %v9049_v27 = vld [vmem:[#allocation3 + $0x80c] sm:$0xf]  ;;  %v7248_v32 = vor.u32 %v8921_v58, %v7245_v44  ;;  %v8148_v23 = vor.u32 %v9154_v41, %v8147_v45  ;;  %v7060_v17 = vor.u32 %v8882_v40, %v7059_v49  ;;  %v9122_v38 = vld [vmem:[#allocation3 + $0xa4c] sm:$0xf0] }
 0x462   : > { %v7757_v55 = vld [vmem:[#allocation3 + $0x848] sm:$0xf0]  ;;  %v8531_v39 = vld [vmem:[#allocation3 + $0xe10] sm:$0xf]  ;;  %v8020_v26 = vor.u32 %v9122_v38, %v8019_v43  ;;  %v9290_v38 = vld [vmem:[#allocation3 + $0xf94] sm:$0xf] }
 0x463   : > { %5588 = vmatpush.bf16.msra.mxu3 %v8464_v37  ;;  %5563 = vmatpush.bf16.msra.mxu1 %v7376_v4  ;;  %v9177_v36 = vld [vmem:[#allocation3 + $0xc0c] sm:$0xf]  ;;  %v7760_v48 = vor.u32 %v9049_v27, %v7757_v55  ;;  %v8660_v37 = vor.u32 %v9282_v51, %v8659_v1  ;;  %v7572_v4 = vor.u32 %v9010_v50, %v7571_v12  ;;  %v9250_v63 = vld [vmem:[#allocation3 + $0xe4c] sm:$0xf0] }
 0x464   : > { %v8269_v30 = vld [vmem:[#allocation3 + $0xc48] sm:$0xf0]  ;;  %v7443_v58 = vld [vmem:[#allocation3 + $0x590] sm:$0xf]  ;;  %v8532_v44 = vor.u32 %v9250_v63, %v8531_v39  ;;  %v8725_v39 = vld [vmem:[#allocation3 + $0xfd0] sm:$0xf0] }
 0x465   : > { %5576 = vmatpush.bf16.msra.mxu2 %v7888_v13  ;;  %5551 = vmatpush.bf16.msra.mxu0 %v6800_v61  ;;  %v8272_v42 = vor.u32 %v9177_v36, %v8269_v30  ;;  %v8084_v13 = vor.u32 %v9138_v31, %v8083_v62  ;;  %v6996_v61 = vor.u32 %v8866_v20, %v6995_v11  ;;  %v8978_v27 = vld [vmem:[#allocation3 + $0x5cc] sm:$0xf0]  ;;  %v7701_v20 = vld [vmem:[#allocation3 + $0x7d0] sm:$0xf0] }
 0x466   : > { %v9106_v55 = vld [vmem:[#allocation3 + $0x9cc] sm:$0xf0]  ;;  %v7444_v9 = vor.u32 %v8978_v27, %v7443_v58  ;;  %v9018_v58 = vld [vmem:[#allocation3 + $0x714] sm:$0xf] }
 0x467   : > { %5589 = vmatpush.bf16.msra.mxu3 %v8400_v7  ;;  %5564 = vmatpush.bf16.msra.mxu1 %v7312_v52  ;;  %v8596_v7 = vor.u32 %v9266_v16, %v8595_v15  ;;  %v6931_v52 = vld [vmem:[#allocation3 + $0x190] sm:$0xf]  ;;  %v7637_v27 = vld [vmem:[#allocation3 + $0x750] sm:$0xf0] }
 0x468   : > { %v8467_v36 = vld [vmem:[#allocation3 + $0xd90] sm:$0xf] }
 0x469   : > { %5577 = vmatpush.bf16.msra.mxu2 %v7824_v2  ;;  %5552 = vmatpush.bf16.msra.mxu0 %v6736_v14  ;;  %v8850_v2 = vld [vmem:[#allocation3 + $0x1cc] sm:$0xf0] }
 0x46a   : > { %v9234_v30 = vld [vmem:[#allocation3 + $0xdcc] sm:$0xf0]  ;;  %v6932_v10 = vor.u32 %v8850_v2, %v6931_v52  ;;  %v8890_v52 = vld [vmem:[#allocation3 + $0x314] sm:$0xf] }
 0x46b   : > { %5590 = vmatpush.bf16.msra.mxu3 %v8336_v54  ;;  %5565 = vmatpush.bf16.msra.mxu1 %v7248_v32  ;;  %v7955_v54 = vld [vmem:[#allocation3 + $0x990] sm:$0xf]  ;;  %v8468_v56 = vor.u32 %v9234_v30, %v8467_v36  ;;  %v7125_v2 = vld [vmem:[#allocation3 + $0x350] sm:$0xf0] }
 0x46c   : > { %5553 = vmatmul.bf16.vlgmr.msra.gmra.mxu0 %v10777_v3  ;;  %v7956_v33 = vor.u32 %v9106_v55, %v7955_v54  ;;  %v6867_v14 = vld [vmem:[#allocation3 + $0x110] sm:$0xf]  ;;  %v9146_v54 = vld [vmem:[#allocation3 + $0xb14] sm:$0xf] }
 0x46d   : > { %5578 = vmatpush.bf16.msra.mxu2 %v7760_v48  ;;  %5597 = vmatpush.bf16.msrb.mxu0 %v7188_v5  ;;  %v8834_v25 = vld [vmem:[#allocation3 + $0x14c] sm:$0xf0]  ;;  %v8149_v55 = vld [vmem:[#allocation3 + $0xb50] sm:$0xf0] }
 0x46e   : > { %5566 = vmatmul.bf16.vlgmr.msra.gmra.mxu1 %v10785_v21  ;;  %v7379_v28 = vld [vmem:[#allocation3 + $0x510] sm:$0xf]  ;;  %v6868_v5 = vor.u32 %v8834_v25, %v6867_v14  ;;  %v9274_v36 = vld [vmem:[#allocation3 + $0xf14] sm:$0xf]  ;;  %v8152_v14 = vor.u32 %v9146_v54, %v8149_v55 }
 0x46f   : > { %5591 = vmatpush.bf16.msra.mxu3 %v8272_v42  ;;  %5610 = vmatpush.bf16.msrb.mxu1 %v7700_v53  ;;  %v8962_v32 = vld [vmem:[#allocation3 + $0x54c] sm:$0xf0]  ;;  %v8661_v30 = vld [vmem:[#allocation3 + $0xf50] sm:$0xf0] }
 0x470   : > { %5579 = vmatmul.bf16.vlgmr.msra.gmra.mxu2 %v10773_v34  ;;  %v7891_v48 = vld [vmem:[#allocation3 + $0x910] sm:$0xf]  ;;  %v7380_v53 = vor.u32 %v8962_v32, %v7379_v28  ;;  %v7061_v25 = vld [vmem:[#allocation3 + $0x2d0] sm:$0xf0]  ;;  %v8664_v32 = vor.u32 %v9274_v36, %v8661_v30 }
 0x471   : > { %5623 = vmatpush.bf16.msrb.mxu2 %v8212_v0  ;;  %5598 = vmatpush.bf16.msrb.mxu0 %v7124_v22  ;;  %v9090_v60 = vld [vmem:[#allocation3 + $0x94c] sm:$0xf0]  ;;  %v9002_v28 = vld [vmem:[#allocation3 + $0x694] sm:$0xf] }
 0x472   : > { %5592 = vmatmul.bf16.vlgmr.msra.gmra.mxu3 %v10781_v35  ;;  %v8403_v47 = vld [vmem:[#allocation3 + $0xd10] sm:$0xf]  ;;  %v7892_v0 = vor.u32 %v9090_v60, %v7891_v48  ;;  %v9130_v48 = vld [vmem:[#allocation3 + $0xa94] sm:$0xf] }
 0x473   : > { %5636 = vmatpush.bf16.msrb.mxu3 %v8724_v46  ;;  %5611 = vmatpush.bf16.msrb.mxu1 %v7636_v59  ;;  %v9218_v42 = vld [vmem:[#allocation3 + $0xd4c] sm:$0xf0]  ;;  %v8085_v60 = vld [vmem:[#allocation3 + $0xad0] sm:$0xf0] }
 0x474   : > { %v6803_v18 = vld [vmem:[#allocation3 + $0x90] sm:$0xf]  ;;  %v8404_v46 = vor.u32 %v9218_v42, %v8403_v47  ;;  %v10804_v47 = vld [vmem:[#allocation11] sm:$0xff]  ;;  %v9258_v42 = vld [vmem:[#allocation3 + $0xe94] sm:$0xf] }
 0x475   : > { %5624 = vmatpush.bf16.msrb.mxu2 %v8148_v23  ;;  %5599 = vmatpush.bf16.msrb.mxu0 %v7060_v17  ;;  %v8818_v19 = vld [vmem:[#allocation3 + $0xcc] sm:$0xf0]  ;;  %v8906_v17 = vld [vmem:[#allocation3 + $0x394] sm:$0xf] }
 0x476   : > { %v7315_v8 = vld [vmem:[#allocation3 + $0x490] sm:$0xf]  ;;  %v6804_v22 = vor.u32 %v8818_v19, %v6803_v18  ;;  %v8088_v19 = vor.u32 %v9130_v48, %v8085_v60  ;;  %v8405_v54 = vld [vmem:[#allocation3 + $0xd50] sm:$0xf0] }
 0x477   : > { %5637 = vmatpush.bf16.msrb.mxu3 %v8660_v37  ;;  %5612 = vmatpush.bf16.msrb.mxu1 %v7572_v4  ;;  %v8946_v24 = vld [vmem:[#allocation3 + $0x4cc] sm:$0xf0]  ;;  %v7189_v4 = vld [vmem:[#allocation3 + $0x3d0] sm:$0xf0] }
 0x478   : > { %v7827_v45 = vld [vmem:[#allocation3 + $0x890] sm:$0xf]  ;;  %v7316_v49 = vor.u32 %v8946_v24, %v7315_v8  ;;  %v6997_v8 = vld [vmem:[#allocation3 + $0x250] sm:$0xf0]  ;;  %v5357_v24 = vperm.slane %v10804_v47, 0 }
 0x479   : > { %5625 = vmatpush.bf16.msrb.mxu2 %v8084_v13  ;;  %5600 = vmatpush.bf16.msrb.mxu0 %v6996_v61  ;;  %v9074_v41 = vld [vmem:[#allocation3 + $0x8cc] sm:$0xf0]  ;;  %v9034_v13 = vld [vmem:[#allocation3 + $0x794] sm:$0xf]  ;;  %v7192_v61 = vor.u32 %v8906_v17, %v7189_v4 }
 0x47a   : > { %v8339_v1 = vld [vmem:[#allocation3 + $0xc90] sm:$0xf]  ;;  %v7828_v40 = vor.u32 %v9074_v41, %v7827_v45  ;;  %v7509_v41 = vld [vmem:[#allocation3 + $0x650] sm:$0xf0] }
 0x47b   : > { %5638 = vmatpush.bf16.msrb.mxu3 %v8596_v7  ;;  %5613 = vmatpush.bf16.msrb.mxu1 %v7508_v57  ;;  %v9202_v51 = vld [vmem:[#allocation3 + $0xccc] sm:$0xf0]  ;;  %v8213_v7 = vld [vmem:[#allocation3 + $0xbd0] sm:$0xf0]  ;;  %v7704_v57 = vor.u32 %v9034_v13, %v7701_v20 }
 0x47c   : > { %v6739_v59 = vld [vmem:[#allocation3 + $0x10] sm:$0xf]  ;;  %v8340_v62 = vor.u32 %v9202_v51, %v8339_v1  ;;  %v9114_v1 = vld [vmem:[#allocation3 + $0xa14] sm:$0xf] }
 0x47d   : > { %5626 = vmatpush.bf16.msrb.mxu2 %v8020_v26  ;;  %5601 = vmatpush.bf16.msrb.mxu0 %v6932_v10  ;;  %v8802_v23 = vld [vmem:[#allocation3 + $0x4c] sm:$0xf0]  ;;  %v8216_v26 = vor.u32 %v9162_v29, %v8213_v7  ;;  %v7128_v10 = vor.u32 %v8890_v52, %v7125_v2  ;;  %v8021_v51 = vld [vmem:[#allocation3 + $0xa50] sm:$0xf0] }
 0x47e   : > { %v7251_v12 = vld [vmem:[#allocation3 + $0x410] sm:$0xf]  ;;  %v6740_v11 = vor.u32 %v8802_v23, %v6739_v59  ;;  %v8533_v59 = vld [vmem:[#allocation3 + $0xe50] sm:$0xf0] }
 0x47f   : > { %5639 = vmatpush.bf16.msrb.mxu3 %v8532_v44  ;;  %5614 = vmatpush.bf16.msrb.mxu1 %v7444_v9  ;;  %v8930_v37 = vld [vmem:[#allocation3 + $0x44c] sm:$0xf0]  ;;  %v8728_v44 = vor.u32 %v9290_v38, %v8725_v39  ;;  %v8874_v9 = vld [vmem:[#allocation3 + $0x294] sm:$0xf] }
 0x480   : > { %v7763_v50 = vld [vmem:[#allocation3 + $0x810] sm:$0xf]  ;;  %v7252_v6 = vor.u32 %v8930_v37, %v7251_v12  ;;  %v8024_v12 = vor.u32 %v9114_v1, %v8021_v51  ;;  %v8842_v37 = vld [vmem:[#allocation3 + $0x194] sm:$0xf] }
 0x481   : > { %5627 = vmatpush.bf16.msrb.mxu2 %v7956_v33  ;;  %5602 = vmatpush.bf16.msrb.mxu0 %v6868_v5  ;;  %v9058_v31 = vld [vmem:[#allocation3 + $0x84c] sm:$0xf0]  ;;  %v7640_v33 = vor.u32 %v9018_v58, %v7637_v27  ;;  %v8597_v5 = vld [vmem:[#allocation3 + $0xed0] sm:$0xf0] }
 0x482   : > { %v8275_v15 = vld [vmem:[#allocation3 + $0xc10] sm:$0xf]  ;;  %v7764_v43 = vor.u32 %v9058_v31, %v7763_v50  ;;  %v8600_v45 = vor.u32 %v9258_v42, %v8597_v5  ;;  %v6933_v50 = vld [vmem:[#allocation3 + $0x1d0] sm:$0xf0] }
 0x483   : > { %5640 = vmatpush.bf16.msrb.mxu3 %v8468_v56  ;;  %5615 = vmatpush.bf16.msrb.mxu1 %v7380_v53  ;;  %v9186_v16 = vld [vmem:[#allocation3 + $0xc4c] sm:$0xf0]  ;;  %v7573_v56 = vld [vmem:[#allocation3 + $0x6d0] sm:$0xf0]  ;;  %v7064_v53 = vor.u32 %v8874_v9, %v7061_v25  ;;  %v6936_v7 = vor.u32 %v8842_v37, %v6933_v50  ;;  %v9043_v50 = vld [vmem:[#allocation3 + $0x7d4] sm:$0xf0] }
 0x484   : > { %v8276_v63 = vor.u32 %v9186_v16, %v8275_v15  ;;  %v7576_v18 = vor.u32 %v9002_v28, %v7573_v56  ;;  %v7445_v17 = vld [vmem:[#allocation3 + $0x5d0] sm:$0xf0] }
 0x485   : > { %5628 = vmatpush.bf16.msrb.mxu2 %v7892_v0  ;;  %5603 = vmatpush.bf16.msrb.mxu0 %v6804_v22  ;;  %v8858_v0 = vld [vmem:[#allocation3 + $0x214] sm:$0xf] }
 0x486   : > { %v9242_v22 = vld [vmem:[#allocation3 + $0xe14] sm:$0xf]  ;;  %v7000_v23 = vor.u32 %v8858_v0, %v6997_v8 }
 0x487   : > { %5641 = vmatpush.bf16.msrb.mxu3 %v8404_v46  ;;  %5616 = vmatpush.bf16.msrb.mxu1 %v7316_v49  ;;  %v8986_v46 = vld [vmem:[#allocation3 + $0x614] sm:$0xf]  ;;  %v8536_v16 = vor.u32 %v9242_v22, %v8533_v59 }
 0x488   : > { %v9098_v4 = vld [vmem:[#allocation3 + $0x994] sm:$0xf] }
 0x489   : > { %5629 = vmatpush.bf16.msrb.mxu2 %v7828_v40  ;;  %5604 = vmatpush.bf16.msrb.mxu0 %v6740_v11  ;;  %v5398_v49 = vpop.f32.mrf.mxu0  ;;  %v7512_v40 = vor.u32 %v8986_v46, %v7509_v41  ;;  %v7957_v13 = vld [vmem:[#allocation3 + $0x9d0] sm:$0xf0] }
 0x48a   : > { %v5399_v31 = vadd.f32 %v5398_v49, %v5357_v24  ;;  %v9226_v11 = vld [vmem:[#allocation3 + $0xd94] sm:$0xf]  ;;  %v7195_v49 = vld [vmem:[#allocation3 + $0x398] sm:$0xf] }
 0x48b   : > { %5642 = vmatpush.bf16.msrb.mxu3 %v8340_v62  ;;  %5617 = vmatpush.bf16.msrb.mxu1 %v7252_v6  ;;  %v8970_v62 = vld [vmem:[#allocation3 + $0x594] sm:$0xf]  ;;  %v5411_v15 = vpop.f32.mrf.mxu1 }
 0x48c   : > { %5605 = vmatmul.bf16.vlgmr.msrb.gmra.mxu0 %v10777_v3  ;;  %v8469_v20 = vld [vmem:[#allocation3 + $0xdd0] sm:$0xf0]  ;;  %v5412_v29 = vadd.f32 %v5411_v15, %v5399_v31  ;;  %v7448_v6 = vor.u32 %v8970_v62, %v7445_v17  ;;  %v8219_v62 = vld [vmem:[#allocation3 + $0xb98] sm:$0xf] }
 0x48d   : > { %5630 = vmatpush.bf16.msrb.mxu2 %v7764_v43  ;;  %5649 = vmatpush.bf16.msra.mxu0 %v7192_v61  ;;  %v7960_v43 = vor.u32 %v9098_v4, %v7957_v13  ;;  %v8826_v38 = vld [vmem:[#allocation3 + $0x114] sm:$0xf]  ;;  %v9171_v31 = vld [vmem:[#allocation3 + $0xbd4] sm:$0xf0] }
 0x48e   : > { %5618 = vmatmul.bf16.vlgmr.msrb.gmra.mxu1 %v10785_v21  ;;  %v6869_v39 = vld [vmem:[#allocation3 + $0x150] sm:$0xf0]  ;;  %v8731_v17 = vld [vmem:[#allocation3 + $0xf98] sm:$0xf] }
 0x48f   : > { %5643 = vmatpush.bf16.msrb.mxu3 %v8276_v63  ;;  %5662 = vmatpush.bf16.msra.mxu1 %v7704_v57  ;;  %v8954_v63 = vld [vmem:[#allocation3 + $0x514] sm:$0xf]  ;;  %v8472_v57 = vor.u32 %v9226_v11, %v8469_v20  ;;  %v6872_v55 = vor.u32 %v8826_v38, %v6869_v39  ;;  %v9299_v4 = vld [vmem:[#allocation3 + $0xfd4] sm:$0xf0] }
 0x490   : > { %5631 = vmatmul.bf16.vlgmr.msrb.gmra.mxu2 %v10773_v34  ;;  %v9082_v52 = vld [vmem:[#allocation3 + $0x914] sm:$0xf]  ;;  %v8732_v38 = vor.u32 %v9299_v4, %v8731_v17  ;;  %v9027_v39 = vld [vmem:[#allocation3 + $0x754] sm:$0xf0] }
 0x491   : > { %5675 = vmatpush.bf16.msra.mxu2 %v8216_v26  ;;  %5650 = vmatpush.bf16.msra.mxu0 %v7128_v10  ;;  %v7381_v26 = vld [vmem:[#allocation3 + $0x550] sm:$0xf0]  ;;  %v5400_v30 = vpop.f32.mrf.mxu0 }
 0x492   : > { %5644 = vmatmul.bf16.vlgmr.msrb.gmra.mxu3 %v10781_v35  ;;  %v7893_v2 = vld [vmem:[#allocation3 + $0x950] sm:$0xf0]  ;;  %v7384_v10 = vor.u32 %v8954_v63, %v7381_v26  ;;  %v8155_v63 = vld [vmem:[#allocation3 + $0xb18] sm:$0xf] }
 0x493   : > { %5688 = vmatpush.bf16.msra.mxu3 %v8728_v44  ;;  %5663 = vmatpush.bf16.msra.mxu1 %v7640_v33  ;;  %v5424_v61 = vpop.f32.mrf.mxu2  ;;  %v9210_v27 = vld [vmem:[#allocation3 + $0xd14] sm:$0xf]  ;;  %v7896_v9 = vor.u32 %v9082_v52, %v7893_v2  ;;  %v5413_v28 = vpop.f32.mrf.mxu1  ;;  %v9283_v26 = vld [vmem:[#allocation3 + $0xf54] sm:$0xf0] }
 0x494   : > { %v5425_v58 = vadd.f32 %v5424_v61, %v5412_v29  ;;  %v8810_v33 = vld [vmem:[#allocation3 + $0x94] sm:$0xf]  ;;  %v8408_v56 = vor.u32 %v9210_v27, %v8405_v54  ;;  %v8220_v29 = vor.u32 %v9171_v31, %v8219_v62  ;;  %v9155_v61 = vld [vmem:[#allocation3 + $0xb54] sm:$0xf0] }
 0x495   : > { %5676 = vmatpush.bf16.msra.mxu2 %v8152_v14  ;;  %5651 = vmatpush.bf16.msra.mxu0 %v7064_v53  ;;  %v5437_v44 = vpop.f32.mrf.mxu3  ;;  %v6805_v14 = vld [vmem:[#allocation3 + $0xd0] sm:$0xf0]  ;;  %v8883_v27 = vld [vmem:[#allocation3 + $0x2d4] sm:$0xf0] }
 0x496   : > { %v10810_v36 = vadd.f32 %v5437_v44, %v5425_v58  ;;  %v8938_v25 = vld [vmem:[#allocation3 + $0x494] sm:$0xf]  ;;  %v6808_v53 = vor.u32 %v8810_v33, %v6805_v14  ;;  %v8156_v58 = vor.u32 %v9155_v61, %v8155_v63  ;;  %v7067_v44 = vld [vmem:[#allocation3 + $0x298] sm:$0xf] }
 0x497   : > { %5689 = vmatpush.bf16.msra.mxu3 %v8664_v32  ;;  %5664 = vmatpush.bf16.msra.mxu1 %v7576_v18  ;;  %v7317_v32 = vld [vmem:[#allocation3 + $0x4d0] sm:$0xf0]  ;;  %v7579_v54 = vld [vmem:[#allocation3 + $0x698] sm:$0xf] }
 0x498   : > { %v9066_v48 = vld [vmem:[#allocation3 + $0x894] sm:$0xf]  ;;  %v9011_v30 = vld [vmem:[#allocation3 + $0x6d4] sm:$0xf0] }
 0x499   : > { %5677 = vmatpush.bf16.msra.mxu2 %v8088_v19  ;;  %5652 = vmatpush.bf16.msra.mxu0 %v7000_v23  ;;  %v7829_v60 = vld [vmem:[#allocation3 + $0x8d0] sm:$0xf0]  ;;  %v7320_v19 = vor.u32 %v8938_v25, %v7317_v32  ;;  %v8603_v33 = vld [vmem:[#allocation3 + $0xe98] sm:$0xf]  ;;  %v7068_v25 = vor.u32 %v8883_v27, %v7067_v44 }
 0x49a   : > { %v9194_v42 = vld [vmem:[#allocation3 + $0xc94] sm:$0xf]  ;;  %v7832_v8 = vor.u32 %v9066_v48, %v7829_v60  ;;  %v9267_v14 = vld [vmem:[#allocation3 + $0xed4] sm:$0xf0] }
 0x49b   : > { %5690 = vmatpush.bf16.msra.mxu3 %v8600_v45  ;;  %5665 = vmatpush.bf16.msra.mxu1 %v7512_v40  ;;  %v8341_v5 = vld [vmem:[#allocation3 + $0xcd0] sm:$0xf0]  ;;  %v5426_v41 = vpop.f32.mrf.mxu2  ;;  %v8915_v40 = vld [vmem:[#allocation3 + $0x3d4] sm:$0xf0] }
 0x49c   : > { %v8794_v0 = vld [vmem:[#allocation3 + $0x14] sm:$0xf]  ;;  %v8344_v1 = vor.u32 %v9194_v42, %v8341_v5  ;;  %v7196_v11 = vor.u32 %v8915_v40, %v7195_v49  ;;  %v7003_v28 = vld [vmem:[#allocation3 + $0x218] sm:$0xf]  ;;  %v5358_v42 = vperm.slane %v10804_v47, 1  ;;  %v8604_v5 = vor.u32 %v9267_v14, %v8603_v33 }
 0x49d   : > { %5678 = vmatpush.bf16.msra.mxu2 %v8024_v12  ;;  %5653 = vmatpush.bf16.msra.mxu0 %v6936_v7  ;;  %v6741_v18 = vld [vmem:[#allocation3 + $0x50] sm:$0xf0]  ;;  %v5439_v23 = vpop.f32.mrf.mxu3  ;;  %v7707_v12 = vld [vmem:[#allocation3 + $0x798] sm:$0xf] }
 0x49e   : > { %v8922_v46 = vld [vmem:[#allocation3 + $0x414] sm:$0xf]  ;;  %v6744_v37 = vor.u32 %v8794_v0, %v6741_v18  ;;  %v7708_v20 = vor.u32 %v9043_v50, %v7707_v12  ;;  %v7131_v7 = vld [vmem:[#allocation3 + $0x318] sm:$0xf] }
 0x49f   : > { %5691 = vmatpush.bf16.msra.mxu3 %v8536_v16  ;;  %5666 = vmatpush.bf16.msra.mxu1 %v7448_v6  ;;  %v7253_v24 = vld [vmem:[#allocation3 + $0x450] sm:$0xf0]  ;;  %v8899_v6 = vld [vmem:[#allocation3 + $0x354] sm:$0xf0] }
 0x4a0   : > { %v9050_v45 = vld [vmem:[#allocation3 + $0x814] sm:$0xf]  ;;  %v7256_v15 = vor.u32 %v8922_v46, %v7253_v24  ;;  %v7132_v52 = vor.u32 %v8899_v6, %v7131_v7  ;;  %v8867_v48 = vld [vmem:[#allocation3 + $0x254] sm:$0xf0] }
 0x4a1   : > { %5679 = vmatpush.bf16.msra.mxu2 %v7960_v43  ;;  %5654 = vmatpush.bf16.msra.mxu0 %v6872_v55  ;;  %v7765_v51 = vld [vmem:[#allocation3 + $0x850] sm:$0xf0]  ;;  %v7643_v43 = vld [vmem:[#allocation3 + $0x718] sm:$0xf]  ;;  %v7004_v46 = vor.u32 %v8867_v48, %v7003_v28 }
 0x4a2   : > { %v9178_v22 = vld [vmem:[#allocation3 + $0xc14] sm:$0xf]  ;;  %v7768_v16 = vor.u32 %v9050_v45, %v7765_v51  ;;  %v7644_v2 = vor.u32 %v9027_v39, %v7643_v43  ;;  %v7515_v60 = vld [vmem:[#allocation3 + $0x618] sm:$0xf] }
 0x4a3   : > { %5692 = vmatpush.bf16.msra.mxu3 %v8472_v57  ;;  %5667 = vmatpush.bf16.msra.mxu1 %v7384_v10  ;;  %v8277_v59 = vld [vmem:[#allocation3 + $0xc50] sm:$0xf0]  ;;  %v8667_v57 = vld [vmem:[#allocation3 + $0xf18] sm:$0xf] }
 0x4a4   : > { %v8280_v13 = vor.u32 %v9178_v22, %v8277_v59  ;;  %v8668_v55 = vor.u32 %v9283_v26, %v8667_v57  ;;  %v8091_v10 = vld [vmem:[#allocation3 + $0xa98] sm:$0xf] }
 0x4a5   : > { %5680 = vmatpush.bf16.msra.mxu2 %v7896_v9  ;;  %5655 = vmatpush.bf16.msra.mxu0 %v6808_v53  ;;  %v9139_v9 = vld [vmem:[#allocation3 + $0xad4] sm:$0xf0] }
 0x4a6   : > { %v8092_v32 = vor.u32 %v9139_v9, %v8091_v10  ;;  %v8995_v53 = vld [vmem:[#allocation3 + $0x654] sm:$0xf0] }
 0x4a7   : > { %5693 = vmatpush.bf16.msra.mxu3 %v8408_v56  ;;  %5668 = vmatpush.bf16.msra.mxu1 %v7320_v19  ;;  %v7580_v56 = vor.u32 %v9011_v30, %v7579_v54  ;;  %v8027_v0 = vld [vmem:[#allocation3 + $0xa18] sm:$0xf]  ;;  %v7516_v45 = vor.u32 %v8995_v53, %v7515_v60 }
 0x4a8   : > { %v9123_v18 = vld [vmem:[#allocation3 + $0xa54] sm:$0xf0] }
 0x4a9   : > { %5681 = vmatpush.bf16.msra.mxu2 %v7832_v8  ;;  %5656 = vmatpush.bf16.msra.mxu0 %v6744_v37  ;;  %v8539_v19 = vld [vmem:[#allocation3 + $0xe18] sm:$0xf]  ;;  %v5450_v24 = vpop.f32.mrf.mxu0  ;;  %v8028_v41 = vor.u32 %v9123_v18, %v8027_v0 }
 0x4aa   : > { %v9251_v8 = vld [vmem:[#allocation3 + $0xe54] sm:$0xf0] }
 0x4ab   : > { %5694 = vmatpush.bf16.msra.mxu3 %v8344_v1  ;;  %5669 = vmatpush.bf16.msra.mxu1 %v7256_v15  ;;  %v5451_v1 = vadd.f32 %v5450_v24, %v5358_v42  ;;  %v5463_v51 = vpop.f32.mrf.mxu1  ;;  %v6939_v22 = vld [vmem:[#allocation3 + $0x198] sm:$0xf]  ;;  %v8540_v49 = vor.u32 %v9251_v8, %v8539_v19 }
 0x4ac   : > { %5657 = vmatmul.bf16.vlgmr.msra.gmra.mxu0 %v10777_v3  ;;  %v8851_v59 = vld [vmem:[#allocation3 + $0x1d4] sm:$0xf0] }
 0x4ad   : > { %5682 = vmatpush.bf16.msra.mxu2 %v7768_v16  ;;  %5701 = vmatpush.bf16.msrb.mxu0 %v7196_v11  ;;  %v7451_v23 = vld [vmem:[#allocation3 + $0x598] sm:$0xf]  ;;  %v5464_v50 = vadd.f32 %v5463_v51, %v5451_v1  ;;  %v6940_v15 = vor.u32 %v8851_v59, %v6939_v22  ;;  %v7197_v1 = vld [vmem:[#allocation3 + $0x3d8] sm:$0xf0] }
 0x4ae   : > { %5670 = vmatmul.bf16.vlgmr.msra.gmra.mxu1 %v10785_v21  ;;  %v8979_v40 = vld [vmem:[#allocation3 + $0x5d4] sm:$0xf0]  ;;  %v9035_v51 = vld [vmem:[#allocation3 + $0x79c] sm:$0xf] }
 0x4af   : > { %5695 = vmatpush.bf16.msra.mxu3 %v8280_v13  ;;  %5714 = vmatpush.bf16.msrb.mxu1 %v7708_v20  ;;  %v7963_v12 = vld [vmem:[#allocation3 + $0x998] sm:$0xf]  ;;  %v7452_v16 = vor.u32 %v8979_v40, %v7451_v23  ;;  %v7709_v59 = vld [vmem:[#allocation3 + $0x7d8] sm:$0xf0] }
 0x4b0   : > { %5683 = vmatmul.bf16.vlgmr.msra.gmra.mxu2 %v10773_v34  ;;  %v9107_v37 = vld [vmem:[#allocation3 + $0x9d4] sm:$0xf0]  ;;  %v9163_v23 = vld [vmem:[#allocation3 + $0xb9c] sm:$0xf] }
 0x4b1   : > { %5727 = vmatpush.bf16.msrb.mxu2 %v8220_v29  ;;  %5702 = vmatpush.bf16.msrb.mxu0 %v7132_v52  ;;  %v8475_v62 = vld [vmem:[#allocation3 + $0xd98] sm:$0xf]  ;;  %v7964_v17 = vor.u32 %v9107_v37, %v7963_v12  ;;  %v9291_v37 = vld [vmem:[#allocation3 + $0xf9c] sm:$0xf] }
 0x4b2   : > { %5696 = vmatmul.bf16.vlgmr.msra.gmra.mxu3 %v10781_v35  ;;  %v9235_v31 = vld [vmem:[#allocation3 + $0xdd4] sm:$0xf0] }
 0x4b3   : > { %5740 = vmatpush.bf16.msrb.mxu3 %v8732_v38  ;;  %5715 = vmatpush.bf16.msrb.mxu1 %v7644_v2  ;;  %v5476_v4 = vpop.f32.mrf.mxu2  ;;  %v6875_v13 = vld [vmem:[#allocation3 + $0x118] sm:$0xf]  ;;  %v8476_v29 = vor.u32 %v9235_v31, %v8475_v62  ;;  %v5452_v2 = vpop.f32.mrf.mxu0 }
 0x4b4   : > { %v8835_v11 = vld [vmem:[#allocation3 + $0x154] sm:$0xf0]  ;;  %v5477_v7 = vadd.f32 %v5476_v4, %v5464_v50  ;;  %v5465_v30 = vpop.f32.mrf.mxu1  ;;  %v8733_v50 = vld [vmem:[#allocation3 + $0xfd8] sm:$0xf0] }
 0x4b5   : > { %5728 = vmatpush.bf16.msrb.mxu2 %v8156_v58  ;;  %5703 = vmatpush.bf16.msrb.mxu0 %v7068_v25  ;;  %v7387_v20 = vld [vmem:[#allocation3 + $0x518] sm:$0xf]  ;;  %v5489_v6 = vpop.f32.mrf.mxu3  ;;  %v6876_v26 = vor.u32 %v8835_v11, %v6875_v13  ;;  %v7133_v4 = vld [vmem:[#allocation3 + $0x358] sm:$0xf0]  ;;  %v8736_v11 = vor.u32 %v9291_v37, %v8733_v50 }
 0x4b6   : > { %v8963_v43 = vld [vmem:[#allocation3 + $0x554] sm:$0xf0]  ;;  %v5490_v57 = vadd.f32 %v5489_v6, %v5477_v7  ;;  %v9019_v13 = vld [vmem:[#allocation3 + $0x71c] sm:$0xf] }
 0x4b7   : > { %5741 = vmatpush.bf16.msrb.mxu3 %v8668_v55  ;;  %5716 = vmatpush.bf16.msrb.mxu1 %v7580_v56  ;;  %v7899_v38 = vld [vmem:[#allocation3 + $0x918] sm:$0xf]  ;;  %v7388_v58 = vor.u32 %v8963_v43, %v7387_v20  ;;  %v7645_v20 = vld [vmem:[#allocation3 + $0x758] sm:$0xf0] }
 0x4b8   : > { %v9091_v39 = vld [vmem:[#allocation3 + $0x954] sm:$0xf0]  ;;  %v6237_v10 = vrot.slane %v5490_v57, 7  ;;  %v8157_v7 = vld [vmem:[#allocation3 + $0xb58] sm:$0xf0] }
 0x4b9   : > { %5729 = vmatpush.bf16.msrb.mxu2 %v8092_v32  ;;  %5704 = vmatpush.bf16.msrb.mxu0 %v7004_v46  ;;  %v8411_v63 = vld [vmem:[#allocation3 + $0xd18] sm:$0xf]  ;;  %v7900_v44 = vor.u32 %v9091_v39, %v7899_v38  ;;  %v9275_v6 = vld [vmem:[#allocation3 + $0xf1c] sm:$0xf]  ;;  %v7648_v39 = vor.u32 %v9019_v13, %v7645_v20 }
 0x4ba   : > { %v9219_v61 = vld [vmem:[#allocation3 + $0xd54] sm:$0xf0]  ;;  %v10819_v56 = vsel %vm6251_vm2, %v10810_v36, %v6237_v10  ;;  %v8907_v36 = vld [vmem:[#allocation3 + $0x39c] sm:$0xf] }
 0x4bb   : > { %5742 = vmatpush.bf16.msrb.mxu3 %v8604_v5  ;;  %5717 = vmatpush.bf16.msrb.mxu1 %v7516_v45  ;;  %v6811_v52 = vld [vmem:[#allocation3 + $0x98] sm:$0xf]  ;;  %v8412_v9 = vor.u32 %v9219_v61, %v8411_v63  ;;  %v5478_v19 = vpop.f32.mrf.mxu2  ;;  %v7200_v31 = vor.u32 %v8907_v36, %v7197_v1  ;;  %v8669_v43 = vld [vmem:[#allocation3 + $0xf58] sm:$0xf0] }
 0x4bc   : > { %v8819_v27 = vld [vmem:[#allocation3 + $0xd4] sm:$0xf0]  ;;  %v8875_v61 = vld [vmem:[#allocation3 + $0x29c] sm:$0xf] }
 0x4bd   : > { %5730 = vmatpush.bf16.msrb.mxu2 %v8028_v41  ;;  %5705 = vmatpush.bf16.msrb.mxu0 %v6940_v15  ;;  %v7323_v54 = vld [vmem:[#allocation3 + $0x498] sm:$0xf]  ;;  %v6812_v32 = vor.u32 %v8819_v27, %v6811_v52  ;;  %v5491_v41 = vpop.f32.mrf.mxu3  ;;  %v7712_v15 = vor.u32 %v9035_v51, %v7709_v59  ;;  %v7069_v57 = vld [vmem:[#allocation3 + $0x2d8] sm:$0xf0]  ;;  %v8672_v52 = vor.u32 %v9275_v6, %v8669_v43 }
 0x4be   : > { %v8947_v55 = vld [vmem:[#allocation3 + $0x4d4] sm:$0xf0]  ;;  %v7581_v2 = vld [vmem:[#allocation3 + $0x6d8] sm:$0xf0] }
 0x4bf   : > { %5743 = vmatpush.bf16.msrb.mxu3 %v8540_v49  ;;  %5718 = vmatpush.bf16.msrb.mxu1 %v7452_v16  ;;  %v7835_v33 = vld [vmem:[#allocation3 + $0x898] sm:$0xf]  ;;  %v7324_v42 = vor.u32 %v8947_v55, %v7323_v54  ;;  %v8221_v49 = vld [vmem:[#allocation3 + $0xbd8] sm:$0xf0]  ;;  %v7072_v55 = vor.u32 %v8875_v61, %v7069_v57 }
 0x4c0   : > { %v9075_v14 = vld [vmem:[#allocation3 + $0x8d4] sm:$0xf0]  ;;  %v8224_v16 = vor.u32 %v9163_v23, %v8221_v49  ;;  %v9259_v27 = vld [vmem:[#allocation3 + $0xe9c] sm:$0xf] }
 0x4c1   : > { %5731 = vmatpush.bf16.msrb.mxu2 %v7964_v17  ;;  %v8347_v25 = vld [vmem:[#allocation3 + $0xc98] sm:$0xf]  ;;  %5706 = vmatpush.bf16.msrb.mxu0 %v6876_v26  ;;  %v7836_v5 = vor.u32 %v9075_v14, %v7835_v33  ;;  %v8891_v17 = vld [vmem:[#allocation3 + $0x31c] sm:$0xf] }
 0x4c2   : > { %v9203_v28 = vld [vmem:[#allocation3 + $0xcd4] sm:$0xf0]  ;;  %v7136_v38 = vor.u32 %v8891_v17, %v7133_v4  ;;  %v9003_v26 = vld [vmem:[#allocation3 + $0x69c] sm:$0xf] }
 0x4c3   : > { %5744 = vmatpush.bf16.msrb.mxu3 %v8476_v29  ;;  %v6747_v48 = vld [vmem:[#allocation3 + $0x18] sm:$0xf]  ;;  %5719 = vmatpush.bf16.msrb.mxu1 %v7388_v58  ;;  %v8348_v8 = vor.u32 %v9203_v28, %v8347_v25  ;;  %v9147_v29 = vld [vmem:[#allocation3 + $0xb1c] sm:$0xf]  ;;  %v7584_v10 = vor.u32 %v9003_v26, %v7581_v2  ;;  %v5359_v25 = vperm.slane %v10804_v47, 2 }
 0x4c4   : > { %v8803_v60 = vld [vmem:[#allocation3 + $0x54] sm:$0xf0]  ;;  %v8160_v63 = vor.u32 %v9147_v29, %v8157_v7  ;;  %v9131_v58 = vld [vmem:[#allocation3 + $0xa9c] sm:$0xf] }
 0x4c5   : > { %5732 = vmatpush.bf16.msrb.mxu2 %v7900_v44  ;;  %v7259_v53 = vld [vmem:[#allocation3 + $0x418] sm:$0xf]  ;;  %5707 = vmatpush.bf16.msrb.mxu0 %v6812_v32  ;;  %v6748_v22 = vor.u32 %v8803_v60, %v6747_v48  ;;  %v8093_v44 = vld [vmem:[#allocation3 + $0xad8] sm:$0xf0] }
 0x4c6   : > { %v8931_v0 = vld [vmem:[#allocation3 + $0x454] sm:$0xf0]  ;;  %v8605_v54 = vld [vmem:[#allocation3 + $0xed8] sm:$0xf0] }
 0x4c7   : > { %v7771_v18 = vld [vmem:[#allocation3 + $0x818] sm:$0xf]  ;;  %5745 = vmatpush.bf16.msrb.mxu3 %v8412_v9  ;;  %5720 = vmatpush.bf16.msrb.mxu1 %v7324_v42  ;;  %v7260_v40 = vor.u32 %v8931_v0, %v7259_v53  ;;  %v8859_v30 = vld [vmem:[#allocation3 + $0x21c] sm:$0xf]  ;;  %v8096_v9 = vor.u32 %v9131_v58, %v8093_v44  ;;  %v8608_v28 = vor.u32 %v9259_v27, %v8605_v54 }
 0x4c8   : > { %v9059_v46 = vld [vmem:[#allocation3 + $0x854] sm:$0xf0]  ;;  %v7005_v33 = vld [vmem:[#allocation3 + $0x258] sm:$0xf0] }
 0x4c9   : > { %v8283_v24 = vld [vmem:[#allocation3 + $0xc18] sm:$0xf]  ;;  %5733 = vmatpush.bf16.msrb.mxu2 %v7836_v5  ;;  %v7772_v12 = vor.u32 %v9059_v46, %v7771_v18  ;;  %5708 = vmatpush.bf16.msrb.mxu0 %v6748_v22  ;;  %v8987_v14 = vld [vmem:[#allocation3 + $0x61c] sm:$0xf]  ;;  %v7008_v53 = vor.u32 %v8859_v30, %v7005_v33  ;;  %v5502_v0 = vpop.f32.mrf.mxu0 }
 0x4ca   : > { %v9187_v45 = vld [vmem:[#allocation3 + $0xc54] sm:$0xf0]  ;;  %v7517_v32 = vld [vmem:[#allocation3 + $0x658] sm:$0xf0] }
 0x4cb   : > { %5746 = vmatpush.bf16.msrb.mxu3 %v8348_v8  ;;  %v8284_v62 = vor.u32 %v9187_v45, %v8283_v24  ;;  %5721 = vmatpush.bf16.msrb.mxu1 %v7260_v40  ;;  %v9115_v48 = vld [vmem:[#allocation3 + $0xa1c] sm:$0xf]  ;;  %v7520_v18 = vor.u32 %v8987_v14, %v7517_v32  ;;  %v5503_v45 = vadd.f32 %v5502_v0, %v5359_v25  ;;  %v5515_v41 = vpop.f32.mrf.mxu1 }
 0x4cc   : > { %5709 = vmatmul.bf16.vlgmr.msrb.gmra.mxu0 %v10777_v3  ;;  %v8029_v60 = vld [vmem:[#allocation3 + $0xa58] sm:$0xf0] }
 0x4cd   : > { %5734 = vmatpush.bf16.msrb.mxu2 %v7772_v12  ;;  %5753 = vmatpush.bf16.msra.mxu0 %v7200_v31  ;;  %v9243_v42 = vld [vmem:[#allocation3 + $0xe1c] sm:$0xf]  ;;  %v8032_v19 = vor.u32 %v9115_v48, %v8029_v60  ;;  %v5516_v49 = vadd.f32 %v5515_v41, %v5503_v45  ;;  %v8227_v45 = vld [vmem:[#allocation3 + $0xba0] sm:$0xf] }
 0x4ce   : > { %5722 = vmatmul.bf16.vlgmr.msrb.gmra.mxu1 %v10785_v21  ;;  %v8541_v5 = vld [vmem:[#allocation3 + $0xe58] sm:$0xf0]  ;;  %v9172_v41 = vld [vmem:[#allocation3 + $0xbdc] sm:$0xf0] }
 0x4cf   : > { %5747 = vmatpush.bf16.msrb.mxu3 %v8284_v62  ;;  %5766 = vmatpush.bf16.msra.mxu1 %v7712_v15  ;;  %v8843_v8 = vld [vmem:[#allocation3 + $0x19c] sm:$0xf]  ;;  %v8544_v36 = vor.u32 %v9243_v42, %v8541_v5 }
 0x4d0   : > { %5735 = vmatmul.bf16.vlgmr.msrb.gmra.mxu2 %v10773_v34  ;;  %v6941_v46 = vld [vmem:[#allocation3 + $0x1d8] sm:$0xf0] }
 0x4d1   : > { %5779 = vmatpush.bf16.msra.mxu2 %v8224_v16  ;;  %5754 = vmatpush.bf16.msra.mxu0 %v7136_v38  ;;  %v8971_v24 = vld [vmem:[#allocation3 + $0x59c] sm:$0xf]  ;;  %v6944_v40 = vor.u32 %v8843_v8, %v6941_v46  ;;  %v5504_v38 = vpop.f32.mrf.mxu0  ;;  %v7715_v8 = vld [vmem:[#allocation3 + $0x7a0] sm:$0xf] }
 0x4d2   : > { %5748 = vmatmul.bf16.vlgmr.msrb.gmra.mxu3 %v10781_v35  ;;  %v7453_v1 = vld [vmem:[#allocation3 + $0x5d8] sm:$0xf0] }
 0x4d3   : > { %5792 = vmatpush.bf16.msra.mxu3 %v8736_v11  ;;  %5767 = vmatpush.bf16.msra.mxu1 %v7648_v39  ;;  %v9099_v51 = vld [vmem:[#allocation3 + $0x99c] sm:$0xf]  ;;  %v7456_v12 = vor.u32 %v8971_v24, %v7453_v1  ;;  %v5528_v15 = vpop.f32.mrf.mxu2  ;;  %v9044_v24 = vld [vmem:[#allocation3 + $0x7dc] sm:$0xf0] }
 0x4d4   : > { %v7965_v22 = vld [vmem:[#allocation3 + $0x9d8] sm:$0xf0]  ;;  %v5529_v11 = vadd.f32 %v5528_v15, %v5516_v49  ;;  %v7716_v49 = vor.u32 %v9044_v24, %v7715_v8  ;;  %v8163_v15 = vld [vmem:[#allocation3 + $0xb20] sm:$0xf] }
 0x4d5   : > { %5780 = vmatpush.bf16.msra.mxu2 %v8160_v63  ;;  %5755 = vmatpush.bf16.msra.mxu0 %v7072_v55  ;;  %v9227_v59 = vld [vmem:[#allocation3 + $0xd9c] sm:$0xf]  ;;  %v7968_v37 = vor.u32 %v9099_v51, %v7965_v22  ;;  %v5541_v20 = vpop.f32.mrf.mxu3  ;;  %v8739_v51 = vld [vmem:[#allocation3 + $0xfa0] sm:$0xf] }
 0x4d6   : > { %v8477_v23 = vld [vmem:[#allocation3 + $0xdd8] sm:$0xf0]  ;;  %v10826_v43 = vadd.f32 %v5541_v20, %v5529_v11  ;;  %v9300_v22 = vld [vmem:[#allocation3 + $0xfdc] sm:$0xf0] }
 0x4d7   : > { %5793 = vmatpush.bf16.msra.mxu3 %v8672_v52  ;;  %5768 = vmatpush.bf16.msra.mxu1 %v7584_v10  ;;  %v8827_v50 = vld [vmem:[#allocation3 + $0x11c] sm:$0xf]  ;;  %v8480_v16 = vor.u32 %v9227_v59, %v8477_v23  ;;  %v5517_v52 = vpop.f32.mrf.mxu1  ;;  %v7971_v8 = vld [vmem:[#allocation3 + $0x9a0] sm:$0xf] }
 0x4d8   : > { %v6877_v62 = vld [vmem:[#allocation3 + $0x158] sm:$0xf0] }
 0x4d9   : > { %5781 = vmatpush.bf16.msra.mxu2 %v8096_v9  ;;  %5756 = vmatpush.bf16.msra.mxu0 %v7008_v53  ;;  %v8955_v31 = vld [vmem:[#allocation3 + $0x51c] sm:$0xf]  ;;  %v6880_v6 = vor.u32 %v8827_v50, %v6877_v62  ;;  %v7651_v50 = vld [vmem:[#allocation3 + $0x720] sm:$0xf]  ;;  %v8740_v62 = vor.u32 %v9300_v22, %v8739_v51 }
 0x4da   : > { %v7389_v17 = vld [vmem:[#allocation3 + $0x558] sm:$0xf0] }
 0x4db   : > { %5794 = vmatpush.bf16.msra.mxu3 %v8608_v28  ;;  %5769 = vmatpush.bf16.msra.mxu1 %v7520_v18  ;;  %v9083_v4 = vld [vmem:[#allocation3 + $0x91c] sm:$0xf]  ;;  %v7392_v39 = vor.u32 %v8955_v31, %v7389_v17  ;;  %v5530_v48 = vpop.f32.mrf.mxu2  ;;  %v7203_v18 = vld [vmem:[#allocation3 + $0x3a0] sm:$0xf] }
 0x4dc   : > { %v7901_v13 = vld [vmem:[#allocation3 + $0x958] sm:$0xf0]  ;;  %v9028_v31 = vld [vmem:[#allocation3 + $0x75c] sm:$0xf0] }
 0x4dd   : > { %5782 = vmatpush.bf16.msra.mxu2 %v8032_v19  ;;  %v9211_v29 = vld [vmem:[#allocation3 + $0xd1c] sm:$0xf]  ;;  %5757 = vmatpush.bf16.msra.mxu0 %v6944_v40  ;;  %v7904_v63 = vor.u32 %v9083_v4, %v7901_v13  ;;  %v5543_v0 = vpop.f32.mrf.mxu3  ;;  %v8916_v19 = vld [vmem:[#allocation3 + $0x3dc] sm:$0xf0]  ;;  %v8228_v40 = vor.u32 %v9172_v41, %v8227_v45  ;;  %v7652_v11 = vor.u32 %v9028_v31, %v7651_v50 }
 0x4de   : > { %v8413_v7 = vld [vmem:[#allocation3 + $0xd58] sm:$0xf0]  ;;  %v7204_v23 = vor.u32 %v8916_v19, %v7203_v18  ;;  %v8675_v17 = vld [vmem:[#allocation3 + $0xf20] sm:$0xf] }
 0x4df   : > { %5795 = vmatpush.bf16.msra.mxu3 %v8544_v36  ;;  %5770 = vmatpush.bf16.msra.mxu1 %v7456_v12  ;;  %v8811_v61 = vld [vmem:[#allocation3 + $0x9c] sm:$0xf]  ;;  %v8416_v2 = vor.u32 %v9211_v29, %v8413_v7  ;;  %v7139_v12 = vld [vmem:[#allocation3 + $0x320] sm:$0xf] }
 0x4e0   : > { %v6813_v57 = vld [vmem:[#allocation3 + $0xd8] sm:$0xf0]  ;;  %v9284_v4 = vld [vmem:[#allocation3 + $0xf5c] sm:$0xf0] }
 0x4e1   : > { %5783 = vmatpush.bf16.msra.mxu2 %v7968_v37  ;;  %v8939_v26 = vld [vmem:[#allocation3 + $0x49c] sm:$0xf]  ;;  %5758 = vmatpush.bf16.msra.mxu0 %v6880_v6  ;;  %v6816_v30 = vor.u32 %v8811_v61, %v6813_v57  ;;  %v8900_v37 = vld [vmem:[#allocation3 + $0x35c] sm:$0xf0]  ;;  %v8676_v38 = vor.u32 %v9284_v4, %v8675_v17  ;;  %v6238_v17 = vrot.slane %v10826_v43, 6 }
 0x4e2   : > { %v7325_v58 = vld [vmem:[#allocation3 + $0x4d8] sm:$0xf0]  ;;  %v7140_v13 = vor.u32 %v8900_v37, %v7139_v12  ;;  %v7075_v29 = vld [vmem:[#allocation3 + $0x2a0] sm:$0xf] }
 0x4e3   : > { %5796 = vmatpush.bf16.msra.mxu3 %v8480_v16  ;;  %v9067_v44 = vld [vmem:[#allocation3 + $0x89c] sm:$0xf]  ;;  %5771 = vmatpush.bf16.msra.mxu1 %v7392_v39  ;;  %v7328_v33 = vor.u32 %v8939_v26, %v7325_v58  ;;  %v9156_v16 = vld [vmem:[#allocation3 + $0xb5c] sm:$0xf0] }
 0x4e4   : > { %v7837_v27 = vld [vmem:[#allocation3 + $0x8d8] sm:$0xf0]  ;;  %v8164_v20 = vor.u32 %v9156_v16, %v8163_v15  ;;  %v8884_v7 = vld [vmem:[#allocation3 + $0x2dc] sm:$0xf0] }
 0x4e5   : > { %v9195_v54 = vld [vmem:[#allocation3 + $0xc9c] sm:$0xf]  ;;  %5784 = vmatpush.bf16.msra.mxu2 %v7904_v63  ;;  %v7840_v14 = vor.u32 %v9067_v44, %v7837_v27  ;;  %5759 = vmatpush.bf16.msra.mxu0 %v6816_v30  ;;  %v7587_v6 = vld [vmem:[#allocation3 + $0x6a0] sm:$0xf]  ;;  %v7076_v52 = vor.u32 %v8884_v7, %v7075_v29 }
 0x4e6   : > { %v8349_v55 = vld [vmem:[#allocation3 + $0xcd8] sm:$0xf0]  ;;  %v9012_v39 = vld [vmem:[#allocation3 + $0x6dc] sm:$0xf0] }
 0x4e7   : > { %v8795_v10 = vld [vmem:[#allocation3 + $0x1c] sm:$0xf]  ;;  %5797 = vmatpush.bf16.msra.mxu3 %v8416_v2  ;;  %v8352_v60 = vor.u32 %v9195_v54, %v8349_v55  ;;  %5772 = vmatpush.bf16.msra.mxu1 %v7328_v33  ;;  %v8099_v63 = vld [vmem:[#allocation3 + $0xaa0] sm:$0xf]  ;;  %v7588_v58 = vor.u32 %v9012_v39, %v7587_v6  ;;  %v5360_v55 = vperm.slane %v10804_v47, 3 }
 0x4e8   : > { %v6749_v9 = vld [vmem:[#allocation3 + $0x58] sm:$0xf0]  ;;  %v9140_v61 = vld [vmem:[#allocation3 + $0xadc] sm:$0xf0] }
 0x4e9   : > { %v8923_v25 = vld [vmem:[#allocation3 + $0x41c] sm:$0xf]  ;;  %v6752_v46 = vor.u32 %v8795_v10, %v6749_v9  ;;  %5785 = vmatpush.bf16.msra.mxu2 %v7840_v14  ;;  %v8611_v57 = vld [vmem:[#allocation3 + $0xea0] sm:$0xf]  ;;  %v8100_v44 = vor.u32 %v9140_v61, %v8099_v63 }
 0x4ea   : > { %v7261_v28 = vld [vmem:[#allocation3 + $0x458] sm:$0xf0]  ;;  %v9268_v26 = vld [vmem:[#allocation3 + $0xedc] sm:$0xf0] }
 0x4eb   : > { %v9051_v32 = vld [vmem:[#allocation3 + $0x81c] sm:$0xf]  ;;  %v7264_v36 = vor.u32 %v8923_v25, %v7261_v28  ;;  %5798 = vmatpush.bf16.msra.mxu3 %v8352_v60  ;;  %5760 = vmatpush.bf16.msra.mxu0 %v6752_v46  ;;  %v7011_v2 = vld [vmem:[#allocation3 + $0x220] sm:$0xf]  ;;  %v8612_v30 = vor.u32 %v9268_v26, %v8611_v57 }
 0x4ec   : > { %v7773_v42 = vld [vmem:[#allocation3 + $0x858] sm:$0xf0]  ;;  %v8868_v27 = vld [vmem:[#allocation3 + $0x25c] sm:$0xf0] }
 0x4ed   : > { %v9179_v5 = vld [vmem:[#allocation3 + $0xc1c] sm:$0xf]  ;;  %v7776_v1 = vor.u32 %v9051_v32, %v7773_v42  ;;  %5773 = vmatpush.bf16.msra.mxu1 %v7264_v36  ;;  %v7523_v54 = vld [vmem:[#allocation3 + $0x620] sm:$0xf]  ;;  %v7012_v28 = vor.u32 %v8868_v27, %v7011_v2  ;;  %v5554_v32 = vpop.f32.mrf.mxu0 }
 0x4ee   : > { %v8285_v53 = vld [vmem:[#allocation3 + $0xc58] sm:$0xf0]  ;;  %5761 = vmatmul.bf16.vlgmr.msra.gmra.mxu0 %v10777_v3  ;;  %v8996_v10 = vld [vmem:[#allocation3 + $0x65c] sm:$0xf0]  ;;  %v5555_v42 = vadd.f32 %v5554_v32, %v5360_v55 }
 0x4ef   : > { %v8288_v59 = vor.u32 %v9179_v5, %v8285_v53  ;;  %5786 = vmatpush.bf16.msra.mxu2 %v7776_v1  ;;  %5805 = vmatpush.bf16.msrb.mxu0 %v7204_v23  ;;  %v8035_v9 = vld [vmem:[#allocation3 + $0xa20] sm:$0xf]  ;;  %v7524_v48 = vor.u32 %v8996_v10, %v7523_v54  ;;  %v5567_v5 = vpop.f32.mrf.mxu1 }
 0x4f0   : > { %5774 = vmatmul.bf16.vlgmr.msra.gmra.mxu1 %v10785_v21  ;;  %v9124_v33 = vld [vmem:[#allocation3 + $0xa5c] sm:$0xf0]  ;;  %v5568_v24 = vadd.f32 %v5567_v5, %v5555_v42  ;;  %v8908_v5 = vld [vmem:[#allocation3 + $0x3a4] sm:$0xf] }
 0x4f1   : > { %5799 = vmatpush.bf16.msra.mxu3 %v8288_v59  ;;  %5818 = vmatpush.bf16.msrb.mxu1 %v7716_v49  ;;  %v8547_v14 = vld [vmem:[#allocation3 + $0xe20] sm:$0xf]  ;;  %v8036_v60 = vor.u32 %v9124_v33, %v8035_v9 }
 0x4f2   : > { %5787 = vmatmul.bf16.vlgmr.msra.gmra.mxu2 %v10773_v34  ;;  %v9252_v25 = vld [vmem:[#allocation3 + $0xe5c] sm:$0xf0] }
 0x4f3   : > { %5831 = vmatpush.bf16.msrb.mxu2 %v8228_v40  ;;  %5806 = vmatpush.bf16.msrb.mxu0 %v7140_v13  ;;  %v6947_v53 = vld [vmem:[#allocation3 + $0x1a0] sm:$0xf]  ;;  %v8548_v47 = vor.u32 %v9252_v25, %v8547_v14  ;;  %v5580_v22 = vpop.f32.mrf.mxu2 }
 0x4f4   : > { %5800 = vmatmul.bf16.vlgmr.msra.gmra.mxu3 %v10781_v35  ;;  %v8852_v0 = vld [vmem:[#allocation3 + $0x1dc] sm:$0xf0]  ;;  %v5581_v12 = vadd.f32 %v5580_v22, %v5568_v24  ;;  %v9292_v24 = vld [vmem:[#allocation3 + $0xfa4] sm:$0xf] }
 0x4f5   : > { %5844 = vmatpush.bf16.msrb.mxu3 %v8740_v62  ;;  %5819 = vmatpush.bf16.msrb.mxu1 %v7652_v11  ;;  %v7459_v18 = vld [vmem:[#allocation3 + $0x5a0] sm:$0xf]  ;;  %v6948_v36 = vor.u32 %v8852_v0, %v6947_v53  ;;  %v5593_v37 = vpop.f32.mrf.mxu3  ;;  %v7205_v53 = vld [vmem:[#allocation3 + $0x3e0] sm:$0xf0] }
 0x4f6   : > { %v8980_v19 = vld [vmem:[#allocation3 + $0x5dc] sm:$0xf0]  ;;  %v5594_v4 = vadd.f32 %v5593_v37, %v5581_v12  ;;  %v9036_v0 = vld [vmem:[#allocation3 + $0x7a4] sm:$0xf] }
 0x4f7   : > { %5832 = vmatpush.bf16.msrb.mxu2 %v8164_v20  ;;  %5807 = vmatpush.bf16.msrb.mxu0 %v7076_v52  ;;  %v9108_v46 = vld [vmem:[#allocation3 + $0x9dc] sm:$0xf0]  ;;  %v7460_v1 = vor.u32 %v8980_v19, %v7459_v18  ;;  %v5556_v20 = vpop.f32.mrf.mxu0  ;;  %v5569_v63 = vpop.f32.mrf.mxu1  ;;  %v7717_v18 = vld [vmem:[#allocation3 + $0x7e0] sm:$0xf0] }
 0x4f8   : > { %v8483_v45 = vld [vmem:[#allocation3 + $0xda0] sm:$0xf]  ;;  %v7972_v51 = vor.u32 %v9108_v46, %v7971_v8  ;;  %v6239_v61 = vrot.slane %v5594_v4, 5  ;;  %v8229_v19 = vld [vmem:[#allocation3 + $0xbe0] sm:$0xf0] }
 0x4f9   : > { %5845 = vmatpush.bf16.msrb.mxu3 %v8676_v38  ;;  %5820 = vmatpush.bf16.msrb.mxu1 %v7588_v58  ;;  %v9236_v41 = vld [vmem:[#allocation3 + $0xddc] sm:$0xf0]  ;;  %v8892_v22 = vld [vmem:[#allocation3 + $0x324] sm:$0xf] }
 0x4fa   : > { %v6883_v59 = vld [vmem:[#allocation3 + $0x120] sm:$0xf]  ;;  %v8484_v40 = vor.u32 %v9236_v41, %v8483_v45  ;;  %v6254_v58 = vsel %vm6253_vm3, %v6238_v17, %v6239_v61  ;;  %v8741_v45 = vld [vmem:[#allocation3 + $0xfe0] sm:$0xf0] }
 0x4fb   : > { %5833 = vmatpush.bf16.msrb.mxu2 %v8100_v44  ;;  %5808 = vmatpush.bf16.msrb.mxu0 %v7012_v28  ;;  %v8836_v23 = vld [vmem:[#allocation3 + $0x15c] sm:$0xf0]  ;;  %v10837_v55 = vsel %vm6255_vm4, %v10819_v56, %v6254_v58  ;;  %v5582_v25 = vpop.f32.mrf.mxu2  ;;  %v9148_v12 = vld [vmem:[#allocation3 + $0xb24] sm:$0xf] }
 0x4fc   : > { %v7395_v49 = vld [vmem:[#allocation3 + $0x520] sm:$0xf]  ;;  %v6884_v13 = vor.u32 %v8836_v23, %v6883_v59  ;;  %v7141_v59 = vld [vmem:[#allocation3 + $0x360] sm:$0xf0] }
 0x4fd   : > { %5846 = vmatpush.bf16.msrb.mxu3 %v8612_v30  ;;  %5821 = vmatpush.bf16.msrb.mxu1 %v7524_v48  ;;  %v8964_v50 = vld [vmem:[#allocation3 + $0x55c] sm:$0xf0]  ;;  %v5595_v42 = vpop.f32.mrf.mxu3  ;;  %v9020_v23 = vld [vmem:[#allocation3 + $0x724] sm:$0xf] }
 0x4fe   : > { %v7907_v62 = vld [vmem:[#allocation3 + $0x920] sm:$0xf]  ;;  %v7396_v29 = vor.u32 %v8964_v50, %v7395_v49  ;;  %v8744_v49 = vor.u32 %v9292_v24, %v8741_v45  ;;  %v8165_v37 = vld [vmem:[#allocation3 + $0xb60] sm:$0xf0] }
 0x4ff   : > { %5834 = vmatpush.bf16.msrb.mxu2 %v8036_v60  ;;  %v9092_v31 = vld [vmem:[#allocation3 + $0x95c] sm:$0xf0]  ;;  %5809 = vmatpush.bf16.msrb.mxu0 %v6948_v36  ;;  %v7208_v36 = vor.u32 %v8908_v5, %v7205_v53  ;;  %v9276_v50 = vld [vmem:[#allocation3 + $0xf24] sm:$0xf] }
 0x500   : > { %v8419_v15 = vld [vmem:[#allocation3 + $0xd20] sm:$0xf]  ;;  %v7908_v7 = vor.u32 %v9092_v31, %v7907_v62  ;;  %v8677_v62 = vld [vmem:[#allocation3 + $0xf60] sm:$0xf0]  ;;  %v7144_v31 = vor.u32 %v8892_v22, %v7141_v59 }
 0x501   : > { %5847 = vmatpush.bf16.msrb.mxu3 %v8548_v47  ;;  %v9220_v16 = vld [vmem:[#allocation3 + $0xd5c] sm:$0xf0]  ;;  %5822 = vmatpush.bf16.msrb.mxu1 %v7460_v1  ;;  %v9164_v47 = vld [vmem:[#allocation3 + $0xba4] sm:$0xf]  ;;  %v7720_v1 = vor.u32 %v9036_v0, %v7717_v18 }
 0x502   : > { %v6819_v11 = vld [vmem:[#allocation3 + $0xa0] sm:$0xf]  ;;  %v8420_v57 = vor.u32 %v9220_v16, %v8419_v15  ;;  %v8168_v16 = vor.u32 %v9148_v12, %v8165_v37  ;;  %v8876_v17 = vld [vmem:[#allocation3 + $0x2a4] sm:$0xf] }
 0x503   : > { %5835 = vmatpush.bf16.msrb.mxu2 %v7972_v51  ;;  %v8820_v6 = vld [vmem:[#allocation3 + $0xdc] sm:$0xf0]  ;;  %5810 = vmatpush.bf16.msrb.mxu0 %v6884_v13  ;;  %v8232_v51 = vor.u32 %v9164_v47, %v8229_v19  ;;  %v7077_v4 = vld [vmem:[#allocation3 + $0x2e0] sm:$0xf0] }
 0x504   : > { %v7331_v38 = vld [vmem:[#allocation3 + $0x4a0] sm:$0xf]  ;;  %v6820_v44 = vor.u32 %v8820_v6, %v6819_v11  ;;  %v9004_v13 = vld [vmem:[#allocation3 + $0x6a4] sm:$0xf]  ;;  %v8680_v11 = vor.u32 %v9276_v50, %v8677_v62 }
 0x505   : > { %v8948_v39 = vld [vmem:[#allocation3 + $0x4dc] sm:$0xf0]  ;;  %5848 = vmatpush.bf16.msrb.mxu3 %v8484_v40  ;;  %5823 = vmatpush.bf16.msrb.mxu1 %v7396_v29  ;;  %v7653_v40 = vld [vmem:[#allocation3 + $0x760] sm:$0xf0] }
 0x506   : > { %v7843_v26 = vld [vmem:[#allocation3 + $0x8a0] sm:$0xf]  ;;  %v7332_v30 = vor.u32 %v8948_v39, %v7331_v38  ;;  %v7656_v15 = vor.u32 %v9020_v23, %v7653_v40  ;;  %v7589_v20 = vld [vmem:[#allocation3 + $0x6e0] sm:$0xf0]  ;;  %v7080_v39 = vor.u32 %v8876_v17, %v7077_v4 }
 0x507   : > { %v9076_v43 = vld [vmem:[#allocation3 + $0x8dc] sm:$0xf0]  ;;  %5836 = vmatpush.bf16.msrb.mxu2 %v7908_v7  ;;  %5811 = vmatpush.bf16.msrb.mxu0 %v6820_v44  ;;  %v9132_v29 = vld [vmem:[#allocation3 + $0xaa4] sm:$0xf]  ;;  %v7592_v61 = vor.u32 %v9004_v13, %v7589_v20 }
 0x508   : > { %v8355_v52 = vld [vmem:[#allocation3 + $0xca0] sm:$0xf]  ;;  %v7844_v10 = vor.u32 %v9076_v43, %v7843_v26  ;;  %v8101_v7 = vld [vmem:[#allocation3 + $0xae0] sm:$0xf0] }
 0x509   : > { %v9204_v2 = vld [vmem:[#allocation3 + $0xcdc] sm:$0xf0]  ;;  %5849 = vmatpush.bf16.msrb.mxu3 %v8420_v57  ;;  %5824 = vmatpush.bf16.msrb.mxu1 %v7332_v30  ;;  %v9260_v6 = vld [vmem:[#allocation3 + $0xea4] sm:$0xf]  ;;  %v8104_v57 = vor.u32 %v9132_v29, %v8101_v7 }
 0x50a   : > { %v6755_v27 = vld [vmem:[#allocation3 + $0x20] sm:$0xf]  ;;  %v8356_v28 = vor.u32 %v9204_v2, %v8355_v52  ;;  %v8613_v38 = vld [vmem:[#allocation3 + $0xee0] sm:$0xf0] }
 0x50b   : > { %v8804_v54 = vld [vmem:[#allocation3 + $0x5c] sm:$0xf0]  ;;  %5837 = vmatpush.bf16.msrb.mxu2 %v7844_v10  ;;  %v8860_v63 = vld [vmem:[#allocation3 + $0x224] sm:$0xf]  ;;  %v8616_v58 = vor.u32 %v9260_v6, %v8613_v38  ;;  %v5619_v42 = vpop.f32.mrf.mxu1 }
 0x50c   : > { %v7267_v9 = vld [vmem:[#allocation3 + $0x420] sm:$0xf]  ;;  %v6756_v56 = vor.u32 %v8804_v54, %v6755_v27  ;;  %v7013_v26 = vld [vmem:[#allocation3 + $0x260] sm:$0xf0] }
 0x50d   : > { %v8932_v33 = vld [vmem:[#allocation3 + $0x45c] sm:$0xf0]  ;;  %5850 = vmatpush.bf16.msrb.mxu3 %v8356_v28  ;;  %v8988_v43 = vld [vmem:[#allocation3 + $0x624] sm:$0xf] }
 0x50e   : > { %v7779_v14 = vld [vmem:[#allocation3 + $0x820] sm:$0xf]  ;;  %v7268_v8 = vor.u32 %v8932_v33, %v7267_v9  ;;  %5812 = vmatpush.bf16.msrb.mxu0 %v6756_v56  ;;  %v10843_v52 = vld [vmem:[#allocation11] sm:$0xff]  ;;  %v7016_v9 = vor.u32 %v8860_v63, %v7013_v26  ;;  %v5606_v33 = vpop.f32.mrf.mxu0 }
 0x50f   : > { %v9060_v32 = vld [vmem:[#allocation3 + $0x85c] sm:$0xf0]  ;;  %v5361_v2 = vperm.slane %v10843_v52, 4  ;;  %v7525_v44 = vld [vmem:[#allocation3 + $0x660] sm:$0xf0] }
 0x510   : > { %v8291_v48 = vld [vmem:[#allocation3 + $0xc20] sm:$0xf]  ;;  %v7780_v46 = vor.u32 %v9060_v32, %v7779_v14  ;;  %5825 = vmatpush.bf16.msrb.mxu1 %v7268_v8  ;;  %v9116_v27 = vld [vmem:[#allocation3 + $0xa24] sm:$0xf]  ;;  %v7528_v14 = vor.u32 %v8988_v43, %v7525_v44 }
 0x511   : > { %v9188_v60 = vld [vmem:[#allocation3 + $0xc5c] sm:$0xf0]  ;;  %5813 = vmatmul.bf16.vlgmr.msrb.gmra.mxu0 %v10777_v3  ;;  %v8037_v54 = vld [vmem:[#allocation3 + $0xa60] sm:$0xf0] }
 0x512   : > { %v8292_v41 = vor.u32 %v9188_v60, %v8291_v48  ;;  %5838 = vmatpush.bf16.msrb.mxu2 %v7780_v46  ;;  %5857 = vmatpush.bf16.msra.mxu0 %v7208_v36  ;;  %v9244_v30 = vld [vmem:[#allocation3 + $0xe24] sm:$0xf]  ;;  %v8040_v25 = vor.u32 %v9116_v27, %v8037_v54  ;;  %v5607_v60 = vadd.f32 %v5606_v33, %v5361_v2 }
 0x513   : > { %5826 = vmatmul.bf16.vlgmr.msrb.gmra.mxu1 %v10785_v21  ;;  %v8549_v10 = vld [vmem:[#allocation3 + $0xe60] sm:$0xf0] }
 0x514   : > { %5851 = vmatpush.bf16.msrb.mxu3 %v8292_v41  ;;  %5870 = vmatpush.bf16.msra.mxu1 %v7720_v1  ;;  %v8844_v28 = vld [vmem:[#allocation3 + $0x1a4] sm:$0xf]  ;;  %v8552_v5 = vor.u32 %v9244_v30, %v8549_v10  ;;  %v5620_v19 = vadd.f32 %v5619_v42, %v5607_v60  ;;  %v5632_v1 = vpop.f32.mrf.mxu2  ;;  %v8235_v60 = vld [vmem:[#allocation3 + $0xba8] sm:$0xf] }
 0x515   : > { %5839 = vmatmul.bf16.vlgmr.msrb.gmra.mxu2 %v10773_v34  ;;  %v6949_v32 = vld [vmem:[#allocation3 + $0x1e0] sm:$0xf0]  ;;  %v5645_v40 = vpop.f32.mrf.mxu3  ;;  %v9173_v42 = vld [vmem:[#allocation3 + $0xbe4] sm:$0xf0] }
 0x516   : > { %5883 = vmatpush.bf16.msra.mxu2 %v8232_v51  ;;  %5858 = vmatpush.bf16.msra.mxu0 %v7144_v31  ;;  %v8972_v48 = vld [vmem:[#allocation3 + $0x5a4] sm:$0xf]  ;;  %v6952_v8 = vor.u32 %v8844_v28, %v6949_v32  ;;  %v5608_v31 = vpop.f32.mrf.mxu0  ;;  %v7723_v28 = vld [vmem:[#allocation3 + $0x7a8] sm:$0xf] }
 0x517   : > { %5852 = vmatmul.bf16.vlgmr.msrb.gmra.mxu3 %v10781_v35  ;;  %v7461_v53 = vld [vmem:[#allocation3 + $0x5e0] sm:$0xf0] }
 0x518   : > { %5896 = vmatpush.bf16.msra.mxu3 %v8744_v49  ;;  %5871 = vmatpush.bf16.msra.mxu1 %v7656_v15  ;;  %v9100_v0 = vld [vmem:[#allocation3 + $0x9a4] sm:$0xf]  ;;  %v7464_v46 = vor.u32 %v8972_v48, %v7461_v53  ;;  %v5633_v49 = vadd.f32 %v5632_v1, %v5620_v19  ;;  %v9045_v48 = vld [vmem:[#allocation3 + $0x7e4] sm:$0xf0] }
 0x519   : > { %v7973_v56 = vld [vmem:[#allocation3 + $0x9e0] sm:$0xf0]  ;;  %v7724_v19 = vor.u32 %v9045_v48, %v7723_v28  ;;  %v8171_v1 = vld [vmem:[#allocation3 + $0xb28] sm:$0xf] }
 0x51a   : > { %5884 = vmatpush.bf16.msra.mxu2 %v8168_v16  ;;  %5859 = vmatpush.bf16.msra.mxu0 %v7080_v39  ;;  %v9228_v18 = vld [vmem:[#allocation3 + $0xda4] sm:$0xf]  ;;  %v7976_v24 = vor.u32 %v9100_v0, %v7973_v56  ;;  %v10846_v62 = vadd.f32 %v5645_v40, %v5633_v49  ;;  %v8747_v0 = vld [vmem:[#allocation3 + $0xfa8] sm:$0xf] }
 0x51b   : > { %v8485_v47 = vld [vmem:[#allocation3 + $0xde0] sm:$0xf0]  ;;  %v9301_v56 = vld [vmem:[#allocation3 + $0xfe4] sm:$0xf0] }
 0x51c   : > { %5897 = vmatpush.bf16.msra.mxu3 %v8680_v11  ;;  %5872 = vmatpush.bf16.msra.mxu1 %v7592_v61  ;;  %v8828_v45 = vld [vmem:[#allocation3 + $0x124] sm:$0xf]  ;;  %v8488_v51 = vor.u32 %v9228_v18, %v8485_v47  ;;  %v5621_v11 = vpop.f32.mrf.mxu1  ;;  %v5634_v27 = vpop.f32.mrf.mxu2  ;;  %v9109_v28 = vld [vmem:[#allocation3 + $0x9e4] sm:$0xf0] }
 0x51d   : > { %v6885_v41 = vld [vmem:[#allocation3 + $0x160] sm:$0xf0]  ;;  %v5647_v33 = vpop.f32.mrf.mxu3  ;;  %v9237_v48 = vld [vmem:[#allocation3 + $0xde4] sm:$0xf0] }
 0x51e   : > { %5885 = vmatpush.bf16.msra.mxu2 %v8104_v57  ;;  %5860 = vmatpush.bf16.msra.mxu0 %v7016_v9  ;;  %v8956_v36 = vld [vmem:[#allocation3 + $0x524] sm:$0xf]  ;;  %v6888_v50 = vor.u32 %v8828_v45, %v6885_v41  ;;  %v7659_v45 = vld [vmem:[#allocation3 + $0x728] sm:$0xf]  ;;  %v8748_v41 = vor.u32 %v9301_v56, %v8747_v0 }
 0x51f   : > { %v7397_v22 = vld [vmem:[#allocation3 + $0x560] sm:$0xf0]  ;;  %v6891_v0 = vld [vmem:[#allocation3 + $0x128] sm:$0xf] }
 0x520   : > { %5898 = vmatpush.bf16.msra.mxu3 %v8616_v58  ;;  %5873 = vmatpush.bf16.msra.mxu1 %v7528_v14  ;;  %v9084_v59 = vld [vmem:[#allocation3 + $0x924] sm:$0xf]  ;;  %v7400_v15 = vor.u32 %v8956_v36, %v7397_v22  ;;  %v7211_v14 = vld [vmem:[#allocation3 + $0x3a8] sm:$0xf] }
 0x521   : > { %v7909_v23 = vld [vmem:[#allocation3 + $0x960] sm:$0xf0]  ;;  %v9029_v36 = vld [vmem:[#allocation3 + $0x764] sm:$0xf0] }
 0x522   : > { %5886 = vmatpush.bf16.msra.mxu2 %v8040_v25  ;;  %v9212_v12 = vld [vmem:[#allocation3 + $0xd24] sm:$0xf]  ;;  %5861 = vmatpush.bf16.msra.mxu0 %v6952_v8  ;;  %v7912_v16 = vor.u32 %v9084_v59, %v7909_v23  ;;  %v8917_v25 = vld [vmem:[#allocation3 + $0x3e4] sm:$0xf0]  ;;  %v8236_v8 = vor.u32 %v9173_v42, %v8235_v60  ;;  %v7660_v49 = vor.u32 %v9029_v36, %v7659_v45 }
 0x523   : > { %v8421_v37 = vld [vmem:[#allocation3 + $0xd60] sm:$0xf0]  ;;  %v7212_v47 = vor.u32 %v8917_v25, %v7211_v14  ;;  %v8683_v22 = vld [vmem:[#allocation3 + $0xf28] sm:$0xf] }
 0x524   : > { %5899 = vmatpush.bf16.msra.mxu3 %v8552_v5  ;;  %5874 = vmatpush.bf16.msra.mxu1 %v7464_v46  ;;  %v8812_v17 = vld [vmem:[#allocation3 + $0xa4] sm:$0xf]  ;;  %v8424_v20 = vor.u32 %v9212_v12, %v8421_v37  ;;  %v7147_v46 = vld [vmem:[#allocation3 + $0x328] sm:$0xf] }
 0x525   : > { %v6821_v4 = vld [vmem:[#allocation3 + $0xe0] sm:$0xf0]  ;;  %v9285_v59 = vld [vmem:[#allocation3 + $0xf64] sm:$0xf0] }
 0x526   : > { %5887 = vmatpush.bf16.msra.mxu2 %v7976_v24  ;;  %v8940_v13 = vld [vmem:[#allocation3 + $0x4a4] sm:$0xf]  ;;  %5862 = vmatpush.bf16.msra.mxu0 %v6888_v50  ;;  %v6824_v63 = vor.u32 %v8812_v17, %v6821_v4  ;;  %v8901_v24 = vld [vmem:[#allocation3 + $0x364] sm:$0xf0]  ;;  %v8684_v31 = vor.u32 %v9285_v59, %v8683_v22 }
 0x527   : > { %v7333_v29 = vld [vmem:[#allocation3 + $0x4e0] sm:$0xf0]  ;;  %v7148_v23 = vor.u32 %v8901_v24, %v7147_v46  ;;  %v7083_v12 = vld [vmem:[#allocation3 + $0x2a8] sm:$0xf] }
 0x528   : > { %5900 = vmatpush.bf16.msra.mxu3 %v8488_v51  ;;  %v9068_v7 = vld [vmem:[#allocation3 + $0x8a4] sm:$0xf]  ;;  %5875 = vmatpush.bf16.msra.mxu1 %v7400_v15  ;;  %v7336_v26 = vor.u32 %v8940_v13, %v7333_v29  ;;  %v9157_v51 = vld [vmem:[#allocation3 + $0xb64] sm:$0xf0] }
 0x529   : > { %v7845_v6 = vld [vmem:[#allocation3 + $0x8e0] sm:$0xf0]  ;;  %v8172_v40 = vor.u32 %v9157_v51, %v8171_v1  ;;  %v8885_v37 = vld [vmem:[#allocation3 + $0x2e4] sm:$0xf0] }
 0x52a   : > { %v9196_v38 = vld [vmem:[#allocation3 + $0xca4] sm:$0xf]  ;;  %5888 = vmatpush.bf16.msra.mxu2 %v7912_v16  ;;  %v7848_v43 = vor.u32 %v9068_v7, %v7845_v6  ;;  %5863 = vmatpush.bf16.msra.mxu0 %v6824_v63  ;;  %v7595_v50 = vld [vmem:[#allocation3 + $0x6a8] sm:$0xf]  ;;  %v7084_v11 = vor.u32 %v8885_v37, %v7083_v12 }
 0x52b   : > { %v8357_v39 = vld [vmem:[#allocation3 + $0xce0] sm:$0xf0]  ;;  %v9013_v15 = vld [vmem:[#allocation3 + $0x6e4] sm:$0xf0] }
 0x52c   : > { %v8796_v61 = vld [vmem:[#allocation3 + $0x24] sm:$0xf]  ;;  %5901 = vmatpush.bf16.msra.mxu3 %v8424_v20  ;;  %v8360_v54 = vor.u32 %v9196_v38, %v8357_v39  ;;  %5876 = vmatpush.bf16.msra.mxu1 %v7336_v26  ;;  %v8107_v16 = vld [vmem:[#allocation3 + $0xaa8] sm:$0xf]  ;;  %v7596_v20 = vor.u32 %v9013_v15, %v7595_v50 }
 0x52d   : > { %v6757_v57 = vld [vmem:[#allocation3 + $0x60] sm:$0xf0]  ;;  %v9141_v17 = vld [vmem:[#allocation3 + $0xae4] sm:$0xf0] }
 0x52e   : > { %v8924_v2 = vld [vmem:[#allocation3 + $0x424] sm:$0xf]  ;;  %v6760_v32 = vor.u32 %v8796_v61, %v6757_v57  ;;  %5889 = vmatpush.bf16.msra.mxu2 %v7848_v43  ;;  %v8619_v4 = vld [vmem:[#allocation3 + $0xea8] sm:$0xf]  ;;  %v8108_v29 = vor.u32 %v9141_v17, %v8107_v16 }
 0x52f   : > { %v7269_v58 = vld [vmem:[#allocation3 + $0x460] sm:$0xf0]  ;;  %v9269_v13 = vld [vmem:[#allocation3 + $0xee4] sm:$0xf0] }
 0x530   : > { %v9052_v44 = vld [vmem:[#allocation3 + $0x824] sm:$0xf]  ;;  %v7272_v5 = vor.u32 %v8924_v2, %v7269_v58  ;;  %5902 = vmatpush.bf16.msra.mxu3 %v8360_v54  ;;  %5864 = vmatpush.bf16.msra.mxu0 %v6760_v32  ;;  %v7019_v7 = vld [vmem:[#allocation3 + $0x228] sm:$0xf]  ;;  %v8620_v39 = vor.u32 %v9269_v13, %v8619_v4  ;;  %v10852_v58 = vpop.f32.mrf.mxu0  ;;  %v10854_v54 = vpop.f32.mrf.mxu1 }
 0x531   : > { %v7781_v30 = vld [vmem:[#allocation3 + $0x860] sm:$0xf0]  ;;  %v8869_v6 = vld [vmem:[#allocation3 + $0x264] sm:$0xf0] }
 0x532   : > { %v9180_v10 = vld [vmem:[#allocation3 + $0xc24] sm:$0xf]  ;;  %v7784_v53 = vor.u32 %v9052_v44, %v7781_v30  ;;  %5877 = vmatpush.bf16.msra.mxu1 %v7272_v5  ;;  %v7531_v38 = vld [vmem:[#allocation3 + $0x628] sm:$0xf]  ;;  %v7020_v2 = vor.u32 %v8869_v6, %v7019_v7 }
 0x533   : > { %v8293_v9 = vld [vmem:[#allocation3 + $0xc60] sm:$0xf0]  ;;  %5865 = vmatmul.bf16.vlgmr.msra.gmra.mxu0 %v10777_v3  ;;  %v8997_v63 = vld [vmem:[#allocation3 + $0x664] sm:$0xf0] }
 0x534   : > { %v8296_v18 = vor.u32 %v9180_v10, %v8293_v9  ;;  %5890 = vmatpush.bf16.msra.mxu2 %v7784_v53  ;;  %5909 = vmatpush.bf16.msrb.mxu0 %v7212_v47  ;;  %v8043_v61 = vld [vmem:[#allocation3 + $0xa28] sm:$0xf]  ;;  %v7532_v44 = vor.u32 %v8997_v63, %v7531_v38  ;;  %v10856_v53 = vpop.f32.mrf.mxu2 }
 0x535   : > { %5878 = vmatmul.bf16.vlgmr.msra.gmra.mxu1 %v10785_v21  ;;  %v9125_v57 = vld [vmem:[#allocation3 + $0xa64] sm:$0xf0] }
 0x536   : > { %5903 = vmatpush.bf16.msra.mxu3 %v8296_v18  ;;  %5922 = vmatpush.bf16.msrb.mxu1 %v7724_v19  ;;  %v8555_v26 = vld [vmem:[#allocation3 + $0xe28] sm:$0xf]  ;;  %v8044_v27 = vor.u32 %v9125_v57, %v8043_v61  ;;  %v10858_v19 = vpop.f32.mrf.mxu3 }
 0x537   : > { %5891 = vmatmul.bf16.vlgmr.msra.gmra.mxu2 %v10773_v34  ;;  %v9253_v43 = vld [vmem:[#allocation3 + $0xe64] sm:$0xf0] }
 0x538   : > { %5935 = vmatpush.bf16.msrb.mxu2 %v8236_v8  ;;  %5910 = vmatpush.bf16.msrb.mxu0 %v7148_v23  ;;  %v6955_v30 = vld [vmem:[#allocation3 + $0x1a8] sm:$0xf]  ;;  %v8556_v33 = vor.u32 %v9253_v43, %v8555_v26  ;;  %v5660_v1 = vpop.f32.mrf.mxu0  ;;  %v8909_v43 = vld [vmem:[#allocation3 + $0x3ac] sm:$0xf] }
 0x539   : > { %5904 = vmatmul.bf16.vlgmr.msra.gmra.mxu3 %v10781_v35  ;;  %v8853_v10 = vld [vmem:[#allocation3 + $0x1e4] sm:$0xf0] }
 0x53a   : > { %5948 = vmatpush.bf16.msrb.mxu3 %v8748_v41  ;;  %5923 = vmatpush.bf16.msrb.mxu1 %v7660_v49  ;;  %v7467_v9 = vld [vmem:[#allocation3 + $0x5a8] sm:$0xf]  ;;  %v6956_v60 = vor.u32 %v8853_v10, %v6955_v30  ;;  %v7725_v30 = vld [vmem:[#allocation3 + $0x7e8] sm:$0xf0] }
 0x53b   : > { %v8981_v14 = vld [vmem:[#allocation3 + $0x5e4] sm:$0xf0]  ;;  %v9165_v10 = vld [vmem:[#allocation3 + $0xbac] sm:$0xf] }
 0x53c   : > { %5936 = vmatpush.bf16.msrb.mxu2 %v8172_v40  ;;  %5911 = vmatpush.bf16.msrb.mxu0 %v7084_v11  ;;  %v7979_v25 = vld [vmem:[#allocation3 + $0x9a8] sm:$0xf]  ;;  %v7468_v42 = vor.u32 %v8981_v14, %v7467_v9  ;;  %v5673_v40 = vpop.f32.mrf.mxu1  ;;  %v5686_v38 = vpop.f32.mrf.mxu2  ;;  %v8237_v9 = vld [vmem:[#allocation3 + $0xbe8] sm:$0xf0] }
 0x53d   : > { %v8491_v32 = vld [vmem:[#allocation3 + $0xda8] sm:$0xf]  ;;  %v7980_v5 = vor.u32 %v9109_v28, %v7979_v25  ;;  %v9293_v25 = vld [vmem:[#allocation3 + $0xfac] sm:$0xf] }
 0x53e   : > { %5949 = vmatpush.bf16.msrb.mxu3 %v8684_v31  ;;  %5924 = vmatpush.bf16.msrb.mxu1 %v7596_v20  ;;  %v8837_v56 = vld [vmem:[#allocation3 + $0x164] sm:$0xf0]  ;;  %v8492_v47 = vor.u32 %v9237_v48, %v8491_v32  ;;  %v5699_v26 = vpop.f32.mrf.mxu3  ;;  %v8749_v28 = vld [vmem:[#allocation3 + $0xfe8] sm:$0xf0] }
 0x53f   : > { %v7403_v18 = vld [vmem:[#allocation3 + $0x528] sm:$0xf]  ;;  %v6892_v36 = vor.u32 %v8837_v56, %v6891_v0  ;;  %v7149_v0 = vld [vmem:[#allocation3 + $0x368] sm:$0xf0] }
 0x540   : > { %5937 = vmatpush.bf16.msrb.mxu2 %v8108_v29  ;;  %5912 = vmatpush.bf16.msrb.mxu0 %v7020_v2  ;;  %v8965_v8 = vld [vmem:[#allocation3 + $0x564] sm:$0xf0]  ;;  %v7213_v2 = vld [vmem:[#allocation3 + $0x3e8] sm:$0xf0] }
 0x541   : > { %v7915_v46 = vld [vmem:[#allocation3 + $0x928] sm:$0xf]  ;;  %v7404_v51 = vor.u32 %v8965_v8, %v7403_v18  ;;  %v7216_v48 = vor.u32 %v8909_v43, %v7213_v2  ;;  %v9021_v56 = vld [vmem:[#allocation3 + $0x72c] sm:$0xf]  ;;  %v8752_v18 = vor.u32 %v9293_v25, %v8749_v28 }
 0x542   : > { %5950 = vmatpush.bf16.msrb.mxu3 %v8620_v39  ;;  %5925 = vmatpush.bf16.msrb.mxu1 %v7532_v44  ;;  %v9093_v24 = vld [vmem:[#allocation3 + $0x964] sm:$0xf0]  ;;  %v9037_v44 = vld [vmem:[#allocation3 + $0x7ac] sm:$0xf] }
 0x543   : > { %v8427_v45 = vld [vmem:[#allocation3 + $0xd28] sm:$0xf]  ;;  %v7916_v22 = vor.u32 %v9093_v24, %v7915_v46  ;;  %v9149_v8 = vld [vmem:[#allocation3 + $0xb2c] sm:$0xf] }
 0x544   : > { %5938 = vmatpush.bf16.msrb.mxu2 %v8044_v27  ;;  %v9221_v41 = vld [vmem:[#allocation3 + $0xd64] sm:$0xf0]  ;;  %5913 = vmatpush.bf16.msrb.mxu0 %v6956_v60  ;;  %v7728_v60 = vor.u32 %v9037_v44, %v7725_v30  ;;  %v8173_v46 = vld [vmem:[#allocation3 + $0xb68] sm:$0xf0] }
 0x545   : > { %v6827_v59 = vld [vmem:[#allocation3 + $0xa8] sm:$0xf]  ;;  %v8428_v12 = vor.u32 %v9221_v41, %v8427_v45  ;;  %v9277_v24 = vld [vmem:[#allocation3 + $0xf2c] sm:$0xf]  ;;  %v8176_v1 = vor.u32 %v9149_v8, %v8173_v46 }
 0x546   : > { %5951 = vmatpush.bf16.msrb.mxu3 %v8556_v33  ;;  %5926 = vmatpush.bf16.msrb.mxu1 %v7468_v42  ;;  %v8821_v23 = vld [vmem:[#allocation3 + $0xe4] sm:$0xf0]  ;;  %v8240_v42 = vor.u32 %v9165_v10, %v8237_v9  ;;  %v8685_v45 = vld [vmem:[#allocation3 + $0xf68] sm:$0xf0] }
 0x547   : > { %v7339_v49 = vld [vmem:[#allocation3 + $0x4a8] sm:$0xf]  ;;  %v6828_v17 = vor.u32 %v8821_v23, %v6827_v59  ;;  %v9005_v59 = vld [vmem:[#allocation3 + $0x6ac] sm:$0xf]  ;;  %v8688_v23 = vor.u32 %v9277_v24, %v8685_v45 }
 0x548   : > { %5939 = vmatpush.bf16.msrb.mxu2 %v7980_v5  ;;  %v8949_v37 = vld [vmem:[#allocation3 + $0x4e4] sm:$0xf0]  ;;  %5914 = vmatpush.bf16.msrb.mxu0 %v6892_v36  ;;  %v8893_v5 = vld [vmem:[#allocation3 + $0x32c] sm:$0xf] }
 0x549   : > { %v7851_v50 = vld [vmem:[#allocation3 + $0x8a8] sm:$0xf]  ;;  %v7340_v11 = vor.u32 %v8949_v37, %v7339_v49  ;;  %v7152_v41 = vor.u32 %v8893_v5, %v7149_v0  ;;  %v7597_v49 = vld [vmem:[#allocation3 + $0x6e8] sm:$0xf0] }
 0x54a   : > { %5952 = vmatpush.bf16.msrb.mxu3 %v8492_v47  ;;  %v9077_v31 = vld [vmem:[#allocation3 + $0x8e4] sm:$0xf0]  ;;  %5927 = vmatpush.bf16.msrb.mxu1 %v7404_v51  ;;  %v7661_v47 = vld [vmem:[#allocation3 + $0x768] sm:$0xf0] }
 0x54b   : > { %v8363_v15 = vld [vmem:[#allocation3 + $0xca8] sm:$0xf]  ;;  %v7852_v20 = vor.u32 %v9077_v31, %v7851_v50  ;;  %v7664_v36 = vor.u32 %v9021_v56, %v7661_v47  ;;  %v8877_v51 = vld [vmem:[#allocation3 + $0x2ac] sm:$0xf]  ;;  %v10866_v44 = vpop.f32.mrf.mxu1 }
 0x54c   : > { %v9205_v16 = vld [vmem:[#allocation3 + $0xce4] sm:$0xf0]  ;;  %5940 = vmatpush.bf16.msrb.mxu2 %v7916_v22  ;;  %5915 = vmatpush.bf16.msrb.mxu0 %v6828_v17  ;;  %v7085_v22 = vld [vmem:[#allocation3 + $0x2e8] sm:$0xf0] }
 0x54d   : > { %v6763_v4 = vld [vmem:[#allocation3 + $0x28] sm:$0xf]  ;;  %v8364_v39 = vor.u32 %v9205_v16, %v8363_v15  ;;  %v9133_v40 = vld [vmem:[#allocation3 + $0xaac] sm:$0xf]  ;;  %v7088_v31 = vor.u32 %v8877_v51, %v7085_v22  ;;  %v7600_v15 = vor.u32 %v9005_v59, %v7597_v49 }
 0x54e   : > { %v8805_v13 = vld [vmem:[#allocation3 + $0x64] sm:$0xf0]  ;;  %5953 = vmatpush.bf16.msrb.mxu3 %v8428_v12  ;;  %5928 = vmatpush.bf16.msrb.mxu1 %v7340_v11  ;;  %v8109_v12 = vld [vmem:[#allocation3 + $0xae8] sm:$0xf0] }
 0x54f   : > { %v7275_v29 = vld [vmem:[#allocation3 + $0x428] sm:$0xf]  ;;  %v6764_v27 = vor.u32 %v8805_v13, %v6763_v4  ;;  %v9261_v37 = vld [vmem:[#allocation3 + $0xeac] sm:$0xf]  ;;  %v8112_v16 = vor.u32 %v9133_v40, %v8109_v12 }
 0x550   : > { %v8933_v7 = vld [vmem:[#allocation3 + $0x464] sm:$0xf0]  ;;  %5941 = vmatpush.bf16.msrb.mxu2 %v7852_v20  ;;  %v8621_v50 = vld [vmem:[#allocation3 + $0xee8] sm:$0xf0] }
 0x551   : > { %v7787_v6 = vld [vmem:[#allocation3 + $0x828] sm:$0xf]  ;;  %v7276_v33 = vor.u32 %v8933_v7, %v7275_v29  ;;  %5916 = vmatpush.bf16.msrb.mxu0 %v6764_v27  ;;  %v8861_v17 = vld [vmem:[#allocation3 + $0x22c] sm:$0xf]  ;;  %v8624_v11 = vor.u32 %v9261_v37, %v8621_v50 }
 0x552   : > { %v9061_v63 = vld [vmem:[#allocation3 + $0x864] sm:$0xf0]  ;;  %5954 = vmatpush.bf16.msrb.mxu3 %v8364_v39  ;;  %v7021_v4 = vld [vmem:[#allocation3 + $0x268] sm:$0xf0] }
 0x553   : > { %v8299_v61 = vld [vmem:[#allocation3 + $0xc28] sm:$0xf]  ;;  %v7788_v14 = vor.u32 %v9061_v63, %v7787_v6  ;;  %5929 = vmatpush.bf16.msrb.mxu1 %v7276_v33  ;;  %v8989_v13 = vld [vmem:[#allocation3 + $0x62c] sm:$0xf]  ;;  %v7024_v39 = vor.u32 %v8861_v17, %v7021_v4  ;;  %v10864_v63 = vpop.f32.mrf.mxu0  ;;  %v10868_v5 = vpop.f32.mrf.mxu2 }
 0x554   : > { %v9189_v57 = vld [vmem:[#allocation3 + $0xc64] sm:$0xf0]  ;;  %5917 = vmatmul.bf16.vlgmr.msrb.gmra.mxu0 %v10777_v3  ;;  %v7533_v20 = vld [vmem:[#allocation3 + $0x668] sm:$0xf0] }
 0x555   : > { %v8300_v32 = vor.u32 %v9189_v57, %v8299_v61  ;;  %5942 = vmatpush.bf16.msrb.mxu2 %v7788_v14  ;;  %5961 = vmatpush.bf16.msra.mxu0 %v7216_v48  ;;  %v9117_v29 = vld [vmem:[#allocation3 + $0xa2c] sm:$0xf]  ;;  %v7536_v61 = vor.u32 %v8989_v13, %v7533_v20  ;;  %v10870_v8 = vpop.f32.mrf.mxu3 }
 0x556   : > { %5930 = vmatmul.bf16.vlgmr.msrb.gmra.mxu1 %v10785_v21  ;;  %v8045_v7 = vld [vmem:[#allocation3 + $0xa68] sm:$0xf0] }
 0x557   : > { %5955 = vmatpush.bf16.msrb.mxu3 %v8300_v32  ;;  %5974 = vmatpush.bf16.msra.mxu1 %v7728_v60  ;;  %v9245_v6 = vld [vmem:[#allocation3 + $0xe2c] sm:$0xf]  ;;  %v8048_v57 = vor.u32 %v9117_v29, %v8045_v7 }
 0x558   : > { %5943 = vmatmul.bf16.vlgmr.msrb.gmra.mxu2 %v10773_v34  ;;  %v8557_v38 = vld [vmem:[#allocation3 + $0xe68] sm:$0xf0] }
 0x559   : > { %5987 = vmatpush.bf16.msra.mxu2 %v8240_v42  ;;  %5962 = vmatpush.bf16.msra.mxu0 %v7152_v41  ;;  %v8845_v26 = vld [vmem:[#allocation3 + $0x1ac] sm:$0xf]  ;;  %v8560_v27 = vor.u32 %v9245_v6, %v8557_v38 }
 0x55a   : > { %5956 = vmatmul.bf16.vlgmr.msrb.gmra.mxu3 %v10781_v35  ;;  %v6957_v43 = vld [vmem:[#allocation3 + $0x1e8] sm:$0xf0] }
 0x55b   : > { %6000 = vmatpush.bf16.msra.mxu3 %v8752_v18  ;;  %5975 = vmatpush.bf16.msra.mxu1 %v7664_v36  ;;  %v8973_v2 = vld [vmem:[#allocation3 + $0x5ac] sm:$0xf]  ;;  %v6960_v25 = vor.u32 %v8845_v26, %v6957_v43  ;;  %v5712_v41 = vpop.f32.mrf.mxu0  ;;  %v5738_v7 = vpop.f32.mrf.mxu2  ;;  %v7219_v26 = vld [vmem:[#allocation3 + $0x3b0] sm:$0xf] }
 0x55c   : > { %v7469_v30 = vld [vmem:[#allocation3 + $0x5e8] sm:$0xf0]  ;;  %v8918_v43 = vld [vmem:[#allocation3 + $0x3ec] sm:$0xf0] }
 0x55d   : > { %5988 = vmatpush.bf16.msra.mxu2 %v8176_v1  ;;  %5963 = vmatpush.bf16.msra.mxu0 %v7088_v31  ;;  %v9101_v10 = vld [vmem:[#allocation3 + $0x9ac] sm:$0xf]  ;;  %v7472_v28 = vor.u32 %v8973_v2, %v7469_v30  ;;  %v7731_v2 = vld [vmem:[#allocation3 + $0x7b0] sm:$0xf] }
 0x55e   : > { %v7981_v9 = vld [vmem:[#allocation3 + $0x9e8] sm:$0xf0]  ;;  %v9046_v30 = vld [vmem:[#allocation3 + $0x7ec] sm:$0xf0] }
 0x55f   : > { %6001 = vmatpush.bf16.msra.mxu3 %v8688_v23  ;;  %5976 = vmatpush.bf16.msra.mxu1 %v7600_v15  ;;  %v9229_v33 = vld [vmem:[#allocation3 + $0xdac] sm:$0xf]  ;;  %v7984_v32 = vor.u32 %v9101_v10, %v7981_v9  ;;  %v5725_v23 = vpop.f32.mrf.mxu1  ;;  %v8243_v10 = vld [vmem:[#allocation3 + $0xbb0] sm:$0xf] }
 0x560   : > { %v8493_v14 = vld [vmem:[#allocation3 + $0xde8] sm:$0xf0]  ;;  %v9174_v9 = vld [vmem:[#allocation3 + $0xbec] sm:$0xf0] }
 0x561   : > { %5989 = vmatpush.bf16.msra.mxu2 %v8112_v16  ;;  %5964 = vmatpush.bf16.msra.mxu0 %v7024_v39  ;;  %v8829_v48 = vld [vmem:[#allocation3 + $0x12c] sm:$0xf]  ;;  %v8496_v0 = vor.u32 %v9229_v33, %v8493_v14  ;;  %v5362_v33 = vperm.slane %v10843_v52, 5  ;;  %v8179_v41 = vld [vmem:[#allocation3 + $0xb30] sm:$0xf] }
 0x562   : > { %v6893_v60 = vld [vmem:[#allocation3 + $0x168] sm:$0xf0] }
 0x563   : > { %6002 = vmatpush.bf16.msra.mxu3 %v8624_v11  ;;  %5977 = vmatpush.bf16.msra.mxu1 %v7536_v61  ;;  %v8957_v42 = vld [vmem:[#allocation3 + $0x52c] sm:$0xf]  ;;  %v6896_v45 = vor.u32 %v8829_v48, %v6893_v60  ;;  %v5363_v48 = vperm.slane %v10843_v52, 6 }
 0x564   : > { %v7405_v56 = vld [vmem:[#allocation3 + $0x568] sm:$0xf0] }
 0x565   : > { %5990 = vmatpush.bf16.msra.mxu2 %v8048_v57  ;;  %v9085_v18 = vld [vmem:[#allocation3 + $0x92c] sm:$0xf]  ;;  %5965 = vmatpush.bf16.msra.mxu0 %v6960_v25  ;;  %v7408_v36 = vor.u32 %v8957_v42, %v7405_v56  ;;  %v5751_v57 = vpop.f32.mrf.mxu3  ;;  %v7220_v42 = vor.u32 %v8918_v43, %v7219_v26  ;;  %v8244_v56 = vor.u32 %v9174_v9, %v8243_v10  ;;  %v9126_v26 = vld [vmem:[#allocation3 + $0xa6c] sm:$0xf0] }
 0x566   : > { %v7917_v47 = vld [vmem:[#allocation3 + $0x968] sm:$0xf0]  ;;  %v8051_v57 = vld [vmem:[#allocation3 + $0xa30] sm:$0xf] }
 0x567   : > { %6003 = vmatpush.bf16.msra.mxu3 %v8560_v27  ;;  %v9213_v46 = vld [vmem:[#allocation3 + $0xd2c] sm:$0xf]  ;;  %5978 = vmatpush.bf16.msra.mxu1 %v7472_v28  ;;  %v7920_v1 = vor.u32 %v9085_v18, %v7917_v47  ;;  %v8755_v28 = vld [vmem:[#allocation3 + $0xfb0] sm:$0xf] }
 0x568   : > { %v8429_v24 = vld [vmem:[#allocation3 + $0xd68] sm:$0xf0]  ;;  %v7155_v18 = vld [vmem:[#allocation3 + $0x330] sm:$0xf] }
 0x569   : > { %5991 = vmatpush.bf16.msra.mxu2 %v7984_v32  ;;  %v8813_v51 = vld [vmem:[#allocation3 + $0xac] sm:$0xf]  ;;  %v8432_v49 = vor.u32 %v9213_v46, %v8429_v24  ;;  %5966 = vmatpush.bf16.msra.mxu0 %v6896_v45  ;;  %v9302_v32 = vld [vmem:[#allocation3 + $0xfec] sm:$0xf0] }
 0x56a   : > { %v6829_v22 = vld [vmem:[#allocation3 + $0xe8] sm:$0xf0]  ;;  %v8902_v47 = vld [vmem:[#allocation3 + $0x36c] sm:$0xf0]  ;;  %v8756_v24 = vor.u32 %v9302_v32, %v8755_v28 }
 0x56b   : > { %v8941_v59 = vld [vmem:[#allocation3 + $0x4ac] sm:$0xf]  ;;  %6004 = vmatpush.bf16.msra.mxu3 %v8496_v0  ;;  %v6832_v15 = vor.u32 %v8813_v51, %v6829_v22  ;;  %5979 = vmatpush.bf16.msra.mxu1 %v7408_v36  ;;  %v7732_v0 = vor.u32 %v9046_v30, %v7731_v2  ;;  %v7667_v46 = vld [vmem:[#allocation3 + $0x730] sm:$0xf]  ;;  %v7156_v23 = vor.u32 %v8902_v47, %v7155_v18  ;;  %v5762_v10 = vpop.f32.mrf.mxu0 }
 0x56c   : > { %v7341_v40 = vld [vmem:[#allocation3 + $0x4e8] sm:$0xf0]  ;;  %v9030_v45 = vld [vmem:[#allocation3 + $0x76c] sm:$0xf0] }
 0x56d   : > { %v9069_v12 = vld [vmem:[#allocation3 + $0x8ac] sm:$0xf]  ;;  %5992 = vmatpush.bf16.msra.mxu2 %v7920_v1  ;;  %v7344_v4 = vor.u32 %v8941_v59, %v7341_v40  ;;  %5967 = vmatpush.bf16.msra.mxu0 %v6832_v15  ;;  %v9158_v36 = vld [vmem:[#allocation3 + $0xb6c] sm:$0xf0]  ;;  %v5659_v1 = vadd.f32 %v10852_v58, %v5362_v33  ;;  %v5711_v59 = vadd.f32 %v10864_v63, %v5363_v48 }
 0x56e   : > { %v7853_v37 = vld [vmem:[#allocation3 + $0x8e8] sm:$0xf0]  ;;  %v8691_v51 = vld [vmem:[#allocation3 + $0xf30] sm:$0xf]  ;;  %v8180_v40 = vor.u32 %v9158_v36, %v8179_v41  ;;  %v8052_v33 = vor.u32 %v9126_v26, %v8051_v57 }
 0x56f   : > { %v9197_v50 = vld [vmem:[#allocation3 + $0xcac] sm:$0xf]  ;;  %v7856_v13 = vor.u32 %v9069_v12, %v7853_v37  ;;  %6005 = vmatpush.bf16.msra.mxu3 %v8432_v49  ;;  %5980 = vmatpush.bf16.msra.mxu1 %v7344_v4  ;;  %v9286_v22 = vld [vmem:[#allocation3 + $0xf6c] sm:$0xf0]  ;;  %v7668_v49 = vor.u32 %v9030_v45, %v7667_v46 }
 0x570   : > { %v8365_v31 = vld [vmem:[#allocation3 + $0xce8] sm:$0xf0]  ;;  %v7091_v12 = vld [vmem:[#allocation3 + $0x2b0] sm:$0xf]  ;;  %v8692_v58 = vor.u32 %v9286_v22, %v8691_v51 }
 0x571   : > { %v8797_v16 = vld [vmem:[#allocation3 + $0x2c] sm:$0xf]  ;;  %v8368_v6 = vor.u32 %v9197_v50, %v8365_v31  ;;  %5993 = vmatpush.bf16.msra.mxu2 %v7856_v13  ;;  %v8886_v37 = vld [vmem:[#allocation3 + $0x2ec] sm:$0xf0]  ;;  %v5724_v13 = vadd.f32 %v10866_v44, %v5711_v59 }
 0x572   : > { %v6765_v17 = vld [vmem:[#allocation3 + $0x68] sm:$0xf0]  ;;  %v7603_v50 = vld [vmem:[#allocation3 + $0x6b0] sm:$0xf] }
 0x573   : > { %v8925_v11 = vld [vmem:[#allocation3 + $0x42c] sm:$0xf]  ;;  %v6768_v27 = vor.u32 %v8797_v16, %v6765_v17  ;;  %6006 = vmatpush.bf16.msra.mxu3 %v8368_v6  ;;  %v9014_v31 = vld [vmem:[#allocation3 + $0x6ec] sm:$0xf0]  ;;  %v5672_v17 = vadd.f32 %v10854_v54, %v5659_v1  ;;  %v5364_v54 = vperm.slane %v10843_v52, 7  ;;  %v5775_v52 = vpop.f32.mrf.mxu1 }
 0x574   : > { %v7277_v20 = vld [vmem:[#allocation3 + $0x468] sm:$0xf0]  ;;  %v8115_v15 = vld [vmem:[#allocation3 + $0xab0] sm:$0xf] }
 0x575   : > { %v9053_v29 = vld [vmem:[#allocation3 + $0x82c] sm:$0xf]  ;;  %v7280_v14 = vor.u32 %v8925_v11, %v7277_v20  ;;  %5968 = vmatpush.bf16.msra.mxu0 %v6768_v27  ;;  %v9142_v16 = vld [vmem:[#allocation3 + $0xaec] sm:$0xf0]  ;;  %v7092_v11 = vor.u32 %v8886_v37, %v7091_v12  ;;  %v5685_v44 = vadd.f32 %v10856_v53, %v5672_v17  ;;  %v5737_v27 = vadd.f32 %v10868_v5, %v5724_v13  ;;  %v5788_v41 = vpop.f32.mrf.mxu2  ;;  %v5764_v17 = vpop.f32.mrf.mxu0 }
 0x576   : > { %v7789_v38 = vld [vmem:[#allocation3 + $0x868] sm:$0xf0]  ;;  %v8627_v63 = vld [vmem:[#allocation3 + $0xeb0] sm:$0xf]  ;;  %v8116_v7 = vor.u32 %v9142_v16, %v8115_v15  ;;  %v6240_v12 = vrot.slane %v10846_v62, 4 }
 0x577   : > { %v9181_v39 = vld [vmem:[#allocation3 + $0xc2c] sm:$0xf]  ;;  %v7792_v25 = vor.u32 %v9053_v29, %v7789_v38  ;;  %5981 = vmatpush.bf16.msra.mxu1 %v7280_v14  ;;  %v9270_v4 = vld [vmem:[#allocation3 + $0xeec] sm:$0xf0]  ;;  %v7604_v29 = vor.u32 %v9014_v31, %v7603_v50  ;;  %v5763_v14 = vadd.f32 %v5762_v10, %v5364_v54  ;;  %v5750_v47 = vadd.f32 %v10870_v8, %v5737_v27  ;;  %v9006_v17 = vld [vmem:[#allocation3 + $0x6b4] sm:$0xf] }
 0x578   : > { %v8301_v61 = vld [vmem:[#allocation3 + $0xc68] sm:$0xf0]  ;;  %5969 = vmatmul.bf16.vlgmr.msra.gmra.mxu0 %v10777_v3  ;;  %v7027_v20 = vld [vmem:[#allocation3 + $0x230] sm:$0xf] }
 0x579   : > { %v8304_v60 = vor.u32 %v9181_v39, %v8301_v61  ;;  %5994 = vmatpush.bf16.msra.mxu2 %v7792_v25  ;;  %6013 = vmatpush.bf16.msrb.mxu0 %v7220_v42  ;;  %v8870_v6 = vld [vmem:[#allocation3 + $0x26c] sm:$0xf0]  ;;  %v8628_v39 = vor.u32 %v9270_v4, %v8627_v63  ;;  %v5776_v5 = vadd.f32 %v5775_v52, %v5763_v14 }
 0x57a   : > { %5982 = vmatmul.bf16.vlgmr.msra.gmra.mxu1 %v10785_v21  ;;  %v7539_v38 = vld [vmem:[#allocation3 + $0x630] sm:$0xf]  ;;  %v7028_v30 = vor.u32 %v8870_v6, %v7027_v20 }
 0x57b   : > { %6007 = vmatpush.bf16.msra.mxu3 %v8304_v60  ;;  %6026 = vmatpush.bf16.msrb.mxu1 %v7732_v0  ;;  %v8998_v61 = vld [vmem:[#allocation3 + $0x66c] sm:$0xf0]  ;;  %v5698_v0 = vadd.f32 %v10858_v19, %v5685_v44  ;;  %v5789_v59 = vadd.f32 %v5788_v41, %v5776_v5  ;;  %v5801_v19 = vpop.f32.mrf.mxu3 }
 0x57c   : > { %5995 = vmatmul.bf16.vlgmr.msra.gmra.mxu2 %v10773_v34  ;;  %v8563_v43 = vld [vmem:[#allocation3 + $0xe30] sm:$0xf]  ;;  %v7540_v9 = vor.u32 %v8998_v61, %v7539_v38 }
 0x57d   : > { %6039 = vmatpush.bf16.msrb.mxu2 %v8244_v56  ;;  %6014 = vmatpush.bf16.msrb.mxu0 %v7156_v23  ;;  %v9254_v2 = vld [vmem:[#allocation3 + $0xe6c] sm:$0xf0]  ;;  %v6241_v8 = vrot.slane %v5698_v0, 3  ;;  %v5802_v31 = vadd.f32 %v5801_v19, %v5789_v59  ;;  %v5790_v52 = vpop.f32.mrf.mxu2  ;;  %v9038_v0 = vld [vmem:[#allocation3 + $0x7b4] sm:$0xf] }
 0x57e   : > { %6008 = vmatmul.bf16.vlgmr.msra.gmra.mxu3 %v10781_v35  ;;  %v6963_v25 = vld [vmem:[#allocation3 + $0x1b0] sm:$0xf]  ;;  %v8564_v48 = vor.u32 %v9254_v2, %v8563_v43  ;;  %v7157_v59 = vld [vmem:[#allocation3 + $0x370] sm:$0xf0] }
 0x57f   : > { %6052 = vmatpush.bf16.msrb.mxu3 %v8756_v24  ;;  %6027 = vmatpush.bf16.msrb.mxu1 %v7668_v49  ;;  %v8854_v28 = vld [vmem:[#allocation3 + $0x1ec] sm:$0xf0]  ;;  %v6243_v62 = vrot.slane %v5802_v31, 1  ;;  %v6258_v61 = vsel %vm6257_vm5, %v6240_v12, %v6241_v8  ;;  %v9022_v19 = vld [vmem:[#allocation3 + $0x734] sm:$0xf] }
 0x580   : > { %v7475_v32 = vld [vmem:[#allocation3 + $0x5b0] sm:$0xf]  ;;  %v6964_v46 = vor.u32 %v8854_v28, %v6963_v25  ;;  %v8181_v12 = vld [vmem:[#allocation3 + $0xb70] sm:$0xf0] }
 0x581   : > { %6040 = vmatpush.bf16.msrb.mxu2 %v8180_v40  ;;  %6015 = vmatpush.bf16.msrb.mxu0 %v7092_v11  ;;  %v8982_v60 = vld [vmem:[#allocation3 + $0x5ec] sm:$0xf0]  ;;  %v9278_v8 = vld [vmem:[#allocation3 + $0xf34] sm:$0xf] }
 0x582   : > { %v7987_v53 = vld [vmem:[#allocation3 + $0x9b0] sm:$0xf]  ;;  %v7476_v24 = vor.u32 %v8982_v60, %v7475_v32  ;;  %v8910_v60 = vld [vmem:[#allocation3 + $0x3b4] sm:$0xf] }
 0x583   : > { %6053 = vmatpush.bf16.msrb.mxu3 %v8692_v58  ;;  %6028 = vmatpush.bf16.msrb.mxu1 %v7604_v29  ;;  %v9110_v42 = vld [vmem:[#allocation3 + $0x9ec] sm:$0xf0]  ;;  %v6242_v58 = vrot.slane %v5750_v47, 2  ;;  %v5777_v29 = vpop.f32.mrf.mxu1  ;;  %v8245_v47 = vld [vmem:[#allocation3 + $0xbf0] sm:$0xf0] }
 0x584   : > { %v8499_v56 = vld [vmem:[#allocation3 + $0xdb0] sm:$0xf]  ;;  %v7988_v45 = vor.u32 %v9110_v42, %v7987_v53  ;;  %v5803_v53 = vpop.f32.mrf.mxu3  ;;  %v7221_v42 = vld [vmem:[#allocation3 + $0x3f0] sm:$0xf0] }
 0x585   : > { %6041 = vmatpush.bf16.msrb.mxu2 %v8116_v7  ;;  %v9238_v18 = vld [vmem:[#allocation3 + $0xdec] sm:$0xf0]  ;;  %6016 = vmatpush.bf16.msrb.mxu0 %v7028_v30  ;;  %v6260_v57 = vsel %vm6259_vm6, %v6242_v58, %v6243_v62  ;;  %v8878_v58 = vld [vmem:[#allocation3 + $0x2b4] sm:$0xf] }
 0x586   : > { %v6899_v36 = vld [vmem:[#allocation3 + $0x130] sm:$0xf]  ;;  %v8500_v22 = vor.u32 %v9238_v18, %v8499_v56  ;;  %v6262_v27 = vsel %vm6261_vm7, %v6258_v61, %v6260_v57  ;;  %v7733_v56 = vld [vmem:[#allocation3 + $0x7f0] sm:$0xf0] }
 0x587   : > { %6054 = vmatpush.bf16.msrb.mxu3 %v8628_v39  ;;  %6029 = vmatpush.bf16.msrb.mxu1 %v7540_v9  ;;  %v8838_v1 = vld [vmem:[#allocation3 + $0x16c] sm:$0xf0]  ;;  %v6264_v25 = vsel %vm6263_vm8, %v10837_v55, %v6262_v27  ;;  %v9166_v18 = vld [vmem:[#allocation3 + $0xbb4] sm:$0xf] }
 0x588   : > { %v7411_v51 = vld [vmem:[#allocation3 + $0x530] sm:$0xf]  ;;  %v6900_v15 = vor.u32 %v8838_v1, %v6899_v36  ;;  %6274 = vst [vmem:[#allocation13] sm:$0xff] %v6264_v25  ;;  %v8757_v55 = vld [vmem:[#allocation3 + $0xff0] sm:$0xf0]  ;;  %v7224_v36 = vor.u32 %v8910_v60, %v7221_v42  ;;  %v7736_v1 = vor.u32 %v9038_v0, %v7733_v56 }
 0x589   : > { %6042 = vmatpush.bf16.msrb.mxu2 %v8052_v33  ;;  %v8966_v23 = vld [vmem:[#allocation3 + $0x56c] sm:$0xf0]  ;;  %6017 = vmatpush.bf16.msrb.mxu0 %v6964_v46  ;;  %v9262_v29 = vld [vmem:[#allocation3 + $0xeb4] sm:$0xf] }
 0x58a   : > { %v7923_v49 = vld [vmem:[#allocation3 + $0x930] sm:$0xf]  ;;  %v7412_v63 = vor.u32 %v8966_v23, %v7411_v51  ;;  %v8248_v51 = vor.u32 %v9166_v18, %v8245_v47  ;;  %v8629_v62 = vld [vmem:[#allocation3 + $0xef0] sm:$0xf0] }
 0x58b   : > { %6055 = vmatpush.bf16.msrb.mxu3 %v8564_v48  ;;  %v9094_v40 = vld [vmem:[#allocation3 + $0x96c] sm:$0xf0]  ;;  %6030 = vmatpush.bf16.msrb.mxu1 %v7476_v24  ;;  %v8990_v61 = vld [vmem:[#allocation3 + $0x634] sm:$0xf] }
 0x58c   : > { %v8435_v37 = vld [vmem:[#allocation3 + $0xd30] sm:$0xf]  ;;  %v7924_v4 = vor.u32 %v9094_v40, %v7923_v49  ;;  %v7669_v49 = vld [vmem:[#allocation3 + $0x770] sm:$0xf0] }
 0x58d   : > { %v9222_v50 = vld [vmem:[#allocation3 + $0xd6c] sm:$0xf0]  ;;  %6043 = vmatpush.bf16.msrb.mxu2 %v7988_v45  ;;  %6018 = vmatpush.bf16.msrb.mxu0 %v6900_v15  ;;  %v9294_v45 = vld [vmem:[#allocation3 + $0xfb4] sm:$0xf]  ;;  %v7672_v31 = vor.u32 %v9022_v19, %v7669_v49 }
 0x58e   : > { %v6835_v16 = vld [vmem:[#allocation3 + $0xb0] sm:$0xf]  ;;  %v8436_v7 = vor.u32 %v9222_v50, %v8435_v37  ;;  %v8760_v23 = vor.u32 %v9294_v45, %v8757_v55  ;;  %v9150_v40 = vld [vmem:[#allocation3 + $0xb34] sm:$0xf] }
 0x58f   : > { %v8822_v13 = vld [vmem:[#allocation3 + $0xec] sm:$0xf0]  ;;  %6056 = vmatpush.bf16.msrb.mxu3 %v8500_v22  ;;  %6031 = vmatpush.bf16.msrb.mxu1 %v7412_v63  ;;  %v8894_v22 = vld [vmem:[#allocation3 + $0x334] sm:$0xf]  ;;  %v8184_v15 = vor.u32 %v9150_v40, %v8181_v12 }
 0x590   : > { %v7347_v11 = vld [vmem:[#allocation3 + $0x4b0] sm:$0xf]  ;;  %v6836_v26 = vor.u32 %v8822_v13, %v6835_v16  ;;  %v8693_v37 = vld [vmem:[#allocation3 + $0xf70] sm:$0xf0]  ;;  %v7160_v50 = vor.u32 %v8894_v22, %v7157_v59 }
 0x591   : > { %v8950_v20 = vld [vmem:[#allocation3 + $0x4ec] sm:$0xf0]  ;;  %6044 = vmatpush.bf16.msrb.mxu2 %v7924_v4  ;;  %v7093_v16 = vld [vmem:[#allocation3 + $0x2f0] sm:$0xf0]  ;;  %v8696_v4 = vor.u32 %v9278_v8, %v8693_v37 }
 0x592   : > { %v7859_v6 = vld [vmem:[#allocation3 + $0x8b0] sm:$0xf]  ;;  %v7348_v30 = vor.u32 %v8950_v20, %v7347_v11  ;;  %6019 = vmatpush.bf16.msrb.mxu0 %v6836_v26  ;;  %v7605_v63 = vld [vmem:[#allocation3 + $0x6f0] sm:$0xf0]  ;;  %v8632_v26 = vor.u32 %v9262_v29, %v8629_v62 }
 0x593   : > { %v9078_v38 = vld [vmem:[#allocation3 + $0x8ec] sm:$0xf0]  ;;  %6057 = vmatpush.bf16.msrb.mxu3 %v8436_v7  ;;  %v9134_v13 = vld [vmem:[#allocation3 + $0xab4] sm:$0xf]  ;;  %v7096_v7 = vor.u32 %v8878_v58, %v7093_v16 }
 0x594   : > { %v8371_v54 = vld [vmem:[#allocation3 + $0xcb0] sm:$0xf]  ;;  %v7860_v10 = vor.u32 %v9078_v38, %v7859_v6  ;;  %6032 = vmatpush.bf16.msrb.mxu1 %v7348_v30  ;;  %v8117_v11 = vld [vmem:[#allocation3 + $0xaf0] sm:$0xf0]  ;;  %v7608_v38 = vor.u32 %v9006_v17, %v7605_v63 }
 0x595   : > { %v9206_v39 = vld [vmem:[#allocation3 + $0xcec] sm:$0xf0]  ;;  %v8862_v6 = vld [vmem:[#allocation3 + $0x234] sm:$0xf] }
 0x596   : > { %v6771_v44 = vld [vmem:[#allocation3 + $0x30] sm:$0xf]  ;;  %v8372_v28 = vor.u32 %v9206_v39, %v8371_v54  ;;  %6045 = vmatpush.bf16.msrb.mxu2 %v7860_v10  ;;  %v8120_v54 = vor.u32 %v9134_v13, %v8117_v11  ;;  %v7029_v39 = vld [vmem:[#allocation3 + $0x270] sm:$0xf0] }
 0x597   : > { %v8806_v43 = vld [vmem:[#allocation3 + $0x6c] sm:$0xf0]  ;;  %v9246_v27 = vld [vmem:[#allocation3 + $0xe34] sm:$0xf]  ;;  %v7032_v10 = vor.u32 %v8862_v6, %v7029_v39 }
 0x598   : > { %v7283_v2 = vld [vmem:[#allocation3 + $0x430] sm:$0xf]  ;;  %v6772_v5 = vor.u32 %v8806_v43, %v6771_v44  ;;  %6058 = vmatpush.bf16.msrb.mxu3 %v8372_v28  ;;  %v7541_v44 = vld [vmem:[#allocation3 + $0x670] sm:$0xf0] }
 0x599   : > { %v8934_v9 = vld [vmem:[#allocation3 + $0x46c] sm:$0xf0]  ;;  %v9118_v43 = vld [vmem:[#allocation3 + $0xa34] sm:$0xf] }
 0x59a   : > { %v7795_v33 = vld [vmem:[#allocation3 + $0x830] sm:$0xf]  ;;  %v7284_v46 = vor.u32 %v8934_v9, %v7283_v2  ;;  %6020 = vmatpush.bf16.msrb.mxu0 %v6772_v5  ;;  %v8053_v2 = vld [vmem:[#allocation3 + $0xa70] sm:$0xf0]  ;;  %v5814_v9 = vpop.f32.mrf.mxu0 }
 0x59b   : > { %v9062_v14 = vld [vmem:[#allocation3 + $0x86c] sm:$0xf0]  ;;  %v8565_v30 = vld [vmem:[#allocation3 + $0xe70] sm:$0xf0] }
 0x59c   : > { %v8307_v32 = vld [vmem:[#allocation3 + $0xc30] sm:$0xf]  ;;  %v7796_v24 = vor.u32 %v9062_v14, %v7795_v33  ;;  %6033 = vmatpush.bf16.msrb.mxu1 %v7284_v46  ;;  %v7544_v33 = vor.u32 %v8990_v61, %v7541_v44  ;;  %v8056_v14 = vor.u32 %v9118_v43, %v8053_v2  ;;  %v8846_v52 = vld [vmem:[#allocation3 + $0x1b4] sm:$0xf]  ;;  %v8568_v60 = vor.u32 %v9246_v27, %v8565_v30 }
 0x59d   : > { %v9190_v48 = vld [vmem:[#allocation3 + $0xc6c] sm:$0xf0]  ;;  %6021 = vmatmul.bf16.vlgmr.msrb.gmra.mxu0 %v10777_v3  ;;  %v6965_v25 = vld [vmem:[#allocation3 + $0x1f0] sm:$0xf0] }
 0x59e   : > { %v8308_v41 = vor.u32 %v9190_v48, %v8307_v32  ;;  %6046 = vmatpush.bf16.msrb.mxu2 %v7796_v24  ;;  %6065 = vmatpush.bf16.msra.mxu0 %v7224_v36  ;;  %v10894_v20 = vld [vmem:[#allocation11 + $0x8] sm:$0xff]  ;;  %v8974_v28 = vld [vmem:[#allocation3 + $0x5b4] sm:$0xf]  ;;  %v5827_v48 = vpop.f32.mrf.mxu1  ;;  %v6968_v47 = vor.u32 %v8846_v52, %v6965_v25  ;;  %v5840_v36 = vpop.f32.mrf.mxu2  ;;  %v9047_v25 = vld [vmem:[#allocation3 + $0x7f4] sm:$0xf0] }
 0x59f   : > { %6034 = vmatmul.bf16.vlgmr.msrb.gmra.mxu1 %v10785_v21  ;;  %v5365_v57 = vperm.slane %v10894_v20, 0  ;;  %v7477_v53 = vld [vmem:[#allocation3 + $0x5f0] sm:$0xf0] }
 0x5a0   : > { %6059 = vmatpush.bf16.msrb.mxu3 %v8308_v41  ;;  %6078 = vmatpush.bf16.msra.mxu1 %v7736_v1  ;;  %v9102_v42 = vld [vmem:[#allocation3 + $0x9b4] sm:$0xf]  ;;  %v7480_v46 = vor.u32 %v8974_v28, %v7477_v53  ;;  %v8251_v28 = vld [vmem:[#allocation3 + $0xbb8] sm:$0xf] }
 0x5a1   : > { %6047 = vmatmul.bf16.vlgmr.msrb.gmra.mxu2 %v10773_v34  ;;  %v5815_v32 = vadd.f32 %v5814_v9, %v5365_v57  ;;  %v7989_v0 = vld [vmem:[#allocation3 + $0x9f0] sm:$0xf0]  ;;  %v7227_v9 = vld [vmem:[#allocation3 + $0x3b8] sm:$0xf] }
 0x5a2   : > { %6091 = vmatpush.bf16.msra.mxu2 %v8248_v51  ;;  %6066 = vmatpush.bf16.msra.mxu0 %v7160_v50  ;;  %v9230_v5 = vld [vmem:[#allocation3 + $0xdb4] sm:$0xf]  ;;  %v7992_v24 = vor.u32 %v9102_v42, %v7989_v0  ;;  %v5816_v37 = vpop.f32.mrf.mxu0  ;;  %v8763_v53 = vld [vmem:[#allocation3 + $0xfb8] sm:$0xf] }
 0x5a3   : > { %6060 = vmatmul.bf16.vlgmr.msrb.gmra.mxu3 %v10781_v35  ;;  %v8501_v56 = vld [vmem:[#allocation3 + $0xdf0] sm:$0xf0]  ;;  %v5828_v18 = vadd.f32 %v5827_v48, %v5815_v32  ;;  %v9175_v32 = vld [vmem:[#allocation3 + $0xbf4] sm:$0xf0] }
 0x5a4   : > { %6104 = vmatpush.bf16.msra.mxu3 %v8760_v23  ;;  %6079 = vmatpush.bf16.msra.mxu1 %v7672_v31  ;;  %v8830_v45 = vld [vmem:[#allocation3 + $0x134] sm:$0xf]  ;;  %v8504_v1 = vor.u32 %v9230_v5, %v8501_v56  ;;  %v5853_v23 = vpop.f32.mrf.mxu3  ;;  %v9303_v42 = vld [vmem:[#allocation3 + $0xff4] sm:$0xf0] }
 0x5a5   : > { %v6901_v55 = vld [vmem:[#allocation3 + $0x170] sm:$0xf0]  ;;  %v5841_v19 = vadd.f32 %v5840_v36, %v5828_v18  ;;  %v8252_v18 = vor.u32 %v9175_v32, %v8251_v28  ;;  %v9159_v36 = vld [vmem:[#allocation3 + $0xb74] sm:$0xf0] }
 0x5a6   : > { %6092 = vmatpush.bf16.msra.mxu2 %v8184_v15  ;;  %6067 = vmatpush.bf16.msra.mxu0 %v7096_v7  ;;  %v8958_v41 = vld [vmem:[#allocation3 + $0x534] sm:$0xf]  ;;  %v6904_v12 = vor.u32 %v8830_v45, %v6901_v55  ;;  %v5829_v17 = vpop.f32.mrf.mxu1  ;;  %v5842_v44 = vpop.f32.mrf.mxu2  ;;  %v8764_v45 = vor.u32 %v9303_v42, %v8763_v53  ;;  %v9031_v55 = vld [vmem:[#allocation3 + $0x774] sm:$0xf0] }
 0x5a7   : > { %v7413_v51 = vld [vmem:[#allocation3 + $0x570] sm:$0xf0]  ;;  %v10900_v8 = vadd.f32 %v5853_v23, %v5841_v19  ;;  %v7099_v23 = vld [vmem:[#allocation3 + $0x2b8] sm:$0xf] }
 0x5a8   : > { %6105 = vmatpush.bf16.msra.mxu3 %v8696_v4  ;;  %6080 = vmatpush.bf16.msra.mxu1 %v7608_v38  ;;  %v9086_v22 = vld [vmem:[#allocation3 + $0x934] sm:$0xf]  ;;  %v7416_v50 = vor.u32 %v8958_v41, %v7413_v51  ;;  %v8187_v41 = vld [vmem:[#allocation3 + $0xb38] sm:$0xf] }
 0x5a9   : > { %v7925_v59 = vld [vmem:[#allocation3 + $0x970] sm:$0xf0]  ;;  %v9287_v51 = vld [vmem:[#allocation3 + $0xf74] sm:$0xf0]  ;;  %v8188_v19 = vor.u32 %v9159_v36, %v8187_v41 }
 0x5aa   : > { %6093 = vmatpush.bf16.msra.mxu2 %v8120_v54  ;;  %6068 = vmatpush.bf16.msra.mxu0 %v7032_v10  ;;  %v9214_v49 = vld [vmem:[#allocation3 + $0xd34] sm:$0xf]  ;;  %v7928_v58 = vor.u32 %v9086_v22, %v7925_v59  ;;  %v9015_v37 = vld [vmem:[#allocation3 + $0x6f4] sm:$0xf0] }
 0x5ab   : > { %v8437_v40 = vld [vmem:[#allocation3 + $0xd70] sm:$0xf0]  ;;  %v7035_v17 = vld [vmem:[#allocation3 + $0x238] sm:$0xf] }
 0x5ac   : > { %6106 = vmatpush.bf16.msra.mxu3 %v8632_v26  ;;  %6081 = vmatpush.bf16.msra.mxu1 %v7544_v33  ;;  %v8814_v31 = vld [vmem:[#allocation3 + $0xb4] sm:$0xf]  ;;  %v8440_v63 = vor.u32 %v9214_v49, %v8437_v40  ;;  %v5855_v10 = vpop.f32.mrf.mxu3  ;;  %v8919_v33 = vld [vmem:[#allocation3 + $0x3f4] sm:$0xf0] }
 0x5ad   : > { %v6837_v15 = vld [vmem:[#allocation3 + $0xf0] sm:$0xf0]  ;;  %v7228_v5 = vor.u32 %v8919_v33, %v7227_v9  ;;  %v8887_v49 = vld [vmem:[#allocation3 + $0x2f4] sm:$0xf0] }
 0x5ae   : > { %6094 = vmatpush.bf16.msra.mxu2 %v8056_v14  ;;  %6069 = vmatpush.bf16.msra.mxu0 %v6968_v47  ;;  %v8942_v16 = vld [vmem:[#allocation3 + $0x4b4] sm:$0xf]  ;;  %v6840_v7 = vor.u32 %v8814_v31, %v6837_v15  ;;  %v7739_v14 = vld [vmem:[#allocation3 + $0x7b8] sm:$0xf] }
 0x5af   : > { %v7349_v4 = vld [vmem:[#allocation3 + $0x4f0] sm:$0xf0]  ;;  %v7740_v56 = vor.u32 %v9047_v25, %v7739_v14  ;;  %v7163_v47 = vld [vmem:[#allocation3 + $0x338] sm:$0xf] }
 0x5b0   : > { %6107 = vmatpush.bf16.msra.mxu3 %v8568_v60  ;;  %6082 = vmatpush.bf16.msra.mxu1 %v7480_v46  ;;  %v9070_v13 = vld [vmem:[#allocation3 + $0x8b4] sm:$0xf]  ;;  %v7352_v54 = vor.u32 %v8942_v16, %v7349_v4  ;;  %v8903_v46 = vld [vmem:[#allocation3 + $0x374] sm:$0xf0]  ;;  %v7100_v16 = vor.u32 %v8887_v49, %v7099_v23 }
 0x5b1   : > { %v7861_v11 = vld [vmem:[#allocation3 + $0x8f0] sm:$0xf0]  ;;  %v7164_v22 = vor.u32 %v8903_v46, %v7163_v47  ;;  %v7611_v40 = vld [vmem:[#allocation3 + $0x6b8] sm:$0xf] }
 0x5b2   : > { %6095 = vmatpush.bf16.msra.mxu2 %v7992_v24  ;;  %v9198_v29 = vld [vmem:[#allocation3 + $0xcb4] sm:$0xf]  ;;  %6070 = vmatpush.bf16.msra.mxu0 %v6904_v12  ;;  %v7864_v39 = vor.u32 %v9070_v13, %v7861_v11  ;;  %v7675_v24 = vld [vmem:[#allocation3 + $0x738] sm:$0xf] }
 0x5b3   : > { %v8373_v62 = vld [vmem:[#allocation3 + $0xcf0] sm:$0xf0]  ;;  %v7676_v59 = vor.u32 %v9031_v55, %v7675_v24  ;;  %v8635_v31 = vld [vmem:[#allocation3 + $0xeb8] sm:$0xf] }
 0x5b4   : > { %6108 = vmatpush.bf16.msra.mxu3 %v8504_v1  ;;  %v8798_v6 = vld [vmem:[#allocation3 + $0x34] sm:$0xf]  ;;  %6083 = vmatpush.bf16.msra.mxu1 %v7416_v50  ;;  %v8376_v43 = vor.u32 %v9198_v29, %v8373_v62  ;;  %v8699_v1 = vld [vmem:[#allocation3 + $0xf38] sm:$0xf]  ;;  %v5366_v29 = vperm.slane %v10894_v20, 1 }
 0x5b5   : > { %v6773_v38 = vld [vmem:[#allocation3 + $0x70] sm:$0xf0]  ;;  %v8700_v12 = vor.u32 %v9287_v51, %v8699_v1  ;;  %v8123_v50 = vld [vmem:[#allocation3 + $0xab8] sm:$0xf] }
 0x5b6   : > { %6096 = vmatpush.bf16.msra.mxu2 %v7928_v58  ;;  %v8926_v61 = vld [vmem:[#allocation3 + $0x434] sm:$0xf]  ;;  %6071 = vmatpush.bf16.msra.mxu0 %v6840_v7  ;;  %v6776_v52 = vor.u32 %v8798_v6, %v6773_v38  ;;  %v9143_v58 = vld [vmem:[#allocation3 + $0xaf4] sm:$0xf0] }
 0x5b7   : > { %v7285_v57 = vld [vmem:[#allocation3 + $0x470] sm:$0xf0]  ;;  %v9271_v15 = vld [vmem:[#allocation3 + $0xef4] sm:$0xf0]  ;;  %v8124_v4 = vor.u32 %v9143_v58, %v8123_v50 }
 0x5b8   : > { %v9054_v26 = vld [vmem:[#allocation3 + $0x834] sm:$0xf]  ;;  %6109 = vmatpush.bf16.msra.mxu3 %v8440_v63  ;;  %6084 = vmatpush.bf16.msra.mxu1 %v7352_v54  ;;  %v7288_v48 = vor.u32 %v8926_v61, %v7285_v57  ;;  %v7612_v63 = vor.u32 %v9015_v37, %v7611_v40  ;;  %v8871_v13 = vld [vmem:[#allocation3 + $0x274] sm:$0xf0]  ;;  %v8636_v62 = vor.u32 %v9271_v15, %v8635_v31  ;;  %v5866_v57 = vpop.f32.mrf.mxu0 }
 0x5b9   : > { %v7797_v2 = vld [vmem:[#allocation3 + $0x870] sm:$0xf0]  ;;  %v7547_v11 = vld [vmem:[#allocation3 + $0x638] sm:$0xf]  ;;  %v7036_v61 = vor.u32 %v8871_v13, %v7035_v17 }
 0x5ba   : > { %v9182_v27 = vld [vmem:[#allocation3 + $0xc34] sm:$0xf]  ;;  %6097 = vmatpush.bf16.msra.mxu2 %v7864_v39  ;;  %v7800_v60 = vor.u32 %v9054_v26, %v7797_v2  ;;  %6072 = vmatpush.bf16.msra.mxu0 %v6776_v52  ;;  %v8999_v7 = vld [vmem:[#allocation3 + $0x674] sm:$0xf0]  ;;  %v5879_v2 = vpop.f32.mrf.mxu1  ;;  %v5892_v42 = vpop.f32.mrf.mxu2 }
 0x5bb   : > { %v8309_v30 = vld [vmem:[#allocation3 + $0xc70] sm:$0xf0]  ;;  %v8059_v6 = vld [vmem:[#allocation3 + $0xa38] sm:$0xf]  ;;  %v7548_v26 = vor.u32 %v8999_v7, %v7547_v11 }
 0x5bc   : > { %6110 = vmatpush.bf16.msra.mxu3 %v8376_v43  ;;  %v8312_v0 = vor.u32 %v9182_v27, %v8309_v30  ;;  %6085 = vmatpush.bf16.msra.mxu1 %v7288_v48  ;;  %v9127_v38 = vld [vmem:[#allocation3 + $0xa74] sm:$0xf0]  ;;  %v5867_v43 = vadd.f32 %v5866_v57, %v5366_v29  ;;  %v5905_v46 = vpop.f32.mrf.mxu3 }
 0x5bd   : > { %6073 = vmatmul.bf16.vlgmr.msra.gmra.mxu0 %v10777_v3  ;;  %v8571_v54 = vld [vmem:[#allocation3 + $0xe38] sm:$0xf]  ;;  %v8060_v44 = vor.u32 %v9127_v38, %v8059_v6 }
 0x5be   : > { %6098 = vmatpush.bf16.msra.mxu2 %v7800_v60  ;;  %6117 = vmatpush.bf16.msrb.mxu0 %v7228_v5  ;;  %v9255_v39 = vld [vmem:[#allocation3 + $0xe74] sm:$0xf0]  ;;  %v5880_v25 = vadd.f32 %v5879_v2, %v5867_v43  ;;  %v7229_v43 = vld [vmem:[#allocation3 + $0x3f8] sm:$0xf0] }
 0x5bf   : > { %6086 = vmatmul.bf16.vlgmr.msra.gmra.mxu1 %v10785_v21  ;;  %v6971_v27 = vld [vmem:[#allocation3 + $0x1b8] sm:$0xf]  ;;  %v8572_v9 = vor.u32 %v9255_v39, %v8571_v54  ;;  %v9039_v2 = vld [vmem:[#allocation3 + $0x7bc] sm:$0xf] }
 0x5c0   : > { %6111 = vmatpush.bf16.msra.mxu3 %v8312_v0  ;;  %6130 = vmatpush.bf16.msrb.mxu1 %v7740_v56  ;;  %v8855_v30 = vld [vmem:[#allocation3 + $0x1f4] sm:$0xf0]  ;;  %v5893_v47 = vadd.f32 %v5892_v42, %v5880_v25  ;;  %v8765_v25 = vld [vmem:[#allocation3 + $0xff8] sm:$0xf0] }
 0x5c1   : > { %6099 = vmatmul.bf16.vlgmr.msra.gmra.mxu2 %v10773_v34  ;;  %v7483_v10 = vld [vmem:[#allocation3 + $0x5b8] sm:$0xf]  ;;  %v6972_v48 = vor.u32 %v8855_v30, %v6971_v27  ;;  %v7741_v30 = vld [vmem:[#allocation3 + $0x7f8] sm:$0xf0] }
 0x5c2   : > { %6143 = vmatpush.bf16.msrb.mxu2 %v8252_v18  ;;  %6118 = vmatpush.bf16.msrb.mxu0 %v7164_v22  ;;  %v8983_v33 = vld [vmem:[#allocation3 + $0x5f4] sm:$0xf0]  ;;  %v5906_v1 = vadd.f32 %v5905_v46, %v5893_v47  ;;  %v5881_v37 = vpop.f32.mrf.mxu1  ;;  %v5894_v54 = vpop.f32.mrf.mxu2  ;;  %v7165_v42 = vld [vmem:[#allocation3 + $0x378] sm:$0xf0] }
 0x5c3   : > { %6112 = vmatmul.bf16.vlgmr.msra.gmra.mxu3 %v10781_v35  ;;  %v7995_v14 = vld [vmem:[#allocation3 + $0x9b8] sm:$0xf]  ;;  %v7484_v60 = vor.u32 %v8983_v33, %v7483_v10  ;;  %v9167_v10 = vld [vmem:[#allocation3 + $0xbbc] sm:$0xf] }
 0x5c4   : > { %6156 = vmatpush.bf16.msrb.mxu3 %v8764_v45  ;;  %6131 = vmatpush.bf16.msrb.mxu1 %v7676_v59  ;;  %v9111_v52 = vld [vmem:[#allocation3 + $0x9f4] sm:$0xf0]  ;;  %v5868_v59 = vpop.f32.mrf.mxu0  ;;  %v6244_v50 = vrot.slane %v5906_v1, 7  ;;  %v8189_v47 = vld [vmem:[#allocation3 + $0xb78] sm:$0xf0] }
 0x5c5   : > { %v8507_v28 = vld [vmem:[#allocation3 + $0xdb8] sm:$0xf]  ;;  %v7996_v53 = vor.u32 %v9111_v52, %v7995_v14  ;;  %v9295_v52 = vld [vmem:[#allocation3 + $0xfbc] sm:$0xf] }
 0x5c6   : > { %6144 = vmatpush.bf16.msrb.mxu2 %v8188_v19  ;;  %6119 = vmatpush.bf16.msrb.mxu0 %v7100_v16  ;;  %v9239_v32 = vld [vmem:[#allocation3 + $0xdf4] sm:$0xf0]  ;;  %v9279_v46 = vld [vmem:[#allocation3 + $0xf3c] sm:$0xf] }
 0x5c7   : > { %v6907_v0 = vld [vmem:[#allocation3 + $0x138] sm:$0xf]  ;;  %v8508_v18 = vor.u32 %v9239_v32, %v8507_v28  ;;  %v7101_v1 = vld [vmem:[#allocation3 + $0x2f8] sm:$0xf0] }
 0x5c8   : > { %6157 = vmatpush.bf16.msrb.mxu3 %v8700_v12  ;;  %6132 = vmatpush.bf16.msrb.mxu1 %v7612_v63  ;;  %v8839_v5 = vld [vmem:[#allocation3 + $0x174] sm:$0xf0]  ;;  %v10909_v63 = vsel %vm6251_vm2, %v10900_v8, %v6244_v50  ;;  %v8911_v8 = vld [vmem:[#allocation3 + $0x3bc] sm:$0xf] }
 0x5c9   : > { %v7419_v56 = vld [vmem:[#allocation3 + $0x538] sm:$0xf]  ;;  %v6908_v51 = vor.u32 %v8839_v5, %v6907_v0  ;;  %v7232_v32 = vor.u32 %v8911_v8, %v7229_v43  ;;  %v9023_v0 = vld [vmem:[#allocation3 + $0x73c] sm:$0xf]  ;;  %v8768_v5 = vor.u32 %v9295_v52, %v8765_v25 }
 0x5ca   : > { %6145 = vmatpush.bf16.msrb.mxu2 %v8124_v4  ;;  %6120 = vmatpush.bf16.msrb.mxu0 %v7036_v61  ;;  %v8967_v24 = vld [vmem:[#allocation3 + $0x574] sm:$0xf0]  ;;  %v7613_v59 = vld [vmem:[#allocation3 + $0x6f8] sm:$0xf0] }
 0x5cb   : > { %v7931_v45 = vld [vmem:[#allocation3 + $0x938] sm:$0xf]  ;;  %v7420_v19 = vor.u32 %v8967_v24, %v7419_v56  ;;  %v7677_v56 = vld [vmem:[#allocation3 + $0x778] sm:$0xf0] }
 0x5cc   : > { %6158 = vmatpush.bf16.msrb.mxu3 %v8636_v62  ;;  %6133 = vmatpush.bf16.msrb.mxu1 %v7548_v26  ;;  %v9095_v55 = vld [vmem:[#allocation3 + $0x974] sm:$0xf0]  ;;  %v8701_v24 = vld [vmem:[#allocation3 + $0xf78] sm:$0xf0] }
 0x5cd   : > { %v8443_v41 = vld [vmem:[#allocation3 + $0xd38] sm:$0xf]  ;;  %v7932_v23 = vor.u32 %v9095_v55, %v7931_v45  ;;  %v7680_v55 = vor.u32 %v9023_v0, %v7677_v56  ;;  %v8863_v37 = vld [vmem:[#allocation3 + $0x23c] sm:$0xf] }
 0x5ce   : > { %6146 = vmatpush.bf16.msrb.mxu2 %v8060_v44  ;;  %v9223_v36 = vld [vmem:[#allocation3 + $0xd74] sm:$0xf0]  ;;  %6121 = vmatpush.bf16.msrb.mxu0 %v6972_v48  ;;  %v5907_v44 = vpop.f32.mrf.mxu3  ;;  %v7744_v48 = vor.u32 %v9039_v2, %v7741_v30  ;;  %v7485_v43 = vld [vmem:[#allocation3 + $0x5f8] sm:$0xf0] }
 0x5cf   : > { %v6843_v22 = vld [vmem:[#allocation3 + $0xb8] sm:$0xf]  ;;  %v8444_v58 = vor.u32 %v9223_v36, %v8443_v41  ;;  %v8879_v36 = vld [vmem:[#allocation3 + $0x2bc] sm:$0xf] }
 0x5d0   : > { %6159 = vmatpush.bf16.msrb.mxu3 %v8572_v9  ;;  %6134 = vmatpush.bf16.msrb.mxu1 %v7484_v60  ;;  %v8823_v49 = vld [vmem:[#allocation3 + $0xf4] sm:$0xf0]  ;;  %v8253_v9 = vld [vmem:[#allocation3 + $0xbf8] sm:$0xf0] }
 0x5d1   : > { %v7355_v40 = vld [vmem:[#allocation3 + $0x4b8] sm:$0xf]  ;;  %v6844_v4 = vor.u32 %v8823_v49, %v6843_v22  ;;  %v8256_v60 = vor.u32 %v9167_v10, %v8253_v9  ;;  %v8704_v22 = vor.u32 %v9279_v46, %v8701_v24  ;;  %v9263_v49 = vld [vmem:[#allocation3 + $0xebc] sm:$0xf] }
 0x5d2   : > { %6147 = vmatpush.bf16.msrb.mxu2 %v7996_v53  ;;  %v8951_v12 = vld [vmem:[#allocation3 + $0x4f4] sm:$0xf0]  ;;  %6122 = vmatpush.bf16.msrb.mxu0 %v6908_v51  ;;  %v8895_v53 = vld [vmem:[#allocation3 + $0x33c] sm:$0xf] }
 0x5d3   : > { %v7867_v31 = vld [vmem:[#allocation3 + $0x8b8] sm:$0xf]  ;;  %v7356_v29 = vor.u32 %v8951_v12, %v7355_v40  ;;  %v7168_v45 = vor.u32 %v8895_v53, %v7165_v42  ;;  %v9007_v51 = vld [vmem:[#allocation3 + $0x6bc] sm:$0xf]  ;;  %v7104_v12 = vor.u32 %v8879_v36, %v7101_v1  ;;  %v5931_v44 = vpop.f32.mrf.mxu1 }
 0x5d4   : > { %6160 = vmatpush.bf16.msrb.mxu3 %v8508_v18  ;;  %v9079_v15 = vld [vmem:[#allocation3 + $0x8f4] sm:$0xf0]  ;;  %6135 = vmatpush.bf16.msrb.mxu1 %v7420_v19  ;;  %v9151_v18 = vld [vmem:[#allocation3 + $0xb3c] sm:$0xf]  ;;  %v7616_v50 = vor.u32 %v9007_v51, %v7613_v59 }
 0x5d5   : > { %v8379_v16 = vld [vmem:[#allocation3 + $0xcb8] sm:$0xf]  ;;  %v7868_v62 = vor.u32 %v9079_v15, %v7867_v31  ;;  %v8192_v41 = vor.u32 %v9151_v18, %v8189_v47  ;;  %v9135_v19 = vld [vmem:[#allocation3 + $0xabc] sm:$0xf] }
 0x5d6   : > { %v9207_v17 = vld [vmem:[#allocation3 + $0xcf4] sm:$0xf0]  ;;  %6148 = vmatpush.bf16.msrb.mxu2 %v7932_v23  ;;  %6123 = vmatpush.bf16.msrb.mxu0 %v6844_v4  ;;  %v8125_v23 = vld [vmem:[#allocation3 + $0xaf8] sm:$0xf0] }
 0x5d7   : > { %v6779_v13 = vld [vmem:[#allocation3 + $0x38] sm:$0xf]  ;;  %v8380_v39 = vor.u32 %v9207_v17, %v8379_v16  ;;  %v8637_v40 = vld [vmem:[#allocation3 + $0xef8] sm:$0xf0]  ;;  %v5367_v16 = vperm.slane %v10894_v20, 2 }
 0x5d8   : > { %v8807_v11 = vld [vmem:[#allocation3 + $0x74] sm:$0xf0]  ;;  %6161 = vmatpush.bf16.msrb.mxu3 %v8444_v58  ;;  %6136 = vmatpush.bf16.msrb.mxu1 %v7356_v29  ;;  %v8128_v58 = vor.u32 %v9135_v19, %v8125_v23  ;;  %v7037_v31 = vld [vmem:[#allocation3 + $0x278] sm:$0xf0]  ;;  %v8640_v17 = vor.u32 %v9263_v49, %v8637_v40 }
 0x5d9   : > { %v7291_v7 = vld [vmem:[#allocation3 + $0x438] sm:$0xf]  ;;  %v6780_v27 = vor.u32 %v8807_v11, %v6779_v13  ;;  %v8991_v15 = vld [vmem:[#allocation3 + $0x63c] sm:$0xf] }
 0x5da   : > { %v8935_v6 = vld [vmem:[#allocation3 + $0x474] sm:$0xf0]  ;;  %6149 = vmatpush.bf16.msrb.mxu2 %v7868_v62  ;;  %v7549_v4 = vld [vmem:[#allocation3 + $0x678] sm:$0xf0] }
 0x5db   : > { %v7803_v38 = vld [vmem:[#allocation3 + $0x838] sm:$0xf]  ;;  %v7292_v33 = vor.u32 %v8935_v6, %v7291_v7  ;;  %6124 = vmatpush.bf16.msrb.mxu0 %v6780_v27  ;;  %v9119_v13 = vld [vmem:[#allocation3 + $0xa3c] sm:$0xf]  ;;  %v7040_v7 = vor.u32 %v8863_v37, %v7037_v31  ;;  %v5918_v6 = vpop.f32.mrf.mxu0 }
 0x5dc   : > { %v9063_v61 = vld [vmem:[#allocation3 + $0x874] sm:$0xf0]  ;;  %6162 = vmatpush.bf16.msrb.mxu3 %v8380_v39  ;;  %v8061_v11 = vld [vmem:[#allocation3 + $0xa78] sm:$0xf0] }
 0x5dd   : > { %v8315_v57 = vld [vmem:[#allocation3 + $0xc38] sm:$0xf]  ;;  %v7804_v14 = vor.u32 %v9063_v61, %v7803_v38  ;;  %6137 = vmatpush.bf16.msrb.mxu1 %v7292_v33  ;;  %v9247_v29 = vld [vmem:[#allocation3 + $0xe3c] sm:$0xf]  ;;  %v7552_v38 = vor.u32 %v8991_v15, %v7549_v4  ;;  %v8064_v54 = vor.u32 %v9119_v13, %v8061_v11  ;;  %v5957_v56 = vpop.f32.mrf.mxu3 }
 0x5de   : > { %v9191_v26 = vld [vmem:[#allocation3 + $0xc74] sm:$0xf0]  ;;  %6125 = vmatmul.bf16.vlgmr.msrb.gmra.mxu0 %v10777_v3  ;;  %v8573_v62 = vld [vmem:[#allocation3 + $0xe78] sm:$0xf0] }
 0x5df   : > { %v8316_v28 = vor.u32 %v9191_v26, %v8315_v57  ;;  %6150 = vmatpush.bf16.msrb.mxu2 %v7804_v14  ;;  %6169 = vmatpush.bf16.msra.mxu0 %v7232_v32  ;;  %v8847_v39 = vld [vmem:[#allocation3 + $0x1bc] sm:$0xf]  ;;  %v5919_v26 = vadd.f32 %v5918_v6, %v5367_v16  ;;  %v8576_v8 = vor.u32 %v9247_v29, %v8573_v62 }
 0x5e0   : > { %6138 = vmatmul.bf16.vlgmr.msrb.gmra.mxu1 %v10785_v21  ;;  %v6973_v61 = vld [vmem:[#allocation3 + $0x1f8] sm:$0xf0] }
 0x5e1   : > { %6163 = vmatpush.bf16.msrb.mxu3 %v8316_v28  ;;  %6182 = vmatpush.bf16.msra.mxu1 %v7744_v48  ;;  %v8975_v57 = vld [vmem:[#allocation3 + $0x5bc] sm:$0xf]  ;;  %v5932_v9 = vadd.f32 %v5931_v44, %v5919_v26  ;;  %v6976_v33 = vor.u32 %v8847_v39, %v6973_v61  ;;  %v5944_v48 = vpop.f32.mrf.mxu2 }
 0x5e2   : > { %6151 = vmatmul.bf16.vlgmr.msrb.gmra.mxu2 %v10773_v34  ;;  %v9103_v2 = vld [vmem:[#allocation3 + $0x9bc] sm:$0xf]  ;;  %v7488_v14 = vor.u32 %v8975_v57, %v7485_v43  ;;  %v5368_v57 = vperm.slane %v10894_v20, 3 }
 0x5e3   : > { %6195 = vmatpush.bf16.msra.mxu2 %v8256_v60  ;;  %6170 = vmatpush.bf16.msra.mxu0 %v7168_v45  ;;  %v7997_v27 = vld [vmem:[#allocation3 + $0x9f8] sm:$0xf0]  ;;  %v5920_v45 = vpop.f32.mrf.mxu0 }
 0x5e4   : > { %6164 = vmatmul.bf16.vlgmr.msrb.gmra.mxu3 %v10781_v35  ;;  %v9231_v30 = vld [vmem:[#allocation3 + $0xdbc] sm:$0xf]  ;;  %v8000_v52 = vor.u32 %v9103_v2, %v7997_v27 }
 0x5e5   : > { %6208 = vmatpush.bf16.msra.mxu3 %v8768_v5  ;;  %6183 = vmatpush.bf16.msra.mxu1 %v7680_v55  ;;  %v8509_v10 = vld [vmem:[#allocation3 + $0xdf8] sm:$0xf0]  ;;  %v5945_v5 = vadd.f32 %v5944_v48, %v5932_v9  ;;  %v5959_v62 = vpop.f32.mrf.mxu3 }
 0x5e6   : > { %v8831_v25 = vld [vmem:[#allocation3 + $0x13c] sm:$0xf]  ;;  %v8512_v60 = vor.u32 %v9231_v30, %v8509_v10 }
 0x5e7   : > { %6196 = vmatpush.bf16.msra.mxu2 %v8192_v41  ;;  %6171 = vmatpush.bf16.msra.mxu0 %v7104_v12  ;;  %v6909_v28 = vld [vmem:[#allocation3 + $0x178] sm:$0xf0]  ;;  %v10916_v24 = vadd.f32 %v5957_v56, %v5945_v5 }
 0x5e8   : > { %v8959_v32 = vld [vmem:[#allocation3 + $0x53c] sm:$0xf]  ;;  %v6912_v46 = vor.u32 %v8831_v25, %v6909_v28  ;;  %v5369_v25 = vperm.slane %v10894_v20, 4 }
 0x5e9   : > { %6209 = vmatpush.bf16.msra.mxu3 %v8704_v22  ;;  %6184 = vmatpush.bf16.msra.mxu1 %v7616_v50  ;;  %v7421_v53 = vld [vmem:[#allocation3 + $0x578] sm:$0xf0]  ;;  %v5933_v22 = vpop.f32.mrf.mxu1 }
 0x5ea   : > { %v9087_v42 = vld [vmem:[#allocation3 + $0x93c] sm:$0xf]  ;;  %v7424_v55 = vor.u32 %v8959_v32, %v7421_v53 }
 0x5eb   : > { %6197 = vmatpush.bf16.msra.mxu2 %v8128_v58  ;;  %6172 = vmatpush.bf16.msra.mxu0 %v7040_v7  ;;  %v7933_v0 = vld [vmem:[#allocation3 + $0x978] sm:$0xf0] }
 0x5ec   : > { %v9215_v18 = vld [vmem:[#allocation3 + $0xd3c] sm:$0xf]  ;;  %v7936_v41 = vor.u32 %v9087_v42, %v7933_v0 }
 0x5ed   : > { %6210 = vmatpush.bf16.msra.mxu3 %v8640_v17  ;;  %6185 = vmatpush.bf16.msra.mxu1 %v7552_v38  ;;  %v8445_v47 = vld [vmem:[#allocation3 + $0xd78] sm:$0xf0]  ;;  %v5946_v17 = vpop.f32.mrf.mxu2 }
 0x5ee   : > { %v8815_v36 = vld [vmem:[#allocation3 + $0xbc] sm:$0xf]  ;;  %v8448_v59 = vor.u32 %v9215_v18, %v8445_v47 }
 0x5ef   : > { %6198 = vmatpush.bf16.msra.mxu2 %v8064_v54  ;;  %6173 = vmatpush.bf16.msra.mxu0 %v6976_v33  ;;  %v6845_v1 = vld [vmem:[#allocation3 + $0xf8] sm:$0xf0] }
 0x5f0   : > { %v8943_v51 = vld [vmem:[#allocation3 + $0x4bc] sm:$0xf]  ;;  %v6848_v37 = vor.u32 %v8815_v36, %v6845_v1 }
 0x5f1   : > { %6211 = vmatpush.bf16.msra.mxu3 %v8576_v8  ;;  %6186 = vmatpush.bf16.msra.mxu1 %v7488_v14  ;;  %v7357_v19 = vld [vmem:[#allocation3 + $0x4f8] sm:$0xf0] }
 0x5f2   : > { %v9071_v23 = vld [vmem:[#allocation3 + $0x8bc] sm:$0xf]  ;;  %v7360_v50 = vor.u32 %v8943_v51, %v7357_v19 }
 0x5f3   : > { %6199 = vmatpush.bf16.msra.mxu2 %v8000_v52  ;;  %v7869_v49 = vld [vmem:[#allocation3 + $0x8f8] sm:$0xf0]  ;;  %6174 = vmatpush.bf16.msra.mxu0 %v6912_v46 }
 0x5f4   : > { %v9199_v40 = vld [vmem:[#allocation3 + $0xcbc] sm:$0xf]  ;;  %v7872_v58 = vor.u32 %v9071_v23, %v7869_v49 }
 0x5f5   : > { %6212 = vmatpush.bf16.msra.mxu3 %v8512_v60  ;;  %v8381_v12 = vld [vmem:[#allocation3 + $0xcf8] sm:$0xf0]  ;;  %6187 = vmatpush.bf16.msra.mxu1 %v7424_v55  ;;  %v5970_v26 = vpop.f32.mrf.mxu0 }
 0x5f6   : > { %v8799_v31 = vld [vmem:[#allocation3 + $0x3c] sm:$0xf]  ;;  %v8384_v4 = vor.u32 %v9199_v40, %v8381_v12  ;;  %v5971_v44 = vadd.f32 %v5970_v26, %v5368_v57 }
 0x5f7   : > { %6200 = vmatpush.bf16.msra.mxu2 %v7936_v41  ;;  %v6781_v15 = vld [vmem:[#allocation3 + $0x78] sm:$0xf0]  ;;  %6175 = vmatpush.bf16.msra.mxu0 %v6848_v37  ;;  %v5983_v8 = vpop.f32.mrf.mxu1 }
 0x5f8   : > { %v8927_v16 = vld [vmem:[#allocation3 + $0x43c] sm:$0xf]  ;;  %v6784_v38 = vor.u32 %v8799_v31, %v6781_v15  ;;  %v5984_v43 = vadd.f32 %v5983_v8, %v5971_v44 }
 0x5f9   : > { %6213 = vmatpush.bf16.msra.mxu3 %v8448_v59  ;;  %v7293_v13 = vld [vmem:[#allocation3 + $0x478] sm:$0xf0]  ;;  %6188 = vmatpush.bf16.msra.mxu1 %v7360_v50  ;;  %v5370_v50 = vperm.slane %v10894_v20, 5 }
 0x5fa   : > { %v9055_v11 = vld [vmem:[#allocation3 + $0x83c] sm:$0xf]  ;;  %v7296_v54 = vor.u32 %v8927_v16, %v7293_v13  ;;  %v5372_v16 = vperm.slane %v10894_v20, 7 }
 0x5fb   : > { %v7805_v29 = vld [vmem:[#allocation3 + $0x878] sm:$0xf0]  ;;  %6201 = vmatpush.bf16.msra.mxu2 %v7872_v58  ;;  %6176 = vmatpush.bf16.msra.mxu0 %v6784_v38  ;;  %v5371_v58 = vperm.slane %v10894_v20, 6 }
 0x5fc   : > { %v9183_v7 = vld [vmem:[#allocation3 + $0xc3c] sm:$0xf]  ;;  %v7808_v39 = vor.u32 %v9055_v11, %v7805_v29 }
 0x5fd   : > { %v8317_v6 = vld [vmem:[#allocation3 + $0xc78] sm:$0xf0]  ;;  %6214 = vmatpush.bf16.msra.mxu3 %v8384_v4  ;;  %6189 = vmatpush.bf16.msra.mxu1 %v7296_v54  ;;  %v5972_v9 = vpop.f32.mrf.mxu0 }
 0x5fe   : > { %v8320_v61 = vor.u32 %v9183_v7, %v8317_v6  ;;  %6177 = vmatmul.bf16.vlgmr.msra.gmra.mxu0 %v10777_v3  ;;  %v6245_v3 = vrot.slane %v10916_v24, 6 }
 0x5ff   : > { %6202 = vmatpush.bf16.msra.mxu2 %v7808_v39  ;;  %v5996_v2 = vpop.f32.mrf.mxu2  ;;  %v5985_v33 = vpop.f32.mrf.mxu1 }
 0x600   : > { %6190 = vmatmul.bf16.vlgmr.msra.gmra.mxu1 %v10785_v21  ;;  %v5997_v27 = vadd.f32 %v5996_v2, %v5984_v43 }
 0x601   : > { %6215 = vmatpush.bf16.msra.mxu3 %v8320_v61  ;;  %v6009_v30 = vpop.f32.mrf.mxu3 }
 0x602   : > { %6203 = vmatmul.bf16.vlgmr.msra.gmra.mxu2 %v10773_v34  ;;  %v6010_v10 = vadd.f32 %v6009_v30, %v5997_v27 }
 0x604   : > { %6216 = vmatmul.bf16.vlgmr.msra.gmra.mxu3 %v10781_v35  ;;  %v6246_v14 = vrot.slane %v6010_v10, 5 }
 0x606   : > { %v6266_v21 = vsel %vm6253_vm3, %v6245_v3, %v6246_v14 }
 0x607   : > { %v6267_v34 = vsel %vm6255_vm4, %v10909_v63, %v6266_v21  ;;  %v5998_v35 = vpop.f32.mrf.mxu2 }
 0x609   : > { %v6011_v52 = vpop.f32.mrf.mxu3 }
 0x61a   : > { %v6022_v28 = vpop.f32.mrf.mxu0 }
 0x61b   : > { %v6023_v32 = vadd.f32 %v6022_v28, %v5369_v25 }
 0x61c   : > { %v6035_v48 = vpop.f32.mrf.mxu1 }
 0x61d   : > { %v6036_v60 = vadd.f32 %v6035_v48, %v6023_v32 }
 0x622   : > { %v6024_v56 = vpop.f32.mrf.mxu0 }
 0x624   : > { %v6048_v53 = vpop.f32.mrf.mxu2  ;;  %v6037_v18 = vpop.f32.mrf.mxu1 }
 0x625   : > { %v6049_v42 = vadd.f32 %v6048_v53, %v6036_v60 }
 0x626   : > { %v6061_v0 = vpop.f32.mrf.mxu3 }
 0x627   : > { %v6062_v5 = vadd.f32 %v6061_v0, %v6049_v42 }
 0x629   : > { %v6247_v2 = vrot.slane %v6062_v5, 4 }
 0x62c   : > { %v6050_v47 = vpop.f32.mrf.mxu2 }
 0x62e   : > { %v6063_v46 = vpop.f32.mrf.mxu3 }
 0x63a   : > { %v6074_v24 = vpop.f32.mrf.mxu0 }
 0x63b   : > { %v6075_v31 = vadd.f32 %v6074_v24, %v5370_v50 }
 0x63c   : > { %v6087_v45 = vpop.f32.mrf.mxu1 }
 0x63d   : > { %v6088_v17 = vadd.f32 %v6087_v45, %v6075_v31 }
 0x642   : > { %v6076_v41 = vpop.f32.mrf.mxu0 }
 0x644   : > { %v6100_v55 = vpop.f32.mrf.mxu2  ;;  %v6089_v36 = vpop.f32.mrf.mxu1 }
 0x645   : > { %v6101_v62 = vadd.f32 %v6100_v55, %v6088_v17 }
 0x646   : > { %v6113_v63 = vpop.f32.mrf.mxu3 }
 0x647   : > { %v6114_v38 = vadd.f32 %v6113_v63, %v6101_v62 }
 0x649   : > { %v6248_v8 = vrot.slane %v6114_v38, 3 }
 0x64b   : > { %v6268_v30 = vsel %vm6257_vm5, %v6247_v2, %v6248_v8 }
 0x64c   : > { %v6102_v1 = vpop.f32.mrf.mxu2 }
 0x64e   : > { %v6115_v51 = vpop.f32.mrf.mxu3 }
 0x65b   : > { %v6126_v22 = vpop.f32.mrf.mxu0 }
 0x65c   : > { %v6127_v15 = vadd.f32 %v6126_v22, %v5371_v58 }
 0x65d   : > { %v6139_v59 = vpop.f32.mrf.mxu1 }
 0x65e   : > { %v6140_v4 = vadd.f32 %v6139_v59, %v6127_v15 }
 0x663   : > { %v6128_v49 = vpop.f32.mrf.mxu0 }
 0x665   : > { %v6152_v19 = vpop.f32.mrf.mxu2  ;;  %v6141_v40 = vpop.f32.mrf.mxu1 }
 0x666   : > { %v6153_v7 = vadd.f32 %v6152_v19, %v6140_v4 }
 0x667   : > { %v6165_v23 = vpop.f32.mrf.mxu3 }
 0x668   : > { %v6166_v39 = vadd.f32 %v6165_v23, %v6153_v7 }
 0x66a   : > { %v6249_v27 = vrot.slane %v6166_v39, 2 }
 0x66d   : > { %v6154_v12 = vpop.f32.mrf.mxu2 }
 0x66f   : > { %v6167_v37 = vpop.f32.mrf.mxu3 }
 0x67b   : > { %v6178_v13 = vpop.f32.mrf.mxu0 }
 0x67c   : > { %v6179_v11 = vadd.f32 %v6178_v13, %v5372_v16 }
 0x67d   : > { %v6191_v29 = vpop.f32.mrf.mxu1 }
 0x67e   : > { %v6192_v6 = vadd.f32 %v6191_v29, %v6179_v11 }
 0x683   : > { %v6180_v26 = vpop.f32.mrf.mxu0 }
 0x685   : > { %v6204_v54 = vpop.f32.mrf.mxu2  ;;  %v6193_v44 = vpop.f32.mrf.mxu1 }
 0x686   : > { %v6205_v61 = vadd.f32 %v6204_v54, %v6192_v6 }
 0x687   : > { %v6217_v57 = vpop.f32.mrf.mxu3 }
 0x688   : > { %v6218_v43 = vadd.f32 %v6217_v57, %v6205_v61 }
 0x68a   : > { %v6250_v20 = vrot.slane %v6218_v43, 1 }
 0x68c   : > { %v6269_v10 = vsel %vm6259_vm6, %v6249_v27, %v6250_v20 }
 0x68d   : > { %v6270_v9 = vsel %vm6261_vm7, %v6268_v30, %v6269_v10  ;;  %v6206_v33 = vpop.f32.mrf.mxu2 }
 0x68e   : > { %v6271_v3 = vsel %vm6263_vm8, %v6267_v34, %v6270_v9 }
 0x68f   : > { %v6219_v14 = vpop.f32.mrf.mxu3  ;;  %6275 = vst [vmem:[#allocation13 + $0x8] sm:$0xff] %v6271_v3 }
 0x690 PF: > { %p9339_p8 = scmp.eq.s32.totalorder %s9676_s25, 2  ;;  %s9621_s12 = smov [#allocation13]  }
 0x691   : > { %s6282_s16 = sshll.u32 %s9621_s12, 4  ;;  %s6284_s5 = sshll.u32 %s10958_s6, 4  ;;  %s6283_s16 = int_to_ptr.vmem [resolvable:$true] %s6282_s16  ;;  %s6285_s5 = int_to_ptr.hbm [resolvable:$true] %s6284_s5 }
 0x692   : > { %9317 = dma.vmem_to_hbm [thread:$0]  (%p9339_p8), %s6283_s16, 256, %s6285_s5, [#allocation7]  }
 0x693   : > { %9593 = dma.done.wait (%p9339_p8), [#allocation7], 256  }
 0x694   : > { %9595 = vsyncadd (%p9339_p8), [#allocation7], 4294967040 }
 0x695 PF: > { %p21_p9 = scmp.ge.s32.totalorder %s9679_s26, 5   ;;  %s10993_s21 = smov %s9602_s22 }
 0x696   : > { %s10994_s22 = smov %s9606_s23  ;;  %s10995_s23 = smov %s9689_s29 }
 0x697   : > { %s10996_s24 = smov %s9679_s26  ;;  %23 = sbr.rel (!%p21_p9) target bundleno = 11 (0xb), region = 110 }
 0x69c   :  { %6298 = vsyncpa [#allocation6], 1 }
 0x69d   :  { %6300 = vsyncpa [#allocation6 + $0x1], 1 }
 0x69e   :  { %6301 = vsyncpa [#allocation9], 1 }
 0x69f   :  { %6303 = vsyncpa [#allocation9 + $0x1], 1 }
 0x6a0   :  { %6304 = vsyncpa [#allocation12], 1 }
 0x6a1   :  { %6305 = vsyncpa [#allocation7], 1 }
 0x6a2   :  { %6307 = vsyncpa [#allocation7 + $0x1], 1 }
 0x6a3   :  { %6308 = vsyncmov [#allocation4] }
 0x6a6   :  { %s6309_s25 = vpop.sfrf %6308 }
 0x6a7   :  { %p8773_p10 = scmp.ne.s32.totalorder %s6309_s25, 0 }
 0x6a9   :  { %6313 = shalt.err (%p8773_p10)  }

</bundles_post_ra>
